<compile_context>
chip_gen: v5e
topology: v5e:2x2
jax: 0.10.0
libtpu: 0.0.40
codegen_flags: <defaults>
</compile_context>

<pallas_src>
import jax
import jax.numpy as jnp
from jax import lax
from jax.experimental import pallas as pl
from jax.experimental.pallas import tpu as pltpu


# ---------------------------------------------------------------------------
# LSTM cell math
# ---------------------------------------------------------------------------
def _sigmoid_tanh(x):
    # Exact identity sigmoid(x) == 0.5*(tanh(0.5*x)+1); costs 1 EUP push
    # instead of 2 (exp + reciprocal) inside the kernel.
    return 0.5 * (jnp.tanh(0.5 * x) + 1.0)


def _cell_update(gates, c, H, sigmoid=jax.nn.sigmoid):
    """PyTorch-semantics LSTM gate nonlinearity. gates:(B,4H), c:(B,H)."""
    i = sigmoid(gates[:, 0 * H:1 * H])
    f = sigmoid(gates[:, 1 * H:2 * H])
    g = jnp.tanh(gates[:, 2 * H:3 * H])
    o = sigmoid(gates[:, 3 * H:4 * H])
    c_new = f * c + i * g
    h_new = o * jnp.tanh(c_new)
    return h_new, c_new


# ---------------------------------------------------------------------------
# Pallas kernel: single invocation, whole sequence resident in VMEM
# ---------------------------------------------------------------------------
def _nem_lstm_kernel(xp_ref, whh0_ref, w1_ref, b1_ref, h1_ref):
    """
    xp_ref  : (T, Bp, 4*Hp) f32  -- hoisted input projection X@W_ih0 + b0
    whh0_ref: (Hp, 4*Hp)    bf16 -- layer-0 recurrent weights (gate-aligned)
    w1_ref  : (2*Hp, 4*Hp)  bf16 -- layer-1 fused [W_ih1; W_hh1]
    b1_ref  : (1, 4*Hp)     f32
    h1_ref  : (T, Bp, Hp)   f32  -- layer-1 hidden states for all timesteps
    """
    T, Bp, G = xp_ref.shape
    Hp = G // 4

    zeros = jnp.zeros((Bp, Hp), jnp.float32)
    # Hoist the bias broadcast once (only 4 vregs live; cheap to keep).
    b1b = jnp.broadcast_to(b1_ref[...], (Bp, G))

    def step(t, carry):
        h0, c0, h1, c1 = carry
        # Layer 0: input projection (incl. b0) is precomputed in xp.
        # Weight refs are read inside the loop body (not hoisted) so the
        # (128x512)+(256x512) weights don't occupy vregs across the whole
        # unrolled loop and force spills; bf16 halves the streamed bytes and
        # uses the fast MXU path.
        g0 = xp_ref[t] + jnp.dot(h0.astype(jnp.bfloat16), whh0_ref[...],
                                 preferred_element_type=jnp.float32)
        h0, c0 = _cell_update(g0, c0, Hp, sigmoid=_sigmoid_tanh)

        # Layer 1: single fused MXU push on the serial path.
        # TODO(synk): on v6e/v7x this could stage weights once with
        # pltpu.matmul_push_rhs / matmul_acc_lhs / matmul_pop.
        xh = jnp.concatenate([h0, h1], axis=-1).astype(jnp.bfloat16)  # (Bp, 2Hp)
        g1 = jnp.dot(xh, w1_ref[...], preferred_element_type=jnp.float32) + b1b
        h1, c1 = _cell_update(g1, c1, Hp, sigmoid=_sigmoid_tanh)

        h1_ref[t] = h1
        return h0, c0, h1, c1

    # unroll=True is appropriate for small T; switch to unroll=4/8 if T grows.
    lax.fori_loop(0, T, step, (zeros, zeros, zeros, zeros), unroll=True)


# ---------------------------------------------------------------------------
# Padding helpers (zero padding keeps padded lanes exactly inert)
# ---------------------------------------------------------------------------
def _pad_gate_cols(w, H, Hp):
    """(in_dim, 4H) -> (in_dim, 4Hp): each gate padded to an Hp-lane slot."""
    in_dim = w.shape[0]
    w4 = w.reshape(in_dim, 4, H)
    w4 = jnp.pad(w4, ((0, 0), (0, 0), (0, Hp - H)))
    return w4.reshape(in_dim, 4 * Hp)


def _pad_rows(w, H, Hp):
    return jnp.pad(w, ((0, Hp - H), (0, 0)))


# ---------------------------------------------------------------------------
# Public forward (accepts / returns PyTorch batch_first layout)
# ---------------------------------------------------------------------------
def nem_price_lstm_forward(X, params):
    """X: (B, T, input_size) float32 -> (B, T, output_size) float32."""
    B, T, _ = X.shape
    H = params["w_hh0"].shape[0]
    Hp = ((H + 127) // 128) * 128        # gate-aligned lane tile (128 for H=50)
    Bp = ((B + 7) // 8) * 8              # full sublane tile (8 for B=2)

    # Pad weights so every gate occupies an aligned 128-lane slot; padded
    # rows/cols are zero => padded h/c lanes stay exactly 0 through time
    # (sigmoid(0)*0 terms and o*tanh(0) keep them pinned at 0).
    w_ih0p = _pad_gate_cols(params["w_ih0"], H, Hp)                       # (I, 4Hp)
    w_hh0p = _pad_gate_cols(_pad_rows(params["w_hh0"], H, Hp), H, Hp)     # (Hp, 4Hp)
    b0p = _pad_gate_cols(params["b0"], H, Hp)                             # (1, 4Hp)
    w_ih1p = _pad_gate_cols(_pad_rows(params["w_ih1"], H, Hp), H, Hp)     # (Hp, 4Hp)
    w_hh1p = _pad_gate_cols(_pad_rows(params["w_hh1"], H, Hp), H, Hp)     # (Hp, 4Hp)
    w1p = jnp.concatenate([w_ih1p, w_hh1p], axis=0)                       # (2Hp, 4Hp)
    b1p = _pad_gate_cols(params["b1"], H, Hp)                             # (1, 4Hp)
    w_outp = _pad_rows(params["w_out"], H, Hp)                            # (Hp, O)

    # bf16 MXU operands for the recurrent matmuls (gate/cell math stays f32).
    w_hh0_bf = w_hh0p.astype(jnp.bfloat16)
    w1_bf = w1p.astype(jnp.bfloat16)

    # Hoisted input projection; the batch_first -> time-major transpose is
    # folded into this single batched matmul (no standalone XLA transpose).
    xp = jnp.einsum("bti,ig->tbg", X.astype(jnp.float32), w_ih0p) + b0p   # (T, B, 4Hp)
    xp = jnp.pad(xp, ((0, 0), (0, Bp - B), (0, 0)))                       # (T, Bp, 4Hp)

    # Guard the whole-sequence-in-VMEM design against long T on small-VMEM
    # generations: raise the scoped VMEM limit when the residents get large.
    resident_bytes = (xp.size * 4 + T * Bp * Hp * 4
                      + w_hh0_bf.size * 2 + w1_bf.size * 2 + b1p.size * 4)
    compiler_params = None
    if resident_bytes > 12 * (1 << 20):
        compiler_params = pltpu.CompilerParams(
            vmem_limit_bytes=min(int(resident_bytes * 1.25) + (2 << 20), 60 << 20))

    vmem = lambda: pl.BlockSpec(memory_space=pltpu.MemorySpace.VMEM)
    h1_all = pl.pallas_call(
        _nem_lstm_kernel,
        out_shape=jax.ShapeDtypeStruct((T, Bp, Hp), jnp.float32),
        in_specs=[vmem(), vmem(), vmem(), vmem()],
        out_specs=vmem(),
        compiler_params=compiler_params,
    )(xp, w_hh0_bf, w1_bf, b1p)

    # Linear head + time-major -> batch_first transpose fused in one einsum.
    y = jnp.einsum("tbh,ho->bto", h1_all[:, :B, :], w_outp) + params["b_out"]
    return y


# ---------------------------------------------------------------------------
# Deterministic init matching PyTorch parameter shapes (stored pre-transposed)
# ---------------------------------------------------------------------------
def init_params(key, input_size=128, hidden_size=50, output_size=1):
    H = hidden_size
    k = 1.0 / jnp.sqrt(jnp.asarray(H, jnp.float32))
    keys = jax.random.split(key, 10)
    u = lambda kk, shape: jax.random.uniform(kk, shape, jnp.float32, -k, k)

    # PyTorch stores W_ih:(4H, in), W_hh:(4H, H); we store the transposes.
    w_ih0 = u(keys[0], (input_size, 4 * H))
    w_hh0 = u(keys[1], (H, 4 * H))
    b0 = u(keys[2], (1, 4 * H)) + u(keys[3], (1, 4 * H))      # b_ih0 + b_hh0
    w_ih1 = u(keys[4], (H, 4 * H))
    w_hh1 = u(keys[5], (H, 4 * H))
    b1 = u(keys[6], (1, 4 * H)) + u(keys[7], (1, 4 * H))      # b_ih1 + b_hh1
    w_out = jax.random.uniform(keys[8], (H, output_size), jnp.float32, -k, k)
    b_out = jax.random.uniform(keys[9], (1, output_size), jnp.float32, -k, k)
    return dict(w_ih0=w_ih0, w_hh0=w_hh0, b0=b0,
                w_ih1=w_ih1, w_hh1=w_hh1, b1=b1,
                w_out=w_out, b_out=b_out)


# ---------------------------------------------------------------------------
# Pure-JAX reference with identical PyTorch LSTM semantics (f32, exact sigmoid)
# ---------------------------------------------------------------------------
def reference_forward(X, params):
    B, T, _ = X.shape
    H = params["w_hh0"].shape[0]

    def cell(carry, x_t):
        h0, c0, h1, c1 = carry
        g0 = x_t @ params["w_ih0"] + h0 @ params["w_hh0"] + params["b0"]
        h0, c0 = _cell_update(g0, c0, H)
        g1 = h0 @ params["w_ih1"] + h1 @ params["w_hh1"] + params["b1"]
        h1, c1 = _cell_update(g1, c1, H)
        y = h1 @ params["w_out"] + params["b_out"]
        return (h0, c0, h1, c1), y

    init = tuple(jnp.zeros((B, H), jnp.float32) for _ in range(4))
    _, ys = lax.scan(cell, init, jnp.transpose(X, (1, 0, 2)))
    return jnp.transpose(ys, (1, 0, 2))


if __name__ == "__main__":
    key = jax.random.PRNGKey(0)
    k_param, k_x = jax.random.split(key)

    batch, seq, input_size, hidden_size, output_size = 2, 8, 128, 50, 1
    params = init_params(k_param, input_size, hidden_size, output_size)
    X = jax.random.normal(k_x, (batch, seq, input_size), jnp.float32)

    fwd = jax.jit(nem_price_lstm_forward)
    y = jax.block_until_ready(fwd(X, params))
    assert y.shape == (batch, seq, output_size), y.shape

    y_ref = jax.block_until_ready(reference_forward(X, params))
    # Tolerance reflects bf16 MXU operands for the recurrent matmuls.
    assert jnp.allclose(y, y_ref, rtol=5e-3, atol=5e-3), float(jnp.max(jnp.abs(y - y_ref)))

    print("KERNEL_OK")
</pallas_src>

<mosaic_0001>
module attributes {stable_mosaic.version = 11 : i64} {
  func.func @_nem_lstm_kernel(%arg0: memref<8x8x512xf32, #tpu.memory_space<vmem>>, %arg1: memref<128x512xbf16, #tpu.memory_space<vmem>>, %arg2: memref<256x512xbf16, #tpu.memory_space<vmem>>, %arg3: memref<1x512xf32, #tpu.memory_space<vmem>>, %arg4: memref<8x8x128xf32, #tpu.memory_space<vmem>>) attributes {dimension_semantics = [], scalar_prefetch = 0 : i64, scratch_operands = 0 : i64, tpu.core_type = #tpu.core_type<tc>} {
    %cst = arith.constant 0.000000e+00 : f32
    %0 = vector.broadcast %cst : f32 to vector<8x128xf32>
    %c0 = arith.constant 0 : index
    %c0_0 = arith.constant 0 : index
    %1 = vector.load %arg3[%c0, %c0_0] : memref<1x512xf32, #tpu.memory_space<vmem>>, vector<1x512xf32>
    %2 = vector.shape_cast %1 : vector<1x512xf32> to vector<1x512xf32>
    %3 = vector.broadcast %2 : vector<1x512xf32> to vector<8x512xf32>
    %c0_i32 = arith.constant 0 : i32
    %4 = arith.index_cast %c0_i32 : i32 to index
    %c0_1 = arith.constant 0 : index
    %c0_2 = arith.constant 0 : index
    %5 = vector.load %arg0[%4, %c0_1, %c0_2] : memref<8x8x512xf32, #tpu.memory_space<vmem>>, vector<1x8x512xf32>
    %6 = vector.shape_cast %5 : vector<1x8x512xf32> to vector<8x512xf32>
    %7 = arith.truncf %0 : vector<8x128xf32> to vector<8x128xbf16>
    %c0_3 = arith.constant 0 : index
    %c0_4 = arith.constant 0 : index
    %8 = vector.load %arg1[%c0_3, %c0_4] : memref<128x512xbf16, #tpu.memory_space<vmem>>, vector<128x512xbf16>
    %cst_5 = arith.constant dense<0.000000e+00> : vector<8x512xf32>
    %9 = tpu.matmul %7, %8, %cst_5 {dimension_numbers = #tpu.dot_dimension_numbers<[1], [0], [0], [1], [0, 0, 1, 1], [], []>} : vector<8x128xbf16>, vector<128x512xbf16>, vector<8x512xf32> -> vector<8x512xf32>
    %10 = arith.addf %6, %9 : vector<8x512xf32>
    %11 = vector.extract_strided_slice %10 {offsets = [0, 0], sizes = [8, 128], strides = [1, 1]} : vector<8x512xf32> to vector<8x128xf32>
    %cst_6 = arith.constant 5.000000e-01 : f32
    %12 = vector.broadcast %cst_6 : f32 to vector<8x128xf32>
    %13 = arith.mulf %12, %11 : vector<8x128xf32>
    %14 = math.tanh %13 : vector<8x128xf32>
    %cst_7 = arith.constant 1.000000e+00 : f32
    %15 = vector.broadcast %cst_7 : f32 to vector<8x128xf32>
    %16 = arith.addf %14, %15 : vector<8x128xf32>
    %cst_8 = arith.constant 5.000000e-01 : f32
    %17 = vector.broadcast %cst_8 : f32 to vector<8x128xf32>
    %18 = arith.mulf %17, %16 : vector<8x128xf32>
    %19 = vector.extract_strided_slice %10 {offsets = [0, 128], sizes = [8, 128], strides = [1, 1]} : vector<8x512xf32> to vector<8x128xf32>
    %cst_9 = arith.constant 5.000000e-01 : f32
    %20 = vector.broadcast %cst_9 : f32 to vector<8x128xf32>
    %21 = arith.mulf %20, %19 : vector<8x128xf32>
    %22 = math.tanh %21 : vector<8x128xf32>
    %cst_10 = arith.constant 1.000000e+00 : f32
    %23 = vector.broadcast %cst_10 : f32 to vector<8x128xf32>
    %24 = arith.addf %22, %23 : vector<8x128xf32>
    %cst_11 = arith.constant 5.000000e-01 : f32
    %25 = vector.broadcast %cst_11 : f32 to vector<8x128xf32>
    %26 = arith.mulf %25, %24 : vector<8x128xf32>
    %27 = vector.extract_strided_slice %10 {offsets = [0, 256], sizes = [8, 128], strides = [1, 1]} : vector<8x512xf32> to vector<8x128xf32>
    %28 = math.tanh %27 : vector<8x128xf32>
    %29 = vector.extract_strided_slice %10 {offsets = [0, 384], sizes = [8, 128], strides = [1, 1]} : vector<8x512xf32> to vector<8x128xf32>
    %cst_12 = arith.constant 5.000000e-01 : f32
    %30 = vector.broadcast %cst_12 : f32 to vector<8x128xf32>
    %31 = arith.mulf %30, %29 : vector<8x128xf32>
    %32 = math.tanh %31 : vector<8x128xf32>
    %cst_13 = arith.constant 1.000000e+00 : f32
    %33 = vector.broadcast %cst_13 : f32 to vector<8x128xf32>
    %34 = arith.addf %32, %33 : vector<8x128xf32>
    %cst_14 = arith.constant 5.000000e-01 : f32
    %35 = vector.broadcast %cst_14 : f32 to vector<8x128xf32>
    %36 = arith.mulf %35, %34 : vector<8x128xf32>
    %37 = arith.mulf %26, %0 : vector<8x128xf32>
    %38 = arith.mulf %18, %28 : vector<8x128xf32>
    %39 = arith.addf %37, %38 : vector<8x128xf32>
    %40 = math.tanh %39 : vector<8x128xf32>
    %41 = arith.mulf %36, %40 : vector<8x128xf32>
    %42 = tpu.concatenate %41, %0 in 1 : vector<8x128xf32>, vector<8x128xf32> -> vector<8x256xf32>
    %43 = arith.truncf %42 : vector<8x256xf32> to vector<8x256xbf16>
    %c0_15 = arith.constant 0 : index
    %c0_16 = arith.constant 0 : index
    %44 = vector.load %arg2[%c0_15, %c0_16] : memref<256x512xbf16, #tpu.memory_space<vmem>>, vector<256x512xbf16>
    %cst_17 = arith.constant dense<0.000000e+00> : vector<8x512xf32>
    %45 = tpu.matmul %43, %44, %cst_17 {dimension_numbers = #tpu.dot_dimension_numbers<[1], [0], [0], [1], [0, 0, 1, 1], [], []>} : vector<8x256xbf16>, vector<256x512xbf16>, vector<8x512xf32> -> vector<8x512xf32>
    %46 = arith.addf %45, %3 : vector<8x512xf32>
    %47 = vector.extract_strided_slice %46 {offsets = [0, 0], sizes = [8, 128], strides = [1, 1]} : vector<8x512xf32> to vector<8x128xf32>
    %cst_18 = arith.constant 5.000000e-01 : f32
    %48 = vector.broadcast %cst_18 : f32 to vector<8x128xf32>
    %49 = arith.mulf %48, %47 : vector<8x128xf32>
    %50 = math.tanh %49 : vector<8x128xf32>
    %cst_19 = arith.constant 1.000000e+00 : f32
    %51 = vector.broadcast %cst_19 : f32 to vector<8x128xf32>
    %52 = arith.addf %50, %51 : vector<8x128xf32>
    %cst_20 = arith.constant 5.000000e-01 : f32
    %53 = vector.broadcast %cst_20 : f32 to vector<8x128xf32>
    %54 = arith.mulf %53, %52 : vector<8x128xf32>
    %55 = vector.extract_strided_slice %46 {offsets = [0, 128], sizes = [8, 128], strides = [1, 1]} : vector<8x512xf32> to vector<8x128xf32>
    %cst_21 = arith.constant 5.000000e-01 : f32
    %56 = vector.broadcast %cst_21 : f32 to vector<8x128xf32>
    %57 = arith.mulf %56, %55 : vector<8x128xf32>
    %58 = math.tanh %57 : vector<8x128xf32>
    %cst_22 = arith.constant 1.000000e+00 : f32
    %59 = vector.broadcast %cst_22 : f32 to vector<8x128xf32>
    %60 = arith.addf %58, %59 : vector<8x128xf32>
    %cst_23 = arith.constant 5.000000e-01 : f32
    %61 = vector.broadcast %cst_23 : f32 to vector<8x128xf32>
    %62 = arith.mulf %61, %60 : vector<8x128xf32>
    %63 = vector.extract_strided_slice %46 {offsets = [0, 256], sizes = [8, 128], strides = [1, 1]} : vector<8x512xf32> to vector<8x128xf32>
    %64 = math.tanh %63 : vector<8x128xf32>
    %65 = vector.extract_strided_slice %46 {offsets = [0, 384], sizes = [8, 128], strides = [1, 1]} : vector<8x512xf32> to vector<8x128xf32>
    %cst_24 = arith.constant 5.000000e-01 : f32
    %66 = vector.broadcast %cst_24 : f32 to vector<8x128xf32>
    %67 = arith.mulf %66, %65 : vector<8x128xf32>
    %68 = math.tanh %67 : vector<8x128xf32>
    %cst_25 = arith.constant 1.000000e+00 : f32
    %69 = vector.broadcast %cst_25 : f32 to vector<8x128xf32>
    %70 = arith.addf %68, %69 : vector<8x128xf32>
    %cst_26 = arith.constant 5.000000e-01 : f32
    %71 = vector.broadcast %cst_26 : f32 to vector<8x128xf32>
    %72 = arith.mulf %71, %70 : vector<8x128xf32>
    %73 = arith.mulf %62, %0 : vector<8x128xf32>
    %74 = arith.mulf %54, %64 : vector<8x128xf32>
    %75 = arith.addf %73, %74 : vector<8x128xf32>
    %76 = math.tanh %75 : vector<8x128xf32>
    %77 = arith.mulf %72, %76 : vector<8x128xf32>
    %78 = arith.index_cast %c0_i32 : i32 to index
    %c0_27 = arith.constant 0 : index
    %c0_28 = arith.constant 0 : index
    %79 = vector.load %arg4[%78, %c0_27, %c0_28] : memref<8x8x128xf32, #tpu.memory_space<vmem>>, vector<1x8x128xf32>
    %80 = vector.shape_cast %79 : vector<1x8x128xf32> to vector<8x128xf32>
    %81 = vector.shape_cast %77 : vector<8x128xf32> to vector<1x8x128xf32>
    tpu.vector_store %arg4[%78, %c0_27, %c0_28], %81 {strides = array<i32>} : memref<8x8x128xf32, #tpu.memory_space<vmem>>, vector<1x8x128xf32>,
    %c1_i32 = arith.constant 1 : i32
    %82 = arith.index_cast %c1_i32 : i32 to index
    %c0_29 = arith.constant 0 : index
    %c0_30 = arith.constant 0 : index
    %83 = vector.load %arg0[%82, %c0_29, %c0_30] : memref<8x8x512xf32, #tpu.memory_space<vmem>>, vector<1x8x512xf32>
    %84 = vector.shape_cast %83 : vector<1x8x512xf32> to vector<8x512xf32>
    %85 = arith.truncf %41 : vector<8x128xf32> to vector<8x128xbf16>
    %c0_31 = arith.constant 0 : index
    %c0_32 = arith.constant 0 : index
    %86 = vector.load %arg1[%c0_31, %c0_32] : memref<128x512xbf16, #tpu.memory_space<vmem>>, vector<128x512xbf16>
    %cst_33 = arith.constant dense<0.000000e+00> : vector<8x512xf32>
    %87 = tpu.matmul %85, %86, %cst_33 {dimension_numbers = #tpu.dot_dimension_numbers<[1], [0], [0], [1], [0, 0, 1, 1], [], []>} : vector<8x128xbf16>, vector<128x512xbf16>, vector<8x512xf32> -> vector<8x512xf32>
    %88 = arith.addf %84, %87 : vector<8x512xf32>
    %89 = vector.extract_strided_slice %88 {offsets = [0, 0], sizes = [8, 128], strides = [1, 1]} : vector<8x512xf32> to vector<8x128xf32>
    %cst_34 = arith.constant 5.000000e-01 : f32
    %90 = vector.broadcast %cst_34 : f32 to vector<8x128xf32>
    %91 = arith.mulf %90, %89 : vector<8x128xf32>
    %92 = math.tanh %91 : vector<8x128xf32>
    %cst_35 = arith.constant 1.000000e+00 : f32
    %93 = vector.broadcast %cst_35 : f32 to vector<8x128xf32>
    %94 = arith.addf %92, %93 : vector<8x128xf32>
    %cst_36 = arith.constant 5.000000e-01 : f32
    %95 = vector.broadcast %cst_36 : f32 to vector<8x128xf32>
    %96 = arith.mulf %95, %94 : vector<8x128xf32>
    %97 = vector.extract_strided_slice %88 {offsets = [0, 128], sizes = [8, 128], strides = [1, 1]} : vector<8x512xf32> to vector<8x128xf32>
    %cst_37 = arith.constant 5.000000e-01 : f32
    %98 = vector.broadcast %cst_37 : f32 to vector<8x128xf32>
    %99 = arith.mulf %98, %97 : vector<8x128xf32>
    %100 = math.tanh %99 : vector<8x128xf32>
    %cst_38 = arith.constant 1.000000e+00 : f32
    %101 = vector.broadcast %cst_38 : f32 to vector<8x128xf32>
    %102 = arith.addf %100, %101 : vector<8x128xf32>
    %cst_39 = arith.constant 5.000000e-01 : f32
    %103 = vector.broadcast %cst_39 : f32 to vector<8x128xf32>
    %104 = arith.mulf %103, %102 : vector<8x128xf32>
    %105 = vector.extract_strided_slice %88 {offsets = [0, 256], sizes = [8, 128], strides = [1, 1]} : vector<8x512xf32> to vector<8x128xf32>
    %106 = math.tanh %105 : vector<8x128xf32>
    %107 = vector.extract_strided_slice %88 {offsets = [0, 384], sizes = [8, 128], strides = [1, 1]} : vector<8x512xf32> to vector<8x128xf32>
    %cst_40 = arith.constant 5.000000e-01 : f32
    %108 = vector.broadcast %cst_40 : f32 to vector<8x128xf32>
    %109 = arith.mulf %108, %107 : vector<8x128xf32>
    %110 = math.tanh %109 : vector<8x128xf32>
    %cst_41 = arith.constant 1.000000e+00 : f32
    %111 = vector.broadcast %cst_41 : f32 to vector<8x128xf32>
    %112 = arith.addf %110, %111 : vector<8x128xf32>
    %cst_42 = arith.constant 5.000000e-01 : f32
    %113 = vector.broadcast %cst_42 : f32 to vector<8x128xf32>
    %114 = arith.mulf %113, %112 : vector<8x128xf32>
    %115 = arith.mulf %104, %39 : vector<8x128xf32>
    %116 = arith.mulf %96, %106 : vector<8x128xf32>
    %117 = arith.addf %115, %116 : vector<8x128xf32>
    %118 = math.tanh %117 : vector<8x128xf32>
    %119 = arith.mulf %114, %118 : vector<8x128xf32>
    %120 = tpu.concatenate %119, %77 in 1 : vector<8x128xf32>, vector<8x128xf32> -> vector<8x256xf32>
    %121 = arith.truncf %120 : vector<8x256xf32> to vector<8x256xbf16>
    %c0_43 = arith.constant 0 : index
    %c0_44 = arith.constant 0 : index
    %122 = vector.load %arg2[%c0_43, %c0_44] : memref<256x512xbf16, #tpu.memory_space<vmem>>, vector<256x512xbf16>
    %cst_45 = arith.constant dense<0.000000e+00> : vector<8x512xf32>
    %123 = tpu.matmul %121, %122, %cst_45 {dimension_numbers = #tpu.dot_dimension_numbers<[1], [0], [0], [1], [0, 0, 1, 1], [], []>} : vector<8x256xbf16>, vector<256x512xbf16>, vector<8x512xf32> -> vector<8x512xf32>
    %124 = arith.addf %123, %3 : vector<8x512xf32>
    %125 = vector.extract_strided_slice %124 {offsets = [0, 0], sizes = [8, 128], strides = [1, 1]} : vector<8x512xf32> to vector<8x128xf32>
    %cst_46 = arith.constant 5.000000e-01 : f32
    %126 = vector.broadcast %cst_46 : f32 to vector<8x128xf32>
    %127 = arith.mulf %126, %125 : vector<8x128xf32>
    %128 = math.tanh %127 : vector<8x128xf32>
    %cst_47 = arith.constant 1.000000e+00 : f32
    %129 = vector.broadcast %cst_47 : f32 to vector<8x128xf32>
    %130 = arith.addf %128, %129 : vector<8x128xf32>
    %cst_48 = arith.constant 5.000000e-01 : f32
    %131 = vector.broadcast %cst_48 : f32 to vector<8x128xf32>
    %132 = arith.mulf %131, %130 : vector<8x128xf32>
    %133 = vector.extract_strided_slice %124 {offsets = [0, 128], sizes = [8, 128], strides = [1, 1]} : vector<8x512xf32> to vector<8x128xf32>
    %cst_49 = arith.constant 5.000000e-01 : f32
    %134 = vector.broadcast %cst_49 : f32 to vector<8x128xf32>
    %135 = arith.mulf %134, %133 : vector<8x128xf32>
    %136 = math.tanh %135 : vector<8x128xf32>
    %cst_50 = arith.constant 1.000000e+00 : f32
    %137 = vector.broadcast %cst_50 : f32 to vector<8x128xf32>
    %138 = arith.addf %136, %137 : vector<8x128xf32>
    %cst_51 = arith.constant 5.000000e-01 : f32
    %139 = vector.broadcast %cst_51 : f32 to vector<8x128xf32>
    %140 = arith.mulf %139, %138 : vector<8x128xf32>
    %141 = vector.extract_strided_slice %124 {offsets = [0, 256], sizes = [8, 128], strides = [1, 1]} : vector<8x512xf32> to vector<8x128xf32>
    %142 = math.tanh %141 : vector<8x128xf32>
    %143 = vector.extract_strided_slice %124 {offsets = [0, 384], sizes = [8, 128], strides = [1, 1]} : vector<8x512xf32> to vector<8x128xf32>
    %cst_52 = arith.constant 5.000000e-01 : f32
    %144 = vector.broadcast %cst_52 : f32 to vector<8x128xf32>
    %145 = arith.mulf %144, %143 : vector<8x128xf32>
    %146 = math.tanh %145 : vector<8x128xf32>
    %cst_53 = arith.constant 1.000000e+00 : f32
    %147 = vector.broadcast %cst_53 : f32 to vector<8x128xf32>
    %148 = arith.addf %146, %147 : vector<8x128xf32>
    %cst_54 = arith.constant 5.000000e-01 : f32
    %149 = vector.broadcast %cst_54 : f32 to vector<8x128xf32>
    %150 = arith.mulf %149, %148 : vector<8x128xf32>
    %151 = arith.mulf %140, %75 : vector<8x128xf32>
    %152 = arith.mulf %132, %142 : vector<8x128xf32>
    %153 = arith.addf %151, %152 : vector<8x128xf32>
    %154 = math.tanh %153 : vector<8x128xf32>
    %155 = arith.mulf %150, %154 : vector<8x128xf32>
    %156 = arith.index_cast %c1_i32 : i32 to index
    %c0_55 = arith.constant 0 : index
    %c0_56 = arith.constant 0 : index
    %157 = vector.load %arg4[%156, %c0_55, %c0_56] : memref<8x8x128xf32, #tpu.memory_space<vmem>>, vector<1x8x128xf32>
    %158 = vector.shape_cast %157 : vector<1x8x128xf32> to vector<8x128xf32>
    %159 = vector.shape_cast %155 : vector<8x128xf32> to vector<1x8x128xf32>
    tpu.vector_store %arg4[%156, %c0_55, %c0_56], %159 {strides = array<i32>} : memref<8x8x128xf32, #tpu.memory_space<vmem>>, vector<1x8x128xf32>,
    %c2_i32 = arith.constant 2 : i32
    %160 = arith.index_cast %c2_i32 : i32 to index
    %c0_57 = arith.constant 0 : index
    %c0_58 = arith.constant 0 : index
    %161 = vector.load %arg0[%160, %c0_57, %c0_58] : memref<8x8x512xf32, #tpu.memory_space<vmem>>, vector<1x8x512xf32>
    %162 = vector.shape_cast %161 : vector<1x8x512xf32> to vector<8x512xf32>
    %163 = arith.truncf %119 : vector<8x128xf32> to vector<8x128xbf16>
    %c0_59 = arith.constant 0 : index
    %c0_60 = arith.constant 0 : index
    %164 = vector.load %arg1[%c0_59, %c0_60] : memref<128x512xbf16, #tpu.memory_space<vmem>>, vector<128x512xbf16>
    %cst_61 = arith.constant dense<0.000000e+00> : vector<8x512xf32>
    %165 = tpu.matmul %163, %164, %cst_61 {dimension_numbers = #tpu.dot_dimension_numbers<[1], [0], [0], [1], [0, 0, 1, 1], [], []>} : vector<8x128xbf16>, vector<128x512xbf16>, vector<8x512xf32> -> vector<8x512xf32>
    %166 = arith.addf %162, %165 : vector<8x512xf32>
    %167 = vector.extract_strided_slice %166 {offsets = [0, 0], sizes = [8, 128], strides = [1, 1]} : vector<8x512xf32> to vector<8x128xf32>
    %cst_62 = arith.constant 5.000000e-01 : f32
    %168 = vector.broadcast %cst_62 : f32 to vector<8x128xf32>
    %169 = arith.mulf %168, %167 : vector<8x128xf32>
    %170 = math.tanh %169 : vector<8x128xf32>
    %cst_63 = arith.constant 1.000000e+00 : f32
    %171 = vector.broadcast %cst_63 : f32 to vector<8x128xf32>
    %172 = arith.addf %170, %171 : vector<8x128xf32>
    %cst_64 = arith.constant 5.000000e-01 : f32
    %173 = vector.broadcast %cst_64 : f32 to vector<8x128xf32>
    %174 = arith.mulf %173, %172 : vector<8x128xf32>
    %175 = vector.extract_strided_slice %166 {offsets = [0, 128], sizes = [8, 128], strides = [1, 1]} : vector<8x512xf32> to vector<8x128xf32>
    %cst_65 = arith.constant 5.000000e-01 : f32
    %176 = vector.broadcast %cst_65 : f32 to vector<8x128xf32>
    %177 = arith.mulf %176, %175 : vector<8x128xf32>
    %178 = math.tanh %177 : vector<8x128xf32>
    %cst_66 = arith.constant 1.000000e+00 : f32
    %179 = vector.broadcast %cst_66 : f32 to vector<8x128xf32>
    %180 = arith.addf %178, %179 : vector<8x128xf32>
    %cst_67 = arith.constant 5.000000e-01 : f32
    %181 = vector.broadcast %cst_67 : f32 to vector<8x128xf32>
    %182 = arith.mulf %181, %180 : vector<8x128xf32>
    %183 = vector.extract_strided_slice %166 {offsets = [0, 256], sizes = [8, 128], strides = [1, 1]} : vector<8x512xf32> to vector<8x128xf32>
    %184 = math.tanh %183 : vector<8x128xf32>
    %185 = vector.extract_strided_slice %166 {offsets = [0, 384], sizes = [8, 128], strides = [1, 1]} : vector<8x512xf32> to vector<8x128xf32>
    %cst_68 = arith.constant 5.000000e-01 : f32
    %186 = vector.broadcast %cst_68 : f32 to vector<8x128xf32>
    %187 = arith.mulf %186, %185 : vector<8x128xf32>
    %188 = math.tanh %187 : vector<8x128xf32>
    %cst_69 = arith.constant 1.000000e+00 : f32
    %189 = vector.broadcast %cst_69 : f32 to vector<8x128xf32>
    %190 = arith.addf %188, %189 : vector<8x128xf32>
    %cst_70 = arith.constant 5.000000e-01 : f32
    %191 = vector.broadcast %cst_70 : f32 to vector<8x128xf32>
    %192 = arith.mulf %191, %190 : vector<8x128xf32>
    %193 = arith.mulf %182, %117 : vector<8x128xf32>
    %194 = arith.mulf %174, %184 : vector<8x128xf32>
    %195 = arith.addf %193, %194 : vector<8x128xf32>
    %196 = math.tanh %195 : vector<8x128xf32>
    %197 = arith.mulf %192, %196 : vector<8x128xf32>
    %198 = tpu.concatenate %197, %155 in 1 : vector<8x128xf32>, vector<8x128xf32> -> vector<8x256xf32>
    %199 = arith.truncf %198 : vector<8x256xf32> to vector<8x256xbf16>
    %c0_71 = arith.constant 0 : index
    %c0_72 = arith.constant 0 : index
    %200 = vector.load %arg2[%c0_71, %c0_72] : memref<256x512xbf16, #tpu.memory_space<vmem>>, vector<256x512xbf16>
    %cst_73 = arith.constant dense<0.000000e+00> : vector<8x512xf32>
    %201 = tpu.matmul %199, %200, %cst_73 {dimension_numbers = #tpu.dot_dimension_numbers<[1], [0], [0], [1], [0, 0, 1, 1], [], []>} : vector<8x256xbf16>, vector<256x512xbf16>, vector<8x512xf32> -> vector<8x512xf32>
    %202 = arith.addf %201, %3 : vector<8x512xf32>
    %203 = vector.extract_strided_slice %202 {offsets = [0, 0], sizes = [8, 128], strides = [1, 1]} : vector<8x512xf32> to vector<8x128xf32>
    %cst_74 = arith.constant 5.000000e-01 : f32
    %204 = vector.broadcast %cst_74 : f32 to vector<8x128xf32>
    %205 = arith.mulf %204, %203 : vector<8x128xf32>
    %206 = math.tanh %205 : vector<8x128xf32>
    %cst_75 = arith.constant 1.000000e+00 : f32
    %207 = vector.broadcast %cst_75 : f32 to vector<8x128xf32>
    %208 = arith.addf %206, %207 : vector<8x128xf32>
    %cst_76 = arith.constant 5.000000e-01 : f32
    %209 = vector.broadcast %cst_76 : f32 to vector<8x128xf32>
    %210 = arith.mulf %209, %208 : vector<8x128xf32>
    %211 = vector.extract_strided_slice %202 {offsets = [0, 128], sizes = [8, 128], strides = [1, 1]} : vector<8x512xf32> to vector<8x128xf32>
    %cst_77 = arith.constant 5.000000e-01 : f32
    %212 = vector.broadcast %cst_77 : f32 to vector<8x128xf32>
    %213 = arith.mulf %212, %211 : vector<8x128xf32>
    %214 = math.tanh %213 : vector<8x128xf32>
    %cst_78 = arith.constant 1.000000e+00 : f32
    %215 = vector.broadcast %cst_78 : f32 to vector<8x128xf32>
    %216 = arith.addf %214, %215 : vector<8x128xf32>
    %cst_79 = arith.constant 5.000000e-01 : f32
    %217 = vector.broadcast %cst_79 : f32 to vector<8x128xf32>
    %218 = arith.mulf %217, %216 : vector<8x128xf32>
    %219 = vector.extract_strided_slice %202 {offsets = [0, 256], sizes = [8, 128], strides = [1, 1]} : vector<8x512xf32> to vector<8x128xf32>
    %220 = math.tanh %219 : vector<8x128xf32>
    %221 = vector.extract_strided_slice %202 {offsets = [0, 384], sizes = [8, 128], strides = [1, 1]} : vector<8x512xf32> to vector<8x128xf32>
    %cst_80 = arith.constant 5.000000e-01 : f32
    %222 = vector.broadcast %cst_80 : f32 to vector<8x128xf32>
    %223 = arith.mulf %222, %221 : vector<8x128xf32>
    %224 = math.tanh %223 : vector<8x128xf32>
    %cst_81 = arith.constant 1.000000e+00 : f32
    %225 = vector.broadcast %cst_81 : f32 to vector<8x128xf32>
    %226 = arith.addf %224, %225 : vector<8x128xf32>
    %cst_82 = arith.constant 5.000000e-01 : f32
    %227 = vector.broadcast %cst_82 : f32 to vector<8x128xf32>
    %228 = arith.mulf %227, %226 : vector<8x128xf32>
    %229 = arith.mulf %218, %153 : vector<8x128xf32>
    %230 = arith.mulf %210, %220 : vector<8x128xf32>
    %231 = arith.addf %229, %230 : vector<8x128xf32>
    %232 = math.tanh %231 : vector<8x128xf32>
    %233 = arith.mulf %228, %232 : vector<8x128xf32>
    %234 = arith.index_cast %c2_i32 : i32 to index
    %c0_83 = arith.constant 0 : index
    %c0_84 = arith.constant 0 : index
    %235 = vector.load %arg4[%234, %c0_83, %c0_84] : memref<8x8x128xf32, #tpu.memory_space<vmem>>, vector<1x8x128xf32>
    %236 = vector.shape_cast %235 : vector<1x8x128xf32> to vector<8x128xf32>
    %237 = vector.shape_cast %233 : vector<8x128xf32> to vector<1x8x128xf32>
    tpu.vector_store %arg4[%234, %c0_83, %c0_84], %237 {strides = array<i32>} : memref<8x8x128xf32, #tpu.memory_space<vmem>>, vector<1x8x128xf32>,
    %c3_i32 = arith.constant 3 : i32
    %238 = arith.index_cast %c3_i32 : i32 to index
    %c0_85 = arith.constant 0 : index
    %c0_86 = arith.constant 0 : index
    %239 = vector.load %arg0[%238, %c0_85, %c0_86] : memref<8x8x512xf32, #tpu.memory_space<vmem>>, vector<1x8x512xf32>
    %240 = vector.shape_cast %239 : vector<1x8x512xf32> to vector<8x512xf32>
    %241 = arith.truncf %197 : vector<8x128xf32> to vector<8x128xbf16>
    %c0_87 = arith.constant 0 : index
    %c0_88 = arith.constant 0 : index
    %242 = vector.load %arg1[%c0_87, %c0_88] : memref<128x512xbf16, #tpu.memory_space<vmem>>, vector<128x512xbf16>
    %cst_89 = arith.constant dense<0.000000e+00> : vector<8x512xf32>
    %243 = tpu.matmul %241, %242, %cst_89 {dimension_numbers = #tpu.dot_dimension_numbers<[1], [0], [0], [1], [0, 0, 1, 1], [], []>} : vector<8x128xbf16>, vector<128x512xbf16>, vector<8x512xf32> -> vector<8x512xf32>
    %244 = arith.addf %240, %243 : vector<8x512xf32>
    %245 = vector.extract_strided_slice %244 {offsets = [0, 0], sizes = [8, 128], strides = [1, 1]} : vector<8x512xf32> to vector<8x128xf32>
    %cst_90 = arith.constant 5.000000e-01 : f32
    %246 = vector.broadcast %cst_90 : f32 to vector<8x128xf32>
    %247 = arith.mulf %246, %245 : vector<8x128xf32>
    %248 = math.tanh %247 : vector<8x128xf32>
    %cst_91 = arith.constant 1.000000e+00 : f32
    %249 = vector.broadcast %cst_91 : f32 to vector<8x128xf32>
    %250 = arith.addf %248, %249 : vector<8x128xf32>
    %cst_92 = arith.constant 5.000000e-01 : f32
    %251 = vector.broadcast %cst_92 : f32 to vector<8x128xf32>
    %252 = arith.mulf %251, %250 : vector<8x128xf32>
    %253 = vector.extract_strided_slice %244 {offsets = [0, 128], sizes = [8, 128], strides = [1, 1]} : vector<8x512xf32> to vector<8x128xf32>
    %cst_93 = arith.constant 5.000000e-01 : f32
    %254 = vector.broadcast %cst_93 : f32 to vector<8x128xf32>
    %255 = arith.mulf %254, %253 : vector<8x128xf32>
    %256 = math.tanh %255 : vector<8x128xf32>
    %cst_94 = arith.constant 1.000000e+00 : f32
    %257 = vector.broadcast %cst_94 : f32 to vector<8x128xf32>
    %258 = arith.addf %256, %257 : vector<8x128xf32>
    %cst_95 = arith.constant 5.000000e-01 : f32
    %259 = vector.broadcast %cst_95 : f32 to vector<8x128xf32>
    %260 = arith.mulf %259, %258 : vector<8x128xf32>
    %261 = vector.extract_strided_slice %244 {offsets = [0, 256], sizes = [8, 128], strides = [1, 1]} : vector<8x512xf32> to vector<8x128xf32>
    %262 = math.tanh %261 : vector<8x128xf32>
    %263 = vector.extract_strided_slice %244 {offsets = [0, 384], sizes = [8, 128], strides = [1, 1]} : vector<8x512xf32> to vector<8x128xf32>
    %cst_96 = arith.constant 5.000000e-01 : f32
    %264 = vector.broadcast %cst_96 : f32 to vector<8x128xf32>
    %265 = arith.mulf %264, %263 : vector<8x128xf32>
    %266 = math.tanh %265 : vector<8x128xf32>
    %cst_97 = arith.constant 1.000000e+00 : f32
    %267 = vector.broadcast %cst_97 : f32 to vector<8x128xf32>
    %268 = arith.addf %266, %267 : vector<8x128xf32>
    %cst_98 = arith.constant 5.000000e-01 : f32
    %269 = vector.broadcast %cst_98 : f32 to vector<8x128xf32>
    %270 = arith.mulf %269, %268 : vector<8x128xf32>
    %271 = arith.mulf %260, %195 : vector<8x128xf32>
    %272 = arith.mulf %252, %262 : vector<8x128xf32>
    %273 = arith.addf %271, %272 : vector<8x128xf32>
    %274 = math.tanh %273 : vector<8x128xf32>
    %275 = arith.mulf %270, %274 : vector<8x128xf32>
    %276 = tpu.concatenate %275, %233 in 1 : vector<8x128xf32>, vector<8x128xf32> -> vector<8x256xf32>
    %277 = arith.truncf %276 : vector<8x256xf32> to vector<8x256xbf16>
    %c0_99 = arith.constant 0 : index
    %c0_100 = arith.constant 0 : index
    %278 = vector.load %arg2[%c0_99, %c0_100] : memref<256x512xbf16, #tpu.memory_space<vmem>>, vector<256x512xbf16>
    %cst_101 = arith.constant dense<0.000000e+00> : vector<8x512xf32>
    %279 = tpu.matmul %277, %278, %cst_101 {dimension_numbers = #tpu.dot_dimension_numbers<[1], [0], [0], [1], [0, 0, 1, 1], [], []>} : vector<8x256xbf16>, vector<256x512xbf16>, vector<8x512xf32> -> vector<8x512xf32>
    %280 = arith.addf %279, %3 : vector<8x512xf32>
    %281 = vector.extract_strided_slice %280 {offsets = [0, 0], sizes = [8, 128], strides = [1, 1]} : vector<8x512xf32> to vector<8x128xf32>
    %cst_102 = arith.constant 5.000000e-01 : f32
    %282 = vector.broadcast %cst_102 : f32 to vector<8x128xf32>
    %283 = arith.mulf %282, %281 : vector<8x128xf32>
    %284 = math.tanh %283 : vector<8x128xf32>
    %cst_103 = arith.constant 1.000000e+00 : f32
    %285 = vector.broadcast %cst_103 : f32 to vector<8x128xf32>
    %286 = arith.addf %284, %285 : vector<8x128xf32>
    %cst_104 = arith.constant 5.000000e-01 : f32
    %287 = vector.broadcast %cst_104 : f32 to vector<8x128xf32>
    %288 = arith.mulf %287, %286 : vector<8x128xf32>
    %289 = vector.extract_strided_slice %280 {offsets = [0, 128], sizes = [8, 128], strides = [1, 1]} : vector<8x512xf32> to vector<8x128xf32>
    %cst_105 = arith.constant 5.000000e-01 : f32
    %290 = vector.broadcast %cst_105 : f32 to vector<8x128xf32>
    %291 = arith.mulf %290, %289 : vector<8x128xf32>
    %292 = math.tanh %291 : vector<8x128xf32>
    %cst_106 = arith.constant 1.000000e+00 : f32
    %293 = vector.broadcast %cst_106 : f32 to vector<8x128xf32>
    %294 = arith.addf %292, %293 : vector<8x128xf32>
    %cst_107 = arith.constant 5.000000e-01 : f32
    %295 = vector.broadcast %cst_107 : f32 to vector<8x128xf32>
    %296 = arith.mulf %295, %294 : vector<8x128xf32>
    %297 = vector.extract_strided_slice %280 {offsets = [0, 256], sizes = [8, 128], strides = [1, 1]} : vector<8x512xf32> to vector<8x128xf32>
    %298 = math.tanh %297 : vector<8x128xf32>
    %299 = vector.extract_strided_slice %280 {offsets = [0, 384], sizes = [8, 128], strides = [1, 1]} : vector<8x512xf32> to vector<8x128xf32>
    %cst_108 = arith.constant 5.000000e-01 : f32
    %300 = vector.broadcast %cst_108 : f32 to vector<8x128xf32>
    %301 = arith.mulf %300, %299 : vector<8x128xf32>
    %302 = math.tanh %301 : vector<8x128xf32>
    %cst_109 = arith.constant 1.000000e+00 : f32
    %303 = vector.broadcast %cst_109 : f32 to vector<8x128xf32>
    %304 = arith.addf %302, %303 : vector<8x128xf32>
    %cst_110 = arith.constant 5.000000e-01 : f32
    %305 = vector.broadcast %cst_110 : f32 to vector<8x128xf32>
    %306 = arith.mulf %305, %304 : vector<8x128xf32>
    %307 = arith.mulf %296, %231 : vector<8x128xf32>
    %308 = arith.mulf %288, %298 : vector<8x128xf32>
    %309 = arith.addf %307, %308 : vector<8x128xf32>
    %310 = math.tanh %309 : vector<8x128xf32>
    %311 = arith.mulf %306, %310 : vector<8x128xf32>
    %312 = arith.index_cast %c3_i32 : i32 to index
    %c0_111 = arith.constant 0 : index
    %c0_112 = arith.constant 0 : index
    %313 = vector.load %arg4[%312, %c0_111, %c0_112] : memref<8x8x128xf32, #tpu.memory_space<vmem>>, vector<1x8x128xf32>
    %314 = vector.shape_cast %313 : vector<1x8x128xf32> to vector<8x128xf32>
    %315 = vector.shape_cast %311 : vector<8x128xf32> to vector<1x8x128xf32>
    tpu.vector_store %arg4[%312, %c0_111, %c0_112], %315 {strides = array<i32>} : memref<8x8x128xf32, #tpu.memory_space<vmem>>, vector<1x8x128xf32>,
    %c4_i32 = arith.constant 4 : i32
    %316 = arith.index_cast %c4_i32 : i32 to index
    %c0_113 = arith.constant 0 : index
    %c0_114 = arith.constant 0 : index
    %317 = vector.load %arg0[%316, %c0_113, %c0_114] : memref<8x8x512xf32, #tpu.memory_space<vmem>>, vector<1x8x512xf32>
    %318 = vector.shape_cast %317 : vector<1x8x512xf32> to vector<8x512xf32>
    %319 = arith.truncf %275 : vector<8x128xf32> to vector<8x128xbf16>
    %c0_115 = arith.constant 0 : index
    %c0_116 = arith.constant 0 : index
    %320 = vector.load %arg1[%c0_115, %c0_116] : memref<128x512xbf16, #tpu.memory_space<vmem>>, vector<128x512xbf16>
    %cst_117 = arith.constant dense<0.000000e+00> : vector<8x512xf32>
    %321 = tpu.matmul %319, %320, %cst_117 {dimension_numbers = #tpu.dot_dimension_numbers<[1], [0], [0], [1], [0, 0, 1, 1], [], []>} : vector<8x128xbf16>, vector<128x512xbf16>, vector<8x512xf32> -> vector<8x512xf32>
    %322 = arith.addf %318, %321 : vector<8x512xf32>
    %323 = vector.extract_strided_slice %322 {offsets = [0, 0], sizes = [8, 128], strides = [1, 1]} : vector<8x512xf32> to vector<8x128xf32>
    %cst_118 = arith.constant 5.000000e-01 : f32
    %324 = vector.broadcast %cst_118 : f32 to vector<8x128xf32>
    %325 = arith.mulf %324, %323 : vector<8x128xf32>
    %326 = math.tanh %325 : vector<8x128xf32>
    %cst_119 = arith.constant 1.000000e+00 : f32
    %327 = vector.broadcast %cst_119 : f32 to vector<8x128xf32>
    %328 = arith.addf %326, %327 : vector<8x128xf32>
    %cst_120 = arith.constant 5.000000e-01 : f32
    %329 = vector.broadcast %cst_120 : f32 to vector<8x128xf32>
    %330 = arith.mulf %329, %328 : vector<8x128xf32>
    %331 = vector.extract_strided_slice %322 {offsets = [0, 128], sizes = [8, 128], strides = [1, 1]} : vector<8x512xf32> to vector<8x128xf32>
    %cst_121 = arith.constant 5.000000e-01 : f32
    %332 = vector.broadcast %cst_121 : f32 to vector<8x128xf32>
    %333 = arith.mulf %332, %331 : vector<8x128xf32>
    %334 = math.tanh %333 : vector<8x128xf32>
    %cst_122 = arith.constant 1.000000e+00 : f32
    %335 = vector.broadcast %cst_122 : f32 to vector<8x128xf32>
    %336 = arith.addf %334, %335 : vector<8x128xf32>
    %cst_123 = arith.constant 5.000000e-01 : f32
    %337 = vector.broadcast %cst_123 : f32 to vector<8x128xf32>
    %338 = arith.mulf %337, %336 : vector<8x128xf32>
    %339 = vector.extract_strided_slice %322 {offsets = [0, 256], sizes = [8, 128], strides = [1, 1]} : vector<8x512xf32> to vector<8x128xf32>
    %340 = math.tanh %339 : vector<8x128xf32>
    %341 = vector.extract_strided_slice %322 {offsets = [0, 384], sizes = [8, 128], strides = [1, 1]} : vector<8x512xf32> to vector<8x128xf32>
    %cst_124 = arith.constant 5.000000e-01 : f32
    %342 = vector.broadcast %cst_124 : f32 to vector<8x128xf32>
    %343 = arith.mulf %342, %341 : vector<8x128xf32>
    %344 = math.tanh %343 : vector<8x128xf32>
    %cst_125 = arith.constant 1.000000e+00 : f32
    %345 = vector.broadcast %cst_125 : f32 to vector<8x128xf32>
    %346 = arith.addf %344, %345 : vector<8x128xf32>
    %cst_126 = arith.constant 5.000000e-01 : f32
    %347 = vector.broadcast %cst_126 : f32 to vector<8x128xf32>
    %348 = arith.mulf %347, %346 : vector<8x128xf32>
    %349 = arith.mulf %338, %273 : vector<8x128xf32>
    %350 = arith.mulf %330, %340 : vector<8x128xf32>
    %351 = arith.addf %349, %350 : vector<8x128xf32>
    %352 = math.tanh %351 : vector<8x128xf32>
    %353 = arith.mulf %348, %352 : vector<8x128xf32>
    %354 = tpu.concatenate %353, %311 in 1 : vector<8x128xf32>, vector<8x128xf32> -> vector<8x256xf32>
    %355 = arith.truncf %354 : vector<8x256xf32> to vector<8x256xbf16>
    %c0_127 = arith.constant 0 : index
    %c0_128 = arith.constant 0 : index
    %356 = vector.load %arg2[%c0_127, %c0_128] : memref<256x512xbf16, #tpu.memory_space<vmem>>, vector<256x512xbf16>
    %cst_129 = arith.constant dense<0.000000e+00> : vector<8x512xf32>
    %357 = tpu.matmul %355, %356, %cst_129 {dimension_numbers = #tpu.dot_dimension_numbers<[1], [0], [0], [1], [0, 0, 1, 1], [], []>} : vector<8x256xbf16>, vector<256x512xbf16>, vector<8x512xf32> -> vector<8x512xf32>
    %358 = arith.addf %357, %3 : vector<8x512xf32>
    %359 = vector.extract_strided_slice %358 {offsets = [0, 0], sizes = [8, 128], strides = [1, 1]} : vector<8x512xf32> to vector<8x128xf32>
    %cst_130 = arith.constant 5.000000e-01 : f32
    %360 = vector.broadcast %cst_130 : f32 to vector<8x128xf32>
    %361 = arith.mulf %360, %359 : vector<8x128xf32>
    %362 = math.tanh %361 : vector<8x128xf32>
    %cst_131 = arith.constant 1.000000e+00 : f32
    %363 = vector.broadcast %cst_131 : f32 to vector<8x128xf32>
    %364 = arith.addf %362, %363 : vector<8x128xf32>
    %cst_132 = arith.constant 5.000000e-01 : f32
    %365 = vector.broadcast %cst_132 : f32 to vector<8x128xf32>
    %366 = arith.mulf %365, %364 : vector<8x128xf32>
    %367 = vector.extract_strided_slice %358 {offsets = [0, 128], sizes = [8, 128], strides = [1, 1]} : vector<8x512xf32> to vector<8x128xf32>
    %cst_133 = arith.constant 5.000000e-01 : f32
    %368 = vector.broadcast %cst_133 : f32 to vector<8x128xf32>
    %369 = arith.mulf %368, %367 : vector<8x128xf32>
    %370 = math.tanh %369 : vector<8x128xf32>
    %cst_134 = arith.constant 1.000000e+00 : f32
    %371 = vector.broadcast %cst_134 : f32 to vector<8x128xf32>
    %372 = arith.addf %370, %371 : vector<8x128xf32>
    %cst_135 = arith.constant 5.000000e-01 : f32
    %373 = vector.broadcast %cst_135 : f32 to vector<8x128xf32>
    %374 = arith.mulf %373, %372 : vector<8x128xf32>
    %375 = vector.extract_strided_slice %358 {offsets = [0, 256], sizes = [8, 128], strides = [1, 1]} : vector<8x512xf32> to vector<8x128xf32>
    %376 = math.tanh %375 : vector<8x128xf32>
    %377 = vector.extract_strided_slice %358 {offsets = [0, 384], sizes = [8, 128], strides = [1, 1]} : vector<8x512xf32> to vector<8x128xf32>
    %cst_136 = arith.constant 5.000000e-01 : f32
    %378 = vector.broadcast %cst_136 : f32 to vector<8x128xf32>
    %379 = arith.mulf %378, %377 : vector<8x128xf32>
    %380 = math.tanh %379 : vector<8x128xf32>
    %cst_137 = arith.constant 1.000000e+00 : f32
    %381 = vector.broadcast %cst_137 : f32 to vector<8x128xf32>
    %382 = arith.addf %380, %381 : vector<8x128xf32>
    %cst_138 = arith.constant 5.000000e-01 : f32
    %383 = vector.broadcast %cst_138 : f32 to vector<8x128xf32>
    %384 = arith.mulf %383, %382 : vector<8x128xf32>
    %385 = arith.mulf %374, %309 : vector<8x128xf32>
    %386 = arith.mulf %366, %376 : vector<8x128xf32>
    %387 = arith.addf %385, %386 : vector<8x128xf32>
    %388 = math.tanh %387 : vector<8x128xf32>
    %389 = arith.mulf %384, %388 : vector<8x128xf32>
    %390 = arith.index_cast %c4_i32 : i32 to index
    %c0_139 = arith.constant 0 : index
    %c0_140 = arith.constant 0 : index
    %391 = vector.load %arg4[%390, %c0_139, %c0_140] : memref<8x8x128xf32, #tpu.memory_space<vmem>>, vector<1x8x128xf32>
    %392 = vector.shape_cast %391 : vector<1x8x128xf32> to vector<8x128xf32>
    %393 = vector.shape_cast %389 : vector<8x128xf32> to vector<1x8x128xf32>
    tpu.vector_store %arg4[%390, %c0_139, %c0_140], %393 {strides = array<i32>} : memref<8x8x128xf32, #tpu.memory_space<vmem>>, vector<1x8x128xf32>,
    %c5_i32 = arith.constant 5 : i32
    %394 = arith.index_cast %c5_i32 : i32 to index
    %c0_141 = arith.constant 0 : index
    %c0_142 = arith.constant 0 : index
    %395 = vector.load %arg0[%394, %c0_141, %c0_142] : memref<8x8x512xf32, #tpu.memory_space<vmem>>, vector<1x8x512xf32>
    %396 = vector.shape_cast %395 : vector<1x8x512xf32> to vector<8x512xf32>
    %397 = arith.truncf %353 : vector<8x128xf32> to vector<8x128xbf16>
    %c0_143 = arith.constant 0 : index
    %c0_144 = arith.constant 0 : index
    %398 = vector.load %arg1[%c0_143, %c0_144] : memref<128x512xbf16, #tpu.memory_space<vmem>>, vector<128x512xbf16>
    %cst_145 = arith.constant dense<0.000000e+00> : vector<8x512xf32>
    %399 = tpu.matmul %397, %398, %cst_145 {dimension_numbers = #tpu.dot_dimension_numbers<[1], [0], [0], [1], [0, 0, 1, 1], [], []>} : vector<8x128xbf16>, vector<128x512xbf16>, vector<8x512xf32> -> vector<8x512xf32>
    %400 = arith.addf %396, %399 : vector<8x512xf32>
    %401 = vector.extract_strided_slice %400 {offsets = [0, 0], sizes = [8, 128], strides = [1, 1]} : vector<8x512xf32> to vector<8x128xf32>
    %cst_146 = arith.constant 5.000000e-01 : f32
    %402 = vector.broadcast %cst_146 : f32 to vector<8x128xf32>
    %403 = arith.mulf %402, %401 : vector<8x128xf32>
    %404 = math.tanh %403 : vector<8x128xf32>
    %cst_147 = arith.constant 1.000000e+00 : f32
    %405 = vector.broadcast %cst_147 : f32 to vector<8x128xf32>
    %406 = arith.addf %404, %405 : vector<8x128xf32>
    %cst_148 = arith.constant 5.000000e-01 : f32
    %407 = vector.broadcast %cst_148 : f32 to vector<8x128xf32>
    %408 = arith.mulf %407, %406 : vector<8x128xf32>
    %409 = vector.extract_strided_slice %400 {offsets = [0, 128], sizes = [8, 128], strides = [1, 1]} : vector<8x512xf32> to vector<8x128xf32>
    %cst_149 = arith.constant 5.000000e-01 : f32
    %410 = vector.broadcast %cst_149 : f32 to vector<8x128xf32>
    %411 = arith.mulf %410, %409 : vector<8x128xf32>
    %412 = math.tanh %411 : vector<8x128xf32>
    %cst_150 = arith.constant 1.000000e+00 : f32
    %413 = vector.broadcast %cst_150 : f32 to vector<8x128xf32>
    %414 = arith.addf %412, %413 : vector<8x128xf32>
    %cst_151 = arith.constant 5.000000e-01 : f32
    %415 = vector.broadcast %cst_151 : f32 to vector<8x128xf32>
    %416 = arith.mulf %415, %414 : vector<8x128xf32>
    %417 = vector.extract_strided_slice %400 {offsets = [0, 256], sizes = [8, 128], strides = [1, 1]} : vector<8x512xf32> to vector<8x128xf32>
    %418 = math.tanh %417 : vector<8x128xf32>
    %419 = vector.extract_strided_slice %400 {offsets = [0, 384], sizes = [8, 128], strides = [1, 1]} : vector<8x512xf32> to vector<8x128xf32>
    %cst_152 = arith.constant 5.000000e-01 : f32
    %420 = vector.broadcast %cst_152 : f32 to vector<8x128xf32>
    %421 = arith.mulf %420, %419 : vector<8x128xf32>
    %422 = math.tanh %421 : vector<8x128xf32>
    %cst_153 = arith.constant 1.000000e+00 : f32
    %423 = vector.broadcast %cst_153 : f32 to vector<8x128xf32>
    %424 = arith.addf %422, %423 : vector<8x128xf32>
    %cst_154 = arith.constant 5.000000e-01 : f32
    %425 = vector.broadcast %cst_154 : f32 to vector<8x128xf32>
    %426 = arith.mulf %425, %424 : vector<8x128xf32>
    %427 = arith.mulf %416, %351 : vector<8x128xf32>
    %428 = arith.mulf %408, %418 : vector<8x128xf32>
    %429 = arith.addf %427, %428 : vector<8x128xf32>
    %430 = math.tanh %429 : vector<8x128xf32>
    %431 = arith.mulf %426, %430 : vector<8x128xf32>
    %432 = tpu.concatenate %431, %389 in 1 : vector<8x128xf32>, vector<8x128xf32> -> vector<8x256xf32>
    %433 = arith.truncf %432 : vector<8x256xf32> to vector<8x256xbf16>
    %c0_155 = arith.constant 0 : index
    %c0_156 = arith.constant 0 : index
    %434 = vector.load %arg2[%c0_155, %c0_156] : memref<256x512xbf16, #tpu.memory_space<vmem>>, vector<256x512xbf16>
    %cst_157 = arith.constant dense<0.000000e+00> : vector<8x512xf32>
    %435 = tpu.matmul %433, %434, %cst_157 {dimension_numbers = #tpu.dot_dimension_numbers<[1], [0], [0], [1], [0, 0, 1, 1], [], []>} : vector<8x256xbf16>, vector<256x512xbf16>, vector<8x512xf32> -> vector<8x512xf32>
    %436 = arith.addf %435, %3 : vector<8x512xf32>
    %437 = vector.extract_strided_slice %436 {offsets = [0, 0], sizes = [8, 128], strides = [1, 1]} : vector<8x512xf32> to vector<8x128xf32>
    %cst_158 = arith.constant 5.000000e-01 : f32
    %438 = vector.broadcast %cst_158 : f32 to vector<8x128xf32>
    %439 = arith.mulf %438, %437 : vector<8x128xf32>
    %440 = math.tanh %439 : vector<8x128xf32>
    %cst_159 = arith.constant 1.000000e+00 : f32
    %441 = vector.broadcast %cst_159 : f32 to vector<8x128xf32>
    %442 = arith.addf %440, %441 : vector<8x128xf32>
    %cst_160 = arith.constant 5.000000e-01 : f32
    %443 = vector.broadcast %cst_160 : f32 to vector<8x128xf32>
    %444 = arith.mulf %443, %442 : vector<8x128xf32>
    %445 = vector.extract_strided_slice %436 {offsets = [0, 128], sizes = [8, 128], strides = [1, 1]} : vector<8x512xf32> to vector<8x128xf32>
    %cst_161 = arith.constant 5.000000e-01 : f32
    %446 = vector.broadcast %cst_161 : f32 to vector<8x128xf32>
    %447 = arith.mulf %446, %445 : vector<8x128xf32>
    %448 = math.tanh %447 : vector<8x128xf32>
    %cst_162 = arith.constant 1.000000e+00 : f32
    %449 = vector.broadcast %cst_162 : f32 to vector<8x128xf32>
    %450 = arith.addf %448, %449 : vector<8x128xf32>
    %cst_163 = arith.constant 5.000000e-01 : f32
    %451 = vector.broadcast %cst_163 : f32 to vector<8x128xf32>
    %452 = arith.mulf %451, %450 : vector<8x128xf32>
    %453 = vector.extract_strided_slice %436 {offsets = [0, 256], sizes = [8, 128], strides = [1, 1]} : vector<8x512xf32> to vector<8x128xf32>
    %454 = math.tanh %453 : vector<8x128xf32>
    %455 = vector.extract_strided_slice %436 {offsets = [0, 384], sizes = [8, 128], strides = [1, 1]} : vector<8x512xf32> to vector<8x128xf32>
    %cst_164 = arith.constant 5.000000e-01 : f32
    %456 = vector.broadcast %cst_164 : f32 to vector<8x128xf32>
    %457 = arith.mulf %456, %455 : vector<8x128xf32>
    %458 = math.tanh %457 : vector<8x128xf32>
    %cst_165 = arith.constant 1.000000e+00 : f32
    %459 = vector.broadcast %cst_165 : f32 to vector<8x128xf32>
    %460 = arith.addf %458, %459 : vector<8x128xf32>
    %cst_166 = arith.constant 5.000000e-01 : f32
    %461 = vector.broadcast %cst_166 : f32 to vector<8x128xf32>
    %462 = arith.mulf %461, %460 : vector<8x128xf32>
    %463 = arith.mulf %452, %387 : vector<8x128xf32>
    %464 = arith.mulf %444, %454 : vector<8x128xf32>
    %465 = arith.addf %463, %464 : vector<8x128xf32>
    %466 = math.tanh %465 : vector<8x128xf32>
    %467 = arith.mulf %462, %466 : vector<8x128xf32>
    %468 = arith.index_cast %c5_i32 : i32 to index
    %c0_167 = arith.constant 0 : index
    %c0_168 = arith.constant 0 : index
    %469 = vector.load %arg4[%468, %c0_167, %c0_168] : memref<8x8x128xf32, #tpu.memory_space<vmem>>, vector<1x8x128xf32>
    %470 = vector.shape_cast %469 : vector<1x8x128xf32> to vector<8x128xf32>
    %471 = vector.shape_cast %467 : vector<8x128xf32> to vector<1x8x128xf32>
    tpu.vector_store %arg4[%468, %c0_167, %c0_168], %471 {strides = array<i32>} : memref<8x8x128xf32, #tpu.memory_space<vmem>>, vector<1x8x128xf32>,
    %c6_i32 = arith.constant 6 : i32
    %472 = arith.index_cast %c6_i32 : i32 to index
    %c0_169 = arith.constant 0 : index
    %c0_170 = arith.constant 0 : index
    %473 = vector.load %arg0[%472, %c0_169, %c0_170] : memref<8x8x512xf32, #tpu.memory_space<vmem>>, vector<1x8x512xf32>
    %474 = vector.shape_cast %473 : vector<1x8x512xf32> to vector<8x512xf32>
    %475 = arith.truncf %431 : vector<8x128xf32> to vector<8x128xbf16>
    %c0_171 = arith.constant 0 : index
    %c0_172 = arith.constant 0 : index
    %476 = vector.load %arg1[%c0_171, %c0_172] : memref<128x512xbf16, #tpu.memory_space<vmem>>, vector<128x512xbf16>
    %cst_173 = arith.constant dense<0.000000e+00> : vector<8x512xf32>
    %477 = tpu.matmul %475, %476, %cst_173 {dimension_numbers = #tpu.dot_dimension_numbers<[1], [0], [0], [1], [0, 0, 1, 1], [], []>} : vector<8x128xbf16>, vector<128x512xbf16>, vector<8x512xf32> -> vector<8x512xf32>
    %478 = arith.addf %474, %477 : vector<8x512xf32>
    %479 = vector.extract_strided_slice %478 {offsets = [0, 0], sizes = [8, 128], strides = [1, 1]} : vector<8x512xf32> to vector<8x128xf32>
    %cst_174 = arith.constant 5.000000e-01 : f32
    %480 = vector.broadcast %cst_174 : f32 to vector<8x128xf32>
    %481 = arith.mulf %480, %479 : vector<8x128xf32>
    %482 = math.tanh %481 : vector<8x128xf32>
    %cst_175 = arith.constant 1.000000e+00 : f32
    %483 = vector.broadcast %cst_175 : f32 to vector<8x128xf32>
    %484 = arith.addf %482, %483 : vector<8x128xf32>
    %cst_176 = arith.constant 5.000000e-01 : f32
    %485 = vector.broadcast %cst_176 : f32 to vector<8x128xf32>
    %486 = arith.mulf %485, %484 : vector<8x128xf32>
    %487 = vector.extract_strided_slice %478 {offsets = [0, 128], sizes = [8, 128], strides = [1, 1]} : vector<8x512xf32> to vector<8x128xf32>
    %cst_177 = arith.constant 5.000000e-01 : f32
    %488 = vector.broadcast %cst_177 : f32 to vector<8x128xf32>
    %489 = arith.mulf %488, %487 : vector<8x128xf32>
    %490 = math.tanh %489 : vector<8x128xf32>
    %cst_178 = arith.constant 1.000000e+00 : f32
    %491 = vector.broadcast %cst_178 : f32 to vector<8x128xf32>
    %492 = arith.addf %490, %491 : vector<8x128xf32>
    %cst_179 = arith.constant 5.000000e-01 : f32
    %493 = vector.broadcast %cst_179 : f32 to vector<8x128xf32>
    %494 = arith.mulf %493, %492 : vector<8x128xf32>
    %495 = vector.extract_strided_slice %478 {offsets = [0, 256], sizes = [8, 128], strides = [1, 1]} : vector<8x512xf32> to vector<8x128xf32>
    %496 = math.tanh %495 : vector<8x128xf32>
    %497 = vector.extract_strided_slice %478 {offsets = [0, 384], sizes = [8, 128], strides = [1, 1]} : vector<8x512xf32> to vector<8x128xf32>
    %cst_180 = arith.constant 5.000000e-01 : f32
    %498 = vector.broadcast %cst_180 : f32 to vector<8x128xf32>
    %499 = arith.mulf %498, %497 : vector<8x128xf32>
    %500 = math.tanh %499 : vector<8x128xf32>
    %cst_181 = arith.constant 1.000000e+00 : f32
    %501 = vector.broadcast %cst_181 : f32 to vector<8x128xf32>
    %502 = arith.addf %500, %501 : vector<8x128xf32>
    %cst_182 = arith.constant 5.000000e-01 : f32
    %503 = vector.broadcast %cst_182 : f32 to vector<8x128xf32>
    %504 = arith.mulf %503, %502 : vector<8x128xf32>
    %505 = arith.mulf %494, %429 : vector<8x128xf32>
    %506 = arith.mulf %486, %496 : vector<8x128xf32>
    %507 = arith.addf %505, %506 : vector<8x128xf32>
    %508 = math.tanh %507 : vector<8x128xf32>
    %509 = arith.mulf %504, %508 : vector<8x128xf32>
    %510 = tpu.concatenate %509, %467 in 1 : vector<8x128xf32>, vector<8x128xf32> -> vector<8x256xf32>
    %511 = arith.truncf %510 : vector<8x256xf32> to vector<8x256xbf16>
    %c0_183 = arith.constant 0 : index
    %c0_184 = arith.constant 0 : index
    %512 = vector.load %arg2[%c0_183, %c0_184] : memref<256x512xbf16, #tpu.memory_space<vmem>>, vector<256x512xbf16>
    %cst_185 = arith.constant dense<0.000000e+00> : vector<8x512xf32>
    %513 = tpu.matmul %511, %512, %cst_185 {dimension_numbers = #tpu.dot_dimension_numbers<[1], [0], [0], [1], [0, 0, 1, 1], [], []>} : vector<8x256xbf16>, vector<256x512xbf16>, vector<8x512xf32> -> vector<8x512xf32>
    %514 = arith.addf %513, %3 : vector<8x512xf32>
    %515 = vector.extract_strided_slice %514 {offsets = [0, 0], sizes = [8, 128], strides = [1, 1]} : vector<8x512xf32> to vector<8x128xf32>
    %cst_186 = arith.constant 5.000000e-01 : f32
    %516 = vector.broadcast %cst_186 : f32 to vector<8x128xf32>
    %517 = arith.mulf %516, %515 : vector<8x128xf32>
    %518 = math.tanh %517 : vector<8x128xf32>
    %cst_187 = arith.constant 1.000000e+00 : f32
    %519 = vector.broadcast %cst_187 : f32 to vector<8x128xf32>
    %520 = arith.addf %518, %519 : vector<8x128xf32>
    %cst_188 = arith.constant 5.000000e-01 : f32
    %521 = vector.broadcast %cst_188 : f32 to vector<8x128xf32>
    %522 = arith.mulf %521, %520 : vector<8x128xf32>
    %523 = vector.extract_strided_slice %514 {offsets = [0, 128], sizes = [8, 128], strides = [1, 1]} : vector<8x512xf32> to vector<8x128xf32>
    %cst_189 = arith.constant 5.000000e-01 : f32
    %524 = vector.broadcast %cst_189 : f32 to vector<8x128xf32>
    %525 = arith.mulf %524, %523 : vector<8x128xf32>
    %526 = math.tanh %525 : vector<8x128xf32>
    %cst_190 = arith.constant 1.000000e+00 : f32
    %527 = vector.broadcast %cst_190 : f32 to vector<8x128xf32>
    %528 = arith.addf %526, %527 : vector<8x128xf32>
    %cst_191 = arith.constant 5.000000e-01 : f32
    %529 = vector.broadcast %cst_191 : f32 to vector<8x128xf32>
    %530 = arith.mulf %529, %528 : vector<8x128xf32>
    %531 = vector.extract_strided_slice %514 {offsets = [0, 256], sizes = [8, 128], strides = [1, 1]} : vector<8x512xf32> to vector<8x128xf32>
    %532 = math.tanh %531 : vector<8x128xf32>
    %533 = vector.extract_strided_slice %514 {offsets = [0, 384], sizes = [8, 128], strides = [1, 1]} : vector<8x512xf32> to vector<8x128xf32>
    %cst_192 = arith.constant 5.000000e-01 : f32
    %534 = vector.broadcast %cst_192 : f32 to vector<8x128xf32>
    %535 = arith.mulf %534, %533 : vector<8x128xf32>
    %536 = math.tanh %535 : vector<8x128xf32>
    %cst_193 = arith.constant 1.000000e+00 : f32
    %537 = vector.broadcast %cst_193 : f32 to vector<8x128xf32>
    %538 = arith.addf %536, %537 : vector<8x128xf32>
    %cst_194 = arith.constant 5.000000e-01 : f32
    %539 = vector.broadcast %cst_194 : f32 to vector<8x128xf32>
    %540 = arith.mulf %539, %538 : vector<8x128xf32>
    %541 = arith.mulf %530, %465 : vector<8x128xf32>
    %542 = arith.mulf %522, %532 : vector<8x128xf32>
    %543 = arith.addf %541, %542 : vector<8x128xf32>
    %544 = math.tanh %543 : vector<8x128xf32>
    %545 = arith.mulf %540, %544 : vector<8x128xf32>
    %546 = arith.index_cast %c6_i32 : i32 to index
    %c0_195 = arith.constant 0 : index
    %c0_196 = arith.constant 0 : index
    %547 = vector.load %arg4[%546, %c0_195, %c0_196] : memref<8x8x128xf32, #tpu.memory_space<vmem>>, vector<1x8x128xf32>
    %548 = vector.shape_cast %547 : vector<1x8x128xf32> to vector<8x128xf32>
    %549 = vector.shape_cast %545 : vector<8x128xf32> to vector<1x8x128xf32>
    tpu.vector_store %arg4[%546, %c0_195, %c0_196], %549 {strides = array<i32>} : memref<8x8x128xf32, #tpu.memory_space<vmem>>, vector<1x8x128xf32>,
    %c7_i32 = arith.constant 7 : i32
    %550 = arith.index_cast %c7_i32 : i32 to index
    %c0_197 = arith.constant 0 : index
    %c0_198 = arith.constant 0 : index
    %551 = vector.load %arg0[%550, %c0_197, %c0_198] : memref<8x8x512xf32, #tpu.memory_space<vmem>>, vector<1x8x512xf32>
    %552 = vector.shape_cast %551 : vector<1x8x512xf32> to vector<8x512xf32>
    %553 = arith.truncf %509 : vector<8x128xf32> to vector<8x128xbf16>
    %c0_199 = arith.constant 0 : index
    %c0_200 = arith.constant 0 : index
    %554 = vector.load %arg1[%c0_199, %c0_200] : memref<128x512xbf16, #tpu.memory_space<vmem>>, vector<128x512xbf16>
    %cst_201 = arith.constant dense<0.000000e+00> : vector<8x512xf32>
    %555 = tpu.matmul %553, %554, %cst_201 {dimension_numbers = #tpu.dot_dimension_numbers<[1], [0], [0], [1], [0, 0, 1, 1], [], []>} : vector<8x128xbf16>, vector<128x512xbf16>, vector<8x512xf32> -> vector<8x512xf32>
    %556 = arith.addf %552, %555 : vector<8x512xf32>
    %557 = vector.extract_strided_slice %556 {offsets = [0, 0], sizes = [8, 128], strides = [1, 1]} : vector<8x512xf32> to vector<8x128xf32>
    %cst_202 = arith.constant 5.000000e-01 : f32
    %558 = vector.broadcast %cst_202 : f32 to vector<8x128xf32>
    %559 = arith.mulf %558, %557 : vector<8x128xf32>
    %560 = math.tanh %559 : vector<8x128xf32>
    %cst_203 = arith.constant 1.000000e+00 : f32
    %561 = vector.broadcast %cst_203 : f32 to vector<8x128xf32>
    %562 = arith.addf %560, %561 : vector<8x128xf32>
    %cst_204 = arith.constant 5.000000e-01 : f32
    %563 = vector.broadcast %cst_204 : f32 to vector<8x128xf32>
    %564 = arith.mulf %563, %562 : vector<8x128xf32>
    %565 = vector.extract_strided_slice %556 {offsets = [0, 128], sizes = [8, 128], strides = [1, 1]} : vector<8x512xf32> to vector<8x128xf32>
    %cst_205 = arith.constant 5.000000e-01 : f32
    %566 = vector.broadcast %cst_205 : f32 to vector<8x128xf32>
    %567 = arith.mulf %566, %565 : vector<8x128xf32>
    %568 = math.tanh %567 : vector<8x128xf32>
    %cst_206 = arith.constant 1.000000e+00 : f32
    %569 = vector.broadcast %cst_206 : f32 to vector<8x128xf32>
    %570 = arith.addf %568, %569 : vector<8x128xf32>
    %cst_207 = arith.constant 5.000000e-01 : f32
    %571 = vector.broadcast %cst_207 : f32 to vector<8x128xf32>
    %572 = arith.mulf %571, %570 : vector<8x128xf32>
    %573 = vector.extract_strided_slice %556 {offsets = [0, 256], sizes = [8, 128], strides = [1, 1]} : vector<8x512xf32> to vector<8x128xf32>
    %574 = math.tanh %573 : vector<8x128xf32>
    %575 = vector.extract_strided_slice %556 {offsets = [0, 384], sizes = [8, 128], strides = [1, 1]} : vector<8x512xf32> to vector<8x128xf32>
    %cst_208 = arith.constant 5.000000e-01 : f32
    %576 = vector.broadcast %cst_208 : f32 to vector<8x128xf32>
    %577 = arith.mulf %576, %575 : vector<8x128xf32>
    %578 = math.tanh %577 : vector<8x128xf32>
    %cst_209 = arith.constant 1.000000e+00 : f32
    %579 = vector.broadcast %cst_209 : f32 to vector<8x128xf32>
    %580 = arith.addf %578, %579 : vector<8x128xf32>
    %cst_210 = arith.constant 5.000000e-01 : f32
    %581 = vector.broadcast %cst_210 : f32 to vector<8x128xf32>
    %582 = arith.mulf %581, %580 : vector<8x128xf32>
    %583 = arith.mulf %572, %507 : vector<8x128xf32>
    %584 = arith.mulf %564, %574 : vector<8x128xf32>
    %585 = arith.addf %583, %584 : vector<8x128xf32>
    %586 = math.tanh %585 : vector<8x128xf32>
    %587 = arith.mulf %582, %586 : vector<8x128xf32>
    %588 = tpu.concatenate %587, %545 in 1 : vector<8x128xf32>, vector<8x128xf32> -> vector<8x256xf32>
    %589 = arith.truncf %588 : vector<8x256xf32> to vector<8x256xbf16>
    %c0_211 = arith.constant 0 : index
    %c0_212 = arith.constant 0 : index
    %590 = vector.load %arg2[%c0_211, %c0_212] : memref<256x512xbf16, #tpu.memory_space<vmem>>, vector<256x512xbf16>
    %cst_213 = arith.constant dense<0.000000e+00> : vector<8x512xf32>
    %591 = tpu.matmul %589, %590, %cst_213 {dimension_numbers = #tpu.dot_dimension_numbers<[1], [0], [0], [1], [0, 0, 1, 1], [], []>} : vector<8x256xbf16>, vector<256x512xbf16>, vector<8x512xf32> -> vector<8x512xf32>
    %592 = arith.addf %591, %3 : vector<8x512xf32>
    %593 = vector.extract_strided_slice %592 {offsets = [0, 0], sizes = [8, 128], strides = [1, 1]} : vector<8x512xf32> to vector<8x128xf32>
    %cst_214 = arith.constant 5.000000e-01 : f32
    %594 = vector.broadcast %cst_214 : f32 to vector<8x128xf32>
    %595 = arith.mulf %594, %593 : vector<8x128xf32>
    %596 = math.tanh %595 : vector<8x128xf32>
    %cst_215 = arith.constant 1.000000e+00 : f32
    %597 = vector.broadcast %cst_215 : f32 to vector<8x128xf32>
    %598 = arith.addf %596, %597 : vector<8x128xf32>
    %cst_216 = arith.constant 5.000000e-01 : f32
    %599 = vector.broadcast %cst_216 : f32 to vector<8x128xf32>
    %600 = arith.mulf %599, %598 : vector<8x128xf32>
    %601 = vector.extract_strided_slice %592 {offsets = [0, 128], sizes = [8, 128], strides = [1, 1]} : vector<8x512xf32> to vector<8x128xf32>
    %cst_217 = arith.constant 5.000000e-01 : f32
    %602 = vector.broadcast %cst_217 : f32 to vector<8x128xf32>
    %603 = arith.mulf %602, %601 : vector<8x128xf32>
    %604 = math.tanh %603 : vector<8x128xf32>
    %cst_218 = arith.constant 1.000000e+00 : f32
    %605 = vector.broadcast %cst_218 : f32 to vector<8x128xf32>
    %606 = arith.addf %604, %605 : vector<8x128xf32>
    %cst_219 = arith.constant 5.000000e-01 : f32
    %607 = vector.broadcast %cst_219 : f32 to vector<8x128xf32>
    %608 = arith.mulf %607, %606 : vector<8x128xf32>
    %609 = vector.extract_strided_slice %592 {offsets = [0, 256], sizes = [8, 128], strides = [1, 1]} : vector<8x512xf32> to vector<8x128xf32>
    %610 = math.tanh %609 : vector<8x128xf32>
    %611 = vector.extract_strided_slice %592 {offsets = [0, 384], sizes = [8, 128], strides = [1, 1]} : vector<8x512xf32> to vector<8x128xf32>
    %cst_220 = arith.constant 5.000000e-01 : f32
    %612 = vector.broadcast %cst_220 : f32 to vector<8x128xf32>
    %613 = arith.mulf %612, %611 : vector<8x128xf32>
    %614 = math.tanh %613 : vector<8x128xf32>
    %cst_221 = arith.constant 1.000000e+00 : f32
    %615 = vector.broadcast %cst_221 : f32 to vector<8x128xf32>
    %616 = arith.addf %614, %615 : vector<8x128xf32>
    %cst_222 = arith.constant 5.000000e-01 : f32
    %617 = vector.broadcast %cst_222 : f32 to vector<8x128xf32>
    %618 = arith.mulf %617, %616 : vector<8x128xf32>
    %619 = arith.mulf %608, %543 : vector<8x128xf32>
    %620 = arith.mulf %600, %610 : vector<8x128xf32>
    %621 = arith.addf %619, %620 : vector<8x128xf32>
    %622 = math.tanh %621 : vector<8x128xf32>
    %623 = arith.mulf %618, %622 : vector<8x128xf32>
    %624 = arith.index_cast %c7_i32 : i32 to index
    %c0_223 = arith.constant 0 : index
    %c0_224 = arith.constant 0 : index
    %625 = vector.load %arg4[%624, %c0_223, %c0_224] : memref<8x8x128xf32, #tpu.memory_space<vmem>>, vector<1x8x128xf32>
    %626 = vector.shape_cast %625 : vector<1x8x128xf32> to vector<8x128xf32>
    %627 = vector.shape_cast %623 : vector<8x128xf32> to vector<1x8x128xf32>
    tpu.vector_store %arg4[%624, %c0_223, %c0_224], %627 {strides = array<i32>} : memref<8x8x128xf32, #tpu.memory_space<vmem>>, vector<1x8x128xf32>,
    %c8_i32 = arith.constant 8 : i32
    return
  }
}

</mosaic_0001>

<bundles_post_ra>
// kernel: nem_price_lstm_forward.1
= control target key start
LH: loop header
LB: loop body
LE: loop exit
PB: predicated region body
PF: predicated region fallthrough
CT: control target
= control target key end

     0   :  { %s15341_s1 = inlined_call_operand.vmem [shape: bf16[128,512], index: 1, kind: input, shape index: {}]   ;;  %s15342_s2 = inlined_call_operand.vmem [shape: bf16[256,512], index: 2, kind: input, shape index: {}]   ;;  %s15343_s0 = inlined_call_operand.vmem [shape: f32[8,8,512], index: 0, kind: input, shape index: {}]   ;;  %s15344_s3 = inlined_call_operand.vmem [shape: f32[1,512], index: 3, kind: input, shape index: {}]   ;;  %s15345_s4 = inlined_call_operand.vmem [shape: f32[8,8,128], index: 4, kind: output, shape index: {}]  }
   0x1   :  { %v6392_v0 = vld [vmem:[%s15341_s1 + $0xe0] sm:$0xf]  ;;  %v9415_v1 = vld [vmem:[%s15341_s1 + $0xec] sm:$0xf0]  ;;  %v9413_v2 = vld [vmem:[%s15341_s1 + $0xe4] sm:$0xf] }
   0x2   :  { %v6393_v3 = vor.u32 %v9415_v1, %v6392_v0  ;;  %v6394_v4 = vld [vmem:[%s15341_s1 + $0xf0] sm:$0xf0]  ;;  %v6400_v5 = vld [vmem:[%s15341_s1 + $0xe8] sm:$0xf]  ;;  %v9416_v6 = vld [vmem:[%s15341_s1 + $0xf4] sm:$0xf0] }
   0x3   :  { %v6397_v7 = vor.u32 %v9413_v2, %v6394_v4  ;;  %v6401_v8 = vor.u32 %v9416_v6, %v6400_v5  ;;  %v9414_v9 = vld [vmem:[%s15341_s1 + $0xec] sm:$0xf]  ;;  %v6402_v10 = vld [vmem:[%s15341_s1 + $0xf8] sm:$0xf0]  ;;  %v6376_v11 = vld [vmem:[%s15341_s1 + $0xc0] sm:$0xf] }
   0x4   :  { %224 = vmatpush.bf16.msra.mxu0 %v6393_v3  ;;  %v6405_v12 = vor.u32 %v9414_v9, %v6402_v10  ;;  %v9411_v13 = vld [vmem:[%s15341_s1 + $0xcc] sm:$0xf0]  ;;  %v9409_v14 = vld [vmem:[%s15341_s1 + $0xc4] sm:$0xf]  ;;  %v6378_v15 = vld [vmem:[%s15341_s1 + $0xd0] sm:$0xf0] }
   0x5   :  { %237 = vmatpush.bf16.msra.mxu1 %v6397_v7  ;;  %250 = vmatpush.bf16.msra.mxu2 %v6401_v8  ;;  %v6377_v16 = vor.u32 %v9411_v13, %v6376_v11  ;;  %v6381_v17 = vor.u32 %v9409_v14, %v6378_v15  ;;  %v6384_v18 = vld [vmem:[%s15341_s1 + $0xc8] sm:$0xf]  ;;  %v9412_v19 = vld [vmem:[%s15341_s1 + $0xd4] sm:$0xf0]  ;;  %v9410_v20 = vld [vmem:[%s15341_s1 + $0xcc] sm:$0xf] }
   0x6   :  { %263 = vmatpush.bf16.msra.mxu3 %v6405_v12  ;;  %v6385_v21 = vor.u32 %v9412_v19, %v6384_v18  ;;  %v6386_v22 = vld [vmem:[%s15341_s1 + $0xd8] sm:$0xf0]  ;;  %v6360_v23 = vld [vmem:[%s15341_s1 + $0xa0] sm:$0xf]  ;;  %v9407_v24 = vld [vmem:[%s15341_s1 + $0xac] sm:$0xf0] }
   0x7   :  { %v6389_v25 = vor.u32 %v9410_v20, %v6386_v22  ;;  %v9405_v26 = vld [vmem:[%s15341_s1 + $0xa4] sm:$0xf]  ;;  %v6362_v27 = vld [vmem:[%s15341_s1 + $0xb0] sm:$0xf0]  ;;  %v6368_v28 = vld [vmem:[%s15341_s1 + $0xa8] sm:$0xf]  ;;  %v6361_v29 = vor.u32 %v9407_v24, %v6360_v23 }
   0x8   :  { %225 = vmatpush.bf16.msra.mxu0 %v6377_v16  ;;  %v9408_v30 = vld [vmem:[%s15341_s1 + $0xb4] sm:$0xf0]  ;;  %v9406_v31 = vld [vmem:[%s15341_s1 + $0xac] sm:$0xf]  ;;  %v6370_v32 = vld [vmem:[%s15341_s1 + $0xb8] sm:$0xf0]  ;;  %v6365_v33 = vor.u32 %v9405_v26, %v6362_v27 }
   0x9   :  { %238 = vmatpush.bf16.msra.mxu1 %v6381_v17  ;;  %251 = vmatpush.bf16.msra.mxu2 %v6385_v21  ;;  %v6369_v34 = vor.u32 %v9408_v30, %v6368_v28  ;;  %v6344_v35 = vld [vmem:[%s15341_s1 + $0x80] sm:$0xf]  ;;  %v9403_v36 = vld [vmem:[%s15341_s1 + $0x8c] sm:$0xf0]  ;;  %v9401_v37 = vld [vmem:[%s15341_s1 + $0x84] sm:$0xf]  ;;  %v6373_v38 = vor.u32 %v9406_v31, %v6370_v32 }
   0xa   :  { %264 = vmatpush.bf16.msra.mxu3 %v6389_v25  ;;  %v6346_v39 = vld [vmem:[%s15341_s1 + $0x90] sm:$0xf0]  ;;  %v6352_v40 = vld [vmem:[%s15341_s1 + $0x88] sm:$0xf]  ;;  %v9404_v41 = vld [vmem:[%s15341_s1 + $0x94] sm:$0xf0]  ;;  %v6345_v44 = vor.u32 %v9403_v36, %v6344_v35 }
   0xb   :  { %v9402_v42 = vld [vmem:[%s15341_s1 + $0x8c] sm:$0xf]  ;;  %v6354_v43 = vld [vmem:[%s15341_s1 + $0x98] sm:$0xf0]  ;;  %v6349_v45 = vor.u32 %v9401_v37, %v6346_v39  ;;  %v6353_v46 = vor.u32 %v9404_v41, %v6352_v40  ;;  %v6328_v47 = vld [vmem:[%s15341_s1 + $0x60] sm:$0xf] }
   0xc   :  { %226 = vmatpush.bf16.msra.mxu0 %v6361_v29  ;;  %v9399_v48 = vld [vmem:[%s15341_s1 + $0x6c] sm:$0xf0]  ;;  %v9397_v49 = vld [vmem:[%s15341_s1 + $0x64] sm:$0xf]  ;;  %v6357_v50 = vor.u32 %v9402_v42, %v6354_v43  ;;  %v6330_v51 = vld [vmem:[%s15341_s1 + $0x70] sm:$0xf0] }
   0xd   :  { %239 = vmatpush.bf16.msra.mxu1 %v6365_v33  ;;  %252 = vmatpush.bf16.msra.mxu2 %v6369_v34  ;;  %v6336_v52 = vld [vmem:[%s15341_s1 + $0x68] sm:$0xf]  ;;  %v9400_v53 = vld [vmem:[%s15341_s1 + $0x74] sm:$0xf0]  ;;  %v9398_v54 = vld [vmem:[%s15341_s1 + $0x6c] sm:$0xf]  ;;  %v6329_v56 = vor.u32 %v9399_v48, %v6328_v47  ;;  %v6333_v57 = vor.u32 %v9397_v49, %v6330_v51 }
   0xe   :  { %265 = vmatpush.bf16.msra.mxu3 %v6373_v38  ;;  %v6338_v55 = vld [vmem:[%s15341_s1 + $0x78] sm:$0xf0]  ;;  %v6337_v58 = vor.u32 %v9400_v53, %v6336_v52  ;;  %v6312_v59 = vld [vmem:[%s15341_s1 + $0x40] sm:$0xf]  ;;  %v9395_v60 = vld [vmem:[%s15341_s1 + $0x4c] sm:$0xf0] }
   0xf   :  { %v9393_v61 = vld [vmem:[%s15341_s1 + $0x44] sm:$0xf]  ;;  %v6341_v62 = vor.u32 %v9398_v54, %v6338_v55  ;;  %v6314_v63 = vld [vmem:[%s15341_s1 + $0x50] sm:$0xf0]  ;;  %v6320_v0 = vld [vmem:[%s15341_s1 + $0x48] sm:$0xf]  ;;  %v6313_v4 = vor.u32 %v9395_v60, %v6312_v59 }
  0x10   :  { %227 = vmatpush.bf16.msra.mxu0 %v6345_v44  ;;  %v9396_v1 = vld [vmem:[%s15341_s1 + $0x54] sm:$0xf0]  ;;  %v9394_v2 = vld [vmem:[%s15341_s1 + $0x4c] sm:$0xf]  ;;  %v6322_v3 = vld [vmem:[%s15341_s1 + $0x58] sm:$0xf0]  ;;  %v6317_v5 = vor.u32 %v9393_v61, %v6314_v63 }
  0x11   :  { %240 = vmatpush.bf16.msra.mxu1 %v6349_v45  ;;  %253 = vmatpush.bf16.msra.mxu2 %v6353_v46  ;;  %v6321_v6 = vor.u32 %v9396_v1, %v6320_v0  ;;  %v6296_v7 = vld [vmem:[%s15341_s1 + $0x20] sm:$0xf]  ;;  %v9391_v8 = vld [vmem:[%s15341_s1 + $0x2c] sm:$0xf0]  ;;  %v9389_v9 = vld [vmem:[%s15341_s1 + $0x24] sm:$0xf]  ;;  %v6325_v10 = vor.u32 %v9394_v2, %v6322_v3 }
  0x12   :  { %266 = vmatpush.bf16.msra.mxu3 %v6357_v50  ;;  %v6298_v11 = vld [vmem:[%s15341_s1 + $0x30] sm:$0xf0]  ;;  %v6304_v12 = vld [vmem:[%s15341_s1 + $0x28] sm:$0xf]  ;;  %v9392_v13 = vld [vmem:[%s15341_s1 + $0x34] sm:$0xf0]  ;;  %v6297_v16 = vor.u32 %v9391_v8, %v6296_v7 }
  0x13   :  { %v9390_v14 = vld [vmem:[%s15341_s1 + $0x2c] sm:$0xf]  ;;  %v6306_v15 = vld [vmem:[%s15341_s1 + $0x38] sm:$0xf0]  ;;  %v6280_v17 = vld [vmem:[%s15341_s1] sm:$0xf]  ;;  %v6301_v18 = vor.u32 %v9389_v9, %v6298_v11  ;;  %v6305_v19 = vor.u32 %v9392_v13, %v6304_v12 }
  0x14   :  { %228 = vmatpush.bf16.msra.mxu0 %v6329_v56  ;;  %v9387_v20 = vld [vmem:[%s15341_s1 + $0xc] sm:$0xf0]  ;;  %v9385_v21 = vld [vmem:[%s15341_s1 + $0x4] sm:$0xf]  ;;  %v6282_v22 = vld [vmem:[%s15341_s1 + $0x10] sm:$0xf0]  ;;  %v6309_v23 = vor.u32 %v9390_v14, %v6306_v15 }
  0x15   :  { %241 = vmatpush.bf16.msra.mxu1 %v6333_v57  ;;  %254 = vmatpush.bf16.msra.mxu2 %v6337_v58  ;;  %v6288_v24 = vld [vmem:[%s15341_s1 + $0x8] sm:$0xf]  ;;  %v9388_v25 = vld [vmem:[%s15341_s1 + $0x14] sm:$0xf0]  ;;  %v9386_v26 = vld [vmem:[%s15341_s1 + $0xc] sm:$0xf]  ;;  %v6281_v30 = vor.u32 %v9387_v20, %v6280_v17  ;;  %v6285_v33 = vor.u32 %v9385_v21, %v6282_v22 }
  0x16   :  { %267 = vmatpush.bf16.msra.mxu3 %v6341_v62  ;;  %v6290_v27 = vld [vmem:[%s15341_s1 + $0x18] sm:$0xf0]  ;;  %v6648_v28 = vld [vmem:[%s15342_s2 + $0x1e0] sm:$0xf]  ;;  %v9479_v29 = vld [vmem:[%s15342_s2 + $0x1ec] sm:$0xf0]  ;;  %v6289_v34 = vor.u32 %v9388_v25, %v6288_v24 }
  0x17   :  { %v9477_v31 = vld [vmem:[%s15342_s2 + $0x1e4] sm:$0xf]  ;;  %v6650_v32 = vld [vmem:[%s15342_s2 + $0x1f0] sm:$0xf0]  ;;  %v6293_v35 = vor.u32 %v9386_v26, %v6290_v27  ;;  %v6649_v36 = vor.u32 %v9479_v29, %v6648_v28  ;;  %v6632_v38 = vld [vmem:[%s15342_s2 + $0x1c0] sm:$0xf] }
  0x18   :  { %229 = vmatpush.bf16.msra.mxu0 %v6313_v4  ;;  %v6653_v37 = vor.u32 %v9477_v31, %v6650_v32  ;;  %v9475_v39 = vld [vmem:[%s15342_s2 + $0x1cc] sm:$0xf0]  ;;  %v9473_v40 = vld [vmem:[%s15342_s2 + $0x1c4] sm:$0xf]  ;;  %v6634_v41 = vld [vmem:[%s15342_s2 + $0x1d0] sm:$0xf0] }
  0x19   :  { %242 = vmatpush.bf16.msra.mxu1 %v6317_v5  ;;  %255 = vmatpush.bf16.msra.mxu2 %v6321_v6  ;;  %v6633_v42 = vor.u32 %v9475_v39, %v6632_v38  ;;  %v6616_v43 = vld [vmem:[%s15342_s2 + $0x1a0] sm:$0xf]  ;;  %v9471_v44 = vld [vmem:[%s15342_s2 + $0x1ac] sm:$0xf0]  ;;  %v10315_v46 = vmov 0   ;;  %v6637_v47 = vor.u32 %v9473_v40, %v6634_v41 }
  0x1a   :  { %268 = vmatpush.bf16.msra.mxu3 %v6325_v10  ;;  %v6520_v45 = vld [vmem:[%s15342_s2 + $0xe0] sm:$0xf]  ;;  %v9447_v48 = vld [vmem:[%s15342_s2 + $0xec] sm:$0xf0]  ;;  %v9445_v49 = vld [vmem:[%s15342_s2 + $0xe4] sm:$0xf]  ;;  %v6617_v57 = vor.u32 %v9471_v44, %v6616_v43 }
  0x1b   :  { %v6522_v50 = vld [vmem:[%s15342_s2 + $0xf0] sm:$0xf0]  ;;  %v9469_v51 = vld [vmem:[%s15342_s2 + $0x1a4] sm:$0xf]  ;;  %v6521_v53 = vor.u32 %v9447_v48, %v6520_v45  ;;  %v6504_v55 = vld [vmem:[%s15342_s2 + $0xc0] sm:$0xf] }
  0x1c   :  { %230 = vmatpush.bf16.msra.mxu0 %v6297_v16  ;;  %v6618_v52 = vld [vmem:[%s15342_s2 + $0x1b0] sm:$0xf0]  ;;  %v6525_v54 = vor.u32 %v9445_v49, %v6522_v50  ;;  %v9443_v56 = vld [vmem:[%s15342_s2 + $0xcc] sm:$0xf0]  ;;  %v6600_v58 = vld [vmem:[%s15342_s2 + $0x180] sm:$0xf] }
  0x1d   :  { %243 = vmatpush.bf16.msra.mxu1 %v6301_v18  ;;  %256 = vmatpush.bf16.msra.mxu2 %v6305_v19  ;;  %v6505_v59 = vor.u32 %v9443_v56, %v6504_v55  ;;  %v9441_v60 = vld [vmem:[%s15342_s2 + $0xc4] sm:$0xf]  ;;  %v6506_v61 = vld [vmem:[%s15342_s2 + $0xd0] sm:$0xf0]  ;;  %v6621_v62 = vor.u32 %v9469_v51, %v6618_v52  ;;  %v9467_v63 = vld [vmem:[%s15342_s2 + $0x18c] sm:$0xf0] }
  0x1e   :  { %269 = vmatpush.bf16.msra.mxu3 %v6309_v23  ;;  %v9465_v0 = vld [vmem:[%s15342_s2 + $0x184] sm:$0xf]  ;;  %v6602_v1 = vld [vmem:[%s15342_s2 + $0x190] sm:$0xf0]  ;;  %v6509_v2 = vor.u32 %v9441_v60, %v6506_v61  ;;  %v6488_v3 = vld [vmem:[%s15342_s2 + $0xa0] sm:$0xf]  ;;  %v6601_v7 = vor.u32 %v9467_v63, %v6600_v58 }
  0x1f   :  { %v9439_v4 = vld [vmem:[%s15342_s2 + $0xac] sm:$0xf0]  ;;  %v9437_v5 = vld [vmem:[%s15342_s2 + $0xa4] sm:$0xf]  ;;  %v6490_v6 = vld [vmem:[%s15342_s2 + $0xb0] sm:$0xf0]  ;;  %v6605_v10 = vor.u32 %v9465_v0, %v6602_v1 }
  0x20   :  { %231 = vmatpush.bf16.msra.mxu0 %v6281_v30  ;;  %v6584_v8 = vld [vmem:[%s15342_s2 + $0x160] sm:$0xf]  ;;  %v6489_v9 = vor.u32 %v9439_v4, %v6488_v3  ;;  %v9463_v11 = vld [vmem:[%s15342_s2 + $0x16c] sm:$0xf0]  ;;  %v9461_v12 = vld [vmem:[%s15342_s2 + $0x164] sm:$0xf]  ;;  %v6493_v14 = vor.u32 %v9437_v5, %v6490_v6 }
  0x21   :  { %244 = vmatpush.bf16.msra.mxu1 %v6285_v33  ;;  %257 = vmatpush.bf16.msra.mxu2 %v6289_v34  ;;  %v6586_v13 = vld [vmem:[%s15342_s2 + $0x170] sm:$0xf0]  ;;  %v6472_v15 = vld [vmem:[%s15342_s2 + $0x80] sm:$0xf]  ;;  %v9435_v16 = vld [vmem:[%s15342_s2 + $0x8c] sm:$0xf0]  ;;  %v6585_v19 = vor.u32 %v9463_v11, %v6584_v8 }
  0x22   :  { %270 = vmatpush.bf16.msra.mxu3 %v6293_v35  ;;  %v9433_v17 = vld [vmem:[%s15342_s2 + $0x84] sm:$0xf]  ;;  %v6474_v18 = vld [vmem:[%s15342_s2 + $0x90] sm:$0xf0]  ;;  %v6568_v20 = vld [vmem:[%s15342_s2 + $0x140] sm:$0xf]  ;;  %v6473_v21 = vor.u32 %v9435_v16, %v6472_v15  ;;  %v6589_v22 = vor.u32 %v9461_v12, %v6586_v13 }
  0x23   :  { %232 = vmatmul.bf16.vlgmr.msra.gmra.mxu0 %v10315_v46  ;;  %v9459_v23 = vld [vmem:[%s15342_s2 + $0x14c] sm:$0xf0]  ;;  %v9457_v24 = vld [vmem:[%s15342_s2 + $0x144] sm:$0xf]  ;;  %v6570_v25 = vld [vmem:[%s15342_s2 + $0x150] sm:$0xf0]  ;;  %v6477_v26 = vor.u32 %v9433_v17, %v6474_v18 }
  0x24   :  { %245 = vmatmul.bf16.vlgmr.msra.gmra.mxu1 %v10315_v46  ;;  %258 = vmatmul.bf16.vlgmr.msra.gmra.mxu2 %v10315_v46  ;;  %v6456_v27 = vld [vmem:[%s15342_s2 + $0x60] sm:$0xf]  ;;  %v9431_v28 = vld [vmem:[%s15342_s2 + $0x6c] sm:$0xf0]  ;;  %v9429_v29 = vld [vmem:[%s15342_s2 + $0x64] sm:$0xf]  ;;  %v6569_v31 = vor.u32 %v9459_v23, %v6568_v20  ;;  %v6573_v34 = vor.u32 %v9457_v24, %v6570_v25 }
  0x25   :  { %697 = vmatpush.bf16.msrb.mxu1 %v6649_v36  ;;  %271 = vmatmul.bf16.vlgmr.msra.gmra.mxu3 %v10315_v46  ;;  %v6458_v30 = vld [vmem:[%s15342_s2 + $0x70] sm:$0xf0]  ;;  %v6552_v32 = vld [vmem:[%s15342_s2 + $0x120] sm:$0xf]  ;;  %v6457_v33 = vor.u32 %v9431_v28, %v6456_v27  ;;  %v9455_v35 = vld [vmem:[%s15342_s2 + $0x12c] sm:$0xf0] }
  0x26   :  { %723 = vmatpush.bf16.msrb.mxu3 %v6653_v37  ;;  %684 = vmatpush.bf16.msrb.mxu0 %v6521_v53  ;;  %v9453_v36 = vld [vmem:[%s15342_s2 + $0x124] sm:$0xf]  ;;  %v6554_v37 = vld [vmem:[%s15342_s2 + $0x130] sm:$0xf0]  ;;  %v6461_v38 = vor.u32 %v9429_v29, %v6458_v30  ;;  %v6440_v39 = vld [vmem:[%s15342_s2 + $0x40] sm:$0xf]  ;;  %v6553_v43 = vor.u32 %v9455_v35, %v6552_v32 }
  0x27   :  { %710 = vmatpush.bf16.msrb.mxu2 %v6525_v54  ;;  %v9427_v40 = vld [vmem:[%s15342_s2 + $0x4c] sm:$0xf0]  ;;  %v9425_v41 = vld [vmem:[%s15342_s2 + $0x44] sm:$0xf]  ;;  %v6536_v44 = vld [vmem:[%s15342_s2 + $0x100] sm:$0xf]  ;;  %v6557_v48 = vor.u32 %v9453_v36, %v6554_v37 }
  0x28   :  { %v9451_v45 = vld [vmem:[%s15342_s2 + $0x10c] sm:$0xf0]  ;;  %v9449_v46 = vld [vmem:[%s15342_s2 + $0x104] sm:$0xf]  ;;  %v6538_v49 = vld [vmem:[%s15342_s2 + $0x110] sm:$0xf0] }
  0x29   :  { %698 = vmatpush.bf16.msrb.mxu1 %v6633_v42  ;;  %v6442_v42 = vld [vmem:[%s15342_s2 + $0x50] sm:$0xf0]  ;;  %v6656_v50 = vld [vmem:[%s15342_s2 + $0x1e8] sm:$0xf]  ;;  %v9480_v51 = vld [vmem:[%s15342_s2 + $0x1f4] sm:$0xf0]  ;;  %v6541_v61 = vor.u32 %v9449_v46, %v6538_v49 }
  0x2a   :  { %724 = vmatpush.bf16.msrb.mxu3 %v6637_v47  ;;  %685 = vmatpush.bf16.msrb.mxu0 %v6505_v59  ;;  %v6441_v47 = vor.u32 %v9427_v40, %v6440_v39  ;;  %v6445_v52 = vor.u32 %v9425_v41, %v6442_v42  ;;  %v9478_v53 = vld [vmem:[%s15342_s2 + $0x1ec] sm:$0xf]  ;;  %v6424_v54 = vld [vmem:[%s15342_s2 + $0x20] sm:$0xf]  ;;  %v9423_v55 = vld [vmem:[%s15342_s2 + $0x2c] sm:$0xf0]  ;;  %v6537_v59 = vor.u32 %v9451_v45, %v6536_v44 }
  0x2b   :  { %711 = vmatpush.bf16.msrb.mxu2 %v6509_v2  ;;  %v6658_v56 = vld [vmem:[%s15342_s2 + $0x1f8] sm:$0xf0]  ;;  %v6426_v58 = vld [vmem:[%s15342_s2 + $0x30] sm:$0xf0]  ;;  %v6425_v60 = vor.u32 %v9423_v55, %v6424_v54  ;;  %v6640_v0 = vld [vmem:[%s15342_s2 + $0x1c8] sm:$0xf] }
  0x2c   :  { %v6661_v63 = vor.u32 %v9478_v53, %v6658_v56  ;;  %v9476_v1 = vld [vmem:[%s15342_s2 + $0x1d4] sm:$0xf0]  ;;  %v9474_v3 = vld [vmem:[%s15342_s2 + $0x1cc] sm:$0xf]  ;;  %v6642_v4 = vld [vmem:[%s15342_s2 + $0x1d8] sm:$0xf0] }
  0x2d   :  { %699 = vmatpush.bf16.msrb.mxu1 %v6617_v57  ;;  %v9421_v57 = vld [vmem:[%s15342_s2 + $0x24] sm:$0xf]  ;;  %v6641_v5 = vor.u32 %v9476_v1, %v6640_v0  ;;  %v6645_v6 = vor.u32 %v9474_v3, %v6642_v4  ;;  %v9472_v8 = vld [vmem:[%s15342_s2 + $0x1b4] sm:$0xf0]  ;;  %v10316_v11 = vmov 0.0|0.0  }
  0x2e   :  { %725 = vmatpush.bf16.msrb.mxu3 %v6621_v62  ;;  %686 = vmatpush.bf16.msrb.mxu0 %v6489_v9  ;;  %v6657_v62 = vor.u32 %v9480_v51, %v6656_v50  ;;  %v6429_v2 = vor.u32 %v9421_v57, %v6426_v58  ;;  %v9470_v9 = vld [vmem:[%s15342_s2 + $0x1ac] sm:$0xf]  ;;  %v9468_v15 = vld [vmem:[%s15342_s2 + $0x194] sm:$0xf0]  ;;  %v6610_v17 = vld [vmem:[%s15342_s2 + $0x198] sm:$0xf0] }
  0x2f   :  { %712 = vmatpush.bf16.msrb.mxu2 %v6493_v14  ;;  %v6608_v14 = vld [vmem:[%s15342_s2 + $0x188] sm:$0xf]  ;;  %v9466_v16 = vld [vmem:[%s15342_s2 + $0x18c] sm:$0xf]  ;;  %v6594_v23 = vld [vmem:[%s15342_s2 + $0x178] sm:$0xf0] }
  0x30   :  { %v6609_v18 = vor.u32 %v9468_v15, %v6608_v14  ;;  %v6592_v20 = vld [vmem:[%s15342_s2 + $0x168] sm:$0xf]  ;;  %v9460_v27 = vld [vmem:[%s15342_s2 + $0x154] sm:$0xf0]  ;;  %v9458_v28 = vld [vmem:[%s15342_s2 + $0x14c] sm:$0xf] }
  0x31   :  { %700 = vmatpush.bf16.msrb.mxu1 %v6601_v7  ;;  %v6624_v7 = vld [vmem:[%s15342_s2 + $0x1a8] sm:$0xf]  ;;  %v6578_v29 = vld [vmem:[%s15342_s2 + $0x158] sm:$0xf0]  ;;  %v9452_v39 = vld [vmem:[%s15342_s2 + $0x114] sm:$0xf0] }
  0x32   :  { %726 = vmatpush.bf16.msrb.mxu3 %v6605_v10  ;;  %687 = vmatpush.bf16.msrb.mxu0 %v6473_v21  ;;  %v6626_v10 = vld [vmem:[%s15342_s2 + $0x1b8] sm:$0xf0]  ;;  %v6625_v12 = vor.u32 %v9472_v8, %v6624_v7  ;;  %v9464_v21 = vld [vmem:[%s15342_s2 + $0x174] sm:$0xf0]  ;;  %v6560_v32 = vld [vmem:[%s15342_s2 + $0x128] sm:$0xf] }
  0x33   :  { %713 = vmatpush.bf16.msrb.mxu2 %v6477_v26  ;;  %v6629_v13 = vor.u32 %v9470_v9, %v6626_v10  ;;  %v6593_v24 = vor.u32 %v9464_v21, %v6592_v20  ;;  %v6576_v26 = vld [vmem:[%s15342_s2 + $0x148] sm:$0xf]  ;;  %v6562_v35 = vld [vmem:[%s15342_s2 + $0x138] sm:$0xf0]  ;;  %v9450_v40 = vld [vmem:[%s15342_s2 + $0x10c] sm:$0xf] }
  0x34   :  { %v6577_v30 = vor.u32 %v9460_v27, %v6576_v26  ;;  %v6546_v41 = vld [vmem:[%s15342_s2 + $0x118] sm:$0xf0]  ;;  %v9509_v44 = vld [vmem:[%s15341_s1 + $0xe4] sm:$0xf]  ;;  %v6782_v45 = vld [vmem:[%s15341_s1 + $0xf0] sm:$0xf0] }
  0x35   :  { %701 = vmatpush.bf16.msrb.mxu1 %v6585_v19  ;;  %v6613_v19 = vor.u32 %v9466_v16, %v6610_v17  ;;  %v9510_v46 = vld [vmem:[%s15341_s1 + $0xec] sm:$0xf]  ;;  %v6408_v50 = vld [vmem:[%s15342_s2] sm:$0xf]  ;;  %v9419_v51 = vld [vmem:[%s15342_s2 + $0xc] sm:$0xf0] }
  0x36   :  { %727 = vmatpush.bf16.msrb.mxu3 %v6589_v22  ;;  %688 = vmatpush.bf16.msrb.mxu0 %v6457_v33  ;;  %v9462_v22 = vld [vmem:[%s15342_s2 + $0x16c] sm:$0xf]  ;;  %v9456_v33 = vld [vmem:[%s15342_s2 + $0x134] sm:$0xf0]  ;;  %v6409_v53 = vor.u32 %v9419_v51, %v6408_v50  ;;  %v6410_v54 = vld [vmem:[%s15342_s2 + $0x10] sm:$0xf0] }
  0x37   :  { %714 = vmatpush.bf16.msrb.mxu2 %v6461_v38  ;;  %v6597_v25 = vor.u32 %v9462_v22, %v6594_v23  ;;  %v6561_v36 = vor.u32 %v9456_v33, %v6560_v32  ;;  %v6544_v38 = vld [vmem:[%s15342_s2 + $0x108] sm:$0xf]  ;;  %v9448_v57 = vld [vmem:[%s15342_s2 + $0xf4] sm:$0xf0]  ;;  %v9446_v58 = vld [vmem:[%s15342_s2 + $0xec] sm:$0xf] }
  0x38   :  { %v6545_v42 = vor.u32 %v9452_v39, %v6544_v38  ;;  %v6528_v55 = vld [vmem:[%s15342_s2 + $0xe8] sm:$0xf]  ;;  %v9506_v0 = vld [vmem:[%s15341_s1 + $0xcc] sm:$0xf]  ;;  %v6514_v8 = vld [vmem:[%s15342_s2 + $0xd8] sm:$0xf0] }
  0x39   :  { %702 = vmatpush.bf16.msrb.mxu1 %v6569_v31  ;;  %v6581_v31 = vor.u32 %v9458_v28, %v6578_v29  ;;  %v6512_v4 = vld [vmem:[%s15342_s2 + $0xc8] sm:$0xf]  ;;  %v9501_v9 = vld [vmem:[%s15341_s1 + $0xa4] sm:$0xf]  ;;  %v6750_v10 = vld [vmem:[%s15341_s1 + $0xb0] sm:$0xf0] }
  0x3a   :  { %728 = vmatpush.bf16.msrb.mxu3 %v6573_v34  ;;  %689 = vmatpush.bf16.msrb.mxu0 %v6441_v47  ;;  %v9454_v34 = vld [vmem:[%s15342_s2 + $0x12c] sm:$0xf]  ;;  %v6785_v47 = vor.u32 %v9509_v44, %v6782_v45  ;;  %v6758_v14 = vld [vmem:[%s15341_s1 + $0xb8] sm:$0xf0]  ;;  %v6496_v16 = vld [vmem:[%s15342_s2 + $0xa8] sm:$0xf] }
  0x3b   :  { %715 = vmatpush.bf16.msrb.mxu2 %v6445_v52  ;;  %v6565_v37 = vor.u32 %v9454_v34, %v6562_v35  ;;  %v9417_v52 = vld [vmem:[%s15342_s2 + $0x4] sm:$0xf]  ;;  %v9440_v17 = vld [vmem:[%s15342_s2 + $0xb4] sm:$0xf0]  ;;  %v6498_v20 = vld [vmem:[%s15342_s2 + $0xb8] sm:$0xf0] }
  0x3c   :  { %v6413_v56 = vor.u32 %v9417_v52, %v6410_v54  ;;  %v9497_v21 = vld [vmem:[%s15341_s1 + $0x84] sm:$0xf]  ;;  %v6734_v22 = vld [vmem:[%s15341_s1 + $0x90] sm:$0xf0]  ;;  %v6742_v26 = vld [vmem:[%s15341_s1 + $0x98] sm:$0xf0] }
  0x3d   :  { %703 = vmatpush.bf16.msrb.mxu1 %v6553_v43  ;;  %v6549_v43 = vor.u32 %v9450_v40, %v6546_v41  ;;  %v6480_v28 = vld [vmem:[%s15342_s2 + $0x88] sm:$0xf]  ;;  %v9436_v29 = vld [vmem:[%s15342_s2 + $0x94] sm:$0xf0]  ;;  %v6482_v32 = vld [vmem:[%s15342_s2 + $0x98] sm:$0xf0] }
  0x3e   :  { %729 = vmatpush.bf16.msrb.mxu3 %v6557_v48  ;;  %690 = vmatpush.bf16.msrb.mxu0 %v6425_v60  ;;  %v6790_v48 = vld [vmem:[%s15341_s1 + $0xf8] sm:$0xf0]  ;;  %v6529_v60 = vor.u32 %v9448_v57, %v6528_v55  ;;  %v9493_v33 = vld [vmem:[%s15341_s1 + $0x64] sm:$0xf]  ;;  %v6718_v34 = vld [vmem:[%s15341_s1 + $0x70] sm:$0xf0] }
  0x3f   :  { %716 = vmatpush.bf16.msrb.mxu2 %v6429_v2  ;;  %v6793_v49 = vor.u32 %v9510_v46, %v6790_v48  ;;  %v6774_v2 = vld [vmem:[%s15341_s1 + $0xd8] sm:$0xf0]  ;;  %v6464_v40 = vld [vmem:[%s15342_s2 + $0x68] sm:$0xf]  ;;  %v9432_v41 = vld [vmem:[%s15342_s2 + $0x74] sm:$0xf0] }
  0x40   :  { %v6777_v3 = vor.u32 %v9506_v0, %v6774_v2  ;;  %v6726_v38 = vld [vmem:[%s15341_s1 + $0x78] sm:$0xf0]  ;;  %v9489_v45 = vld [vmem:[%s15341_s1 + $0x44] sm:$0xf]  ;;  %v6702_v46 = vld [vmem:[%s15341_s1 + $0x50] sm:$0xf0] }
  0x41   :  { %704 = vmatpush.bf16.msrb.mxu1 %v6537_v59  ;;  %v6530_v59 = vld [vmem:[%s15342_s2 + $0xf8] sm:$0xf0]  ;;  %v6705_v48 = vor.u32 %v9489_v45, %v6702_v46  ;;  %v6448_v52 = vld [vmem:[%s15342_s2 + $0x48] sm:$0xf]  ;;  %v9426_v54 = vld [vmem:[%s15342_s2 + $0x4c] sm:$0xf] }
  0x42   :  { %730 = vmatpush.bf16.msrb.mxu3 %v6541_v61  ;;  %691 = vmatpush.bf16.msrb.mxu0 %v6409_v53  ;;  %v6533_v61 = vor.u32 %v9446_v58, %v6530_v59  ;;  %v6466_v44 = vld [vmem:[%s15342_s2 + $0x78] sm:$0xf0]  ;;  %v9428_v53 = vld [vmem:[%s15342_s2 + $0x54] sm:$0xf0]  ;;  %v9485_v57 = vld [vmem:[%s15341_s1 + $0x24] sm:$0xf] }
  0x43   :  { %717 = vmatpush.bf16.msrb.mxu2 %v6413_v56  ;;  %v6710_v50 = vld [vmem:[%s15341_s1 + $0x58] sm:$0xf0]  ;;  %v6449_v55 = vor.u32 %v9428_v53, %v6448_v52  ;;  %v6686_v58 = vld [vmem:[%s15341_s1 + $0x30] sm:$0xf0]  ;;  %v6432_v0 = vld [vmem:[%s15342_s2 + $0x28] sm:$0xf] }
  0x44   :  { %705 = vmatmul.bf16.vlgmr.msrb.gmra.mxu1 %v10316_v11  ;;  %v6450_v56 = vld [vmem:[%s15342_s2 + $0x58] sm:$0xf0]  ;;  %v9422_v2 = vld [vmem:[%s15342_s2 + $0x2c] sm:$0xf]  ;;  %v9511_v52 = vld [vmem:[%s15341_s1 + $0xec] sm:$0xf0] }
  0x45   :  { %749 = vmatpush.bf16.msra.mxu1 %v6657_v62  ;;  %731 = vmatmul.bf16.vlgmr.msrb.gmra.mxu3 %v10316_v11  ;;  %v9505_v62 = vld [vmem:[%s15341_s1 + $0xc4] sm:$0xf]  ;;  %v6453_v59 = vor.u32 %v9426_v54, %v6450_v56  ;;  %v6788_v53 = vld [vmem:[%s15341_s1 + $0xe8] sm:$0xf]  ;;  %v9512_v54 = vld [vmem:[%s15341_s1 + $0xf4] sm:$0xf0] }
  0x46   :  { %775 = vmatpush.bf16.msra.mxu3 %v6661_v63  ;;  %v6766_v63 = vld [vmem:[%s15341_s1 + $0xd0] sm:$0xf0]  ;;  %736 = vmatpush.bf16.msra.mxu0 %v6529_v60  ;;  %v6689_v60 = vor.u32 %v9485_v57, %v6686_v58  ;;  %v6789_v58 = vor.u32 %v9512_v54, %v6788_v53  ;;  %v6684_v54 = vld [vmem:[%s15341_s1 + $0x20] sm:$0xf] }
  0x47   :  { %v6769_v1 = vor.u32 %v9505_v62, %v6766_v63  ;;  %762 = vmatpush.bf16.msra.mxu2 %v6533_v61  ;;  %v9486_v61 = vld [vmem:[%s15341_s1 + $0x2c] sm:$0xf]  ;;  %v6694_v62 = vld [vmem:[%s15341_s1 + $0x38] sm:$0xf0] }
  0x48   :  { %v6697_v63 = vor.u32 %v9486_v61, %v6694_v62  ;;  %v6772_v61 = vld [vmem:[%s15341_s1 + $0xc8] sm:$0xf]  ;;  %v9508_v62 = vld [vmem:[%s15341_s1 + $0xd4] sm:$0xf0] }
  0x49   :  { %750 = vmatpush.bf16.msra.mxu1 %v6641_v5  ;;  %v9444_v5 = vld [vmem:[%s15342_s2 + $0xd4] sm:$0xf0] }
  0x4a   :  { %776 = vmatpush.bf16.msra.mxu3 %v6645_v6  ;;  %v9442_v6 = vld [vmem:[%s15342_s2 + $0xcc] sm:$0xf]  ;;  %v6513_v7 = vor.u32 %v9444_v5, %v6512_v4  ;;  %v6434_v4 = vld [vmem:[%s15342_s2 + $0x38] sm:$0xf0]  ;;  %v9481_v5 = vld [vmem:[%s15341_s1 + $0x4] sm:$0xf] }
  0x4c   :  { %737 = vmatpush.bf16.msra.mxu0 %v6513_v7  ;;  %v6437_v7 = vor.u32 %v9422_v2, %v6434_v4  ;;  %v9575_v4 = vld [vmem:[%s15342_s2 + $0x1ec] sm:$0xf0] }
  0x4d   :  { %751 = vmatpush.bf16.msra.mxu1 %v6625_v12  ;;  %v6753_v12 = vor.u32 %v9501_v9, %v6750_v10  ;;  %v9482_v9 = vld [vmem:[%s15341_s1 + $0xc] sm:$0xf]  ;;  %v6678_v10 = vld [vmem:[%s15341_s1 + $0x18] sm:$0xf0] }
  0x4e   :  { %777 = vmatpush.bf16.msra.mxu3 %v6629_v13  ;;  %v9502_v13 = vld [vmem:[%s15341_s1 + $0xac] sm:$0xf] }
  0x4f   :  { %v6761_v15 = vor.u32 %v9502_v13, %v6758_v14  ;;  %v6416_v13 = vld [vmem:[%s15342_s2 + $0x8] sm:$0xf]  ;;  %v9420_v14 = vld [vmem:[%s15342_s2 + $0x14] sm:$0xf0] }
  0x51   :  { %752 = vmatpush.bf16.msra.mxu1 %v6609_v18  ;;  %v9438_v18 = vld [vmem:[%s15342_s2 + $0xac] sm:$0xf] }
  0x52   :  { %778 = vmatpush.bf16.msra.mxu3 %v6613_v19  ;;  %v6497_v19 = vor.u32 %v9440_v17, %v6496_v16  ;;  %v6501_v23 = vor.u32 %v9438_v18, %v6498_v20  ;;  %v29_v16 = vld [vmem:[%s15343_s0 + $0x8] sm:$0xff]  ;;  %v6417_v17 = vor.u32 %v9420_v14, %v6416_v13  ;;  %v6418_v18 = vld [vmem:[%s15342_s2 + $0x18] sm:$0xf0]  ;;  %v9569_v14 = vld [vmem:[%s15342_s2 + $0x1c4] sm:$0xf] }
  0x54   :  { %738 = vmatpush.bf16.msra.mxu0 %v6497_v19 }
  0x55   :  { %753 = vmatpush.bf16.msra.mxu1 %v6593_v24  ;;  %v6737_v24 = vor.u32 %v9497_v21, %v6734_v22 }
  0x56   :  { %779 = vmatpush.bf16.msra.mxu3 %v6597_v25  ;;  %v9498_v25 = vld [vmem:[%s15341_s1 + $0x8c] sm:$0xf] }
  0x57   :  { %v6745_v27 = vor.u32 %v9498_v25, %v6742_v26  ;;  %v30_v26 = vld [vmem:[%s15343_s0 + $0x10] sm:$0xff] }
  0x59   :  { %754 = vmatpush.bf16.msra.mxu1 %v6577_v30  ;;  %v9434_v30 = vld [vmem:[%s15342_s2 + $0x8c] sm:$0xf] }
  0x5a   :  { %780 = vmatpush.bf16.msra.mxu3 %v6581_v31  ;;  %v6481_v31 = vor.u32 %v9436_v29, %v6480_v28  ;;  %v6485_v35 = vor.u32 %v9434_v30, %v6482_v32 }
  0x5c   :  { %739 = vmatpush.bf16.msra.mxu0 %v6481_v31 }
  0x5d   :  { %755 = vmatpush.bf16.msra.mxu1 %v6561_v36  ;;  %v6721_v36 = vor.u32 %v9493_v33, %v6718_v34 }
  0x5e   :  { %781 = vmatpush.bf16.msra.mxu3 %v6565_v37  ;;  %v9494_v37 = vld [vmem:[%s15341_s1 + $0x6c] sm:$0xf] }
  0x5f   :  { %v6729_v39 = vor.u32 %v9494_v37, %v6726_v38 }
  0x61   :  { %756 = vmatpush.bf16.msra.mxu1 %v6545_v42  ;;  %v9430_v42 = vld [vmem:[%s15342_s2 + $0x6c] sm:$0xf] }
  0x62   :  { %782 = vmatpush.bf16.msra.mxu3 %v6549_v43  ;;  %v6465_v43 = vor.u32 %v9432_v41, %v6464_v40 }
  0x64   :  { %757 = vmatmul.bf16.vlgmr.msra.gmra.mxu1 %v10316_v11  ;;  %740 = vmatpush.bf16.msra.mxu0 %v6465_v43 }
  0x65   :  { %783 = vmatmul.bf16.vlgmr.msra.gmra.mxu3 %v10316_v11  ;;  %1017 = vmatpush.bf16.msrb.mxu1 %v6785_v47  ;;  %v6517_v11 = vor.u32 %v9442_v6, %v6514_v8  ;;  %v6469_v47 = vor.u32 %v9430_v42, %v6466_v44  ;;  %v6670_v6 = vld [vmem:[%s15341_s1 + $0x10] sm:$0xf0] }
  0x66   :  { %1043 = vmatpush.bf16.msrb.mxu3 %v6793_v49  ;;  %v9490_v49 = vld [vmem:[%s15341_s1 + $0x4c] sm:$0xf]  ;;  %v6673_v8 = vor.u32 %v9481_v5, %v6670_v6  ;;  %v9573_v5 = vld [vmem:[%s15342_s2 + $0x1e4] sm:$0xf] }
  0x67   :  { %763 = vmatpush.bf16.msra.mxu2 %v6517_v11  ;;  %v6713_v51 = vor.u32 %v9490_v49, %v6710_v50  ;;  %v28_v11 = vld [vmem:[%s15343_s0] sm:$0xff] }
  0x68   :  { %741 = vmatpush.bf16.msra.mxu0 %v6449_v55  ;;  %v6780_v50 = vld [vmem:[%s15341_s1 + $0xe0] sm:$0xf] }
  0x69   :  { %1018 = vmatpush.bf16.msrb.mxu1 %v6769_v1  ;;  %v9424_v1 = vld [vmem:[%s15342_s2 + $0x34] sm:$0xf0]  ;;  %v6781_v57 = vor.u32 %v9511_v52, %v6780_v50  ;;  %v6708_v50 = vld [vmem:[%s15341_s1 + $0x48] sm:$0xf] }
  0x6a   :  { %1044 = vmatpush.bf16.msrb.mxu3 %v6777_v3  ;;  %v6433_v3 = vor.u32 %v9424_v1, %v6432_v0  ;;  %v9503_v0 = vld [vmem:[%s15341_s1 + $0xac] sm:$0xf0]  ;;  %v6756_v1 = vld [vmem:[%s15341_s1 + $0xa8] sm:$0xf] }
  0x6b   :  { %764 = vmatpush.bf16.msra.mxu2 %v6501_v23 }
  0x6c   :  { %742 = vmatpush.bf16.msra.mxu0 %v6433_v3  ;;  %v7036_v3 = vld [vmem:[%s15342_s2 + $0x1e0] sm:$0xf] }
  0x6d   :  { %1019 = vmatpush.bf16.msrb.mxu1 %v6753_v12  ;;  %v6681_v12 = vor.u32 %v9482_v9, %v6678_v10  ;;  %v7038_v9 = vld [vmem:[%s15342_s2 + $0x1f0] sm:$0xf0]  ;;  %v7020_v10 = vld [vmem:[%s15342_s2 + $0x1c0] sm:$0xf] }
  0x6e   :  { %1045 = vmatpush.bf16.msrb.mxu3 %v6761_v15  ;;  %v9418_v15 = vld [vmem:[%s15342_s2 + $0xc] sm:$0xf]  ;;  %v7041_v13 = vor.u32 %v9573_v5, %v7038_v9  ;;  %v9559_v9 = vld [vmem:[%s15342_s2 + $0x16c] sm:$0xf0] }
  0x6f   :  { %765 = vmatpush.bf16.msra.mxu2 %v6485_v35  ;;  %v6421_v20 = vor.u32 %v9418_v15, %v6418_v18  ;;  %v7022_v15 = vld [vmem:[%s15342_s2 + $0x1d0] sm:$0xf0] }
  0x70   :  { %743 = vmatpush.bf16.msra.mxu0 %v6417_v17  ;;  %v7025_v18 = vor.u32 %v9569_v14, %v7022_v15  ;;  %v9543_v14 = vld [vmem:[%s15342_s2 + $0xec] sm:$0xf0]  ;;  %v9541_v15 = vld [vmem:[%s15342_s2 + $0xe4] sm:$0xf] }
  0x71   :  { %1020 = vmatpush.bf16.msrb.mxu1 %v6737_v24 }
  0x72   :  { %1046 = vmatpush.bf16.msrb.mxu3 %v6745_v27  ;;  %v31_v27 = vld [vmem:[%s15343_s0 + $0x18] sm:$0xff] }
  0x73   :  { %766 = vmatpush.bf16.msra.mxu2 %v6469_v47 }
  0x75   :  { %1021 = vmatpush.bf16.msrb.mxu1 %v6721_v36 }
  0x76   :  { %1047 = vmatpush.bf16.msrb.mxu3 %v6729_v39 }
  0x77   :  { %767 = vmatpush.bf16.msra.mxu2 %v6453_v59  ;;  %v6764_v59 = vld [vmem:[%s15341_s1 + $0xc0] sm:$0xf] }
  0x79   :  { %1022 = vmatpush.bf16.msrb.mxu1 %v6705_v48 }
  0x7a   :  { %1048 = vmatpush.bf16.msrb.mxu3 %v6713_v51 }
  0x7b   :  { %768 = vmatpush.bf16.msra.mxu2 %v6437_v7  ;;  %v6773_v7 = vor.u32 %v9508_v62, %v6772_v61  ;;  %v6668_v61 = vld [vmem:[%s15341_s1] sm:$0xf]  ;;  %v9483_v62 = vld [vmem:[%s15341_s1 + $0xc] sm:$0xf0] }
  0x7d   :  { %1023 = vmatpush.bf16.msrb.mxu1 %v6689_v60  ;;  %v9507_v60 = vld [vmem:[%s15341_s1 + $0xcc] sm:$0xf0] }
  0x7e   :  { %1049 = vmatpush.bf16.msrb.mxu3 %v6697_v63  ;;  %v6748_v63 = vld [vmem:[%s15341_s1 + $0xa0] sm:$0xf]  ;;  %v6765_v6 = vor.u32 %v9507_v60, %v6764_v59 }
  0x7f   :  { %769 = vmatpush.bf16.msra.mxu2 %v6421_v20  ;;  %v9567_v20 = vld [vmem:[%s15342_s2 + $0x1ac] sm:$0xf0] }
  0x81   :  { %1024 = vmatpush.bf16.msrb.mxu1 %v6673_v8  ;;  %v7037_v8 = vor.u32 %v9575_v4, %v7036_v3 }
  0x82   :  { %1050 = vmatpush.bf16.msrb.mxu3 %v6681_v12  ;;  %v9504_v12 = vld [vmem:[%s15341_s1 + $0xb4] sm:$0xf0] }
  0x85   :  { %1477 = vmatpush.bf16.msra.mxu1 %v7037_v8  ;;  %v6972_v8 = vld [vmem:[%s15342_s2 + $0x160] sm:$0xf] }
  0x86   :  { %1503 = vmatpush.bf16.msra.mxu3 %v7041_v13  ;;  %v6908_v13 = vld [vmem:[%s15342_s2 + $0xe0] sm:$0xf] }
  0x8a   :  { %1504 = vmatpush.bf16.msra.mxu3 %v7025_v18  ;;  %v6910_v18 = vld [vmem:[%s15342_s2 + $0xf0] sm:$0xf0] }
  0xa0   :  { %v233_v19 = vpop.f32.mrf.mxu0 }
  0xa1   :  { %v276_v21 = vadd.f32 %v233_v19, %v28_v11  ;;  %v246_v22 = vpop.f32.mrf.mxu1  ;;  %v9571_v11 = vld [vmem:[%s15342_s2 + $0x1cc] sm:$0xf0]  ;;  %v7004_v19 = vld [vmem:[%s15342_s2 + $0x1a0] sm:$0xf] }
  0xa2   :  { %v277_v23 = vadd.f32 %v246_v22, %v29_v16  ;;  %v7021_v16 = vor.u32 %v9571_v11, %v7020_v10  ;;  %v6757_v22 = vor.u32 %v9504_v12, %v6756_v1  ;;  %v6669_v1 = vor.u32 %v9483_v62, %v6668_v61  ;;  %v9557_v11 = vld [vmem:[%s15342_s2 + $0x164] sm:$0xf]  ;;  %v6862_v62 = vld [vmem:[%s15342_s2 + $0x90] sm:$0xf0] }
  0xa3   :  { %v280_v24 = vmul.f32 0.5, %v276_v21  ;;  %v6749_v21 = vor.u32 %v9503_v0, %v6748_v63  ;;  %v6676_v63 = vld [vmem:[%s15341_s1 + $0x8] sm:$0xf]  ;;  %v9484_v0 = vld [vmem:[%s15341_s1 + $0x14] sm:$0xf0]  ;;  %v6973_v10 = vor.u32 %v9559_v9, %v6972_v8 }
  0xa4   :  { %v284_v25 = vmul.f32 0.5, %v277_v23  ;;  %v6732_v23 = vld [vmem:[%s15341_s1 + $0x80] sm:$0xf]  ;;  %1478 = vmatpush.bf16.msra.mxu1 %v7021_v16  ;;  %v6677_v3 = vor.u32 %v9484_v0, %v6676_v63  ;;  %v6909_v16 = vor.u32 %v9543_v14, %v6908_v13  ;;  %v9529_v61 = vld [vmem:[%s15342_s2 + $0x84] sm:$0xf] }
  0xa5   :  { %10155 = vtanh.f32 %v280_v24  ;;  %v9565_v24 = vld [vmem:[%s15342_s2 + $0x1a4] sm:$0xf]  ;;  %v6865_v63 = vor.u32 %v9529_v61, %v6862_v62  ;;  %v7028_v0 = vld [vmem:[%s15342_s2 + $0x1c8] sm:$0xf]  ;;  %v6844_v9 = vld [vmem:[%s15342_s2 + $0x60] sm:$0xf] }
  0xa6   :  { %10157 = vtanh.f32 %v284_v25  ;;  %v7006_v25 = vld [vmem:[%s15342_s2 + $0x1b0] sm:$0xf0]  ;;  %v7012_v14 = vld [vmem:[%s15342_s2 + $0x1a8] sm:$0xf]  ;;  %v9542_v61 = vld [vmem:[%s15342_s2 + $0xec] sm:$0xf] }
  0xa7   :  { %v259_v28 = vpop.f32.mrf.mxu2  ;;  %v6918_v62 = vld [vmem:[%s15342_s2 + $0xf8] sm:$0xf0] }
  0xa8   :  { %v278_v29 = vadd.f32 %v259_v28, %v30_v26  ;;  %v272_v30 = vpop.f32.mrf.mxu3  ;;  %v235_v31 = vpop.f32.mrf.mxu0  ;;  %v9499_v26 = vld [vmem:[%s15341_s1 + $0x8c] sm:$0xf0]  ;;  %v9500_v28 = vld [vmem:[%s15341_s1 + $0x94] sm:$0xf0] }
  0xa9   :  { %v279_v32 = vadd.f32 %v272_v30, %v31_v27  ;;  %v248_v33 = vpop.f32.mrf.mxu1  ;;  %v6740_v27 = vld [vmem:[%s15341_s1 + $0x88] sm:$0xf]  ;;  %v6716_v30 = vld [vmem:[%s15341_s1 + $0x60] sm:$0xf]  ;;  %v9495_v31 = vld [vmem:[%s15341_s1 + $0x6c] sm:$0xf0] }
  0xaa   :  { %10159 = vtanh.f32 %v278_v29  ;;  %v7005_v29 = vor.u32 %v9567_v20, %v7004_v19  ;;  %v7009_v33 = vor.u32 %v9565_v24, %v7006_v25  ;;  %v6956_v19 = vld [vmem:[%s15342_s2 + $0x140] sm:$0xf]  ;;  %v9555_v20 = vld [vmem:[%s15342_s2 + $0x14c] sm:$0xf0]  ;;  %v6958_v24 = vld [vmem:[%s15342_s2 + $0x150] sm:$0xf0] }
  0xab   :  { %v10156_v34 = vpop.eup %10155  ;;  %v289_v35 = vmul.f32 0.5, %v279_v32 }
  0xac   :  { %v10158_v36 = vpop.eup %10157  ;;  %v282_v37 = vadd.f32 1.0, %v10156_v34  ;;  %v6733_v34 = vor.u32 %v9499_v26, %v6732_v23  ;;  %1479 = vmatpush.bf16.msra.mxu1 %v7005_v29  ;;  %1505 = vmatpush.bf16.msra.mxu3 %v7009_v33  ;;  %v9553_v23 = vld [vmem:[%s15342_s2 + $0x144] sm:$0xf]  ;;  %v6892_v26 = vld [vmem:[%s15342_s2 + $0xc0] sm:$0xf] }
  0xad   :  { %v286_v38 = vadd.f32 1.0, %v10158_v36  ;;  %10161 = vtanh.f32 %v289_v35  ;;  %v6741_v35 = vor.u32 %v9500_v28, %v6740_v27  ;;  %v6988_v36 = vld [vmem:[%s15342_s2 + $0x180] sm:$0xf]  ;;  %v6961_v25 = vor.u32 %v9553_v23, %v6958_v24  ;;  %v9539_v27 = vld [vmem:[%s15342_s2 + $0xcc] sm:$0xf0] }
  0xae   :  { %v283_v39 = vmul.f32 0.5, %v282_v37  ;;  %v9563_v37 = vld [vmem:[%s15342_s2 + $0x18c] sm:$0xf0]  ;;  %v9537_v28 = vld [vmem:[%s15342_s2 + $0xc4] sm:$0xf]  ;;  %v6893_v29 = vor.u32 %v9539_v27, %v6892_v26 }
  0xaf   :  { %v287_v40 = vmul.f32 0.5, %v286_v38  ;;  %v261_v41 = vpop.f32.mrf.mxu2  ;;  %v9561_v38 = vld [vmem:[%s15342_s2 + $0x184] sm:$0xf]  ;;  %v11347_v24 = vld [vmem:[%s15344_s3] sm:$0xf] }
  0xb0   :  { %v10160_v42 = vpop.eup %10159  ;;  %v274_v43 = vpop.f32.mrf.mxu3  ;;  %v6990_v41 = vld [vmem:[%s15342_s2 + $0x190] sm:$0xf0]  ;;  %v9521_v23 = vld [vmem:[%s15342_s2 + $0x44] sm:$0xf] }
  0xb1   :  { %v293_v44 = vmul.f32 0.0, %v287_v40  ;;  %v294_v45 = vmul.f32 %v10160_v42, %v283_v39  ;;  %v6724_v39 = vld [vmem:[%s15341_s1 + $0x68] sm:$0xf]  ;;  %v9496_v40 = vld [vmem:[%s15341_s1 + $0x74] sm:$0xf0]  ;;  %v6989_v43 = vor.u32 %v9563_v37, %v6988_v36 }
  0xb2   :  { %v6942_v36 = vld [vmem:[%s15342_s2 + $0x130] sm:$0xf0] }
  0xb3   :  { %v10162_v46 = vpop.eup %10161  ;;  %v11026_v47 = vadd.f32 %v294_v45, %v293_v44  ;;  %v6993_v44 = vor.u32 %v9561_v38, %v6990_v41  ;;  %v6717_v45 = vor.u32 %v9495_v31, %v6716_v30  ;;  %1480 = vmatpush.bf16.msra.mxu1 %v6989_v43  ;;  %v6894_v30 = vld [vmem:[%s15342_s2 + $0xd0] sm:$0xf0]  ;;  %v6940_v31 = vld [vmem:[%s15342_s2 + $0x120] sm:$0xf] }
  0xb4   :  { %v291_v48 = vadd.f32 1.0, %v10162_v46  ;;  %v6725_v46 = vor.u32 %v9496_v40, %v6724_v39  ;;  %v6897_v33 = vor.u32 %v9537_v28, %v6894_v30  ;;  %v6876_v38 = vld [vmem:[%s15342_s2 + $0xa0] sm:$0xf]  ;;  %v9535_v39 = vld [vmem:[%s15342_s2 + $0xac] sm:$0xf0] }
  0xb5   :  { %10163 = vtanh.f32 %v11026_v47  ;;  %1506 = vmatpush.bf16.msra.mxu3 %v6993_v44  ;;  %v9533_v40 = vld [vmem:[%s15342_s2 + $0xa4] sm:$0xf]  ;;  %v6877_v41 = vor.u32 %v9535_v39, %v6876_v38  ;;  %v6924_v43 = vld [vmem:[%s15342_s2 + $0x100] sm:$0xf]  ;;  %v9547_v44 = vld [vmem:[%s15342_s2 + $0x10c] sm:$0xf0] }
  0xb6   :  { %v292_v49 = vmul.f32 0.5, %v291_v48  ;;  %v6700_v48 = vld [vmem:[%s15341_s1 + $0x40] sm:$0xf]  ;;  %v6830_v26 = vld [vmem:[%s15342_s2 + $0x50] sm:$0xf0] }
  0xb7   :  { %1481 = vmatpush.bf16.msra.mxu1 %v6973_v10  ;;  %v9527_v10 = vld [vmem:[%s15342_s2 + $0x6c] sm:$0xf0]  ;;  %v6833_v27 = vor.u32 %v9521_v23, %v6830_v26  ;;  %v6996_v28 = vld [vmem:[%s15342_s2 + $0x188] sm:$0xf]  ;;  %v9562_v30 = vld [vmem:[%s15342_s2 + $0x18c] sm:$0xf] }
  0xb8   :  { %v6814_v39 = vld [vmem:[%s15342_s2 + $0x30] sm:$0xf0]  ;;  %v6950_v26 = vld [vmem:[%s15342_s2 + $0x138] sm:$0xf0] }
  0xbb   :  { %v10164_v51 = vpop.eup %10163 }
  0xbc   :  { %v297_v55 = vmul.f32 %v10164_v51, %v292_v49  ;;  %v9491_v49 = vld [vmem:[%s15341_s1 + $0x4c] sm:$0xf0]  ;;  %v9492_v51 = vld [vmem:[%s15341_s1 + $0x54] sm:$0xf0] }
  0xbd   :  { %v6701_v52 = vor.u32 %v9491_v49, %v6700_v48  ;;  %v6709_v53 = vor.u32 %v9492_v51, %v6708_v50  ;;  %v9545_v48 = vld [vmem:[%s15342_s2 + $0x104] sm:$0xf]  ;;  %v6926_v49 = vld [vmem:[%s15342_s2 + $0x110] sm:$0xf0]  ;;  %v7044_v50 = vld [vmem:[%s15342_s2 + $0x1e8] sm:$0xf] }
  0xbe   :  { %v11041_v56 = vpack.c.bf16 %v297_v55, %v297_v55  ;;  %v9487_v55 = vld [vmem:[%s15341_s1 + $0x2c] sm:$0xf0]  ;;  %v6929_v51 = vor.u32 %v9545_v48, %v6926_v49  ;;  %v6796_v49 = vld [vmem:[%s15342_s2] sm:$0xf] }
  0xbf   :  { %v6685_v59 = vor.u32 %v9487_v55, %v6684_v54  ;;  %v7046_v54 = vld [vmem:[%s15342_s2 + $0x1f8] sm:$0xf0] }
  0xc0   :  { %692 = vmatmul.bf16.vlgmr.msrb.gmra.mxu0 %v11041_v56  ;;  %718 = vmatmul.bf16.vlgmr.msrb.gmra.mxu2 %v11041_v56 }
  0xc1   :  { %1025 = vmatmul.bf16.vlgmr.msrb.gmra.mxu1 %v11041_v56  ;;  %1051 = vmatmul.bf16.vlgmr.msrb.gmra.mxu3 %v11041_v56  ;;  %v11068_v2 = vpop.f32.mrf.mxu1 }
  0xc2   :  { %1004 = vmatpush.bf16.msrb.mxu0 %v6781_v57  ;;  %1030 = vmatpush.bf16.msrb.mxu2 %v6789_v58  ;;  %v6692_v57 = vld [vmem:[%s15341_s1 + $0x28] sm:$0xf]  ;;  %v9488_v58 = vld [vmem:[%s15341_s1 + $0x34] sm:$0xf0] }
  0xc3   :  { %v6693_v60 = vor.u32 %v9488_v58, %v6692_v57  ;;  %v6860_v58 = vld [vmem:[%s15342_s2 + $0x80] sm:$0xf] }
  0xc6   :  { %1005 = vmatpush.bf16.msrb.mxu0 %v6765_v6  ;;  %1031 = vmatpush.bf16.msrb.mxu2 %v6773_v7 }
  0xc8   :  { %v11097_v17 = vpop.f32.mrf.mxu3 }
  0xc9   :  { %v708_v32 = vpop.f32.mrf.mxu1 }
  0xca   :  { %1006 = vmatpush.bf16.msrb.mxu0 %v6749_v21  ;;  %1032 = vmatpush.bf16.msrb.mxu2 %v6757_v22  ;;  %v6913_v21 = vor.u32 %v9541_v15, %v6910_v18  ;;  %v6957_v22 = vor.u32 %v9555_v20, %v6956_v19  ;;  %v9551_v32 = vld [vmem:[%s15342_s2 + $0x12c] sm:$0xf0]  ;;  %v9568_v15 = vld [vmem:[%s15342_s2 + $0x1b4] sm:$0xf0]  ;;  %v9566_v18 = vld [vmem:[%s15342_s2 + $0x1ac] sm:$0xf] }
  0xcb   :  { %v7014_v19 = vld [vmem:[%s15342_s2 + $0x1b8] sm:$0xf0] }
  0xcc   :  { %1482 = vmatpush.bf16.msra.mxu1 %v6957_v22  ;;  %v7017_v20 = vor.u32 %v9566_v18, %v7014_v19  ;;  %v9523_v22 = vld [vmem:[%s15342_s2 + $0x4c] sm:$0xf0] }
  0xce   :  { %1007 = vmatpush.bf16.msrb.mxu0 %v6733_v34  ;;  %1033 = vmatpush.bf16.msrb.mxu2 %v6741_v35  ;;  %v6941_v34 = vor.u32 %v9551_v32, %v6940_v31  ;;  %v9549_v35 = vld [vmem:[%s15342_s2 + $0x124] sm:$0xf]  ;;  %v6998_v32 = vld [vmem:[%s15342_s2 + $0x198] sm:$0xf0] }
  0xcf   :  { %v6945_v37 = vor.u32 %v9549_v35, %v6942_v36  ;;  %v9519_v35 = vld [vmem:[%s15342_s2 + $0x2c] sm:$0xf0]  ;;  %v9517_v36 = vld [vmem:[%s15342_s2 + $0x24] sm:$0xf] }
  0xd0   :  { %v734_v42 = vpop.f32.mrf.mxu3  ;;  %744 = vmatmul.bf16.vlgmr.msra.gmra.mxu0 %v11041_v56  ;;  %770 = vmatmul.bf16.vlgmr.msra.gmra.mxu2 %v11041_v56 }
  0xd1   :  { %1483 = vmatpush.bf16.msra.mxu1 %v6941_v34  ;;  %v6878_v42 = vld [vmem:[%s15342_s2 + $0xb0] sm:$0xf0]  ;;  %v6812_v34 = vld [vmem:[%s15342_s2 + $0x20] sm:$0xf] }
  0xd2   :  { %1008 = vmatpush.bf16.msrb.mxu0 %v6717_v45  ;;  %1034 = vmatpush.bf16.msrb.mxu2 %v6725_v46  ;;  %v6881_v45 = vor.u32 %v9533_v40, %v6878_v42  ;;  %v6925_v46 = vor.u32 %v9547_v44, %v6924_v43  ;;  %v6813_v38 = vor.u32 %v9519_v35, %v6812_v34  ;;  %v9560_v42 = vld [vmem:[%s15342_s2 + $0x174] sm:$0xf0]  ;;  %v9558_v43 = vld [vmem:[%s15342_s2 + $0x16c] sm:$0xf]  ;;  %v6932_v34 = vld [vmem:[%s15342_s2 + $0x108] sm:$0xf] }
  0xd3   :  { %v6817_v40 = vor.u32 %v9517_v36, %v6814_v39  ;;  %v9546_v39 = vld [vmem:[%s15342_s2 + $0x10c] sm:$0xf] }
  0xd5   :  { %1484 = vmatpush.bf16.msra.mxu1 %v6925_v46 }
  0xd6   :  { %1009 = vmatpush.bf16.msrb.mxu0 %v6701_v52  ;;  %1035 = vmatpush.bf16.msrb.mxu2 %v6709_v53  ;;  %v9576_v52 = vld [vmem:[%s15342_s2 + $0x1f4] sm:$0xf0]  ;;  %v9574_v53 = vld [vmem:[%s15342_s2 + $0x1ec] sm:$0xf] }
  0xd7   :  { %v7045_v55 = vor.u32 %v9576_v52, %v7044_v50  ;;  %v7049_v57 = vor.u32 %v9574_v53, %v7046_v54  ;;  %v9515_v50 = vld [vmem:[%s15342_s2 + $0xc] sm:$0xf0]  ;;  %v11404_v54 = vperm.slane %v11347_v24, 1 }
  0xd9   :  { %1529 = vmatpush.bf16.msrb.mxu1 %v7045_v55  ;;  %v6797_v55 = vor.u32 %v9515_v50, %v6796_v49  ;;  %v9530_v50 = vld [vmem:[%s15342_s2 + $0x8c] sm:$0xf] }
  0xda   :  { %1010 = vmatpush.bf16.msrb.mxu0 %v6685_v59  ;;  %1036 = vmatpush.bf16.msrb.mxu2 %v6693_v60  ;;  %v9531_v59 = vld [vmem:[%s15342_s2 + $0x8c] sm:$0xf0] }
  0xdb   :  { %v6861_v60 = vor.u32 %v9531_v59, %v6860_v58  ;;  %v6916_v58 = vld [vmem:[%s15342_s2 + $0xe8] sm:$0xf] }
  0xde   :  { %1011 = vmatpush.bf16.msrb.mxu0 %v6669_v1  ;;  %1037 = vmatpush.bf16.msrb.mxu2 %v6677_v3  ;;  %v9572_v1 = vld [vmem:[%s15342_s2 + $0x1d4] sm:$0xf0]  ;;  %v9570_v3 = vld [vmem:[%s15342_s2 + $0x1cc] sm:$0xf] }
  0xe1   :  { %v11185_v4 = vpop.f32.mrf.mxu1  ;;  %1012 = vmatmul.bf16.vlgmr.msrb.gmra.mxu0 %v11041_v56  ;;  %1038 = vmatmul.bf16.vlgmr.msrb.gmra.mxu2 %v11041_v56  ;;  %v6974_v56 = vld [vmem:[%s15342_s2 + $0x170] sm:$0xf0] }
  0xe2   :  { %v6977_v12 = vor.u32 %v9557_v11, %v6974_v56  ;;  %1464 = vmatpush.bf16.msra.mxu0 %v6909_v16  ;;  %1490 = vmatpush.bf16.msra.mxu2 %v6913_v21  ;;  %v9525_v11 = vld [vmem:[%s15342_s2 + $0x64] sm:$0xf]  ;;  %v6845_v56 = vor.u32 %v9527_v10, %v6844_v9  ;;  %v7013_v16 = vor.u32 %v9568_v15, %v7012_v14  ;;  %v6828_v21 = vld [vmem:[%s15342_s2 + $0x40] sm:$0xf]  ;;  %v6966_v9 = vld [vmem:[%s15342_s2 + $0x158] sm:$0xf0] }
  0xe3   :  { %v6902_v14 = vld [vmem:[%s15342_s2 + $0xd8] sm:$0xf0]  ;;  %v6948_v15 = vld [vmem:[%s15342_s2 + $0x128] sm:$0xf] }
  0xe4   :  { %1507 = vmatpush.bf16.msra.mxu3 %v6977_v12  ;;  %v6846_v12 = vld [vmem:[%s15342_s2 + $0x70] sm:$0xf0] }
  0xe5   :  { %v6849_v13 = vor.u32 %v9525_v11, %v6846_v12  ;;  %v6900_v11 = vld [vmem:[%s15342_s2 + $0xc8] sm:$0xf] }
  0xe6   :  { %1465 = vmatpush.bf16.msra.mxu0 %v6893_v29  ;;  %1491 = vmatpush.bf16.msra.mxu2 %v6897_v33  ;;  %v9564_v29 = vld [vmem:[%s15342_s2 + $0x194] sm:$0xf0]  ;;  %v7001_v33 = vor.u32 %v9562_v30, %v6998_v32  ;;  %v6884_v30 = vld [vmem:[%s15342_s2 + $0xa8] sm:$0xf]  ;;  %v9534_v32 = vld [vmem:[%s15342_s2 + $0xac] sm:$0xf] }
  0xe7   :  { %v6997_v31 = vor.u32 %v9564_v29, %v6996_v28 }
  0xe8   :  { %v11189_v5 = vpop.f32.mrf.mxu3  ;;  %1508 = vmatpush.bf16.msra.mxu3 %v6961_v25  ;;  %v6829_v25 = vor.u32 %v9523_v22, %v6828_v21  ;;  %v9550_v21 = vld [vmem:[%s15342_s2 + $0x12c] sm:$0xf] }
  0xe9   :  { %v760_v6 = vpop.f32.mrf.mxu1  ;;  %v6953_v29 = vor.u32 %v9550_v21, %v6950_v26  ;;  %v9520_v21 = vld [vmem:[%s15342_s2 + $0x34] sm:$0xf0] }
  0xea   :  { %1466 = vmatpush.bf16.msra.mxu0 %v6877_v41  ;;  %1492 = vmatpush.bf16.msra.mxu2 %v6881_v45  ;;  %v7029_v6 = vor.u32 %v9572_v1, %v7028_v0  ;;  %v6980_v41 = vld [vmem:[%s15342_s2 + $0x168] sm:$0xf]  ;;  %v6982_v45 = vld [vmem:[%s15342_s2 + $0x178] sm:$0xf0]  ;;  %v6921_v0 = vor.u32 %v9542_v61, %v6918_v62  ;;  %v9526_v61 = vld [vmem:[%s15342_s2 + $0x6c] sm:$0xf] }
  0xeb   :  { %v6981_v44 = vor.u32 %v9560_v42, %v6980_v41  ;;  %v6985_v48 = vor.u32 %v9558_v43, %v6982_v45  ;;  %v6964_v1 = vld [vmem:[%s15342_s2 + $0x148] sm:$0xf]  ;;  %v6934_v41 = vld [vmem:[%s15342_s2 + $0x118] sm:$0xf0]  ;;  %v11487_v42 = vperm.slane %v11347_v24, 2 }
  0xec   :  { %1509 = vmatpush.bf16.msra.mxu3 %v6945_v37  ;;  %1530 = vmatpush.bf16.msrb.mxu1 %v7029_v6  ;;  %v11374_v37 = vperm.slane %v11347_v24, 0  ;;  %v9554_v6 = vld [vmem:[%s15342_s2 + $0x14c] sm:$0xf]  ;;  %v6937_v43 = vor.u32 %v9546_v39, %v6934_v41  ;;  %v6868_v45 = vld [vmem:[%s15342_s2 + $0x88] sm:$0xf] }
  0xed   :  { %v6969_v10 = vor.u32 %v9554_v6, %v6966_v9  ;;  %v6854_v62 = vld [vmem:[%s15342_s2 + $0x78] sm:$0xf0]  ;;  %v6836_v9 = vld [vmem:[%s15342_s2 + $0x48] sm:$0xf] }
  0xee   :  { %1467 = vmatpush.bf16.msra.mxu0 %v6861_v60  ;;  %1493 = vmatpush.bf16.msra.mxu2 %v6865_v63  ;;  %v9544_v60 = vld [vmem:[%s15342_s2 + $0xf4] sm:$0xf0]  ;;  %v6857_v6 = vor.u32 %v9526_v61, %v6854_v62 }
  0xef   :  { %v6917_v63 = vor.u32 %v9544_v60, %v6916_v58  ;;  %v6852_v58 = vld [vmem:[%s15342_s2 + $0x68] sm:$0xf]  ;;  %v9528_v60 = vld [vmem:[%s15342_s2 + $0x74] sm:$0xf0] }
  0xf0   :  { %v786_v7 = vpop.f32.mrf.mxu3  ;;  %1510 = vmatpush.bf16.msra.mxu3 %v6929_v51  ;;  %1531 = vmatpush.bf16.msrb.mxu1 %v7013_v16  ;;  %v9513_v51 = vld [vmem:[%s15342_s2 + $0x4] sm:$0xf] }
  0xf1   :  { %v7030_v7 = vld [vmem:[%s15342_s2 + $0x1d8] sm:$0xf0] }
  0xf2   :  { %v7033_v8 = vor.u32 %v9570_v3, %v7030_v7  ;;  %1468 = vmatpush.bf16.msra.mxu0 %v6845_v56  ;;  %1494 = vmatpush.bf16.msra.mxu2 %v6849_v13  ;;  %v9556_v3 = vld [vmem:[%s15342_s2 + $0x154] sm:$0xf0]  ;;  %v9538_v13 = vld [vmem:[%s15342_s2 + $0xcc] sm:$0xf] }
  0xf3   :  { %v9540_v56 = vld [vmem:[%s15342_s2 + $0xd4] sm:$0xf0]  ;;  %v6905_v19 = vor.u32 %v9538_v13, %v6902_v14 }
  0xf4   :  { %1555 = vmatpush.bf16.msrb.mxu3 %v7049_v57  ;;  %1532 = vmatpush.bf16.msrb.mxu1 %v6997_v31  ;;  %v6798_v57 = vld [vmem:[%s15342_s2 + $0x10] sm:$0xf0]  ;;  %v9536_v31 = vld [vmem:[%s15342_s2 + $0xb4] sm:$0xf0] }
  0xf5   :  { %v6801_v59 = vor.u32 %v9513_v51, %v6798_v57  ;;  %v6870_v51 = vld [vmem:[%s15342_s2 + $0x98] sm:$0xf0] }
  0xf6   :  { %1469 = vmatpush.bf16.msra.mxu0 %v6829_v25  ;;  %1495 = vmatpush.bf16.msra.mxu2 %v6833_v27 }
  0xf8   :  { %1556 = vmatpush.bf16.msrb.mxu3 %v7033_v8  ;;  %1533 = vmatpush.bf16.msrb.mxu1 %v6981_v44  ;;  %v6965_v8 = vor.u32 %v9556_v3, %v6964_v1  ;;  %v11516_v1 = vperm.slane %v11347_v24, 3  ;;  %v6853_v3 = vor.u32 %v9528_v60, %v6852_v58  ;;  %v7179_v58 = vld [vmem:[%s15341_s1 + $0xf8] sm:$0xf0] }
  0xfa   :  { %1470 = vmatpush.bf16.msra.mxu0 %v6813_v38  ;;  %1496 = vmatpush.bf16.msra.mxu2 %v6817_v40  ;;  %v9548_v38 = vld [vmem:[%s15342_s2 + $0x114] sm:$0xf0] }
  0xfb   :  { %v6933_v40 = vor.u32 %v9548_v38, %v6932_v34  ;;  %v6662_v38 = vld [vmem:[%s15343_s0 + $0x20] sm:$0xff] }
  0xfc   :  { %1557 = vmatpush.bf16.msrb.mxu3 %v7017_v20  ;;  %1534 = vmatpush.bf16.msrb.mxu1 %v6965_v8  ;;  %v9552_v20 = vld [vmem:[%s15342_s2 + $0x134] sm:$0xf0] }
  0xfd   :  { %v6949_v25 = vor.u32 %v9552_v20, %v6948_v15  ;;  %v6820_v20 = vld [vmem:[%s15342_s2 + $0x28] sm:$0xf] }
  0xfe   :  { %1471 = vmatpush.bf16.msra.mxu0 %v6797_v55  ;;  %1497 = vmatpush.bf16.msra.mxu2 %v6801_v59  ;;  %v6873_v55 = vor.u32 %v9530_v50, %v6870_v51  ;;  %v6664_v50 = vld [vmem:[%s15343_s0 + $0x30] sm:$0xff]  ;;  %v9605_v51 = vld [vmem:[%s15341_s1 + $0xe4] sm:$0xf] }
 0x100   :  { %1558 = vmatpush.bf16.msrb.mxu3 %v7001_v33  ;;  %1535 = vmatpush.bf16.msrb.mxu1 %v6949_v25  ;;  %v6885_v33 = vor.u32 %v9536_v31, %v6884_v30  ;;  %v6804_v31 = vld [vmem:[%s15342_s2 + $0x8] sm:$0xf] }
 0x102   :  { %1516 = vmatpush.bf16.msrb.mxu0 %v6917_v63  ;;  %1542 = vmatpush.bf16.msrb.mxu2 %v6921_v0 }
 0x104   :  { %1559 = vmatpush.bf16.msrb.mxu3 %v6985_v48  ;;  %1536 = vmatpush.bf16.msrb.mxu1 %v6933_v40  ;;  %v6665_v40 = vld [vmem:[%s15343_s0 + $0x38] sm:$0xff] }
 0x106   :  { %1543 = vmatpush.bf16.msrb.mxu2 %v6905_v19 }
 0x108   :  { %1560 = vmatpush.bf16.msrb.mxu3 %v6969_v10 }
 0x10c   :  { %1561 = vmatpush.bf16.msrb.mxu3 %v6953_v29 }
 0x110   :  { %1562 = vmatpush.bf16.msrb.mxu3 %v6937_v43 }
 0x13d   :  { %v693_v46 = vpop.f32.mrf.mxu0 }
 0x13e   :  { %v694_v52 = vadd.f32 %v693_v46, %v11374_v37  ;;  %v11401_v53 = vpop.f32.mrf.mxu1  ;;  %v9532_v46 = vld [vmem:[%s15342_s2 + $0x94] sm:$0xf0] }
 0x13f   :  { %v6869_v49 = vor.u32 %v9532_v46, %v6868_v45 }
 0x140   :  { %v707_v7 = vadd.f32 %v11068_v2, %v694_v52  ;;  %v6901_v2 = vor.u32 %v9540_v56, %v6900_v11  ;;  %v9522_v56 = vld [vmem:[%s15342_s2 + $0x4c] sm:$0xf] }
 0x142   :  { %v788_v22 = vmul.f32 0.5, %v707_v7  ;;  %1517 = vmatpush.bf16.msrb.mxu0 %v6901_v2  ;;  %v6663_v7 = vld [vmem:[%s15343_s0 + $0x28] sm:$0xff] }
 0x143   :  { %v719_v12 = vpop.f32.mrf.mxu2  ;;  %v1057_v2 = vadd.f32 %v6663_v7, %v11401_v53  ;;  %v9518_v53 = vld [vmem:[%s15342_s2 + $0x2c] sm:$0xf]  ;;  %v9601_v7 = vld [vmem:[%s15341_s1 + $0xc4] sm:$0xf] }
 0x144   :  { %v720_v16 = vadd.f32 %v719_v12, %v11404_v54  ;;  %v11450_v18 = vpop.f32.mrf.mxu3  ;;  %10165 = vtanh.f32 %v788_v22  ;;  %v6838_v12 = vld [vmem:[%s15342_s2 + $0x58] sm:$0xf0] }
 0x145   :  { %v695_v23 = vpop.f32.mrf.mxu0  ;;  %v6841_v14 = vor.u32 %v9522_v56, %v6838_v12  ;;  %v1064_v26 = vmul.f32 0.5, %v1057_v2  ;;  %v1059_v45 = vadd.f32 %v6665_v40, %v11450_v18  ;;  %v9606_v18 = vld [vmem:[%s15341_s1 + $0xec] sm:$0xf] }
 0x146   :  { %v733_v27 = vadd.f32 %v11097_v17, %v720_v16  ;;  %v1028_v28 = vpop.f32.mrf.mxu1  ;;  %v6886_v17 = vld [vmem:[%s15342_s2 + $0xb8] sm:$0xf0]  ;;  %1518 = vmatpush.bf16.msrb.mxu0 %v6885_v33  ;;  %v6821_v23 = vor.u32 %v9520_v21, %v6820_v20  ;;  %v9514_v33 = vld [vmem:[%s15342_s2 + $0xc] sm:$0xf] }
 0x147   :  { %v6889_v36 = vor.u32 %v9534_v32, %v6886_v17  ;;  %v9516_v32 = vld [vmem:[%s15342_s2 + $0x14] sm:$0xf0]  ;;  %v1069_v61 = vmul.f32 0.5, %v1059_v45 }
 0x148   :  { %v792_v35 = vmul.f32 0.5, %v733_v27  ;;  %v9608_v45 = vld [vmem:[%s15341_s1 + $0xf4] sm:$0xf0] }
 0x149   :  { %1544 = vmatpush.bf16.msrb.mxu2 %v6889_v36  ;;  %v6806_v36 = vld [vmem:[%s15342_s2 + $0x18] sm:$0xf0] }
 0x14a   :  { %10167 = vtanh.f32 %v792_v35  ;;  %1519 = vmatpush.bf16.msrb.mxu0 %v6869_v49  ;;  %v10166_v59 = vpop.eup %10165  ;;  %v6805_v35 = vor.u32 %v9516_v32, %v6804_v31  ;;  %v6809_v39 = vor.u32 %v9514_v33, %v6806_v36  ;;  %v9589_v33 = vld [vmem:[%s15341_s1 + $0x64] sm:$0xf]  ;;  %v7115_v36 = vld [vmem:[%s15341_s1 + $0x78] sm:$0xf0] }
 0x14b   :  { %v721_v44 = vpop.f32.mrf.mxu2  ;;  %v790_v10 = vadd.f32 1.0, %v10166_v59 }
 0x14c   :  { %v1054_v48 = vpop.f32.mrf.mxu3 }
 0x14d   :  { %v745_v52 = vpop.f32.mrf.mxu0  ;;  %1545 = vmatpush.bf16.msrb.mxu2 %v6873_v55  ;;  %v791_v22 = vmul.f32 0.5, %v790_v10  ;;  %v7163_v10 = vld [vmem:[%s15341_s1 + $0xd8] sm:$0xf0] }
 0x14e   :  { %v746_v57 = vadd.f32 %v745_v52, %v11487_v42  ;;  %1520 = vmatpush.bf16.msrb.mxu0 %v6853_v3  ;;  %v7171_v52 = vld [vmem:[%s15341_s1 + $0xf0] sm:$0xf0] }
 0x14f   :  { %v7174_v3 = vor.u32 %v9605_v51, %v7171_v52  ;;  %v7099_v51 = vld [vmem:[%s15341_s1 + $0x58] sm:$0xf0] }
 0x150   :  { %v10168_v63 = vpop.eup %10167  ;;  %v759_v0 = vadd.f32 %v11185_v4, %v746_v57  ;;  %v9524_v4 = vld [vmem:[%s15342_s2 + $0x54] sm:$0xf0] }
 0x151   :  { %v794_v8 = vadd.f32 1.0, %v10168_v63  ;;  %1546 = vmatpush.bf16.msrb.mxu2 %v6857_v6  ;;  %v6837_v11 = vor.u32 %v9524_v4, %v6836_v9  ;;  %v7182_v6 = vor.u32 %v9606_v18, %v7179_v58  ;;  %v7155_v9 = vld [vmem:[%s15341_s1 + $0xd0] sm:$0xf0]  ;;  %v9602_v4 = vld [vmem:[%s15341_s1 + $0xcc] sm:$0xf] }
 0x152   :  { %10169 = vtanh.f32 %v759_v0  ;;  %v7158_v12 = vor.u32 %v9601_v7, %v7155_v9  ;;  %v7166_v2 = vor.u32 %v9602_v4, %v7163_v10  ;;  %v7153_v18 = vld [vmem:[%s15341_s1 + $0xc0] sm:$0xf]  ;;  %v9603_v58 = vld [vmem:[%s15341_s1 + $0xcc] sm:$0xf0]  ;;  %v7083_v7 = vld [vmem:[%s15341_s1 + $0x38] sm:$0xf0] }
 0x153   :  { %v771_v24 = vpop.f32.mrf.mxu2  ;;  %v795_v15 = vmul.f32 0.5, %v794_v8  ;;  %1521 = vmatpush.bf16.msrb.mxu0 %v6837_v11  ;;  %v7137_v4 = vld [vmem:[%s15341_s1 + $0xa0] sm:$0xf]  ;;  %v9599_v10 = vld [vmem:[%s15341_s1 + $0xac] sm:$0xf0] }
 0x154   :  { %v772_v13 = vadd.f32 %v771_v24, %v11516_v1 }
 0x155   :  { %v747_v16 = vpop.f32.mrf.mxu0  ;;  %1547 = vmatpush.bf16.msrb.mxu2 %v6841_v14  ;;  %v801_v29 = vmul.f32 0.0, %v795_v15  ;;  %v7139_v14 = vld [vmem:[%s15341_s1 + $0xb0] sm:$0xf0]  ;;  %v9598_v15 = vld [vmem:[%s15341_s1 + $0xac] sm:$0xf] }
 0x156   :  { %v785_v19 = vadd.f32 %v11189_v5, %v772_v13  ;;  %v6822_v5 = vld [vmem:[%s15342_s2 + $0x38] sm:$0xf0]  ;;  %v9597_v13 = vld [vmem:[%s15341_s1 + $0xa4] sm:$0xf] }
 0x157   :  { %v6825_v28 = vor.u32 %v9518_v53, %v6822_v5  ;;  %1522 = vmatpush.bf16.msrb.mxu0 %v6821_v23  ;;  %v7147_v16 = vld [vmem:[%s15341_s1 + $0xb8] sm:$0xf0]  ;;  %v7142_v23 = vor.u32 %v9597_v13, %v7139_v14  ;;  %v7059_v13 = vld [vmem:[%s15341_s1 + $0x10] sm:$0xf0]  ;;  %v9578_v14 = vld [vmem:[%s15341_s1 + $0xc] sm:$0xf] }
 0x158   :  { %v10170_v25 = vpop.eup %10169  ;;  %v797_v27 = vmul.f32 0.5, %v785_v19  ;;  %v7150_v5 = vor.u32 %v9598_v15, %v7147_v16  ;;  %v7067_v15 = vld [vmem:[%s15341_s1 + $0x18] sm:$0xf0]  ;;  %v7138_v16 = vor.u32 %v9599_v10, %v7137_v4  ;;  %v9661_v4 = vld [vmem:[%s15342_s2 + $0x1a4] sm:$0xf] }
 0x159   :  { %v802_v30 = vmul.f32 %v10170_v25, %v791_v22  ;;  %1548 = vmatpush.bf16.msrb.mxu2 %v6825_v28  ;;  %v9593_v25 = vld [vmem:[%s15341_s1 + $0x84] sm:$0xf]  ;;  %v9594_v28 = vld [vmem:[%s15341_s1 + $0x8c] sm:$0xf] }
 0x15a   :  { %10171 = vtanh.f32 %v797_v27  ;;  %v7123_v27 = vld [vmem:[%s15341_s1 + $0x90] sm:$0xf0] }
 0x15b   :  { %v11557_v17 = vadd.f32 %v802_v30, %v801_v29  ;;  %v773_v34 = vpop.f32.mrf.mxu2  ;;  %10173 = vtanh.f32 %v1064_v26  ;;  %1523 = vmatpush.bf16.msrb.mxu0 %v6805_v35  ;;  %v7126_v31 = vor.u32 %v9593_v25, %v7123_v27  ;;  %v9590_v35 = vld [vmem:[%s15341_s1 + $0x6c] sm:$0xf]  ;;  %v7105_v27 = vld [vmem:[%s15341_s1 + $0x60] sm:$0xf] }
 0x15c   :  { %v7107_v34 = vld [vmem:[%s15341_s1 + $0x70] sm:$0xf0]  ;;  %v7118_v40 = vor.u32 %v9590_v35, %v7115_v36  ;;  %v7097_v35 = vld [vmem:[%s15341_s1 + $0x48] sm:$0xf]  ;;  %v9588_v36 = vld [vmem:[%s15341_s1 + $0x54] sm:$0xf0] }
 0x15d   :  { %10175 = vtanh.f32 %v11557_v17  ;;  %1549 = vmatpush.bf16.msrb.mxu2 %v6809_v39  ;;  %v7110_v39 = vor.u32 %v9589_v33, %v7107_v34  ;;  %v7089_v33 = vld [vmem:[%s15341_s1 + $0x40] sm:$0xf]  ;;  %v9587_v34 = vld [vmem:[%s15341_s1 + $0x4c] sm:$0xf0] }
 0x15e   :  { %v1013_v41 = vpop.f32.mrf.mxu0 }
 0x15f   :  { %v1056_v43 = vadd.f32 %v6662_v38, %v1013_v41  ;;  %v7169_v41 = vld [vmem:[%s15341_s1 + $0xe0] sm:$0xf] }
 0x160   :  { %v10172_v44 = vpop.eup %10171 }
 0x161   :  { %v799_v46 = vadd.f32 1.0, %v10172_v44  ;;  %v1060_v48 = vmul.f32 0.5, %v1056_v43  ;;  %v10174_v49 = vpop.eup %10173  ;;  %v9607_v43 = vld [vmem:[%s15341_s1 + $0xec] sm:$0xf0]  ;;  %v7177_v44 = vld [vmem:[%s15341_s1 + $0xe8] sm:$0xf] }
 0x162   :  { %v1066_v60 = vadd.f32 1.0, %v10174_v49  ;;  %v7091_v49 = vld [vmem:[%s15341_s1 + $0x50] sm:$0xf0] }
 0x163   :  { %v10176_v55 = vpop.eup %10175  ;;  %v800_v57 = vmul.f32 0.5, %v799_v46  ;;  %10177 = vtanh.f32 %v1060_v48  ;;  %v9585_v46 = vld [vmem:[%s15341_s1 + $0x44] sm:$0xf] }
 0x164   :  { %v1039_v59 = vpop.f32.mrf.mxu2  ;;  %v1067_v11 = vmul.f32 0.5, %v1066_v60  ;;  %v7094_v60 = vor.u32 %v9585_v46, %v7091_v49  ;;  %v9579_v49 = vld [vmem:[%s15341_s1 + $0xc] sm:$0xf0] }
 0x165   :  { %v805_v62 = vmul.f32 %v10176_v55, %v800_v57  ;;  %v1058_v63 = vadd.f32 %v6664_v50, %v1039_v59  ;;  %v9586_v50 = vld [vmem:[%s15341_s1 + $0x4c] sm:$0xf]  ;;  %v7170_v55 = vor.u32 %v9607_v43, %v7169_v41  ;;  %v7178_v57 = vor.u32 %v9608_v45, %v7177_v44  ;;  %v9583_v41 = vld [vmem:[%s15341_s1 + $0x2c] sm:$0xf0]  ;;  %v7081_v43 = vld [vmem:[%s15341_s1 + $0x28] sm:$0xf] }
 0x166   :  { %v1015_v0 = vpop.f32.mrf.mxu0  ;;  %v1073_v53 = vmul.f32 %v1067_v11, %v11026_v47  ;;  %v7131_v47 = vld [vmem:[%s15341_s1 + $0x98] sm:$0xf0]  ;;  %v9584_v44 = vld [vmem:[%s15341_s1 + $0x34] sm:$0xf0] }
 0x167   :  { %806 = vst [vmem:[%s15345_s4] sm:$0xff] %v805_v62  ;;  %10179 = vtanh.f32 %v1058_v63  ;;  %v1079_v8 = vpack.c.bf16 %v805_v62, %v805_v62  ;;  %v7134_v32 = vor.u32 %v9594_v28, %v7131_v47  ;;  %v7161_v62 = vld [vmem:[%s15341_s1 + $0xc8] sm:$0xf]  ;;  %v9604_v63 = vld [vmem:[%s15341_s1 + $0xd4] sm:$0xf0]  ;;  %v9581_v0 = vld [vmem:[%s15341_s1 + $0x24] sm:$0xf]  ;;  %v7082_v46 = vor.u32 %v9584_v44, %v7081_v43 }
 0x168   :  { %10181 = vtanh.f32 %v1069_v61  ;;  %v7102_v61 = vor.u32 %v9586_v50, %v7099_v51  ;;  %v7162_v9 = vor.u32 %v9604_v63, %v7161_v62  ;;  %v9591_v28 = vld [vmem:[%s15341_s1 + $0x6c] sm:$0xf0]  ;;  %v7113_v47 = vld [vmem:[%s15341_s1 + $0x68] sm:$0xf]  ;;  %v9580_v51 = vld [vmem:[%s15341_s1 + $0x14] sm:$0xf0] }
 0x169   :  { %v10178_v24 = vpop.eup %10177  ;;  %1485 = vmatmul.bf16.vlgmr.msra.gmra.mxu1 %v1079_v8  ;;  %1511 = vmatmul.bf16.vlgmr.msra.gmra.mxu3 %v1079_v8  ;;  %v7065_v50 = vld [vmem:[%s15341_s1 + $0x8] sm:$0xf]  ;;  %v9667_v63 = vld [vmem:[%s15342_s2 + $0x1cc] sm:$0xf0] }
 0x16a   :  { %v1062_v56 = vadd.f32 1.0, %v10178_v24  ;;  %1798 = vmatpush.bf16.msra.mxu1 %v7174_v3  ;;  %1824 = vmatpush.bf16.msra.mxu3 %v7182_v6  ;;  %v7075_v3 = vld [vmem:[%s15341_s1 + $0x30] sm:$0xf0]  ;;  %v9582_v6 = vld [vmem:[%s15341_s1 + $0x2c] sm:$0xf] }
 0x16b   :  { %v7078_v24 = vor.u32 %v9581_v0, %v7075_v3  ;;  %v7086_v11 = vor.u32 %v9582_v6, %v7083_v7  ;;  %v9665_v0 = vld [vmem:[%s15342_s2 + $0x1c4] sm:$0xf]  ;;  %v7411_v6 = vld [vmem:[%s15342_s2 + $0x1d0] sm:$0xf0]  ;;  %v9647_v43 = vld [vmem:[%s15342_s2 + $0x12c] sm:$0xf0] }
 0x16c   :  { %v1063_v19 = vmul.f32 0.5, %v1062_v56  ;;  %v1041_v20 = vpop.f32.mrf.mxu2  ;;  %v7145_v56 = vld [vmem:[%s15341_s1 + $0xa8] sm:$0xf]  ;;  %v7414_v7 = vor.u32 %v9665_v0, %v7411_v6  ;;  %v9672_v6 = vld [vmem:[%s15342_s2 + $0x1f4] sm:$0xf0] }
 0x16d   :  { %v10180_v21 = vpop.eup %10179 }
 0x16e   :  { %v1074_v22 = vmul.f32 %v10180_v21, %v1063_v19  ;;  %1799 = vmatpush.bf16.msra.mxu1 %v7158_v12  ;;  %1825 = vmatpush.bf16.msra.mxu3 %v7166_v2  ;;  %v10182_v26 = vpop.eup %10181  ;;  %v9600_v12 = vld [vmem:[%s15341_s1 + $0xb4] sm:$0xf0]  ;;  %v9577_v2 = vld [vmem:[%s15341_s1 + $0x4] sm:$0xf]  ;;  %v7070_v21 = vor.u32 %v9578_v14, %v7067_v15  ;;  %v7379_v14 = vld [vmem:[%s15342_s2 + $0x190] sm:$0xf0] }
 0x16f   :  { %v1071_v30 = vadd.f32 1.0, %v10182_v26  ;;  %v7146_v19 = vor.u32 %v9600_v12, %v7145_v56  ;;  %v7062_v20 = vor.u32 %v9577_v2, %v7059_v13  ;;  %v7377_v56 = vld [vmem:[%s15342_s2 + $0x180] sm:$0xf]  ;;  %v9659_v12 = vld [vmem:[%s15342_s2 + $0x18c] sm:$0xf0] }
 0x170   :  { %v11625_v29 = vadd.f32 %v1074_v22, %v1073_v53  ;;  %v7121_v53 = vld [vmem:[%s15341_s1 + $0x80] sm:$0xf]  ;;  %v9595_v22 = vld [vmem:[%s15341_s1 + $0x8c] sm:$0xf0]  ;;  %v9657_v2 = vld [vmem:[%s15342_s2 + $0x184] sm:$0xf]  ;;  %v7378_v13 = vor.u32 %v9659_v12, %v7377_v56 }
 0x171   :  { %v1072_v38 = vmul.f32 0.5, %v1071_v30  ;;  %v7122_v25 = vor.u32 %v9595_v22, %v7121_v53  ;;  %v9592_v30 = vld [vmem:[%s15341_s1 + $0x74] sm:$0xf0]  ;;  %v7382_v15 = vor.u32 %v9657_v2, %v7379_v14  ;;  %v7363_v53 = vld [vmem:[%s15342_s2 + $0x170] sm:$0xf0] }
 0x172   :  { %10183 = vtanh.f32 %v11625_v29  ;;  %1800 = vmatpush.bf16.msra.mxu1 %v7142_v23  ;;  %1826 = vmatpush.bf16.msra.mxu3 %v7150_v5  ;;  %v7129_v23 = vld [vmem:[%s15341_s1 + $0x88] sm:$0xf]  ;;  %v9596_v5 = vld [vmem:[%s15341_s1 + $0x94] sm:$0xf0]  ;;  %v9625_v56 = vld [vmem:[%s15342_s2 + $0x84] sm:$0xf] }
 0x173   :  { %v7130_v26 = vor.u32 %v9596_v5, %v7129_v23  ;;  %v7297_v23 = vld [vmem:[%s15342_s2 + $0xe0] sm:$0xf]  ;;  %v9639_v5 = vld [vmem:[%s15342_s2 + $0xec] sm:$0xf0]  ;;  %v7251_v12 = vld [vmem:[%s15342_s2 + $0x90] sm:$0xf0] }
 0x174   :  { %v7417_v14 = vld [vmem:[%s15342_s2 + $0x1c8] sm:$0xf] }
 0x176   :  { %1801 = vmatpush.bf16.msra.mxu1 %v7126_v31  ;;  %1827 = vmatpush.bf16.msra.mxu3 %v7134_v32  ;;  %v7106_v31 = vor.u32 %v9591_v28, %v7105_v27  ;;  %v7114_v32 = vor.u32 %v9592_v30, %v7113_v47  ;;  %v7299_v27 = vld [vmem:[%s15342_s2 + $0xf0] sm:$0xf0]  ;;  %v7345_v28 = vld [vmem:[%s15342_s2 + $0x140] sm:$0xf]  ;;  %v9651_v47 = vld [vmem:[%s15342_s2 + $0x14c] sm:$0xf0] }
 0x178   :  { %v10184_v48 = vpop.eup %10183 }
 0x179   :  { %v1077_v52 = vmul.f32 %v10184_v48, %v1072_v38  ;;  %1537 = vmatmul.bf16.vlgmr.msrb.gmra.mxu1 %v1079_v8  ;;  %1563 = vmatmul.bf16.vlgmr.msrb.gmra.mxu3 %v1079_v8  ;;  %v7154_v8 = vor.u32 %v9603_v58, %v7153_v18  ;;  %v7090_v38 = vor.u32 %v9587_v34, %v7089_v33  ;;  %v7057_v48 = vld [vmem:[%s15341_s1] sm:$0xf]  ;;  %v9671_v18 = vld [vmem:[%s15342_s2 + $0x1ec] sm:$0xf0]  ;;  %v9669_v58 = vld [vmem:[%s15342_s2 + $0x1e4] sm:$0xf] }
 0x17a   :  { %1802 = vmatpush.bf16.msra.mxu1 %v7110_v39  ;;  %1828 = vmatpush.bf16.msra.mxu3 %v7118_v40  ;;  %v7098_v39 = vor.u32 %v9588_v36, %v7097_v35  ;;  %v7073_v40 = vld [vmem:[%s15341_s1 + $0x20] sm:$0xf]  ;;  %v7347_v33 = vld [vmem:[%s15342_s2 + $0x150] sm:$0xf0]  ;;  %v9635_v36 = vld [vmem:[%s15342_s2 + $0xcc] sm:$0xf0] }
 0x17b   :  { %v11670_v59 = vpack.c.bf16 %v1077_v52, %v1077_v52  ;;  %v7074_v45 = vor.u32 %v9583_v41, %v7073_v40  ;;  %v7058_v52 = vor.u32 %v9579_v49, %v7057_v48  ;;  %v7281_v35 = vld [vmem:[%s15342_s2 + $0xc0] sm:$0xf]  ;;  %v7283_v40 = vld [vmem:[%s15342_s2 + $0xd0] sm:$0xf0] }
 0x17c   :  { %v7329_v41 = vld [vmem:[%s15342_s2 + $0x120] sm:$0xf]  ;;  %v7331_v48 = vld [vmem:[%s15342_s2 + $0x130] sm:$0xf0] }
 0x17d   :  { %1472 = vmatmul.bf16.vlgmr.msra.gmra.mxu0 %v11670_v59  ;;  %1498 = vmatmul.bf16.vlgmr.msra.gmra.mxu2 %v11670_v59 }
 0x17e   :  { %1785 = vmatpush.bf16.msra.mxu0 %v7170_v55  ;;  %1811 = vmatpush.bf16.msra.mxu2 %v7178_v57  ;;  %v7066_v55 = vor.u32 %v9580_v51, %v7065_v50  ;;  %v7425_v57 = vld [vmem:[%s15342_s2 + $0x1e0] sm:$0xf] }
 0x17f   :  { %1803 = vmatpush.bf16.msra.mxu1 %v7094_v60  ;;  %1829 = vmatpush.bf16.msra.mxu3 %v7102_v61  ;;  %v7426_v60 = vor.u32 %v9671_v18, %v7425_v57  ;;  %v7427_v61 = vld [vmem:[%s15342_s2 + $0x1f0] sm:$0xf0]  ;;  %v7265_v51 = vld [vmem:[%s15342_s2 + $0xa0] sm:$0xf] }
 0x180   :  { %v7430_v62 = vor.u32 %v9669_v58, %v7427_v61  ;;  %v7267_v18 = vld [vmem:[%s15342_s2 + $0xb0] sm:$0xf0]  ;;  %v7313_v58 = vld [vmem:[%s15342_s2 + $0x100] sm:$0xf] }
 0x182   :  { %1786 = vmatpush.bf16.msra.mxu0 %v7154_v8  ;;  %1812 = vmatpush.bf16.msra.mxu2 %v7162_v9  ;;  %v7393_v8 = vld [vmem:[%s15342_s2 + $0x1a0] sm:$0xf]  ;;  %v9663_v9 = vld [vmem:[%s15342_s2 + $0x1ac] sm:$0xf0] }
 0x183   :  { %1804 = vmatpush.bf16.msra.mxu1 %v7078_v24  ;;  %1830 = vmatpush.bf16.msra.mxu3 %v7086_v11  ;;  %v7394_v10 = vor.u32 %v9663_v9, %v7393_v8  ;;  %v7395_v24 = vld [vmem:[%s15342_s2 + $0x1b0] sm:$0xf0]  ;;  %v7435_v9 = vld [vmem:[%s15342_s2 + $0x1f8] sm:$0xf0] }
 0x184   :  { %v7398_v11 = vor.u32 %v9661_v4, %v7395_v24  ;;  %v7249_v4 = vld [vmem:[%s15342_s2 + $0x80] sm:$0xf] }
 0x186   :  { %1787 = vmatpush.bf16.msra.mxu0 %v7138_v16  ;;  %1813 = vmatpush.bf16.msra.mxu2 %v7146_v19  ;;  %v7361_v16 = vld [vmem:[%s15342_s2 + $0x160] sm:$0xf]  ;;  %v9655_v19 = vld [vmem:[%s15342_s2 + $0x16c] sm:$0xf0] }
 0x187   :  { %1805 = vmatpush.bf16.msra.mxu1 %v7062_v20  ;;  %1831 = vmatpush.bf16.msra.mxu3 %v7070_v21  ;;  %v9653_v20 = vld [vmem:[%s15342_s2 + $0x164] sm:$0xf]  ;;  %v7362_v21 = vor.u32 %v9655_v19, %v7361_v16  ;;  %v9666_v16 = vld [vmem:[%s15342_s2 + $0x1cc] sm:$0xf] }
 0x188   :  { %v7366_v22 = vor.u32 %v9653_v20, %v7363_v53  ;;  %v7419_v20 = vld [vmem:[%s15342_s2 + $0x1d8] sm:$0xf0] }
 0x189   :  { %v7422_v53 = vor.u32 %v9666_v16, %v7419_v20  ;;  %v7353_v20 = vld [vmem:[%s15342_s2 + $0x148] sm:$0xf] }
 0x18a   :  { %1788 = vmatpush.bf16.msra.mxu0 %v7122_v25  ;;  %1806 = vmatmul.bf16.vlgmr.msra.gmra.mxu1 %v11670_v59  ;;  %v9637_v25 = vld [vmem:[%s15342_s2 + $0xe4] sm:$0xf] }
 0x18b   :  { %1814 = vmatpush.bf16.msra.mxu2 %v7130_v26  ;;  %1832 = vmatmul.bf16.vlgmr.msra.gmra.mxu3 %v11670_v59  ;;  %v7298_v26 = vor.u32 %v9639_v5, %v7297_v23  ;;  %v7302_v30 = vor.u32 %v9637_v25, %v7299_v27  ;;  %v9623_v23 = vld [vmem:[%s15342_s2 + $0x6c] sm:$0xf0]  ;;  %v9621_v25 = vld [vmem:[%s15342_s2 + $0x64] sm:$0xf] }
 0x18c   :  { %2258 = vmatpush.bf16.msrb.mxu1 %v7426_v60  ;;  %2284 = vmatpush.bf16.msrb.mxu3 %v7430_v62  ;;  %v9643_v60 = vld [vmem:[%s15342_s2 + $0x10c] sm:$0xf0] }
 0x18d   :  { %1524 = vmatmul.bf16.vlgmr.msrb.gmra.mxu0 %v11670_v59  ;;  %1550 = vmatmul.bf16.vlgmr.msrb.gmra.mxu2 %v11670_v59  ;;  %v7314_v62 = vor.u32 %v9643_v60, %v7313_v58  ;;  %v7203_v58 = vld [vmem:[%s15342_s2 + $0x30] sm:$0xf0] }
 0x18e   :  { %1789 = vmatpush.bf16.msra.mxu0 %v7106_v31  ;;  %v7346_v31 = vor.u32 %v9651_v47, %v7345_v28  ;;  %v7401_v28 = vld [vmem:[%s15342_s2 + $0x1a8] sm:$0xf]  ;;  %v9664_v47 = vld [vmem:[%s15342_s2 + $0x1b4] sm:$0xf0] }
 0x18f   :  { %1815 = vmatpush.bf16.msra.mxu2 %v7114_v32  ;;  %v9649_v32 = vld [vmem:[%s15342_s2 + $0x144] sm:$0xf] }
 0x190   :  { %2285 = vmatpush.bf16.msrb.mxu3 %v7414_v7  ;;  %v7350_v34 = vor.u32 %v9649_v32, %v7347_v33  ;;  %v9670_v7 = vld [vmem:[%s15342_s2 + $0x1ec] sm:$0xf]  ;;  %v7403_v32 = vld [vmem:[%s15342_s2 + $0x1b8] sm:$0xf0] }
 0x191   :  { %v7438_v24 = vor.u32 %v9670_v7, %v7435_v9  ;;  %v7185_v7 = vld [vmem:[%s15342_s2] sm:$0xf]  ;;  %v9609_v9 = vld [vmem:[%s15342_s2 + $0x4] sm:$0xf] }
 0x192   :  { %1790 = vmatpush.bf16.msra.mxu0 %v7090_v38  ;;  %v9633_v38 = vld [vmem:[%s15342_s2 + $0xc4] sm:$0xf] }
 0x193   :  { %1816 = vmatpush.bf16.msra.mxu2 %v7098_v39  ;;  %v7282_v39 = vor.u32 %v9635_v36, %v7281_v35  ;;  %v7286_v44 = vor.u32 %v9633_v38, %v7283_v40  ;;  %v9619_v35 = vld [vmem:[%s15342_s2 + $0x4c] sm:$0xf0]  ;;  %v9617_v36 = vld [vmem:[%s15342_s2 + $0x44] sm:$0xf] }
 0x194   :  { %2286 = vmatpush.bf16.msrb.mxu3 %v7398_v11 }
 0x196   :  { %1791 = vmatpush.bf16.msra.mxu0 %v7074_v45  ;;  %v7330_v45 = vor.u32 %v9647_v43, %v7329_v41  ;;  %v7385_v43 = vld [vmem:[%s15342_s2 + $0x188] sm:$0xf] }
 0x197   :  { %1817 = vmatpush.bf16.msra.mxu2 %v7082_v46  ;;  %v9645_v46 = vld [vmem:[%s15342_s2 + $0x124] sm:$0xf] }
 0x198   :  { %2287 = vmatpush.bf16.msrb.mxu3 %v7382_v15  ;;  %v7334_v49 = vor.u32 %v9645_v46, %v7331_v48  ;;  %v9668_v15 = vld [vmem:[%s15342_s2 + $0x1d4] sm:$0xf0]  ;;  %v7387_v48 = vld [vmem:[%s15342_s2 + $0x198] sm:$0xf0] }
 0x199   :  { %v7418_v19 = vor.u32 %v9668_v15, %v7417_v14  ;;  %v9638_v14 = vld [vmem:[%s15342_s2 + $0xec] sm:$0xf]  ;;  %v7307_v15 = vld [vmem:[%s15342_s2 + $0xf8] sm:$0xf0] }
 0x19a   :  { %1792 = vmatpush.bf16.msra.mxu0 %v7058_v52  ;;  %v9631_v52 = vld [vmem:[%s15342_s2 + $0xac] sm:$0xf0] }
 0x19b   :  { %1818 = vmatpush.bf16.msra.mxu2 %v7066_v55  ;;  %v9629_v55 = vld [vmem:[%s15342_s2 + $0xa4] sm:$0xf]  ;;  %v7266_v57 = vor.u32 %v9631_v52, %v7265_v51  ;;  %v7201_v52 = vld [vmem:[%s15342_s2 + $0x20] sm:$0xf] }
 0x19c   :  { %2288 = vmatpush.bf16.msrb.mxu3 %v7366_v22  ;;  %v7270_v61 = vor.u32 %v9629_v55, %v7267_v18  ;;  %v7233_v22 = vld [vmem:[%s15342_s2 + $0x60] sm:$0xf]  ;;  %v9615_v55 = vld [vmem:[%s15342_s2 + $0x2c] sm:$0xf0] }
 0x19d   :  { %1793 = vmatmul.bf16.vlgmr.msra.gmra.mxu0 %v11670_v59  ;;  %v7234_v5 = vor.u32 %v9623_v23, %v7233_v22  ;;  %v7202_v18 = vor.u32 %v9615_v55, %v7201_v52  ;;  %v7321_v55 = vld [vmem:[%s15342_s2 + $0x108] sm:$0xf] }
 0x19e   :  { %1819 = vmatmul.bf16.vlgmr.msra.gmra.mxu2 %v11670_v59  ;;  %v7409_v59 = vld [vmem:[%s15342_s2 + $0x1c0] sm:$0xf]  ;;  %2245 = vmatpush.bf16.msrb.mxu0 %v7298_v26  ;;  %v7235_v26 = vld [vmem:[%s15342_s2 + $0x70] sm:$0xf0] }
 0x19f   :  { %v7410_v3 = vor.u32 %v9667_v63, %v7409_v59  ;;  %2271 = vmatpush.bf16.msrb.mxu2 %v7302_v30  ;;  %v9641_v59 = vld [vmem:[%s15342_s2 + $0x104] sm:$0xf]  ;;  %v7315_v63 = vld [vmem:[%s15342_s2 + $0x110] sm:$0xf0]  ;;  %v7238_v27 = vor.u32 %v9621_v25, %v7235_v26  ;;  %v9662_v30 = vld [vmem:[%s15342_s2 + $0x1ac] sm:$0xf] }
 0x1a0   :  { %2289 = vmatpush.bf16.msrb.mxu3 %v7350_v34  ;;  %v7318_v0 = vor.u32 %v9641_v59, %v7315_v63  ;;  %v7406_v33 = vor.u32 %v9662_v30, %v7403_v32  ;;  %v7217_v34 = vld [vmem:[%s15342_s2 + $0x40] sm:$0xf]  ;;  %v9654_v59 = vld [vmem:[%s15342_s2 + $0x16c] sm:$0xf]  ;;  %v7355_v25 = vld [vmem:[%s15342_s2 + $0x158] sm:$0xf0] }
 0x1a1   :  { %2259 = vmatpush.bf16.msrb.mxu1 %v7410_v3  ;;  %v7433_v3 = vld [vmem:[%s15342_s2 + $0x1e8] sm:$0xf]  ;;  %v7218_v38 = vor.u32 %v9619_v35, %v7217_v34  ;;  %v9634_v30 = vld [vmem:[%s15342_s2 + $0xcc] sm:$0xf]  ;;  %v9648_v35 = vld [vmem:[%s15342_s2 + $0x134] sm:$0xf0] }
 0x1a2   :  { %2246 = vmatpush.bf16.msrb.mxu0 %v7282_v39  ;;  %v7434_v8 = vor.u32 %v9672_v6, %v7433_v3  ;;  %v7219_v39 = vld [vmem:[%s15342_s2 + $0x50] sm:$0xf0]  ;;  %v7337_v32 = vld [vmem:[%s15342_s2 + $0x128] sm:$0xf] }
 0x1a3   :  { %2272 = vmatpush.bf16.msrb.mxu2 %v7286_v44  ;;  %v7222_v41 = vor.u32 %v9617_v36, %v7219_v39  ;;  %v9660_v44 = vld [vmem:[%s15342_s2 + $0x194] sm:$0xf0]  ;;  %v9646_v36 = vld [vmem:[%s15342_s2 + $0x12c] sm:$0xf] }
 0x1a4   :  { %2290 = vmatpush.bf16.msrb.mxu3 %v7334_v49  ;;  %v7386_v46 = vor.u32 %v9660_v44, %v7385_v43 }
 0x1a5   :  { %2260 = vmatpush.bf16.msrb.mxu1 %v7394_v10  ;;  %v9627_v10 = vld [vmem:[%s15342_s2 + $0x8c] sm:$0xf0] }
 0x1a6   :  { %2247 = vmatpush.bf16.msrb.mxu0 %v7266_v57  ;;  %v7250_v11 = vor.u32 %v9627_v10, %v7249_v4  ;;  %v9613_v57 = vld [vmem:[%s15342_s2 + $0x24] sm:$0xf] }
 0x1a7   :  { %2273 = vmatpush.bf16.msrb.mxu2 %v7270_v61  ;;  %v7206_v60 = vor.u32 %v9613_v57, %v7203_v58  ;;  %v7369_v61 = vld [vmem:[%s15342_s2 + $0x168] sm:$0xf]  ;;  %v9644_v57 = vld [vmem:[%s15342_s2 + $0x114] sm:$0xf0] }
 0x1a8   :  { %2291 = vmatpush.bf16.msrb.mxu3 %v7318_v0  ;;  %v7371_v0 = vld [vmem:[%s15342_s2 + $0x178] sm:$0xf0] }
 0x1a9   :  { %2261 = vmatpush.bf16.msrb.mxu1 %v7378_v13  ;;  %v7254_v13 = vor.u32 %v9625_v56, %v7251_v12  ;;  %v7374_v6 = vor.u32 %v9654_v59, %v7371_v0  ;;  %v7257_v0 = vld [vmem:[%s15342_s2 + $0x88] sm:$0xf] }
 0x1aa   :  { %2248 = vmatpush.bf16.msrb.mxu0 %v7250_v11  ;;  %v7305_v11 = vld [vmem:[%s15342_s2 + $0xe8] sm:$0xf] }
 0x1ab   :  { %2274 = vmatpush.bf16.msrb.mxu2 %v7254_v13  ;;  %v9640_v13 = vld [vmem:[%s15342_s2 + $0xf4] sm:$0xf0] }
 0x1ac   :  { %2336 = vmatpush.bf16.msra.mxu3 %v7438_v24  ;;  %v7187_v24 = vld [vmem:[%s15342_s2 + $0x10] sm:$0xf0]  ;;  %v7306_v16 = vor.u32 %v9640_v13, %v7305_v11  ;;  %v7241_v11 = vld [vmem:[%s15342_s2 + $0x68] sm:$0xf]  ;;  %v9622_v13 = vld [vmem:[%s15342_s2 + $0x6c] sm:$0xf] }
 0x1ad   :  { %2262 = vmatpush.bf16.msrb.mxu1 %v7362_v21  ;;  %v7190_v12 = vor.u32 %v9609_v9, %v7187_v24  ;;  %v7259_v9 = vld [vmem:[%s15342_s2 + $0x98] sm:$0xf0] }
 0x1ae   :  { %2249 = vmatpush.bf16.msrb.mxu0 %v7234_v5 }
 0x1af   :  { %2275 = vmatpush.bf16.msrb.mxu2 %v7238_v27  ;;  %v7289_v27 = vld [vmem:[%s15342_s2 + $0xc8] sm:$0xf] }
 0x1b0   :  { %2337 = vmatpush.bf16.msra.mxu3 %v7422_v53  ;;  %v9650_v53 = vld [vmem:[%s15342_s2 + $0x14c] sm:$0xf] }
 0x1b1   :  { %2263 = vmatpush.bf16.msrb.mxu1 %v7346_v31  ;;  %v7402_v31 = vor.u32 %v9664_v47, %v7401_v28  ;;  %v7358_v26 = vor.u32 %v9650_v53, %v7355_v25  ;;  %v9636_v28 = vld [vmem:[%s15342_s2 + $0xd4] sm:$0xf0]  ;;  %v7225_v25 = vld [vmem:[%s15342_s2 + $0x48] sm:$0xf] }
 0x1b2   :  { %2250 = vmatpush.bf16.msrb.mxu0 %v7218_v38 }
 0x1b3   :  { %2276 = vmatpush.bf16.msrb.mxu2 %v7222_v41  ;;  %v7339_v41 = vld [vmem:[%s15342_s2 + $0x138] sm:$0xf0] }
 0x1b4   :  { %2338 = vmatpush.bf16.msra.mxu3 %v7406_v33  ;;  %v7342_v44 = vor.u32 %v9646_v36, %v7339_v41  ;;  %v7209_v36 = vld [vmem:[%s15342_s2 + $0x28] sm:$0xf]  ;;  %v9614_v41 = vld [vmem:[%s15342_s2 + $0x2c] sm:$0xf] }
 0x1b5   :  { %2264 = vmatpush.bf16.msrb.mxu1 %v7330_v45  ;;  %v9658_v45 = vld [vmem:[%s15342_s2 + $0x18c] sm:$0xf] }
 0x1b6   :  { %v7390_v51 = vor.u32 %v9658_v45, %v7387_v48  ;;  %2251 = vmatpush.bf16.msrb.mxu0 %v7202_v18  ;;  %v7273_v45 = vld [vmem:[%s15342_s2 + $0xa8] sm:$0xf]  ;;  %v9630_v48 = vld [vmem:[%s15342_s2 + $0xac] sm:$0xf] }
 0x1b7   :  { %2277 = vmatpush.bf16.msrb.mxu2 %v7206_v60  ;;  %v7322_v60 = vor.u32 %v9644_v57, %v7321_v55  ;;  %v9612_v55 = vld [vmem:[%s15342_s2 + $0x14] sm:$0xf0]  ;;  %v9610_v57 = vld [vmem:[%s15342_s2 + $0xc] sm:$0xf] }
 0x1b8   :  { %2339 = vmatpush.bf16.msra.mxu3 %v7390_v51 }
 0x1b9   :  { %2265 = vmatpush.bf16.msrb.mxu1 %v7314_v62  ;;  %v9656_v62 = vld [vmem:[%s15342_s2 + $0x174] sm:$0xf0] }
 0x1ba   :  { %v7370_v63 = vor.u32 %v9656_v62, %v7369_v61  ;;  %v9642_v61 = vld [vmem:[%s15342_s2 + $0x10c] sm:$0xf]  ;;  %v7323_v62 = vld [vmem:[%s15342_s2 + $0x118] sm:$0xf0] }
 0x1bb   :  { %2278 = vmatpush.bf16.msrb.mxu2 %v7190_v12  ;;  %v7326_v59 = vor.u32 %v9642_v61, %v7323_v62  ;;  %v9624_v12 = vld [vmem:[%s15342_s2 + $0x74] sm:$0xf0]  ;;  %v7195_v61 = vld [vmem:[%s15342_s2 + $0x18] sm:$0xf0] }
 0x1bc   :  { %2340 = vmatpush.bf16.msra.mxu3 %v7374_v6  ;;  %v7198_v62 = vor.u32 %v9610_v57, %v7195_v61  ;;  %v7496_v57 = vld [vmem:[%s15341_s1 + $0x70] sm:$0xf0] }
 0x1bd   :  { %2310 = vmatpush.bf16.msra.mxu1 %v7434_v8  ;;  %v9611_v8 = vld [vmem:[%s15342_s2 + $0xc] sm:$0xf0] }
 0x1be   :  { %v7186_v10 = vor.u32 %v9611_v8, %v7185_v7  ;;  %v9626_v8 = vld [vmem:[%s15342_s2 + $0x8c] sm:$0xf] }
 0x1c0   :  { %2252 = vmatpush.bf16.msrb.mxu0 %v7186_v10  ;;  %2341 = vmatpush.bf16.msra.mxu3 %v7358_v26  ;;  %v9620_v26 = vld [vmem:[%s15342_s2 + $0x54] sm:$0xf0] }
 0x1c1   :  { %2311 = vmatpush.bf16.msra.mxu1 %v7418_v19  ;;  %v7310_v19 = vor.u32 %v9638_v14, %v7307_v15  ;;  %v7242_v15 = vor.u32 %v9624_v12, %v7241_v11 }
 0x1c3   :  { %2323 = vmatpush.bf16.msra.mxu2 %v7310_v19 }
 0x1c4   :  { %2297 = vmatpush.bf16.msra.mxu0 %v7306_v16  ;;  %2342 = vmatpush.bf16.msra.mxu3 %v7342_v44  ;;  %v7243_v16 = vld [vmem:[%s15342_s2 + $0x78] sm:$0xf0] }
 0x1c5   :  { %2312 = vmatpush.bf16.msra.mxu1 %v7402_v31  ;;  %v7291_v31 = vld [vmem:[%s15342_s2 + $0xd8] sm:$0xf0] }
 0x1c6   :  { %v7294_v34 = vor.u32 %v9634_v30, %v7291_v31 }
 0x1c8   :  { %2324 = vmatpush.bf16.msra.mxu2 %v7294_v34  ;;  %2343 = vmatpush.bf16.msra.mxu3 %v7326_v59 }
 0x1c9   :  { %2313 = vmatpush.bf16.msra.mxu1 %v7386_v46  ;;  %v9632_v46 = vld [vmem:[%s15342_s2 + $0xb4] sm:$0xf0] }
 0x1ca   :  { %v7274_v52 = vor.u32 %v9632_v46, %v7273_v45 }
 0x1cd   :  { %2314 = vmatpush.bf16.msra.mxu1 %v7370_v63 }
 0x1e6   :  { %v11890_v50 = vpop.f32.mrf.mxu1 }
 0x1ec   :  { %v11940_v2 = vpop.f32.mrf.mxu3 }
 0x1ee   :  { %v1488_v21 = vpop.f32.mrf.mxu1 }
 0x1ef   :  { %v9652_v21 = vld [vmem:[%s15342_s2 + $0x154] sm:$0xf0] }
 0x1f0   :  { %v7354_v5 = vor.u32 %v9652_v21, %v7353_v20  ;;  %v7246_v21 = vor.u32 %v9622_v13, %v7243_v16  ;;  %v9702_v13 = vld [vmem:[%s15341_s1 + $0xec] sm:$0xf] }
 0x1f2   :  { %2315 = vmatpush.bf16.msra.mxu1 %v7354_v5 }
 0x1f4   :  { %v1514_v40 = vpop.f32.mrf.mxu3 }
 0x1f5   :  { %v7338_v40 = vor.u32 %v9648_v35, %v7337_v32 }
 0x1f6   :  { %v12002_v49 = vpop.f32.mrf.mxu1 }
 0x1f7   :  { %2316 = vmatpush.bf16.msra.mxu1 %v7338_v40 }
 0x1fa   :  { %v1473_v3 = vpop.f32.mrf.mxu0 }
 0x1fb   :  { %v1474_v4 = vadd.f32 %v1473_v3, %v11374_v37  ;;  %v9628_v3 = vld [vmem:[%s15342_s2 + $0x94] sm:$0xf0]  ;;  %2317 = vmatpush.bf16.msra.mxu1 %v7322_v60 }
 0x1fc   :  { %v12044_v56 = vpop.f32.mrf.mxu3  ;;  %v7258_v7 = vor.u32 %v9628_v3, %v7257_v0  ;;  %v7054_v0 = vld [vmem:[%s15343_s0 + $0x58] sm:$0xff] }
 0x1fd   :  { %v1487_v22 = vadd.f32 %v11890_v50, %v1474_v4  ;;  %v7290_v50 = vor.u32 %v9636_v28, %v7289_v27  ;;  %v7262_v4 = vor.u32 %v9626_v8, %v7259_v9 }
 0x1fe   :  { %v1540_v23 = vpop.f32.mrf.mxu1 }
 0x1ff   :  { %v1568_v38 = vmul.f32 0.5, %v1487_v22  ;;  %2298 = vmatpush.bf16.msra.mxu0 %v7290_v50  ;;  %v7052_v22 = vld [vmem:[%s15343_s0 + $0x48] sm:$0xff]  ;;  %v7227_v50 = vld [vmem:[%s15342_s2 + $0x58] sm:$0xf0] }
 0x200   :  { %v1499_v47 = vpop.f32.mrf.mxu2 }
 0x201   :  { %v1500_v33 = vadd.f32 %v1499_v47, %v11404_v54  ;;  %10185 = vtanh.f32 %v1568_v38  ;;  %v7226_v47 = vor.u32 %v9620_v26, %v7225_v25  ;;  %v9616_v38 = vld [vmem:[%s15342_s2 + $0x34] sm:$0xf0]  ;;  %v7544_v25 = vld [vmem:[%s15341_s1 + $0xd0] sm:$0xf0] }
 0x202   :  { %v1475_v39 = vpop.f32.mrf.mxu0  ;;  %v7210_v40 = vor.u32 %v9616_v38, %v7209_v36  ;;  %v7536_v36 = vld [vmem:[%s15341_s1 + $0xb8] sm:$0xf0] }
 0x203   :  { %v1513_v43 = vadd.f32 %v11940_v2, %v1500_v33  ;;  %v7275_v2 = vld [vmem:[%s15342_s2 + $0xb8] sm:$0xf0]  ;;  %2299 = vmatpush.bf16.msra.mxu0 %v7274_v52 }
 0x204   :  { %v1566_v51 = vpop.f32.mrf.mxu3  ;;  %v7278_v58 = vor.u32 %v9630_v48, %v7275_v2  ;;  %v7193_v2 = vld [vmem:[%s15342_s2 + $0x8] sm:$0xf] }
 0x205   :  { %v1572_v18 = vmul.f32 0.5, %v1513_v43  ;;  %v7194_v60 = vor.u32 %v9612_v55, %v7193_v2  ;;  %v9685_v55 = vld [vmem:[%s15341_s1 + $0x64] sm:$0xf] }
 0x206   :  { %2325 = vmatpush.bf16.msra.mxu2 %v7278_v58  ;;  %v7051_v58 = vld [vmem:[%s15343_s0 + $0x40] sm:$0xff]  ;;  %v7499_v61 = vor.u32 %v9685_v55, %v7496_v57 }
 0x207   :  { %10187 = vtanh.f32 %v1572_v18  ;;  %v1807_v63 = vpop.f32.mrf.mxu1  ;;  %2300 = vmatpush.bf16.msra.mxu0 %v7258_v7  ;;  %v10186_v14 = vpop.eup %10185  ;;  %v7478_v57 = vld [vmem:[%s15341_s1 + $0x40] sm:$0xf] }
 0x208   :  { %v1501_v6 = vpop.f32.mrf.mxu2  ;;  %v1570_v27 = vadd.f32 1.0, %v10186_v14  ;;  %v1838_v30 = vadd.f32 %v7052_v22, %v1807_v63  ;;  %v7568_v14 = vld [vmem:[%s15341_s1 + $0xf8] sm:$0xf0] }
 0x20a   :  { %v1525_v10 = vpop.f32.mrf.mxu0  ;;  %2326 = vmatpush.bf16.msra.mxu2 %v7262_v4  ;;  %v1571_v39 = vmul.f32 0.5, %v1570_v27  ;;  %v1845_v44 = vmul.f32 0.5, %v1838_v30  ;;  %v7053_v4 = vld [vmem:[%s15343_s0 + $0x50] sm:$0xff]  ;;  %v7552_v27 = vld [vmem:[%s15341_s1 + $0xd8] sm:$0xf0] }
 0x20b   :  { %v1526_v24 = vadd.f32 %v1525_v10, %v11487_v42  ;;  %2301 = vmatpush.bf16.msra.mxu0 %v7242_v15  ;;  %v9701_v10 = vld [vmem:[%s15341_s1 + $0xe4] sm:$0xf] }
 0x20d   :  { %v10188_v19 = vpop.eup %10187  ;;  %v1539_v20 = vadd.f32 %v12002_v49, %v1526_v24  ;;  %v9618_v49 = vld [vmem:[%s15342_s2 + $0x4c] sm:$0xf]  ;;  %v7560_v24 = vld [vmem:[%s15341_s1 + $0xf0] sm:$0xf0] }
 0x20e   :  { %v1574_v53 = vadd.f32 1.0, %v10188_v19  ;;  %v1833_v23 = vpop.f32.mrf.mxu3  ;;  %2327 = vmatpush.bf16.msra.mxu2 %v7246_v21  ;;  %v7230_v32 = vor.u32 %v9618_v49, %v7227_v50  ;;  %v7563_v22 = vor.u32 %v9701_v10, %v7560_v24  ;;  %v9698_v49 = vld [vmem:[%s15341_s1 + $0xcc] sm:$0xf]  ;;  %v7488_v10 = vld [vmem:[%s15341_s1 + $0x58] sm:$0xf0] }
 0x20f   :  { %10189 = vtanh.f32 %v1539_v20  ;;  %v1809_v5 = vpop.f32.mrf.mxu1  ;;  %2302 = vmatpush.bf16.msra.mxu0 %v7226_v47  ;;  %v1840_v9 = vadd.f32 %v7054_v0, %v1833_v23  ;;  %v7571_v23 = vor.u32 %v9702_v13, %v7568_v14  ;;  %v7566_v0 = vld [vmem:[%s15341_s1 + $0xe8] sm:$0xf]  ;;  %v7542_v13 = vld [vmem:[%s15341_s1 + $0xc0] sm:$0xf]  ;;  %v9699_v14 = vld [vmem:[%s15341_s1 + $0xcc] sm:$0xf0] }
 0x210   :  { %v1551_v28 = vpop.f32.mrf.mxu2  ;;  %v1575_v33 = vmul.f32 0.5, %v1574_v53  ;;  %v9697_v5 = vld [vmem:[%s15341_s1 + $0xc4] sm:$0xf] }
 0x211   :  { %v1552_v31 = vadd.f32 %v1551_v28, %v11516_v1  ;;  %v1850_v53 = vmul.f32 0.5, %v1840_v9  ;;  %v7547_v30 = vor.u32 %v9697_v5, %v7544_v25  ;;  %v7480_v9 = vld [vmem:[%s15341_s1 + $0x50] sm:$0xf0]  ;;  %v7472_v5 = vld [vmem:[%s15341_s1 + $0x38] sm:$0xf0]  ;;  %v7543_v25 = vor.u32 %v9699_v14, %v7542_v13 }
 0x212   :  { %v1527_v34 = vpop.f32.mrf.mxu0  ;;  %2328 = vmatpush.bf16.msra.mxu2 %v7230_v32  ;;  %v1581_v48 = vmul.f32 %v1575_v33, %v11557_v17  ;;  %v9693_v32 = vld [vmem:[%s15341_s1 + $0xa4] sm:$0xf]  ;;  %v7528_v33 = vld [vmem:[%s15341_s1 + $0xb0] sm:$0xf0]  ;;  %v9767_v13 = vld [vmem:[%s15342_s2 + $0x1ec] sm:$0xf0] }
 0x213   :  { %v1565_v35 = vadd.f32 %v12044_v56, %v1552_v31  ;;  %v7211_v56 = vld [vmem:[%s15342_s2 + $0x38] sm:$0xf0]  ;;  %2303 = vmatpush.bf16.msra.mxu0 %v7210_v40  ;;  %v7555_v31 = vor.u32 %v9698_v49, %v7552_v27  ;;  %v7531_v40 = vor.u32 %v9693_v32, %v7528_v33  ;;  %v7526_v49 = vld [vmem:[%s15341_s1 + $0xa0] sm:$0xf]  ;;  %v9695_v27 = vld [vmem:[%s15341_s1 + $0xac] sm:$0xf0] }
 0x214   :  { %v7214_v46 = vor.u32 %v9614_v41, %v7211_v56  ;;  %v7448_v32 = vld [vmem:[%s15341_s1 + $0x10] sm:$0xf0]  ;;  %v9674_v33 = vld [vmem:[%s15341_s1 + $0xc] sm:$0xf]  ;;  %v9765_v14 = vld [vmem:[%s15342_s2 + $0x1e4] sm:$0xf] }
 0x215   :  { %v10190_v43 = vpop.eup %10189  ;;  %v1577_v45 = vmul.f32 0.5, %v1565_v35  ;;  %v9694_v35 = vld [vmem:[%s15341_s1 + $0xac] sm:$0xf] }
 0x216   :  { %v1582_v51 = vmul.f32 %v10190_v43, %v1571_v39  ;;  %v1835_v52 = vpop.f32.mrf.mxu3  ;;  %2329 = vmatpush.bf16.msra.mxu2 %v7214_v46  ;;  %v7539_v43 = vor.u32 %v9694_v35, %v7536_v36  ;;  %v9690_v46 = vld [vmem:[%s15341_s1 + $0x8c] sm:$0xf]  ;;  %v7527_v35 = vor.u32 %v9695_v27, %v7526_v49  ;;  %v9757_v49 = vld [vmem:[%s15342_s2 + $0x1a4] sm:$0xf] }
 0x217   :  { %10191 = vtanh.f32 %v1577_v45  ;;  %2304 = vmatpush.bf16.msra.mxu0 %v7194_v60  ;;  %v7512_v45 = vld [vmem:[%s15341_s1 + $0x90] sm:$0xf0]  ;;  %v7504_v60 = vld [vmem:[%s15341_s1 + $0x78] sm:$0xf0] }
 0x218   :  { %v12183_v18 = vadd.f32 %v1582_v51, %v1581_v48  ;;  %v1553_v17 = vpop.f32.mrf.mxu2  ;;  %10193 = vtanh.f32 %v1845_v44  ;;  %v9689_v44 = vld [vmem:[%s15341_s1 + $0x84] sm:$0xf] }
 0x219   :  { %v7515_v52 = vor.u32 %v9689_v44, %v7512_v45 }
 0x21a   :  { %10195 = vtanh.f32 %v12183_v18  ;;  %v1794_v59 = vpop.f32.mrf.mxu0  ;;  %2330 = vmatpush.bf16.msra.mxu2 %v7198_v62 }
 0x21b   :  { %v1837_v63 = vadd.f32 %v7051_v58, %v1794_v59  ;;  %v9686_v58 = vld [vmem:[%s15341_s1 + $0x6c] sm:$0xf]  ;;  %v7558_v59 = vld [vmem:[%s15341_s1 + $0xe0] sm:$0xf] }
 0x21c   :  { %v7507_v62 = vor.u32 %v9686_v58, %v7504_v60  ;;  %v7486_v58 = vld [vmem:[%s15341_s1 + $0x48] sm:$0xf]  ;;  %v9684_v60 = vld [vmem:[%s15341_s1 + $0x54] sm:$0xf0] }
 0x21d   :  { %v10192_v3 = vpop.eup %10191  ;;  %v1841_v6 = vmul.f32 0.5, %v1837_v63  ;;  %v9703_v63 = vld [vmem:[%s15341_s1 + $0xec] sm:$0xf0] }
 0x21e   :  { %v1579_v7 = vadd.f32 1.0, %v10192_v3  ;;  %v10194_v8 = vpop.eup %10193 }
 0x21f   :  { %10197 = vtanh.f32 %v1841_v6  ;;  %v1847_v21 = vadd.f32 1.0, %v10194_v8  ;;  %v9704_v6 = vld [vmem:[%s15341_s1 + $0xf4] sm:$0xf0] }
 0x220   :  { %v10196_v11 = vpop.eup %10195  ;;  %v1580_v12 = vmul.f32 0.5, %v1579_v7  ;;  %v9681_v7 = vld [vmem:[%s15341_s1 + $0x44] sm:$0xf] }
 0x221   :  { %v1820_v15 = vpop.f32.mrf.mxu2  ;;  %v1848_v50 = vmul.f32 0.5, %v1847_v21  ;;  %v9700_v21 = vld [vmem:[%s15341_s1 + $0xd4] sm:$0xf0] }
 0x222   :  { %v1585_v16 = vmul.f32 %v10196_v11, %v1580_v12  ;;  %v1839_v19 = vadd.f32 %v7053_v4, %v1820_v15  ;;  %v1796_v20 = vpop.f32.mrf.mxu0  ;;  %v9682_v4 = vld [vmem:[%s15341_s1 + $0x4c] sm:$0xf]  ;;  %v7559_v11 = vor.u32 %v9703_v63, %v7558_v59  ;;  %v7567_v12 = vor.u32 %v9704_v6, %v7566_v0  ;;  %v7462_v59 = vld [vmem:[%s15341_s1 + $0x20] sm:$0xf]  ;;  %v9679_v63 = vld [vmem:[%s15341_s1 + $0x2c] sm:$0xf0] }
 0x223   :  { %v1854_v41 = vmul.f32 %v1848_v50, %v11625_v29  ;;  %v7520_v29 = vld [vmem:[%s15341_s1 + $0x98] sm:$0xf0]  ;;  %v7550_v20 = vld [vmem:[%s15341_s1 + $0xc8] sm:$0xf]  ;;  %v7463_v6 = vor.u32 %v9679_v63, %v7462_v59  ;;  %v7672_v59 = vld [vmem:[%s15342_s2 + $0xd0] sm:$0xf0] }
 0x224   :  { %7050 = vst [vmem:[%s15345_s4 + $0x8] sm:$0xff] %v1585_v16  ;;  %10199 = vtanh.f32 %v1839_v19  ;;  %v1860_v26 = vpack.c.bf16 %v1585_v16, %v1585_v16  ;;  %v7523_v2 = vor.u32 %v9690_v46, %v7520_v29  ;;  %v7483_v16 = vor.u32 %v9681_v7, %v7480_v9  ;;  %v7534_v50 = vld [vmem:[%s15341_s1 + $0xa8] sm:$0xf]  ;;  %v7494_v46 = vld [vmem:[%s15341_s1 + $0x60] sm:$0xf] }
 0x225   :  { %v10198_v28 = vpop.eup %10197  ;;  %10201 = vtanh.f32 %v1850_v53  ;;  %v7491_v19 = vor.u32 %v9682_v4, %v7488_v10  ;;  %v9677_v53 = vld [vmem:[%s15341_s1 + $0x24] sm:$0xf]  ;;  %v9687_v29 = vld [vmem:[%s15341_s1 + $0x6c] sm:$0xf0]  ;;  %v7470_v0 = vld [vmem:[%s15341_s1 + $0x28] sm:$0xf] }
 0x226   :  { %v1843_v47 = vadd.f32 1.0, %v10198_v28  ;;  %2266 = vmatmul.bf16.vlgmr.msrb.gmra.mxu1 %v1860_v26  ;;  %2292 = vmatmul.bf16.vlgmr.msrb.gmra.mxu3 %v1860_v26  ;;  %v9675_v9 = vld [vmem:[%s15341_s1 + $0xc] sm:$0xf0]  ;;  %v7454_v4 = vld [vmem:[%s15341_s1 + $0x8] sm:$0xf] }
 0x227   :  { %2579 = vmatpush.bf16.msrb.mxu1 %v7563_v22  ;;  %2605 = vmatpush.bf16.msrb.mxu3 %v7571_v23  ;;  %v7464_v22 = vld [vmem:[%s15341_s1 + $0x30] sm:$0xf0]  ;;  %v9678_v23 = vld [vmem:[%s15341_s1 + $0x2c] sm:$0xf]  ;;  %v9676_v10 = vld [vmem:[%s15341_s1 + $0x14] sm:$0xf0] }
 0x228   :  { %v1844_v34 = vmul.f32 0.5, %v1843_v47  ;;  %v7467_v28 = vor.u32 %v9677_v53, %v7464_v22  ;;  %v7475_v47 = vor.u32 %v9678_v23, %v7472_v5  ;;  %v9761_v53 = vld [vmem:[%s15342_s2 + $0x1c4] sm:$0xf]  ;;  %v7800_v23 = vld [vmem:[%s15342_s2 + $0x1d0] sm:$0xf0] }
 0x229   :  { %v1822_v38 = vpop.f32.mrf.mxu2  ;;  %v7803_v5 = vor.u32 %v9761_v53, %v7800_v23  ;;  %v7718_v63 = vld [vmem:[%s15342_s2 + $0x120] sm:$0xf]  ;;  %v9768_v23 = vld [vmem:[%s15342_s2 + $0x1f4] sm:$0xf0] }
 0x22a   :  { %v10200_v39 = vpop.eup %10199 }
 0x22b   :  { %v1855_v56 = vmul.f32 %v10200_v39, %v1844_v34  ;;  %2580 = vmatpush.bf16.msrb.mxu1 %v7547_v30  ;;  %2606 = vmatpush.bf16.msrb.mxu3 %v7555_v31  ;;  %v10202_v48 = vpop.eup %10201  ;;  %v9696_v30 = vld [vmem:[%s15341_s1 + $0xb4] sm:$0xf0]  ;;  %v9673_v31 = vld [vmem:[%s15341_s1 + $0x4] sm:$0xf]  ;;  %v7456_v34 = vld [vmem:[%s15341_s1 + $0x18] sm:$0xf0] }
 0x22c   :  { %v1852_v17 = vadd.f32 1.0, %v10202_v48  ;;  %v7535_v36 = vor.u32 %v9696_v30, %v7534_v50  ;;  %v7451_v38 = vor.u32 %v9673_v31, %v7448_v32  ;;  %v7459_v39 = vor.u32 %v9674_v33, %v7456_v34  ;;  %v7502_v48 = vld [vmem:[%s15341_s1 + $0x68] sm:$0xf]  ;;  %v7766_v50 = vld [vmem:[%s15342_s2 + $0x180] sm:$0xf] }
 0x22d   :  { %v12250_v51 = vadd.f32 %v1855_v56, %v1854_v41  ;;  %v9691_v41 = vld [vmem:[%s15341_s1 + $0x8c] sm:$0xf0]  ;;  %v7518_v56 = vld [vmem:[%s15341_s1 + $0x88] sm:$0xf]  ;;  %v9753_v31 = vld [vmem:[%s15342_s2 + $0x184] sm:$0xf] }
 0x22e   :  { %v1853_v3 = vmul.f32 0.5, %v1852_v17  ;;  %v9683_v17 = vld [vmem:[%s15341_s1 + $0x4c] sm:$0xf0]  ;;  %v7768_v33 = vld [vmem:[%s15342_s2 + $0x190] sm:$0xf0] }
 0x22f   :  { %10203 = vtanh.f32 %v12250_v51  ;;  %2581 = vmatpush.bf16.msrb.mxu1 %v7531_v40  ;;  %2607 = vmatpush.bf16.msrb.mxu3 %v7539_v43  ;;  %v7510_v40 = vld [vmem:[%s15341_s1 + $0x80] sm:$0xf]  ;;  %v9692_v43 = vld [vmem:[%s15341_s1 + $0x94] sm:$0xf0]  ;;  %v9755_v30 = vld [vmem:[%s15342_s2 + $0x18c] sm:$0xf0]  ;;  %v7771_v34 = vor.u32 %v9753_v31, %v7768_v33 }
 0x230   :  { %v7511_v44 = vor.u32 %v9691_v41, %v7510_v40  ;;  %v7519_v45 = vor.u32 %v9692_v43, %v7518_v56  ;;  %v7767_v32 = vor.u32 %v9755_v30, %v7766_v50  ;;  %v7752_v40 = vld [vmem:[%s15342_s2 + $0x170] sm:$0xf0]  ;;  %v7686_v56 = vld [vmem:[%s15342_s2 + $0xe0] sm:$0xf]  ;;  %v9735_v43 = vld [vmem:[%s15342_s2 + $0xec] sm:$0xf0] }
 0x231   :  { %v9721_v50 = vld [vmem:[%s15342_s2 + $0x84] sm:$0xf]  ;;  %v7640_v30 = vld [vmem:[%s15342_s2 + $0x90] sm:$0xf0]  ;;  %v7806_v33 = vld [vmem:[%s15342_s2 + $0x1c8] sm:$0xf] }
 0x233   :  { %2582 = vmatpush.bf16.msrb.mxu1 %v7515_v52  ;;  %2608 = vmatpush.bf16.msrb.mxu3 %v7523_v2  ;;  %v9688_v52 = vld [vmem:[%s15341_s1 + $0x74] sm:$0xf0]  ;;  %v7495_v2 = vor.u32 %v9687_v29, %v7494_v46  ;;  %v7688_v46 = vld [vmem:[%s15342_s2 + $0xf0] sm:$0xf0]  ;;  %v7734_v29 = vld [vmem:[%s15342_s2 + $0x140] sm:$0xf] }
 0x234   :  { %v7503_v55 = vor.u32 %v9688_v52, %v7502_v48  ;;  %v9747_v48 = vld [vmem:[%s15342_s2 + $0x14c] sm:$0xf0] }
 0x235   :  { %v10204_v8 = vpop.eup %10203 }
 0x236   :  { %v1858_v24 = vmul.f32 %v10204_v8, %v1853_v3  ;;  %2318 = vmatmul.bf16.vlgmr.msra.gmra.mxu1 %v1860_v26  ;;  %2344 = vmatmul.bf16.vlgmr.msra.gmra.mxu3 %v1860_v26  ;;  %v7551_v26 = vor.u32 %v9700_v21, %v7550_v20  ;;  %v9680_v3 = vld [vmem:[%s15341_s1 + $0x34] sm:$0xf0]  ;;  %v7446_v8 = vld [vmem:[%s15341_s1] sm:$0xf]  ;;  %v9763_v21 = vld [vmem:[%s15342_s2 + $0x1cc] sm:$0xf0] }
 0x237   :  { %2583 = vmatpush.bf16.msrb.mxu1 %v7499_v61  ;;  %2609 = vmatpush.bf16.msrb.mxu3 %v7507_v62  ;;  %v7479_v61 = vor.u32 %v9683_v17, %v7478_v57  ;;  %v7487_v62 = vor.u32 %v9684_v60, %v7486_v58  ;;  %v7471_v7 = vor.u32 %v9680_v3, %v7470_v0  ;;  %v7736_v57 = vld [vmem:[%s15342_s2 + $0x150] sm:$0xf0]  ;;  %v7670_v58 = vld [vmem:[%s15342_s2 + $0xc0] sm:$0xf]  ;;  %v9731_v60 = vld [vmem:[%s15342_s2 + $0xcc] sm:$0xf0] }
 0x238   :  { %v12295_v15 = vpack.c.bf16 %v1858_v24, %v1858_v24  ;;  %v7447_v24 = vor.u32 %v9675_v9, %v7446_v8  ;;  %v9743_v0 = vld [vmem:[%s15342_s2 + $0x12c] sm:$0xf0]  ;;  %v7720_v8 = vld [vmem:[%s15342_s2 + $0x130] sm:$0xf0] }
 0x23a   :  { %2253 = vmatmul.bf16.vlgmr.msrb.gmra.mxu0 %v12295_v15  ;;  %2279 = vmatmul.bf16.vlgmr.msrb.gmra.mxu2 %v12295_v15 }
 0x23b   :  { %2566 = vmatpush.bf16.msrb.mxu0 %v7559_v11  ;;  %2592 = vmatpush.bf16.msrb.mxu2 %v7567_v12  ;;  %v7455_v11 = vor.u32 %v9676_v10, %v7454_v4  ;;  %v7814_v12 = vld [vmem:[%s15342_s2 + $0x1e0] sm:$0xf] }
 0x23c   :  { %2584 = vmatpush.bf16.msrb.mxu1 %v7483_v16  ;;  %2610 = vmatpush.bf16.msrb.mxu3 %v7491_v19  ;;  %v7815_v16 = vor.u32 %v9767_v13, %v7814_v12  ;;  %v7816_v19 = vld [vmem:[%s15342_s2 + $0x1f0] sm:$0xf0]  ;;  %v7654_v10 = vld [vmem:[%s15342_s2 + $0xa0] sm:$0xf] }
 0x23d   :  { %v7819_v20 = vor.u32 %v9765_v14, %v7816_v19  ;;  %v7656_v13 = vld [vmem:[%s15342_s2 + $0xb0] sm:$0xf0]  ;;  %v7702_v14 = vld [vmem:[%s15342_s2 + $0x100] sm:$0xf] }
 0x23f   :  { %2567 = vmatpush.bf16.msrb.mxu0 %v7543_v25  ;;  %2593 = vmatpush.bf16.msrb.mxu2 %v7551_v26  ;;  %v7782_v25 = vld [vmem:[%s15342_s2 + $0x1a0] sm:$0xf]  ;;  %v9759_v26 = vld [vmem:[%s15342_s2 + $0x1ac] sm:$0xf0] }
 0x240   :  { %2585 = vmatpush.bf16.msrb.mxu1 %v7467_v28  ;;  %2611 = vmatpush.bf16.msrb.mxu3 %v7475_v47  ;;  %v7783_v27 = vor.u32 %v9759_v26, %v7782_v25  ;;  %v7784_v28 = vld [vmem:[%s15342_s2 + $0x1b0] sm:$0xf0]  ;;  %v7824_v26 = vld [vmem:[%s15342_s2 + $0x1f8] sm:$0xf0] }
 0x241   :  { %v7787_v47 = vor.u32 %v9757_v49, %v7784_v28  ;;  %v7638_v49 = vld [vmem:[%s15342_s2 + $0x80] sm:$0xf] }
 0x243   :  { %2568 = vmatpush.bf16.msrb.mxu0 %v7527_v35  ;;  %2594 = vmatpush.bf16.msrb.mxu2 %v7535_v36  ;;  %v7750_v35 = vld [vmem:[%s15342_s2 + $0x160] sm:$0xf]  ;;  %v9751_v36 = vld [vmem:[%s15342_s2 + $0x16c] sm:$0xf0] }
 0x244   :  { %2586 = vmatpush.bf16.msrb.mxu1 %v7451_v38  ;;  %2612 = vmatpush.bf16.msrb.mxu3 %v7459_v39  ;;  %v9749_v38 = vld [vmem:[%s15342_s2 + $0x164] sm:$0xf]  ;;  %v7751_v39 = vor.u32 %v9751_v36, %v7750_v35  ;;  %v9762_v35 = vld [vmem:[%s15342_s2 + $0x1cc] sm:$0xf] }
 0x245   :  { %v7755_v41 = vor.u32 %v9749_v38, %v7752_v40  ;;  %v7808_v38 = vld [vmem:[%s15342_s2 + $0x1d8] sm:$0xf0] }
 0x246   :  { %v7811_v40 = vor.u32 %v9762_v35, %v7808_v38  ;;  %v7742_v38 = vld [vmem:[%s15342_s2 + $0x148] sm:$0xf] }
 0x247   :  { %2569 = vmatpush.bf16.msrb.mxu0 %v7511_v44  ;;  %2587 = vmatmul.bf16.vlgmr.msrb.gmra.mxu1 %v12295_v15  ;;  %v9733_v44 = vld [vmem:[%s15342_s2 + $0xe4] sm:$0xf] }
 0x248   :  { %2595 = vmatpush.bf16.msrb.mxu2 %v7519_v45  ;;  %2613 = vmatmul.bf16.vlgmr.msrb.gmra.mxu3 %v12295_v15  ;;  %v7687_v45 = vor.u32 %v9735_v43, %v7686_v56  ;;  %v7691_v52 = vor.u32 %v9733_v44, %v7688_v46  ;;  %v9719_v56 = vld [vmem:[%s15342_s2 + $0x6c] sm:$0xf0]  ;;  %v9717_v44 = vld [vmem:[%s15342_s2 + $0x64] sm:$0xf] }
 0x249   :  { %3039 = vmatpush.bf16.msra.mxu1 %v7815_v16  ;;  %3065 = vmatpush.bf16.msra.mxu3 %v7819_v20  ;;  %v9739_v16 = vld [vmem:[%s15342_s2 + $0x10c] sm:$0xf0] }
 0x24a   :  { %2305 = vmatmul.bf16.vlgmr.msra.gmra.mxu0 %v12295_v15  ;;  %2331 = vmatmul.bf16.vlgmr.msra.gmra.mxu2 %v12295_v15  ;;  %v7703_v20 = vor.u32 %v9739_v16, %v7702_v14  ;;  %v7592_v14 = vld [vmem:[%s15342_s2 + $0x30] sm:$0xf0] }
 0x24b   :  { %2570 = vmatpush.bf16.msrb.mxu0 %v7495_v2  ;;  %v7735_v2 = vor.u32 %v9747_v48, %v7734_v29  ;;  %v7790_v29 = vld [vmem:[%s15342_s2 + $0x1a8] sm:$0xf]  ;;  %v9760_v48 = vld [vmem:[%s15342_s2 + $0x1b4] sm:$0xf0] }
 0x24c   :  { %2596 = vmatpush.bf16.msrb.mxu2 %v7503_v55  ;;  %v9745_v55 = vld [vmem:[%s15342_s2 + $0x144] sm:$0xf] }
 0x24d   :  { %3066 = vmatpush.bf16.msra.mxu3 %v7803_v5  ;;  %v7739_v17 = vor.u32 %v9745_v55, %v7736_v57  ;;  %v9766_v5 = vld [vmem:[%s15342_s2 + $0x1ec] sm:$0xf]  ;;  %v7792_v55 = vld [vmem:[%s15342_s2 + $0x1b8] sm:$0xf0] }
 0x24e   :  { %v7827_v28 = vor.u32 %v9766_v5, %v7824_v26  ;;  %v7574_v5 = vld [vmem:[%s15342_s2] sm:$0xf]  ;;  %v9705_v26 = vld [vmem:[%s15342_s2 + $0x4] sm:$0xf] }
 0x24f   :  { %2571 = vmatpush.bf16.msrb.mxu0 %v7479_v61  ;;  %v9729_v61 = vld [vmem:[%s15342_s2 + $0xc4] sm:$0xf] }
 0x250   :  { %2597 = vmatpush.bf16.msrb.mxu2 %v7487_v62  ;;  %v7671_v62 = vor.u32 %v9731_v60, %v7670_v58  ;;  %v7675_v3 = vor.u32 %v9729_v61, %v7672_v59  ;;  %v9715_v58 = vld [vmem:[%s15342_s2 + $0x4c] sm:$0xf0]  ;;  %v9713_v60 = vld [vmem:[%s15342_s2 + $0x44] sm:$0xf] }
 0x251   :  { %3067 = vmatpush.bf16.msra.mxu3 %v7787_v47 }
 0x253   :  { %2572 = vmatpush.bf16.msrb.mxu0 %v7463_v6  ;;  %v7719_v6 = vor.u32 %v9743_v0, %v7718_v63  ;;  %v7774_v0 = vld [vmem:[%s15342_s2 + $0x188] sm:$0xf] }
 0x254   :  { %2598 = vmatpush.bf16.msrb.mxu2 %v7471_v7  ;;  %v9741_v7 = vld [vmem:[%s15342_s2 + $0x124] sm:$0xf] }
 0x255   :  { %3068 = vmatpush.bf16.msra.mxu3 %v7771_v34  ;;  %v7723_v9 = vor.u32 %v9741_v7, %v7720_v8  ;;  %v9764_v34 = vld [vmem:[%s15342_s2 + $0x1d4] sm:$0xf0]  ;;  %v7776_v8 = vld [vmem:[%s15342_s2 + $0x198] sm:$0xf0] }
 0x256   :  { %v7807_v36 = vor.u32 %v9764_v34, %v7806_v33  ;;  %v9734_v33 = vld [vmem:[%s15342_s2 + $0xec] sm:$0xf]  ;;  %v7696_v34 = vld [vmem:[%s15342_s2 + $0xf8] sm:$0xf0] }
 0x257   :  { %2573 = vmatpush.bf16.msrb.mxu0 %v7447_v24  ;;  %v9727_v24 = vld [vmem:[%s15342_s2 + $0xac] sm:$0xf0] }
 0x258   :  { %2599 = vmatpush.bf16.msrb.mxu2 %v7455_v11  ;;  %v9725_v11 = vld [vmem:[%s15342_s2 + $0xa4] sm:$0xf]  ;;  %v7655_v12 = vor.u32 %v9727_v24, %v7654_v10  ;;  %v7590_v24 = vld [vmem:[%s15342_s2 + $0x20] sm:$0xf] }
 0x259   :  { %3069 = vmatpush.bf16.msra.mxu3 %v7755_v41  ;;  %v7659_v19 = vor.u32 %v9725_v11, %v7656_v13  ;;  %v7622_v41 = vld [vmem:[%s15342_s2 + $0x60] sm:$0xf]  ;;  %v9711_v11 = vld [vmem:[%s15342_s2 + $0x2c] sm:$0xf0] }
 0x25a   :  { %2574 = vmatmul.bf16.vlgmr.msrb.gmra.mxu0 %v12295_v15  ;;  %v7623_v43 = vor.u32 %v9719_v56, %v7622_v41  ;;  %v7591_v13 = vor.u32 %v9711_v11, %v7590_v24  ;;  %v7710_v11 = vld [vmem:[%s15342_s2 + $0x108] sm:$0xf] }
 0x25b   :  { %2600 = vmatmul.bf16.vlgmr.msrb.gmra.mxu2 %v12295_v15  ;;  %v7798_v15 = vld [vmem:[%s15342_s2 + $0x1c0] sm:$0xf]  ;;  %3026 = vmatpush.bf16.msra.mxu0 %v7687_v45  ;;  %v7624_v45 = vld [vmem:[%s15342_s2 + $0x70] sm:$0xf0] }
 0x25c   :  { %v7799_v22 = vor.u32 %v9763_v21, %v7798_v15  ;;  %3052 = vmatpush.bf16.msra.mxu2 %v7691_v52  ;;  %v9737_v15 = vld [vmem:[%s15342_s2 + $0x104] sm:$0xf]  ;;  %v7704_v21 = vld [vmem:[%s15342_s2 + $0x110] sm:$0xf0]  ;;  %v7627_v46 = vor.u32 %v9717_v44, %v7624_v45  ;;  %v9758_v52 = vld [vmem:[%s15342_s2 + $0x1ac] sm:$0xf] }
 0x25d   :  { %3070 = vmatpush.bf16.msra.mxu3 %v7739_v17  ;;  %v7707_v53 = vor.u32 %v9737_v15, %v7704_v21  ;;  %v7795_v57 = vor.u32 %v9758_v52, %v7792_v55  ;;  %v7606_v17 = vld [vmem:[%s15342_s2 + $0x40] sm:$0xf]  ;;  %v9750_v15 = vld [vmem:[%s15342_s2 + $0x16c] sm:$0xf]  ;;  %v7744_v44 = vld [vmem:[%s15342_s2 + $0x158] sm:$0xf0] }
 0x25e   :  { %3040 = vmatpush.bf16.msra.mxu1 %v7799_v22  ;;  %v7822_v22 = vld [vmem:[%s15342_s2 + $0x1e8] sm:$0xf]  ;;  %v7607_v61 = vor.u32 %v9715_v58, %v7606_v17  ;;  %v9730_v52 = vld [vmem:[%s15342_s2 + $0xcc] sm:$0xf]  ;;  %v9744_v58 = vld [vmem:[%s15342_s2 + $0x134] sm:$0xf0] }
 0x25f   :  { %3027 = vmatpush.bf16.msra.mxu0 %v7671_v62  ;;  %v7823_v25 = vor.u32 %v9768_v23, %v7822_v22  ;;  %v7608_v62 = vld [vmem:[%s15342_s2 + $0x50] sm:$0xf0]  ;;  %v7726_v55 = vld [vmem:[%s15342_s2 + $0x128] sm:$0xf] }
 0x260   :  { %3053 = vmatpush.bf16.msra.mxu2 %v7675_v3  ;;  %v7611_v63 = vor.u32 %v9713_v60, %v7608_v62  ;;  %v9756_v3 = vld [vmem:[%s15342_s2 + $0x194] sm:$0xf0]  ;;  %v9742_v60 = vld [vmem:[%s15342_s2 + $0x12c] sm:$0xf] }
 0x261   :  { %3071 = vmatpush.bf16.msra.mxu3 %v7723_v9  ;;  %v7775_v7 = vor.u32 %v9756_v3, %v7774_v0 }
 0x262   :  { %3041 = vmatpush.bf16.msra.mxu1 %v7783_v27  ;;  %v9723_v27 = vld [vmem:[%s15342_s2 + $0x8c] sm:$0xf0] }
 0x263   :  { %3028 = vmatpush.bf16.msra.mxu0 %v7655_v12  ;;  %v7639_v47 = vor.u32 %v9723_v27, %v7638_v49  ;;  %v9709_v12 = vld [vmem:[%s15342_s2 + $0x24] sm:$0xf] }
 0x264   :  { %3054 = vmatpush.bf16.msra.mxu2 %v7659_v19  ;;  %v7595_v16 = vor.u32 %v9709_v12, %v7592_v14  ;;  %v7758_v19 = vld [vmem:[%s15342_s2 + $0x168] sm:$0xf]  ;;  %v9740_v12 = vld [vmem:[%s15342_s2 + $0x114] sm:$0xf0] }
 0x265   :  { %3072 = vmatpush.bf16.msra.mxu3 %v7707_v53  ;;  %v7760_v53 = vld [vmem:[%s15342_s2 + $0x178] sm:$0xf0] }
 0x266   :  { %3042 = vmatpush.bf16.msra.mxu1 %v7767_v32  ;;  %v7643_v32 = vor.u32 %v9721_v50, %v7640_v30  ;;  %v7763_v23 = vor.u32 %v9750_v15, %v7760_v53  ;;  %v7646_v53 = vld [vmem:[%s15342_s2 + $0x88] sm:$0xf] }
 0x267   :  { %3029 = vmatpush.bf16.msra.mxu0 %v7639_v47  ;;  %v7694_v47 = vld [vmem:[%s15342_s2 + $0xe8] sm:$0xf] }
 0x268   :  { %3055 = vmatpush.bf16.msra.mxu2 %v7643_v32  ;;  %v9736_v32 = vld [vmem:[%s15342_s2 + $0xf4] sm:$0xf0] }
 0x269   :  { %3117 = vmatpush.bf16.msrb.mxu3 %v7827_v28  ;;  %v7576_v28 = vld [vmem:[%s15342_s2 + $0x10] sm:$0xf0]  ;;  %v7695_v35 = vor.u32 %v9736_v32, %v7694_v47  ;;  %v7630_v47 = vld [vmem:[%s15342_s2 + $0x68] sm:$0xf]  ;;  %v9718_v32 = vld [vmem:[%s15342_s2 + $0x6c] sm:$0xf] }
 0x26a   :  { %3043 = vmatpush.bf16.msra.mxu1 %v7751_v39  ;;  %v7579_v30 = vor.u32 %v9705_v26, %v7576_v28  ;;  %v7648_v26 = vld [vmem:[%s15342_s2 + $0x98] sm:$0xf0] }
 0x26b   :  { %3030 = vmatpush.bf16.msra.mxu0 %v7623_v43 }
 0x26c   :  { %3056 = vmatpush.bf16.msra.mxu2 %v7627_v46  ;;  %v7678_v46 = vld [vmem:[%s15342_s2 + $0xc8] sm:$0xf] }
 0x26d   :  { %3118 = vmatpush.bf16.msrb.mxu3 %v7811_v40  ;;  %v9746_v40 = vld [vmem:[%s15342_s2 + $0x14c] sm:$0xf] }
 0x26e   :  { %3044 = vmatpush.bf16.msra.mxu1 %v7735_v2  ;;  %v7791_v2 = vor.u32 %v9760_v48, %v7790_v29  ;;  %v7747_v45 = vor.u32 %v9746_v40, %v7744_v44  ;;  %v9732_v29 = vld [vmem:[%s15342_s2 + $0xd4] sm:$0xf0]  ;;  %v7614_v44 = vld [vmem:[%s15342_s2 + $0x48] sm:$0xf] }
 0x26f   :  { %3031 = vmatpush.bf16.msra.mxu0 %v7607_v61 }
 0x270   :  { %3057 = vmatpush.bf16.msra.mxu2 %v7611_v63  ;;  %v7728_v63 = vld [vmem:[%s15342_s2 + $0x138] sm:$0xf0] }
 0x271   :  { %3119 = vmatpush.bf16.msrb.mxu3 %v7795_v57  ;;  %v7731_v3 = vor.u32 %v9742_v60, %v7728_v63  ;;  %v7598_v60 = vld [vmem:[%s15342_s2 + $0x28] sm:$0xf]  ;;  %v9710_v63 = vld [vmem:[%s15342_s2 + $0x2c] sm:$0xf] }
 0x272   :  { %3045 = vmatpush.bf16.msra.mxu1 %v7719_v6  ;;  %v9754_v6 = vld [vmem:[%s15342_s2 + $0x18c] sm:$0xf] }
 0x273   :  { %v7779_v10 = vor.u32 %v9754_v6, %v7776_v8  ;;  %3032 = vmatpush.bf16.msra.mxu0 %v7591_v13  ;;  %v7662_v6 = vld [vmem:[%s15342_s2 + $0xa8] sm:$0xf]  ;;  %v9726_v8 = vld [vmem:[%s15342_s2 + $0xac] sm:$0xf] }
 0x274   :  { %3058 = vmatpush.bf16.msra.mxu2 %v7595_v16  ;;  %v7711_v16 = vor.u32 %v9740_v12, %v7710_v11  ;;  %v9708_v11 = vld [vmem:[%s15342_s2 + $0x14] sm:$0xf0]  ;;  %v9706_v12 = vld [vmem:[%s15342_s2 + $0xc] sm:$0xf] }
 0x275   :  { %3120 = vmatpush.bf16.msrb.mxu3 %v7779_v10 }
 0x276   :  { %3046 = vmatpush.bf16.msra.mxu1 %v7703_v20  ;;  %v9752_v20 = vld [vmem:[%s15342_s2 + $0x174] sm:$0xf0] }
 0x277   :  { %v7759_v21 = vor.u32 %v9752_v20, %v7758_v19  ;;  %v9738_v19 = vld [vmem:[%s15342_s2 + $0x10c] sm:$0xf]  ;;  %v7712_v20 = vld [vmem:[%s15342_s2 + $0x118] sm:$0xf0] }
 0x278   :  { %3059 = vmatpush.bf16.msra.mxu2 %v7579_v30  ;;  %v7715_v15 = vor.u32 %v9738_v19, %v7712_v20  ;;  %v9720_v30 = vld [vmem:[%s15342_s2 + $0x74] sm:$0xf0]  ;;  %v7584_v19 = vld [vmem:[%s15342_s2 + $0x18] sm:$0xf0] }
 0x279   :  { %3121 = vmatpush.bf16.msrb.mxu3 %v7763_v23  ;;  %v7587_v20 = vor.u32 %v9706_v12, %v7584_v19  ;;  %v7885_v12 = vld [vmem:[%s15341_s1 + $0x70] sm:$0xf0] }
 0x27a   :  { %3091 = vmatpush.bf16.msrb.mxu1 %v7823_v25  ;;  %v9707_v25 = vld [vmem:[%s15342_s2 + $0xc] sm:$0xf0] }
 0x27b   :  { %v7575_v27 = vor.u32 %v9707_v25, %v7574_v5  ;;  %v9722_v25 = vld [vmem:[%s15342_s2 + $0x8c] sm:$0xf] }
 0x27d   :  { %3033 = vmatpush.bf16.msra.mxu0 %v7575_v27  ;;  %3122 = vmatpush.bf16.msrb.mxu3 %v7747_v45  ;;  %v9716_v45 = vld [vmem:[%s15342_s2 + $0x54] sm:$0xf0] }
 0x27e   :  { %3092 = vmatpush.bf16.msrb.mxu1 %v7807_v36  ;;  %v7699_v36 = vor.u32 %v9734_v33, %v7696_v34  ;;  %v7631_v34 = vor.u32 %v9720_v30, %v7630_v47 }
 0x280   :  { %3104 = vmatpush.bf16.msrb.mxu2 %v7699_v36 }
 0x281   :  { %3078 = vmatpush.bf16.msrb.mxu0 %v7695_v35  ;;  %3123 = vmatpush.bf16.msrb.mxu3 %v7731_v3  ;;  %v7632_v35 = vld [vmem:[%s15342_s2 + $0x78] sm:$0xf0] }
 0x282   :  { %3093 = vmatpush.bf16.msrb.mxu1 %v7791_v2  ;;  %v7680_v2 = vld [vmem:[%s15342_s2 + $0xd8] sm:$0xf0] }
 0x283   :  { %v7683_v17 = vor.u32 %v9730_v52, %v7680_v2 }
 0x285   :  { %3105 = vmatpush.bf16.msrb.mxu2 %v7683_v17  ;;  %3124 = vmatpush.bf16.msrb.mxu3 %v7715_v15 }
 0x286   :  { %3094 = vmatpush.bf16.msrb.mxu1 %v7775_v7  ;;  %v9728_v7 = vld [vmem:[%s15342_s2 + $0xb4] sm:$0xf0] }
 0x287   :  { %v7663_v24 = vor.u32 %v9728_v7, %v7662_v6 }
 0x28a   :  { %3095 = vmatpush.bf16.msrb.mxu1 %v7759_v21 }
 0x2a3   :  { %v12515_v4 = vpop.f32.mrf.mxu1 }
 0x2a9   :  { %v12565_v31 = vpop.f32.mrf.mxu3 }
 0x2ab   :  { %v2269_v39 = vpop.f32.mrf.mxu1 }
 0x2ac   :  { %v9748_v39 = vld [vmem:[%s15342_s2 + $0x154] sm:$0xf0] }
 0x2ad   :  { %v7743_v43 = vor.u32 %v9748_v39, %v7742_v38  ;;  %v7635_v39 = vor.u32 %v9718_v32, %v7632_v35  ;;  %v9798_v32 = vld [vmem:[%s15341_s1 + $0xec] sm:$0xf] }
 0x2af   :  { %3096 = vmatpush.bf16.msrb.mxu1 %v7743_v43 }
 0x2b1   :  { %v2295_v59 = vpop.f32.mrf.mxu3 }
 0x2b2   :  { %v7727_v59 = vor.u32 %v9744_v58, %v7726_v55 }
 0x2b3   :  { %v12627_v9 = vpop.f32.mrf.mxu1 }
 0x2b4   :  { %3097 = vmatpush.bf16.msrb.mxu1 %v7727_v59 }
 0x2b7   :  { %v2254_v22 = vpop.f32.mrf.mxu0 }
 0x2b8   :  { %v2255_v49 = vadd.f32 %v2254_v22, %v11374_v37  ;;  %v9724_v22 = vld [vmem:[%s15342_s2 + $0x94] sm:$0xf0]  ;;  %3098 = vmatpush.bf16.msrb.mxu1 %v7711_v16 }
 0x2b9   :  { %v12669_v50 = vpop.f32.mrf.mxu3  ;;  %v7647_v5 = vor.u32 %v9724_v22, %v7646_v53  ;;  %v7443_v53 = vld [vmem:[%s15343_s0 + $0x78] sm:$0xff] }
 0x2ba   :  { %v2268_v41 = vadd.f32 %v12515_v4, %v2255_v49  ;;  %v7679_v4 = vor.u32 %v9732_v29, %v7678_v46  ;;  %v7651_v49 = vor.u32 %v9722_v25, %v7648_v26 }
 0x2bb   :  { %v2321_v56 = vpop.f32.mrf.mxu1 }
 0x2bc   :  { %v2349_v61 = vmul.f32 0.5, %v2268_v41  ;;  %3079 = vmatpush.bf16.msrb.mxu0 %v7679_v4  ;;  %v7441_v41 = vld [vmem:[%s15343_s0 + $0x68] sm:$0xff]  ;;  %v7616_v4 = vld [vmem:[%s15342_s2 + $0x58] sm:$0xf0] }
 0x2bd   :  { %v2280_v48 = vpop.f32.mrf.mxu2 }
 0x2be   :  { %v2281_v57 = vadd.f32 %v2280_v48, %v11404_v54  ;;  %10205 = vtanh.f32 %v2349_v61  ;;  %v7615_v48 = vor.u32 %v9716_v45, %v7614_v44  ;;  %v9712_v61 = vld [vmem:[%s15342_s2 + $0x34] sm:$0xf0]  ;;  %v7933_v44 = vld [vmem:[%s15341_s1 + $0xd0] sm:$0xf0] }
 0x2bf   :  { %v2256_v62 = vpop.f32.mrf.mxu0  ;;  %v7599_v59 = vor.u32 %v9712_v61, %v7598_v60  ;;  %v7925_v60 = vld [vmem:[%s15341_s1 + $0xb8] sm:$0xf0] }
 0x2c0   :  { %v2294_v0 = vadd.f32 %v12565_v31, %v2281_v57  ;;  %v7664_v31 = vld [vmem:[%s15342_s2 + $0xb8] sm:$0xf0]  ;;  %3080 = vmatpush.bf16.msrb.mxu0 %v7663_v24 }
 0x2c1   :  { %v2347_v10 = vpop.f32.mrf.mxu3  ;;  %v7667_v14 = vor.u32 %v9726_v8, %v7664_v31  ;;  %v7582_v31 = vld [vmem:[%s15342_s2 + $0x8] sm:$0xf] }
 0x2c2   :  { %v2353_v13 = vmul.f32 0.5, %v2294_v0  ;;  %v7583_v16 = vor.u32 %v9708_v11, %v7582_v31  ;;  %v9781_v11 = vld [vmem:[%s15341_s1 + $0x64] sm:$0xf] }
 0x2c3   :  { %3106 = vmatpush.bf16.msrb.mxu2 %v7667_v14  ;;  %v7440_v14 = vld [vmem:[%s15343_s0 + $0x60] sm:$0xff]  ;;  %v7888_v19 = vor.u32 %v9781_v11, %v7885_v12 }
 0x2c4   :  { %10207 = vtanh.f32 %v2353_v13  ;;  %v2588_v21 = vpop.f32.mrf.mxu1  ;;  %3081 = vmatpush.bf16.msrb.mxu0 %v7647_v5  ;;  %v10206_v33 = vpop.eup %10205  ;;  %v7867_v12 = vld [vmem:[%s15341_s1 + $0x40] sm:$0xf] }
 0x2c5   :  { %v2282_v23 = vpop.f32.mrf.mxu2  ;;  %v2351_v46 = vadd.f32 1.0, %v10206_v33  ;;  %v2619_v52 = vadd.f32 %v7441_v41, %v2588_v21  ;;  %v7957_v33 = vld [vmem:[%s15341_s1 + $0xf8] sm:$0xf0] }
 0x2c7   :  { %v2306_v27 = vpop.f32.mrf.mxu0  ;;  %3107 = vmatpush.bf16.msrb.mxu2 %v7651_v49  ;;  %v2352_v62 = vmul.f32 0.5, %v2351_v46  ;;  %v2626_v3 = vmul.f32 0.5, %v2619_v52  ;;  %v7442_v49 = vld [vmem:[%s15343_s0 + $0x70] sm:$0xff]  ;;  %v7941_v46 = vld [vmem:[%s15341_s1 + $0xd8] sm:$0xf0] }
 0x2c8   :  { %v2307_v28 = vadd.f32 %v2306_v27, %v11487_v42  ;;  %3082 = vmatpush.bf16.msrb.mxu0 %v7631_v34  ;;  %v9797_v27 = vld [vmem:[%s15341_s1 + $0xe4] sm:$0xf] }
 0x2ca   :  { %v10208_v36 = vpop.eup %10207  ;;  %v2320_v38 = vadd.f32 %v12627_v9, %v2307_v28  ;;  %v9714_v9 = vld [vmem:[%s15342_s2 + $0x4c] sm:$0xf]  ;;  %v7949_v28 = vld [vmem:[%s15341_s1 + $0xf0] sm:$0xf0] }
 0x2cb   :  { %v2355_v40 = vadd.f32 1.0, %v10208_v36  ;;  %v2614_v56 = vpop.f32.mrf.mxu3  ;;  %3108 = vmatpush.bf16.msrb.mxu2 %v7635_v39  ;;  %v7619_v55 = vor.u32 %v9714_v9, %v7616_v4  ;;  %v7952_v41 = vor.u32 %v9797_v27, %v7949_v28  ;;  %v9794_v9 = vld [vmem:[%s15341_s1 + $0xcc] sm:$0xf]  ;;  %v7877_v27 = vld [vmem:[%s15341_s1 + $0x58] sm:$0xf0] }
 0x2cc   :  { %10209 = vtanh.f32 %v2320_v38  ;;  %v2590_v43 = vpop.f32.mrf.mxu1  ;;  %3083 = vmatpush.bf16.msrb.mxu0 %v7615_v48  ;;  %v2621_v26 = vadd.f32 %v7443_v53, %v2614_v56  ;;  %v7960_v56 = vor.u32 %v9798_v32, %v7957_v33  ;;  %v7955_v53 = vld [vmem:[%s15341_s1 + $0xe8] sm:$0xf]  ;;  %v7931_v32 = vld [vmem:[%s15341_s1 + $0xc0] sm:$0xf]  ;;  %v9795_v33 = vld [vmem:[%s15341_s1 + $0xcc] sm:$0xf0] }
 0x2cd   :  { %v2332_v29 = vpop.f32.mrf.mxu2  ;;  %v2356_v57 = vmul.f32 0.5, %v2355_v40  ;;  %v9793_v43 = vld [vmem:[%s15341_s1 + $0xc4] sm:$0xf] }
 0x2ce   :  { %v2333_v2 = vadd.f32 %v2332_v29, %v11516_v1  ;;  %v2631_v40 = vmul.f32 0.5, %v2621_v26  ;;  %v7936_v52 = vor.u32 %v9793_v43, %v7933_v44  ;;  %v7869_v26 = vld [vmem:[%s15341_s1 + $0x50] sm:$0xf0]  ;;  %v7861_v43 = vld [vmem:[%s15341_s1 + $0x38] sm:$0xf0]  ;;  %v7932_v44 = vor.u32 %v9795_v33, %v7931_v32 }
 0x2cf   :  { %v2308_v17 = vpop.f32.mrf.mxu0  ;;  %3109 = vmatpush.bf16.msrb.mxu2 %v7619_v55  ;;  %v2362_v8 = vmul.f32 %v2356_v57, %v12183_v18  ;;  %v9789_v55 = vld [vmem:[%s15341_s1 + $0xa4] sm:$0xf]  ;;  %v7917_v57 = vld [vmem:[%s15341_s1 + $0xb0] sm:$0xf0]  ;;  %v9863_v32 = vld [vmem:[%s15342_s2 + $0x1ec] sm:$0xf0] }
 0x2d0   :  { %v2346_v58 = vadd.f32 %v12669_v50, %v2333_v2  ;;  %v7600_v50 = vld [vmem:[%s15342_s2 + $0x38] sm:$0xf0]  ;;  %3084 = vmatpush.bf16.msrb.mxu0 %v7599_v59  ;;  %v7944_v2 = vor.u32 %v9794_v9, %v7941_v46  ;;  %v7920_v59 = vor.u32 %v9789_v55, %v7917_v57  ;;  %v7915_v9 = vld [vmem:[%s15341_s1 + $0xa0] sm:$0xf]  ;;  %v9791_v46 = vld [vmem:[%s15341_s1 + $0xac] sm:$0xf0] }
 0x2d1   :  { %v7603_v7 = vor.u32 %v9710_v63, %v7600_v50  ;;  %v7837_v55 = vld [vmem:[%s15341_s1 + $0x10] sm:$0xf0]  ;;  %v9770_v57 = vld [vmem:[%s15341_s1 + $0xc] sm:$0xf]  ;;  %v9861_v33 = vld [vmem:[%s15342_s2 + $0x1e4] sm:$0xf] }
 0x2d2   :  { %v10210_v0 = vpop.eup %10209  ;;  %v2358_v6 = vmul.f32 0.5, %v2346_v58  ;;  %v9790_v58 = vld [vmem:[%s15341_s1 + $0xac] sm:$0xf] }
 0x2d3   :  { %v2363_v10 = vmul.f32 %v10210_v0, %v2352_v62  ;;  %v2616_v24 = vpop.f32.mrf.mxu3  ;;  %3110 = vmatpush.bf16.msrb.mxu2 %v7603_v7  ;;  %v7928_v0 = vor.u32 %v9790_v58, %v7925_v60  ;;  %v9786_v7 = vld [vmem:[%s15341_s1 + $0x8c] sm:$0xf]  ;;  %v7916_v58 = vor.u32 %v9791_v46, %v7915_v9  ;;  %v9853_v9 = vld [vmem:[%s15342_s2 + $0x1a4] sm:$0xf] }
 0x2d4   :  { %10211 = vtanh.f32 %v2358_v6  ;;  %3085 = vmatpush.bf16.msrb.mxu0 %v7583_v16  ;;  %v7901_v6 = vld [vmem:[%s15341_s1 + $0x90] sm:$0xf0]  ;;  %v7893_v16 = vld [vmem:[%s15341_s1 + $0x78] sm:$0xf0] }
 0x2d5   :  { %v12808_v13 = vadd.f32 %v2363_v10, %v2362_v8  ;;  %v2334_v18 = vpop.f32.mrf.mxu2  ;;  %10213 = vtanh.f32 %v2626_v3  ;;  %v9785_v3 = vld [vmem:[%s15341_s1 + $0x84] sm:$0xf] }
 0x2d6   :  { %v7904_v24 = vor.u32 %v9785_v3, %v7901_v6 }
 0x2d7   :  { %10215 = vtanh.f32 %v12808_v13  ;;  %v2575_v15 = vpop.f32.mrf.mxu0  ;;  %3111 = vmatpush.bf16.msrb.mxu2 %v7587_v20 }
 0x2d8   :  { %v2618_v21 = vadd.f32 %v7440_v14, %v2575_v15  ;;  %v9782_v14 = vld [vmem:[%s15341_s1 + $0x6c] sm:$0xf]  ;;  %v7947_v15 = vld [vmem:[%s15341_s1 + $0xe0] sm:$0xf] }
 0x2d9   :  { %v7896_v20 = vor.u32 %v9782_v14, %v7893_v16  ;;  %v7875_v14 = vld [vmem:[%s15341_s1 + $0x48] sm:$0xf]  ;;  %v9780_v16 = vld [vmem:[%s15341_s1 + $0x54] sm:$0xf0] }
 0x2da   :  { %v10212_v22 = vpop.eup %10211  ;;  %v2622_v23 = vmul.f32 0.5, %v2618_v21  ;;  %v9799_v21 = vld [vmem:[%s15341_s1 + $0xec] sm:$0xf0] }
 0x2db   :  { %v2360_v5 = vadd.f32 1.0, %v10212_v22  ;;  %v10214_v25 = vpop.eup %10213 }
 0x2dc   :  { %10217 = vtanh.f32 %v2622_v23  ;;  %v2628_v39 = vadd.f32 1.0, %v10214_v25  ;;  %v9800_v23 = vld [vmem:[%s15341_s1 + $0xf4] sm:$0xf0] }
 0x2dd   :  { %v10216_v47 = vpop.eup %10215  ;;  %v2361_v30 = vmul.f32 0.5, %v2360_v5  ;;  %v9777_v5 = vld [vmem:[%s15341_s1 + $0x44] sm:$0xf] }
 0x2de   :  { %v2601_v34 = vpop.f32.mrf.mxu2  ;;  %v2629_v4 = vmul.f32 0.5, %v2628_v39  ;;  %v9796_v39 = vld [vmem:[%s15341_s1 + $0xd4] sm:$0xf0] }
 0x2df   :  { %v2366_v35 = vmul.f32 %v10216_v47, %v2361_v30  ;;  %v2620_v36 = vadd.f32 %v7442_v49, %v2601_v34  ;;  %v2577_v38 = vpop.f32.mrf.mxu0  ;;  %v9778_v49 = vld [vmem:[%s15341_s1 + $0x4c] sm:$0xf]  ;;  %v7948_v47 = vor.u32 %v9799_v21, %v7947_v15  ;;  %v7956_v30 = vor.u32 %v9800_v23, %v7955_v53  ;;  %v7851_v15 = vld [vmem:[%s15341_s1 + $0x20] sm:$0xf]  ;;  %v9775_v21 = vld [vmem:[%s15341_s1 + $0x2c] sm:$0xf0] }
 0x2e0   :  { %v2635_v63 = vmul.f32 %v2629_v4, %v12250_v51  ;;  %v7909_v51 = vld [vmem:[%s15341_s1 + $0x98] sm:$0xf0]  ;;  %v7939_v38 = vld [vmem:[%s15341_s1 + $0xc8] sm:$0xf]  ;;  %v7852_v23 = vor.u32 %v9775_v21, %v7851_v15  ;;  %v8061_v15 = vld [vmem:[%s15342_s2 + $0xd0] sm:$0xf0] }
 0x2e1   :  { %7439 = vst [vmem:[%s15345_s4 + $0x10] sm:$0xff] %v2366_v35  ;;  %10219 = vtanh.f32 %v2620_v36  ;;  %v2641_v45 = vpack.c.bf16 %v2366_v35, %v2366_v35  ;;  %v7912_v31 = vor.u32 %v9786_v7, %v7909_v51  ;;  %v7872_v35 = vor.u32 %v9777_v5, %v7869_v26  ;;  %v7923_v4 = vld [vmem:[%s15341_s1 + $0xa8] sm:$0xf]  ;;  %v7883_v7 = vld [vmem:[%s15341_s1 + $0x60] sm:$0xf] }
 0x2e2   :  { %v10218_v29 = vpop.eup %10217  ;;  %10221 = vtanh.f32 %v2631_v40  ;;  %v7880_v36 = vor.u32 %v9778_v49, %v7877_v27  ;;  %v9773_v40 = vld [vmem:[%s15341_s1 + $0x24] sm:$0xf]  ;;  %v9783_v51 = vld [vmem:[%s15341_s1 + $0x6c] sm:$0xf0]  ;;  %v7859_v53 = vld [vmem:[%s15341_s1 + $0x28] sm:$0xf] }
 0x2e3   :  { %v2624_v48 = vadd.f32 1.0, %v10218_v29  ;;  %3047 = vmatmul.bf16.vlgmr.msra.gmra.mxu1 %v2641_v45  ;;  %3073 = vmatmul.bf16.vlgmr.msra.gmra.mxu3 %v2641_v45  ;;  %v9771_v26 = vld [vmem:[%s15341_s1 + $0xc] sm:$0xf0]  ;;  %v7843_v49 = vld [vmem:[%s15341_s1 + $0x8] sm:$0xf] }
 0x2e4   :  { %3360 = vmatpush.bf16.msra.mxu1 %v7952_v41  ;;  %3386 = vmatpush.bf16.msra.mxu3 %v7960_v56  ;;  %v7853_v41 = vld [vmem:[%s15341_s1 + $0x30] sm:$0xf0]  ;;  %v9774_v56 = vld [vmem:[%s15341_s1 + $0x2c] sm:$0xf]  ;;  %v9772_v27 = vld [vmem:[%s15341_s1 + $0x14] sm:$0xf0] }
 0x2e5   :  { %v2625_v17 = vmul.f32 0.5, %v2624_v48  ;;  %v7856_v29 = vor.u32 %v9773_v40, %v7853_v41  ;;  %v7864_v48 = vor.u32 %v9774_v56, %v7861_v43  ;;  %v9857_v40 = vld [vmem:[%s15342_s2 + $0x1c4] sm:$0xf]  ;;  %v8189_v56 = vld [vmem:[%s15342_s2 + $0x1d0] sm:$0xf0] }
 0x2e6   :  { %v2603_v61 = vpop.f32.mrf.mxu2  ;;  %v8192_v43 = vor.u32 %v9857_v40, %v8189_v56  ;;  %v8107_v21 = vld [vmem:[%s15342_s2 + $0x120] sm:$0xf]  ;;  %v9864_v56 = vld [vmem:[%s15342_s2 + $0x1f4] sm:$0xf0] }
 0x2e7   :  { %v10220_v62 = vpop.eup %10219 }
 0x2e8   :  { %v2636_v50 = vmul.f32 %v10220_v62, %v2625_v17  ;;  %3361 = vmatpush.bf16.msra.mxu1 %v7936_v52  ;;  %3387 = vmatpush.bf16.msra.mxu3 %v7944_v2  ;;  %v10222_v8 = vpop.eup %10221  ;;  %v9792_v52 = vld [vmem:[%s15341_s1 + $0xb4] sm:$0xf0]  ;;  %v9769_v2 = vld [vmem:[%s15341_s1 + $0x4] sm:$0xf]  ;;  %v7845_v17 = vld [vmem:[%s15341_s1 + $0x18] sm:$0xf0] }
 0x2e9   :  { %v2633_v18 = vadd.f32 1.0, %v10222_v8  ;;  %v7924_v60 = vor.u32 %v9792_v52, %v7923_v4  ;;  %v7840_v61 = vor.u32 %v9769_v2, %v7837_v55  ;;  %v7848_v62 = vor.u32 %v9770_v57, %v7845_v17  ;;  %v7891_v8 = vld [vmem:[%s15341_s1 + $0x68] sm:$0xf]  ;;  %v8155_v4 = vld [vmem:[%s15342_s2 + $0x180] sm:$0xf] }
 0x2ea   :  { %v12875_v10 = vadd.f32 %v2636_v50, %v2635_v63  ;;  %v9787_v63 = vld [vmem:[%s15341_s1 + $0x8c] sm:$0xf0]  ;;  %v7907_v50 = vld [vmem:[%s15341_s1 + $0x88] sm:$0xf]  ;;  %v9849_v2 = vld [vmem:[%s15342_s2 + $0x184] sm:$0xf] }
 0x2eb   :  { %v2634_v22 = vmul.f32 0.5, %v2633_v18  ;;  %v9779_v18 = vld [vmem:[%s15341_s1 + $0x4c] sm:$0xf0]  ;;  %v8157_v57 = vld [vmem:[%s15342_s2 + $0x190] sm:$0xf0] }
 0x2ec   :  { %10223 = vtanh.f32 %v12875_v10  ;;  %3362 = vmatpush.bf16.msra.mxu1 %v7920_v59  ;;  %3388 = vmatpush.bf16.msra.mxu3 %v7928_v0  ;;  %v7899_v59 = vld [vmem:[%s15341_s1 + $0x80] sm:$0xf]  ;;  %v9788_v0 = vld [vmem:[%s15341_s1 + $0x94] sm:$0xf0]  ;;  %v9851_v52 = vld [vmem:[%s15342_s2 + $0x18c] sm:$0xf0]  ;;  %v8160_v17 = vor.u32 %v9849_v2, %v8157_v57 }
 0x2ed   :  { %v7900_v3 = vor.u32 %v9787_v63, %v7899_v59  ;;  %v7908_v6 = vor.u32 %v9788_v0, %v7907_v50  ;;  %v8156_v55 = vor.u32 %v9851_v52, %v8155_v4  ;;  %v8141_v59 = vld [vmem:[%s15342_s2 + $0x170] sm:$0xf0]  ;;  %v8075_v50 = vld [vmem:[%s15342_s2 + $0xe0] sm:$0xf]  ;;  %v9831_v0 = vld [vmem:[%s15342_s2 + $0xec] sm:$0xf0] }
 0x2ee   :  { %v9817_v4 = vld [vmem:[%s15342_s2 + $0x84] sm:$0xf]  ;;  %v8029_v52 = vld [vmem:[%s15342_s2 + $0x90] sm:$0xf0]  ;;  %v8195_v57 = vld [vmem:[%s15342_s2 + $0x1c8] sm:$0xf] }
 0x2f0   :  { %3363 = vmatpush.bf16.msra.mxu1 %v7904_v24  ;;  %3389 = vmatpush.bf16.msra.mxu3 %v7912_v31  ;;  %v9784_v24 = vld [vmem:[%s15341_s1 + $0x74] sm:$0xf0]  ;;  %v7884_v31 = vor.u32 %v9783_v51, %v7883_v7  ;;  %v8077_v7 = vld [vmem:[%s15342_s2 + $0xf0] sm:$0xf0]  ;;  %v8123_v51 = vld [vmem:[%s15342_s2 + $0x140] sm:$0xf] }
 0x2f1   :  { %v7892_v11 = vor.u32 %v9784_v24, %v7891_v8  ;;  %v9843_v8 = vld [vmem:[%s15342_s2 + $0x14c] sm:$0xf0] }
 0x2f2   :  { %v10224_v25 = vpop.eup %10223 }
 0x2f3   :  { %v2639_v28 = vmul.f32 %v10224_v25, %v2634_v22  ;;  %3099 = vmatmul.bf16.vlgmr.msrb.gmra.mxu1 %v2641_v45  ;;  %3125 = vmatmul.bf16.vlgmr.msrb.gmra.mxu3 %v2641_v45  ;;  %v7940_v45 = vor.u32 %v9796_v39, %v7939_v38  ;;  %v9776_v22 = vld [vmem:[%s15341_s1 + $0x34] sm:$0xf0]  ;;  %v7835_v25 = vld [vmem:[%s15341_s1] sm:$0xf]  ;;  %v9859_v39 = vld [vmem:[%s15342_s2 + $0x1cc] sm:$0xf0] }
 0x2f4   :  { %3364 = vmatpush.bf16.msra.mxu1 %v7888_v19  ;;  %3390 = vmatpush.bf16.msra.mxu3 %v7896_v20  ;;  %v7868_v19 = vor.u32 %v9779_v18, %v7867_v12  ;;  %v7876_v20 = vor.u32 %v9780_v16, %v7875_v14  ;;  %v7860_v5 = vor.u32 %v9776_v22, %v7859_v53  ;;  %v8125_v12 = vld [vmem:[%s15342_s2 + $0x150] sm:$0xf0]  ;;  %v8059_v14 = vld [vmem:[%s15342_s2 + $0xc0] sm:$0xf]  ;;  %v9827_v16 = vld [vmem:[%s15342_s2 + $0xcc] sm:$0xf0] }
 0x2f5   :  { %v12920_v34 = vpack.c.bf16 %v2639_v28, %v2639_v28  ;;  %v7836_v28 = vor.u32 %v9771_v26, %v7835_v25  ;;  %v9839_v53 = vld [vmem:[%s15342_s2 + $0x12c] sm:$0xf0]  ;;  %v8109_v25 = vld [vmem:[%s15342_s2 + $0x130] sm:$0xf0] }
 0x2f7   :  { %3034 = vmatmul.bf16.vlgmr.msra.gmra.mxu0 %v12920_v34  ;;  %3060 = vmatmul.bf16.vlgmr.msra.gmra.mxu2 %v12920_v34 }
 0x2f8   :  { %3347 = vmatpush.bf16.msra.mxu0 %v7948_v47  ;;  %3373 = vmatpush.bf16.msra.mxu2 %v7956_v30  ;;  %v7844_v47 = vor.u32 %v9772_v27, %v7843_v49  ;;  %v8203_v30 = vld [vmem:[%s15342_s2 + $0x1e0] sm:$0xf] }
 0x2f9   :  { %3365 = vmatpush.bf16.msra.mxu1 %v7872_v35  ;;  %3391 = vmatpush.bf16.msra.mxu3 %v7880_v36  ;;  %v8204_v35 = vor.u32 %v9863_v32, %v8203_v30  ;;  %v8205_v36 = vld [vmem:[%s15342_s2 + $0x1f0] sm:$0xf0]  ;;  %v8043_v27 = vld [vmem:[%s15342_s2 + $0xa0] sm:$0xf] }
 0x2fa   :  { %v8208_v38 = vor.u32 %v9861_v33, %v8205_v36  ;;  %v8045_v32 = vld [vmem:[%s15342_s2 + $0xb0] sm:$0xf0]  ;;  %v8091_v33 = vld [vmem:[%s15342_s2 + $0x100] sm:$0xf] }
 0x2fc   :  { %3348 = vmatpush.bf16.msra.mxu0 %v7932_v44  ;;  %3374 = vmatpush.bf16.msra.mxu2 %v7940_v45  ;;  %v8171_v44 = vld [vmem:[%s15342_s2 + $0x1a0] sm:$0xf]  ;;  %v9855_v45 = vld [vmem:[%s15342_s2 + $0x1ac] sm:$0xf0] }
 0x2fd   :  { %3366 = vmatpush.bf16.msra.mxu1 %v7856_v29  ;;  %3392 = vmatpush.bf16.msra.mxu3 %v7864_v48  ;;  %v8172_v46 = vor.u32 %v9855_v45, %v8171_v44  ;;  %v8173_v29 = vld [vmem:[%s15342_s2 + $0x1b0] sm:$0xf0]  ;;  %v8213_v45 = vld [vmem:[%s15342_s2 + $0x1f8] sm:$0xf0] }
 0x2fe   :  { %v8176_v48 = vor.u32 %v9853_v9, %v8173_v29  ;;  %v8027_v9 = vld [vmem:[%s15342_s2 + $0x80] sm:$0xf] }
 0x300   :  { %3349 = vmatpush.bf16.msra.mxu0 %v7916_v58  ;;  %3375 = vmatpush.bf16.msra.mxu2 %v7924_v60  ;;  %v8139_v58 = vld [vmem:[%s15342_s2 + $0x160] sm:$0xf]  ;;  %v9847_v60 = vld [vmem:[%s15342_s2 + $0x16c] sm:$0xf0] }
 0x301   :  { %3367 = vmatpush.bf16.msra.mxu1 %v7840_v61  ;;  %3393 = vmatpush.bf16.msra.mxu3 %v7848_v62  ;;  %v9845_v61 = vld [vmem:[%s15342_s2 + $0x164] sm:$0xf]  ;;  %v8140_v62 = vor.u32 %v9847_v60, %v8139_v58  ;;  %v9858_v58 = vld [vmem:[%s15342_s2 + $0x1cc] sm:$0xf] }
 0x302   :  { %v8144_v63 = vor.u32 %v9845_v61, %v8141_v59  ;;  %v8197_v61 = vld [vmem:[%s15342_s2 + $0x1d8] sm:$0xf0] }
 0x303   :  { %v8200_v59 = vor.u32 %v9858_v58, %v8197_v61  ;;  %v8131_v61 = vld [vmem:[%s15342_s2 + $0x148] sm:$0xf] }
 0x304   :  { %3350 = vmatpush.bf16.msra.mxu0 %v7900_v3  ;;  %3368 = vmatmul.bf16.vlgmr.msra.gmra.mxu1 %v12920_v34  ;;  %v9829_v3 = vld [vmem:[%s15342_s2 + $0xe4] sm:$0xf] }
 0x305   :  { %3376 = vmatpush.bf16.msra.mxu2 %v7908_v6  ;;  %3394 = vmatmul.bf16.vlgmr.msra.gmra.mxu3 %v12920_v34  ;;  %v8076_v6 = vor.u32 %v9831_v0, %v8075_v50  ;;  %v8080_v24 = vor.u32 %v9829_v3, %v8077_v7  ;;  %v9815_v50 = vld [vmem:[%s15342_s2 + $0x6c] sm:$0xf0]  ;;  %v9813_v3 = vld [vmem:[%s15342_s2 + $0x64] sm:$0xf] }
 0x306   :  { %3820 = vmatpush.bf16.msrb.mxu1 %v8204_v35  ;;  %3846 = vmatpush.bf16.msrb.mxu3 %v8208_v38  ;;  %v9835_v35 = vld [vmem:[%s15342_s2 + $0x10c] sm:$0xf0] }
 0x307   :  { %3086 = vmatmul.bf16.vlgmr.msrb.gmra.mxu0 %v12920_v34  ;;  %3112 = vmatmul.bf16.vlgmr.msrb.gmra.mxu2 %v12920_v34  ;;  %v8092_v38 = vor.u32 %v9835_v35, %v8091_v33  ;;  %v7981_v33 = vld [vmem:[%s15342_s2 + $0x30] sm:$0xf0] }
 0x308   :  { %3351 = vmatpush.bf16.msra.mxu0 %v7884_v31  ;;  %v8124_v31 = vor.u32 %v9843_v8, %v8123_v51  ;;  %v8179_v51 = vld [vmem:[%s15342_s2 + $0x1a8] sm:$0xf]  ;;  %v9856_v8 = vld [vmem:[%s15342_s2 + $0x1b4] sm:$0xf0] }
 0x309   :  { %3377 = vmatpush.bf16.msra.mxu2 %v7892_v11  ;;  %v9841_v11 = vld [vmem:[%s15342_s2 + $0x144] sm:$0xf] }
 0x30a   :  { %3847 = vmatpush.bf16.msrb.mxu3 %v8192_v43  ;;  %v8128_v18 = vor.u32 %v9841_v11, %v8125_v12  ;;  %v9862_v43 = vld [vmem:[%s15342_s2 + $0x1ec] sm:$0xf]  ;;  %v8181_v11 = vld [vmem:[%s15342_s2 + $0x1b8] sm:$0xf0] }
 0x30b   :  { %v8216_v29 = vor.u32 %v9862_v43, %v8213_v45  ;;  %v7963_v43 = vld [vmem:[%s15342_s2] sm:$0xf]  ;;  %v9801_v45 = vld [vmem:[%s15342_s2 + $0x4] sm:$0xf] }
 0x30c   :  { %3352 = vmatpush.bf16.msra.mxu0 %v7868_v19  ;;  %v9825_v19 = vld [vmem:[%s15342_s2 + $0xc4] sm:$0xf] }
 0x30d   :  { %3378 = vmatpush.bf16.msra.mxu2 %v7876_v20  ;;  %v8060_v20 = vor.u32 %v9827_v16, %v8059_v14  ;;  %v8064_v22 = vor.u32 %v9825_v19, %v8061_v15  ;;  %v9811_v14 = vld [vmem:[%s15342_s2 + $0x4c] sm:$0xf0]  ;;  %v9809_v16 = vld [vmem:[%s15342_s2 + $0x44] sm:$0xf] }
 0x30e   :  { %3848 = vmatpush.bf16.msrb.mxu3 %v8176_v48 }
 0x310   :  { %3353 = vmatpush.bf16.msra.mxu0 %v7852_v23  ;;  %v8108_v23 = vor.u32 %v9839_v53, %v8107_v21  ;;  %v8163_v53 = vld [vmem:[%s15342_s2 + $0x188] sm:$0xf] }
 0x311   :  { %3379 = vmatpush.bf16.msra.mxu2 %v7860_v5  ;;  %v9837_v5 = vld [vmem:[%s15342_s2 + $0x124] sm:$0xf] }
 0x312   :  { %3849 = vmatpush.bf16.msrb.mxu3 %v8160_v17  ;;  %v8112_v26 = vor.u32 %v9837_v5, %v8109_v25  ;;  %v9860_v17 = vld [vmem:[%s15342_s2 + $0x1d4] sm:$0xf0]  ;;  %v8165_v25 = vld [vmem:[%s15342_s2 + $0x198] sm:$0xf0] }
 0x313   :  { %v8196_v60 = vor.u32 %v9860_v17, %v8195_v57  ;;  %v9830_v57 = vld [vmem:[%s15342_s2 + $0xec] sm:$0xf]  ;;  %v8085_v17 = vld [vmem:[%s15342_s2 + $0xf8] sm:$0xf0] }
 0x314   :  { %3354 = vmatpush.bf16.msra.mxu0 %v7836_v28  ;;  %v9823_v28 = vld [vmem:[%s15342_s2 + $0xac] sm:$0xf0] }
 0x315   :  { %3380 = vmatpush.bf16.msra.mxu2 %v7844_v47  ;;  %v9821_v47 = vld [vmem:[%s15342_s2 + $0xa4] sm:$0xf]  ;;  %v8044_v30 = vor.u32 %v9823_v28, %v8043_v27  ;;  %v7979_v28 = vld [vmem:[%s15342_s2 + $0x20] sm:$0xf] }
 0x316   :  { %3850 = vmatpush.bf16.msrb.mxu3 %v8144_v63  ;;  %v8048_v36 = vor.u32 %v9821_v47, %v8045_v32  ;;  %v8011_v63 = vld [vmem:[%s15342_s2 + $0x60] sm:$0xf]  ;;  %v9807_v47 = vld [vmem:[%s15342_s2 + $0x2c] sm:$0xf0] }
 0x317   :  { %3355 = vmatmul.bf16.vlgmr.msra.gmra.mxu0 %v12920_v34  ;;  %v8012_v0 = vor.u32 %v9815_v50, %v8011_v63  ;;  %v7980_v32 = vor.u32 %v9807_v47, %v7979_v28  ;;  %v8099_v47 = vld [vmem:[%s15342_s2 + $0x108] sm:$0xf] }
 0x318   :  { %3381 = vmatmul.bf16.vlgmr.msra.gmra.mxu2 %v12920_v34  ;;  %v8187_v34 = vld [vmem:[%s15342_s2 + $0x1c0] sm:$0xf]  ;;  %3807 = vmatpush.bf16.msrb.mxu0 %v8076_v6  ;;  %v8013_v6 = vld [vmem:[%s15342_s2 + $0x70] sm:$0xf0] }
 0x319   :  { %v8188_v41 = vor.u32 %v9859_v39, %v8187_v34  ;;  %3833 = vmatpush.bf16.msrb.mxu2 %v8080_v24  ;;  %v9833_v34 = vld [vmem:[%s15342_s2 + $0x104] sm:$0xf]  ;;  %v8093_v39 = vld [vmem:[%s15342_s2 + $0x110] sm:$0xf0]  ;;  %v8016_v7 = vor.u32 %v9813_v3, %v8013_v6  ;;  %v9854_v24 = vld [vmem:[%s15342_s2 + $0x1ac] sm:$0xf] }
 0x31a   :  { %3851 = vmatpush.bf16.msrb.mxu3 %v8128_v18  ;;  %v8096_v40 = vor.u32 %v9833_v34, %v8093_v39  ;;  %v8184_v12 = vor.u32 %v9854_v24, %v8181_v11  ;;  %v7995_v18 = vld [vmem:[%s15342_s2 + $0x40] sm:$0xf]  ;;  %v9846_v34 = vld [vmem:[%s15342_s2 + $0x16c] sm:$0xf]  ;;  %v8133_v3 = vld [vmem:[%s15342_s2 + $0x158] sm:$0xf0] }
 0x31b   :  { %3821 = vmatpush.bf16.msrb.mxu1 %v8188_v41  ;;  %v8211_v41 = vld [vmem:[%s15342_s2 + $0x1e8] sm:$0xf]  ;;  %v7996_v19 = vor.u32 %v9811_v14, %v7995_v18  ;;  %v9826_v24 = vld [vmem:[%s15342_s2 + $0xcc] sm:$0xf]  ;;  %v9840_v14 = vld [vmem:[%s15342_s2 + $0x134] sm:$0xf0] }
 0x31c   :  { %3808 = vmatpush.bf16.msrb.mxu0 %v8060_v20  ;;  %v8212_v44 = vor.u32 %v9864_v56, %v8211_v41  ;;  %v7997_v20 = vld [vmem:[%s15342_s2 + $0x50] sm:$0xf0]  ;;  %v8115_v11 = vld [vmem:[%s15342_s2 + $0x128] sm:$0xf] }
 0x31d   :  { %3834 = vmatpush.bf16.msrb.mxu2 %v8064_v22  ;;  %v8000_v21 = vor.u32 %v9809_v16, %v7997_v20  ;;  %v9852_v22 = vld [vmem:[%s15342_s2 + $0x194] sm:$0xf0]  ;;  %v9838_v16 = vld [vmem:[%s15342_s2 + $0x12c] sm:$0xf] }
 0x31e   :  { %3852 = vmatpush.bf16.msrb.mxu3 %v8112_v26  ;;  %v8164_v5 = vor.u32 %v9852_v22, %v8163_v53 }
 0x31f   :  { %3822 = vmatpush.bf16.msrb.mxu1 %v8172_v46  ;;  %v9819_v46 = vld [vmem:[%s15342_s2 + $0x8c] sm:$0xf0] }
 0x320   :  { %3809 = vmatpush.bf16.msrb.mxu0 %v8044_v30  ;;  %v8028_v48 = vor.u32 %v9819_v46, %v8027_v9  ;;  %v9805_v30 = vld [vmem:[%s15342_s2 + $0x24] sm:$0xf] }
 0x321   :  { %3835 = vmatpush.bf16.msrb.mxu2 %v8048_v36  ;;  %v7984_v35 = vor.u32 %v9805_v30, %v7981_v33  ;;  %v8147_v36 = vld [vmem:[%s15342_s2 + $0x168] sm:$0xf]  ;;  %v9836_v30 = vld [vmem:[%s15342_s2 + $0x114] sm:$0xf0] }
 0x322   :  { %3853 = vmatpush.bf16.msrb.mxu3 %v8096_v40  ;;  %v8149_v40 = vld [vmem:[%s15342_s2 + $0x178] sm:$0xf0] }
 0x323   :  { %3823 = vmatpush.bf16.msrb.mxu1 %v8156_v55  ;;  %v8032_v55 = vor.u32 %v9817_v4, %v8029_v52  ;;  %v8152_v56 = vor.u32 %v9846_v34, %v8149_v40  ;;  %v8035_v40 = vld [vmem:[%s15342_s2 + $0x88] sm:$0xf] }
 0x324   :  { %3810 = vmatpush.bf16.msrb.mxu0 %v8028_v48  ;;  %v8083_v48 = vld [vmem:[%s15342_s2 + $0xe8] sm:$0xf] }
 0x325   :  { %3836 = vmatpush.bf16.msrb.mxu2 %v8032_v55  ;;  %v9832_v55 = vld [vmem:[%s15342_s2 + $0xf4] sm:$0xf0] }
 0x326   :  { %3898 = vmatpush.bf16.msra.mxu3 %v8216_v29  ;;  %v7965_v29 = vld [vmem:[%s15342_s2 + $0x10] sm:$0xf0]  ;;  %v8084_v58 = vor.u32 %v9832_v55, %v8083_v48  ;;  %v8019_v48 = vld [vmem:[%s15342_s2 + $0x68] sm:$0xf]  ;;  %v9814_v55 = vld [vmem:[%s15342_s2 + $0x6c] sm:$0xf] }
 0x327   :  { %3824 = vmatpush.bf16.msrb.mxu1 %v8140_v62  ;;  %v7968_v52 = vor.u32 %v9801_v45, %v7965_v29  ;;  %v8037_v45 = vld [vmem:[%s15342_s2 + $0x98] sm:$0xf0] }
 0x328   :  { %3811 = vmatpush.bf16.msrb.mxu0 %v8012_v0 }
 0x329   :  { %3837 = vmatpush.bf16.msrb.mxu2 %v8016_v7  ;;  %v8067_v7 = vld [vmem:[%s15342_s2 + $0xc8] sm:$0xf] }
 0x32a   :  { %3899 = vmatpush.bf16.msra.mxu3 %v8200_v59  ;;  %v9842_v59 = vld [vmem:[%s15342_s2 + $0x14c] sm:$0xf] }
 0x32b   :  { %3825 = vmatpush.bf16.msrb.mxu1 %v8124_v31  ;;  %v8180_v31 = vor.u32 %v9856_v8, %v8179_v51  ;;  %v8136_v6 = vor.u32 %v9842_v59, %v8133_v3  ;;  %v9828_v51 = vld [vmem:[%s15342_s2 + $0xd4] sm:$0xf0]  ;;  %v8003_v3 = vld [vmem:[%s15342_s2 + $0x48] sm:$0xf] }
 0x32c   :  { %3812 = vmatpush.bf16.msrb.mxu0 %v7996_v19 }
 0x32d   :  { %3838 = vmatpush.bf16.msrb.mxu2 %v8000_v21  ;;  %v8117_v21 = vld [vmem:[%s15342_s2 + $0x138] sm:$0xf0] }
 0x32e   :  { %3900 = vmatpush.bf16.msra.mxu3 %v8184_v12  ;;  %v8120_v22 = vor.u32 %v9838_v16, %v8117_v21  ;;  %v7987_v16 = vld [vmem:[%s15342_s2 + $0x28] sm:$0xf]  ;;  %v9806_v21 = vld [vmem:[%s15342_s2 + $0x2c] sm:$0xf] }
 0x32f   :  { %3826 = vmatpush.bf16.msrb.mxu1 %v8108_v23  ;;  %v9850_v23 = vld [vmem:[%s15342_s2 + $0x18c] sm:$0xf] }
 0x330   :  { %v8168_v27 = vor.u32 %v9850_v23, %v8165_v25  ;;  %3813 = vmatpush.bf16.msrb.mxu0 %v7980_v32  ;;  %v8051_v23 = vld [vmem:[%s15342_s2 + $0xa8] sm:$0xf]  ;;  %v9822_v25 = vld [vmem:[%s15342_s2 + $0xac] sm:$0xf] }
 0x331   :  { %3839 = vmatpush.bf16.msrb.mxu2 %v7984_v35  ;;  %v8100_v35 = vor.u32 %v9836_v30, %v8099_v47  ;;  %v9804_v47 = vld [vmem:[%s15342_s2 + $0x14] sm:$0xf0]  ;;  %v9802_v30 = vld [vmem:[%s15342_s2 + $0xc] sm:$0xf] }
 0x332   :  { %3901 = vmatpush.bf16.msra.mxu3 %v8168_v27 }
 0x333   :  { %3827 = vmatpush.bf16.msrb.mxu1 %v8092_v38  ;;  %v9848_v38 = vld [vmem:[%s15342_s2 + $0x174] sm:$0xf0] }
 0x334   :  { %v8148_v39 = vor.u32 %v9848_v38, %v8147_v36  ;;  %v9834_v36 = vld [vmem:[%s15342_s2 + $0x10c] sm:$0xf]  ;;  %v8101_v38 = vld [vmem:[%s15342_s2 + $0x118] sm:$0xf0] }
 0x335   :  { %3840 = vmatpush.bf16.msrb.mxu2 %v7968_v52  ;;  %v8104_v34 = vor.u32 %v9834_v36, %v8101_v38  ;;  %v9816_v52 = vld [vmem:[%s15342_s2 + $0x74] sm:$0xf0]  ;;  %v7973_v36 = vld [vmem:[%s15342_s2 + $0x18] sm:$0xf0] }
 0x336   :  { %3902 = vmatpush.bf16.msra.mxu3 %v8152_v56  ;;  %v7976_v38 = vor.u32 %v9802_v30, %v7973_v36  ;;  %v8274_v30 = vld [vmem:[%s15341_s1 + $0x70] sm:$0xf0] }
 0x337   :  { %3872 = vmatpush.bf16.msra.mxu1 %v8212_v44  ;;  %v9803_v44 = vld [vmem:[%s15342_s2 + $0xc] sm:$0xf0] }
 0x338   :  { %v7964_v46 = vor.u32 %v9803_v44, %v7963_v43  ;;  %v9818_v44 = vld [vmem:[%s15342_s2 + $0x8c] sm:$0xf] }
 0x33a   :  { %3814 = vmatpush.bf16.msrb.mxu0 %v7964_v46  ;;  %3903 = vmatpush.bf16.msra.mxu3 %v8136_v6  ;;  %v9812_v6 = vld [vmem:[%s15342_s2 + $0x54] sm:$0xf0] }
 0x33b   :  { %3873 = vmatpush.bf16.msra.mxu1 %v8196_v60  ;;  %v8088_v60 = vor.u32 %v9830_v57, %v8085_v17  ;;  %v8020_v17 = vor.u32 %v9816_v52, %v8019_v48 }
 0x33d   :  { %3885 = vmatpush.bf16.msra.mxu2 %v8088_v60 }
 0x33e   :  { %3859 = vmatpush.bf16.msra.mxu0 %v8084_v58  ;;  %3904 = vmatpush.bf16.msra.mxu3 %v8120_v22  ;;  %v8021_v58 = vld [vmem:[%s15342_s2 + $0x78] sm:$0xf0] }
 0x33f   :  { %3874 = vmatpush.bf16.msra.mxu1 %v8180_v31  ;;  %v8069_v31 = vld [vmem:[%s15342_s2 + $0xd8] sm:$0xf0] }
 0x340   :  { %v8072_v18 = vor.u32 %v9826_v24, %v8069_v31 }
 0x342   :  { %3886 = vmatpush.bf16.msra.mxu2 %v8072_v18  ;;  %3905 = vmatpush.bf16.msra.mxu3 %v8104_v34 }
 0x343   :  { %3875 = vmatpush.bf16.msra.mxu1 %v8164_v5  ;;  %v9824_v5 = vld [vmem:[%s15342_s2 + $0xb4] sm:$0xf0] }
 0x344   :  { %v8052_v28 = vor.u32 %v9824_v5, %v8051_v23 }
 0x347   :  { %3876 = vmatpush.bf16.msra.mxu1 %v8148_v39 }
 0x360   :  { %v13140_v49 = vpop.f32.mrf.mxu1 }
 0x366   :  { %v13190_v2 = vpop.f32.mrf.mxu3 }
 0x368   :  { %v3050_v62 = vpop.f32.mrf.mxu1 }
 0x369   :  { %v9844_v62 = vld [vmem:[%s15342_s2 + $0x154] sm:$0xf0] }
 0x36a   :  { %v8132_v0 = vor.u32 %v9844_v62, %v8131_v61  ;;  %v8024_v62 = vor.u32 %v9814_v55, %v8021_v58  ;;  %v9894_v55 = vld [vmem:[%s15341_s1 + $0xec] sm:$0xf] }
 0x36c   :  { %3877 = vmatpush.bf16.msra.mxu1 %v8132_v0 }
 0x36e   :  { %v3076_v15 = vpop.f32.mrf.mxu3 }
 0x36f   :  { %v8116_v15 = vor.u32 %v9840_v14, %v8115_v11 }
 0x370   :  { %v13252_v26 = vpop.f32.mrf.mxu1 }
 0x371   :  { %3878 = vmatpush.bf16.msra.mxu1 %v8116_v15 }
 0x374   :  { %v3035_v41 = vpop.f32.mrf.mxu0 }
 0x375   :  { %v3036_v9 = vadd.f32 %v3035_v41, %v11374_v37  ;;  %v9820_v41 = vld [vmem:[%s15342_s2 + $0x94] sm:$0xf0]  ;;  %3879 = vmatpush.bf16.msra.mxu1 %v8100_v35 }
 0x376   :  { %v13294_v4 = vpop.f32.mrf.mxu3  ;;  %v8036_v43 = vor.u32 %v9820_v41, %v8035_v40  ;;  %v7832_v40 = vld [vmem:[%s15343_s0 + $0x98] sm:$0xff] }
 0x377   :  { %v3049_v63 = vadd.f32 %v13140_v49, %v3036_v9  ;;  %v8068_v49 = vor.u32 %v9828_v51, %v8067_v7  ;;  %v8040_v9 = vor.u32 %v9818_v44, %v8037_v45 }
 0x378   :  { %v3102_v50 = vpop.f32.mrf.mxu1 }
 0x379   :  { %v3130_v19 = vmul.f32 0.5, %v3049_v63  ;;  %3860 = vmatpush.bf16.msra.mxu0 %v8068_v49  ;;  %v7830_v63 = vld [vmem:[%s15343_s0 + $0x88] sm:$0xff]  ;;  %v8005_v49 = vld [vmem:[%s15342_s2 + $0x58] sm:$0xf0] }
 0x37a   :  { %v3061_v8 = vpop.f32.mrf.mxu2 }
 0x37b   :  { %v3062_v12 = vadd.f32 %v3061_v8, %v11404_v54  ;;  %10225 = vtanh.f32 %v3130_v19  ;;  %v8004_v8 = vor.u32 %v9812_v6, %v8003_v3  ;;  %v9808_v19 = vld [vmem:[%s15342_s2 + $0x34] sm:$0xf0]  ;;  %v8322_v3 = vld [vmem:[%s15341_s1 + $0xd0] sm:$0xf0] }
 0x37c   :  { %v3037_v20 = vpop.f32.mrf.mxu0  ;;  %v7988_v15 = vor.u32 %v9808_v19, %v7987_v16  ;;  %v8314_v16 = vld [vmem:[%s15341_s1 + $0xb8] sm:$0xf0] }
 0x37d   :  { %v3075_v53 = vadd.f32 %v13190_v2, %v3062_v12  ;;  %v8053_v2 = vld [vmem:[%s15342_s2 + $0xb8] sm:$0xf0]  ;;  %3861 = vmatpush.bf16.msra.mxu0 %v8052_v28 }
 0x37e   :  { %v3128_v27 = vpop.f32.mrf.mxu3  ;;  %v8056_v33 = vor.u32 %v9822_v25, %v8053_v2  ;;  %v7971_v2 = vld [vmem:[%s15342_s2 + $0x8] sm:$0xf] }
 0x37f   :  { %v3134_v32 = vmul.f32 0.5, %v3075_v53  ;;  %v7972_v35 = vor.u32 %v9804_v47, %v7971_v2  ;;  %v9877_v47 = vld [vmem:[%s15341_s1 + $0x64] sm:$0xf] }
 0x380   :  { %3887 = vmatpush.bf16.msra.mxu2 %v8056_v33  ;;  %v7829_v33 = vld [vmem:[%s15343_s0 + $0x80] sm:$0xff]  ;;  %v8277_v36 = vor.u32 %v9877_v47, %v8274_v30 }
 0x381   :  { %10227 = vtanh.f32 %v3134_v32  ;;  %v3369_v39 = vpop.f32.mrf.mxu1  ;;  %3862 = vmatpush.bf16.msra.mxu0 %v8036_v43  ;;  %v10226_v57 = vpop.eup %10225  ;;  %v8256_v30 = vld [vmem:[%s15341_s1 + $0x40] sm:$0xf] }
 0x382   :  { %v3063_v56 = vpop.f32.mrf.mxu2  ;;  %v3132_v7 = vadd.f32 1.0, %v10226_v57  ;;  %v3400_v24 = vadd.f32 %v7830_v63, %v3369_v39  ;;  %v8346_v57 = vld [vmem:[%s15341_s1 + $0xf8] sm:$0xf0] }
 0x384   :  { %v3087_v46 = vpop.f32.mrf.mxu0  ;;  %3888 = vmatpush.bf16.msra.mxu2 %v8040_v9  ;;  %v3133_v20 = vmul.f32 0.5, %v3132_v7  ;;  %v3407_v22 = vmul.f32 0.5, %v3400_v24  ;;  %v7831_v9 = vld [vmem:[%s15343_s0 + $0x90] sm:$0xff]  ;;  %v8330_v7 = vld [vmem:[%s15341_s1 + $0xd8] sm:$0xf0] }
 0x385   :  { %v3088_v29 = vadd.f32 %v3087_v46, %v11487_v42  ;;  %3863 = vmatpush.bf16.msra.mxu0 %v8020_v17  ;;  %v9893_v46 = vld [vmem:[%s15341_s1 + $0xe4] sm:$0xf] }
 0x387   :  { %v10228_v60 = vpop.eup %10227  ;;  %v3101_v61 = vadd.f32 %v13252_v26, %v3088_v29  ;;  %v9810_v26 = vld [vmem:[%s15342_s2 + $0x4c] sm:$0xf]  ;;  %v8338_v29 = vld [vmem:[%s15341_s1 + $0xf0] sm:$0xf0] }
 0x388   :  { %v3136_v59 = vadd.f32 1.0, %v10228_v60  ;;  %v3395_v50 = vpop.f32.mrf.mxu3  ;;  %3889 = vmatpush.bf16.msra.mxu2 %v8024_v62  ;;  %v8008_v11 = vor.u32 %v9810_v26, %v8005_v49  ;;  %v8341_v63 = vor.u32 %v9893_v46, %v8338_v29  ;;  %v9890_v26 = vld [vmem:[%s15341_s1 + $0xcc] sm:$0xf]  ;;  %v8266_v46 = vld [vmem:[%s15341_s1 + $0x58] sm:$0xf0] }
 0x389   :  { %10229 = vtanh.f32 %v3101_v61  ;;  %v3371_v0 = vpop.f32.mrf.mxu1  ;;  %3864 = vmatpush.bf16.msra.mxu0 %v8004_v8  ;;  %v3402_v45 = vadd.f32 %v7832_v40, %v3395_v50  ;;  %v8349_v50 = vor.u32 %v9894_v55, %v8346_v57  ;;  %v8344_v40 = vld [vmem:[%s15341_s1 + $0xe8] sm:$0xf]  ;;  %v8320_v55 = vld [vmem:[%s15341_s1 + $0xc0] sm:$0xf]  ;;  %v9891_v57 = vld [vmem:[%s15341_s1 + $0xcc] sm:$0xf0] }
 0x38a   :  { %v3113_v51 = vpop.f32.mrf.mxu2  ;;  %v3137_v12 = vmul.f32 0.5, %v3136_v59  ;;  %v9889_v0 = vld [vmem:[%s15341_s1 + $0xc4] sm:$0xf] }
 0x38b   :  { %v3114_v31 = vadd.f32 %v3113_v51, %v11516_v1  ;;  %v3412_v59 = vmul.f32 0.5, %v3402_v45  ;;  %v8325_v24 = vor.u32 %v9889_v0, %v8322_v3  ;;  %v8258_v45 = vld [vmem:[%s15341_s1 + $0x50] sm:$0xf0]  ;;  %v8250_v0 = vld [vmem:[%s15341_s1 + $0x38] sm:$0xf0]  ;;  %v8321_v3 = vor.u32 %v9891_v57, %v8320_v55 }
 0x38c   :  { %v3089_v18 = vpop.f32.mrf.mxu0  ;;  %3890 = vmatpush.bf16.msra.mxu2 %v8008_v11  ;;  %v3143_v25 = vmul.f32 %v3137_v12, %v12808_v13  ;;  %v9885_v11 = vld [vmem:[%s15341_s1 + $0xa4] sm:$0xf]  ;;  %v8306_v12 = vld [vmem:[%s15341_s1 + $0xb0] sm:$0xf0]  ;;  %v9959_v55 = vld [vmem:[%s15342_s2 + $0x1ec] sm:$0xf0] }
 0x38d   :  { %v3127_v14 = vadd.f32 %v13294_v4, %v3114_v31  ;;  %v7989_v4 = vld [vmem:[%s15342_s2 + $0x38] sm:$0xf0]  ;;  %3865 = vmatpush.bf16.msra.mxu0 %v7988_v15  ;;  %v8333_v31 = vor.u32 %v9890_v26, %v8330_v7  ;;  %v8309_v15 = vor.u32 %v9885_v11, %v8306_v12  ;;  %v8304_v26 = vld [vmem:[%s15341_s1 + $0xa0] sm:$0xf]  ;;  %v9887_v7 = vld [vmem:[%s15341_s1 + $0xac] sm:$0xf0] }
 0x38e   :  { %v7992_v5 = vor.u32 %v9806_v21, %v7989_v4  ;;  %v8226_v11 = vld [vmem:[%s15341_s1 + $0x10] sm:$0xf0]  ;;  %v9866_v12 = vld [vmem:[%s15341_s1 + $0xc] sm:$0xf]  ;;  %v9957_v57 = vld [vmem:[%s15342_s2 + $0x1e4] sm:$0xf] }
 0x38f   :  { %v10230_v53 = vpop.eup %10229  ;;  %v3139_v23 = vmul.f32 0.5, %v3127_v14  ;;  %v9886_v14 = vld [vmem:[%s15341_s1 + $0xac] sm:$0xf] }
 0x390   :  { %v3144_v27 = vmul.f32 %v10230_v53, %v3133_v20  ;;  %v3397_v28 = vpop.f32.mrf.mxu3  ;;  %3891 = vmatpush.bf16.msra.mxu2 %v7992_v5  ;;  %v8317_v53 = vor.u32 %v9886_v14, %v8314_v16  ;;  %v9882_v5 = vld [vmem:[%s15341_s1 + $0x8c] sm:$0xf]  ;;  %v8305_v14 = vor.u32 %v9887_v7, %v8304_v26  ;;  %v9949_v26 = vld [vmem:[%s15342_s2 + $0x1a4] sm:$0xf] }
 0x391   :  { %10231 = vtanh.f32 %v3139_v23  ;;  %3866 = vmatpush.bf16.msra.mxu0 %v7972_v35  ;;  %v8290_v23 = vld [vmem:[%s15341_s1 + $0x90] sm:$0xf0]  ;;  %v8282_v35 = vld [vmem:[%s15341_s1 + $0x78] sm:$0xf0] }
 0x392   :  { %v13433_v32 = vadd.f32 %v3144_v27, %v3143_v25  ;;  %v3115_v13 = vpop.f32.mrf.mxu2  ;;  %10233 = vtanh.f32 %v3407_v22  ;;  %v9881_v22 = vld [vmem:[%s15341_s1 + $0x84] sm:$0xf] }
 0x393   :  { %v8293_v28 = vor.u32 %v9881_v22, %v8290_v23 }
 0x394   :  { %10235 = vtanh.f32 %v13433_v32  ;;  %v3356_v34 = vpop.f32.mrf.mxu0  ;;  %3892 = vmatpush.bf16.msra.mxu2 %v7976_v38 }
 0x395   :  { %v3399_v39 = vadd.f32 %v7829_v33, %v3356_v34  ;;  %v9878_v33 = vld [vmem:[%s15341_s1 + $0x6c] sm:$0xf]  ;;  %v8336_v34 = vld [vmem:[%s15341_s1 + $0xe0] sm:$0xf] }
 0x396   :  { %v8285_v38 = vor.u32 %v9878_v33, %v8282_v35  ;;  %v8264_v33 = vld [vmem:[%s15341_s1 + $0x48] sm:$0xf]  ;;  %v9876_v35 = vld [vmem:[%s15341_s1 + $0x54] sm:$0xf0] }
 0x397   :  { %v10232_v41 = vpop.eup %10231  ;;  %v3403_v56 = vmul.f32 0.5, %v3399_v39  ;;  %v9895_v39 = vld [vmem:[%s15341_s1 + $0xec] sm:$0xf0] }
 0x398   :  { %v3141_v43 = vadd.f32 1.0, %v10232_v41  ;;  %v10234_v44 = vpop.eup %10233 }
 0x399   :  { %10237 = vtanh.f32 %v3403_v56  ;;  %v3409_v62 = vadd.f32 1.0, %v10234_v44  ;;  %v9896_v56 = vld [vmem:[%s15341_s1 + $0xf4] sm:$0xf0] }
 0x39a   :  { %v10236_v48 = vpop.eup %10235  ;;  %v3142_v52 = vmul.f32 0.5, %v3141_v43  ;;  %v9873_v43 = vld [vmem:[%s15341_s1 + $0x44] sm:$0xf] }
 0x39b   :  { %v3382_v17 = vpop.f32.mrf.mxu2  ;;  %v3410_v49 = vmul.f32 0.5, %v3409_v62  ;;  %v9892_v62 = vld [vmem:[%s15341_s1 + $0xd4] sm:$0xf0] }
 0x39c   :  { %v3147_v58 = vmul.f32 %v10236_v48, %v3142_v52  ;;  %v3401_v60 = vadd.f32 %v7831_v9, %v3382_v17  ;;  %v3358_v61 = vpop.f32.mrf.mxu0  ;;  %v9874_v9 = vld [vmem:[%s15341_s1 + $0x4c] sm:$0xf]  ;;  %v8337_v48 = vor.u32 %v9895_v39, %v8336_v34  ;;  %v8345_v52 = vor.u32 %v9896_v56, %v8344_v40  ;;  %v8240_v34 = vld [vmem:[%s15341_s1 + $0x20] sm:$0xf]  ;;  %v9871_v39 = vld [vmem:[%s15341_s1 + $0x2c] sm:$0xf0] }
 0x39d   :  { %v3416_v21 = vmul.f32 %v3410_v49, %v12875_v10  ;;  %v8298_v10 = vld [vmem:[%s15341_s1 + $0x98] sm:$0xf0]  ;;  %v8328_v61 = vld [vmem:[%s15341_s1 + $0xc8] sm:$0xf]  ;;  %v8241_v56 = vor.u32 %v9871_v39, %v8240_v34  ;;  %v8450_v34 = vld [vmem:[%s15342_s2 + $0xd0] sm:$0xf0] }
 0x39e   :  { %7828 = vst [vmem:[%s15345_s4 + $0x18] sm:$0xff] %v3147_v58  ;;  %v3422_v6 = vpack.c.bf16 %v3147_v58, %v3147_v58  ;;  %10239 = vtanh.f32 %v3401_v60  ;;  %v8301_v2 = vor.u32 %v9882_v5, %v8298_v10  ;;  %v8261_v58 = vor.u32 %v9873_v43, %v8258_v45  ;;  %v8312_v49 = vld [vmem:[%s15341_s1 + $0xa8] sm:$0xf]  ;;  %v8272_v5 = vld [vmem:[%s15341_s1 + $0x60] sm:$0xf] }
 0x39f   :  { %v10238_v51 = vpop.eup %10237  ;;  %10241 = vtanh.f32 %v3412_v59  ;;  %v8269_v60 = vor.u32 %v9874_v9, %v8266_v46  ;;  %v9869_v59 = vld [vmem:[%s15341_s1 + $0x24] sm:$0xf]  ;;  %v9879_v10 = vld [vmem:[%s15341_s1 + $0x6c] sm:$0xf0]  ;;  %v8248_v40 = vld [vmem:[%s15341_s1 + $0x28] sm:$0xf] }
 0x3a0   :  { %v3405_v8 = vadd.f32 1.0, %v10238_v51  ;;  %3828 = vmatmul.bf16.vlgmr.msrb.gmra.mxu1 %v3422_v6  ;;  %3854 = vmatmul.bf16.vlgmr.msrb.gmra.mxu3 %v3422_v6  ;;  %v9867_v45 = vld [vmem:[%s15341_s1 + $0xc] sm:$0xf0]  ;;  %v8232_v9 = vld [vmem:[%s15341_s1 + $0x8] sm:$0xf] }
 0x3a1   :  { %4141 = vmatpush.bf16.msrb.mxu1 %v8341_v63  ;;  %4167 = vmatpush.bf16.msrb.mxu3 %v8349_v50  ;;  %v8242_v63 = vld [vmem:[%s15341_s1 + $0x30] sm:$0xf0]  ;;  %v9870_v50 = vld [vmem:[%s15341_s1 + $0x2c] sm:$0xf]  ;;  %v9868_v46 = vld [vmem:[%s15341_s1 + $0x14] sm:$0xf0] }
 0x3a2   :  { %v3406_v18 = vmul.f32 0.5, %v3405_v8  ;;  %v8245_v51 = vor.u32 %v9869_v59, %v8242_v63  ;;  %v8253_v8 = vor.u32 %v9870_v50, %v8250_v0  ;;  %v9953_v59 = vld [vmem:[%s15342_s2 + $0x1c4] sm:$0xf]  ;;  %v8578_v50 = vld [vmem:[%s15342_s2 + $0x1d0] sm:$0xf0] }
 0x3a3   :  { %v3384_v19 = vpop.f32.mrf.mxu2  ;;  %v8581_v0 = vor.u32 %v9953_v59, %v8578_v50  ;;  %v8496_v39 = vld [vmem:[%s15342_s2 + $0x120] sm:$0xf]  ;;  %v9960_v50 = vld [vmem:[%s15342_s2 + $0x1f4] sm:$0xf0] }
 0x3a4   :  { %v10240_v20 = vpop.eup %10239 }
 0x3a5   :  { %v3417_v4 = vmul.f32 %v10240_v20, %v3406_v18  ;;  %4142 = vmatpush.bf16.msrb.mxu1 %v8325_v24  ;;  %4168 = vmatpush.bf16.msrb.mxu3 %v8333_v31  ;;  %v10242_v25 = vpop.eup %10241  ;;  %v9888_v24 = vld [vmem:[%s15341_s1 + $0xb4] sm:$0xf0]  ;;  %v9865_v31 = vld [vmem:[%s15341_s1 + $0x4] sm:$0xf]  ;;  %v8234_v18 = vld [vmem:[%s15341_s1 + $0x18] sm:$0xf0] }
 0x3a6   :  { %v3414_v13 = vadd.f32 1.0, %v10242_v25  ;;  %v8313_v16 = vor.u32 %v9888_v24, %v8312_v49  ;;  %v8229_v19 = vor.u32 %v9865_v31, %v8226_v11  ;;  %v8237_v20 = vor.u32 %v9866_v12, %v8234_v18  ;;  %v8280_v25 = vld [vmem:[%s15341_s1 + $0x68] sm:$0xf]  ;;  %v8544_v49 = vld [vmem:[%s15342_s2 + $0x180] sm:$0xf] }
 0x3a7   :  { %v13500_v27 = vadd.f32 %v3417_v4, %v3416_v21  ;;  %v9883_v21 = vld [vmem:[%s15341_s1 + $0x8c] sm:$0xf0]  ;;  %v8296_v4 = vld [vmem:[%s15341_s1 + $0x88] sm:$0xf]  ;;  %v9945_v31 = vld [vmem:[%s15342_s2 + $0x184] sm:$0xf] }
 0x3a8   :  { %v3415_v41 = vmul.f32 0.5, %v3414_v13  ;;  %v9875_v13 = vld [vmem:[%s15341_s1 + $0x4c] sm:$0xf0]  ;;  %v8546_v12 = vld [vmem:[%s15342_s2 + $0x190] sm:$0xf0] }
 0x3a9   :  { %10243 = vtanh.f32 %v13500_v27  ;;  %4143 = vmatpush.bf16.msrb.mxu1 %v8309_v15  ;;  %4169 = vmatpush.bf16.msrb.mxu3 %v8317_v53  ;;  %v8288_v15 = vld [vmem:[%s15341_s1 + $0x80] sm:$0xf]  ;;  %v9884_v53 = vld [vmem:[%s15341_s1 + $0x94] sm:$0xf0]  ;;  %v9947_v24 = vld [vmem:[%s15342_s2 + $0x18c] sm:$0xf0]  ;;  %v8549_v18 = vor.u32 %v9945_v31, %v8546_v12 }
 0x3aa   :  { %v8289_v22 = vor.u32 %v9883_v21, %v8288_v15  ;;  %v8297_v23 = vor.u32 %v9884_v53, %v8296_v4  ;;  %v8545_v11 = vor.u32 %v9947_v24, %v8544_v49  ;;  %v8530_v15 = vld [vmem:[%s15342_s2 + $0x170] sm:$0xf0]  ;;  %v8464_v4 = vld [vmem:[%s15342_s2 + $0xe0] sm:$0xf]  ;;  %v9927_v53 = vld [vmem:[%s15342_s2 + $0xec] sm:$0xf0] }
 0x3ab   :  { %v9913_v49 = vld [vmem:[%s15342_s2 + $0x84] sm:$0xf]  ;;  %v8418_v24 = vld [vmem:[%s15342_s2 + $0x90] sm:$0xf0]  ;;  %v8584_v12 = vld [vmem:[%s15342_s2 + $0x1c8] sm:$0xf] }
 0x3ad   :  { %4144 = vmatpush.bf16.msrb.mxu1 %v8293_v28  ;;  %4170 = vmatpush.bf16.msrb.mxu3 %v8301_v2  ;;  %v9880_v28 = vld [vmem:[%s15341_s1 + $0x74] sm:$0xf0]  ;;  %v8273_v2 = vor.u32 %v9879_v10, %v8272_v5  ;;  %v8466_v5 = vld [vmem:[%s15342_s2 + $0xf0] sm:$0xf0]  ;;  %v8512_v10 = vld [vmem:[%s15342_s2 + $0x140] sm:$0xf] }
 0x3ae   :  { %v8281_v47 = vor.u32 %v9880_v28, %v8280_v25  ;;  %v9939_v25 = vld [vmem:[%s15342_s2 + $0x14c] sm:$0xf0] }
 0x3af   :  { %v10244_v44 = vpop.eup %10243 }
 0x3b0   :  { %v3420_v29 = vmul.f32 %v10244_v44, %v3415_v41  ;;  %3880 = vmatmul.bf16.vlgmr.msra.gmra.mxu1 %v3422_v6  ;;  %3906 = vmatmul.bf16.vlgmr.msra.gmra.mxu3 %v3422_v6  ;;  %v8329_v6 = vor.u32 %v9892_v62, %v8328_v61  ;;  %v9872_v41 = vld [vmem:[%s15341_s1 + $0x34] sm:$0xf0]  ;;  %v8224_v44 = vld [vmem:[%s15341_s1] sm:$0xf]  ;;  %v9955_v62 = vld [vmem:[%s15342_s2 + $0x1cc] sm:$0xf0] }
 0x3b1   :  { %4145 = vmatpush.bf16.msrb.mxu1 %v8277_v36  ;;  %4171 = vmatpush.bf16.msrb.mxu3 %v8285_v38  ;;  %v8257_v36 = vor.u32 %v9875_v13, %v8256_v30  ;;  %v8265_v38 = vor.u32 %v9876_v35, %v8264_v33  ;;  %v8249_v43 = vor.u32 %v9872_v41, %v8248_v40  ;;  %v8514_v30 = vld [vmem:[%s15342_s2 + $0x150] sm:$0xf0]  ;;  %v8448_v33 = vld [vmem:[%s15342_s2 + $0xc0] sm:$0xf]  ;;  %v9923_v35 = vld [vmem:[%s15342_s2 + $0xcc] sm:$0xf0] }
 0x3b2   :  { %v13545_v17 = vpack.c.bf16 %v3420_v29, %v3420_v29  ;;  %v8225_v29 = vor.u32 %v9867_v45, %v8224_v44  ;;  %v9935_v40 = vld [vmem:[%s15342_s2 + $0x12c] sm:$0xf0]  ;;  %v8498_v44 = vld [vmem:[%s15342_s2 + $0x130] sm:$0xf0] }
 0x3b4   :  { %3815 = vmatmul.bf16.vlgmr.msrb.gmra.mxu0 %v13545_v17  ;;  %3841 = vmatmul.bf16.vlgmr.msrb.gmra.mxu2 %v13545_v17 }
 0x3b5   :  { %4128 = vmatpush.bf16.msrb.mxu0 %v8337_v48  ;;  %4154 = vmatpush.bf16.msrb.mxu2 %v8345_v52  ;;  %v8233_v48 = vor.u32 %v9868_v46, %v8232_v9  ;;  %v8592_v52 = vld [vmem:[%s15342_s2 + $0x1e0] sm:$0xf] }
 0x3b6   :  { %4146 = vmatpush.bf16.msrb.mxu1 %v8261_v58  ;;  %4172 = vmatpush.bf16.msrb.mxu3 %v8269_v60  ;;  %v8593_v58 = vor.u32 %v9959_v55, %v8592_v52  ;;  %v8594_v60 = vld [vmem:[%s15342_s2 + $0x1f0] sm:$0xf0]  ;;  %v8432_v46 = vld [vmem:[%s15342_s2 + $0xa0] sm:$0xf] }
 0x3b7   :  { %v8597_v61 = vor.u32 %v9957_v57, %v8594_v60  ;;  %v8434_v55 = vld [vmem:[%s15342_s2 + $0xb0] sm:$0xf0]  ;;  %v8480_v57 = vld [vmem:[%s15342_s2 + $0x100] sm:$0xf] }
 0x3b9   :  { %4129 = vmatpush.bf16.msrb.mxu0 %v8321_v3  ;;  %4155 = vmatpush.bf16.msrb.mxu2 %v8329_v6  ;;  %v8560_v3 = vld [vmem:[%s15342_s2 + $0x1a0] sm:$0xf]  ;;  %v9951_v6 = vld [vmem:[%s15342_s2 + $0x1ac] sm:$0xf0] }
 0x3ba   :  { %4147 = vmatpush.bf16.msrb.mxu1 %v8245_v51  ;;  %4173 = vmatpush.bf16.msrb.mxu3 %v8253_v8  ;;  %v8561_v7 = vor.u32 %v9951_v6, %v8560_v3  ;;  %v8562_v51 = vld [vmem:[%s15342_s2 + $0x1b0] sm:$0xf0]  ;;  %v8602_v6 = vld [vmem:[%s15342_s2 + $0x1f8] sm:$0xf0] }
 0x3bb   :  { %v8565_v8 = vor.u32 %v9949_v26, %v8562_v51  ;;  %v8416_v26 = vld [vmem:[%s15342_s2 + $0x80] sm:$0xf] }
 0x3bd   :  { %4130 = vmatpush.bf16.msrb.mxu0 %v8305_v14  ;;  %4156 = vmatpush.bf16.msrb.mxu2 %v8313_v16  ;;  %v8528_v14 = vld [vmem:[%s15342_s2 + $0x160] sm:$0xf]  ;;  %v9943_v16 = vld [vmem:[%s15342_s2 + $0x16c] sm:$0xf0] }
 0x3be   :  { %4148 = vmatpush.bf16.msrb.mxu1 %v8229_v19  ;;  %4174 = vmatpush.bf16.msrb.mxu3 %v8237_v20  ;;  %v9941_v19 = vld [vmem:[%s15342_s2 + $0x164] sm:$0xf]  ;;  %v8529_v20 = vor.u32 %v9943_v16, %v8528_v14  ;;  %v9954_v14 = vld [vmem:[%s15342_s2 + $0x1cc] sm:$0xf] }
 0x3bf   :  { %v8533_v21 = vor.u32 %v9941_v19, %v8530_v15  ;;  %v8586_v19 = vld [vmem:[%s15342_s2 + $0x1d8] sm:$0xf0] }
 0x3c0   :  { %v8589_v15 = vor.u32 %v9954_v14, %v8586_v19  ;;  %v8520_v19 = vld [vmem:[%s15342_s2 + $0x148] sm:$0xf] }
 0x3c1   :  { %4131 = vmatpush.bf16.msrb.mxu0 %v8289_v22  ;;  %4149 = vmatmul.bf16.vlgmr.msrb.gmra.mxu1 %v13545_v17  ;;  %v9925_v22 = vld [vmem:[%s15342_s2 + $0xe4] sm:$0xf] }
 0x3c2   :  { %4157 = vmatpush.bf16.msrb.mxu2 %v8297_v23  ;;  %4175 = vmatmul.bf16.vlgmr.msrb.gmra.mxu3 %v13545_v17  ;;  %v8465_v23 = vor.u32 %v9927_v53, %v8464_v4  ;;  %v8469_v28 = vor.u32 %v9925_v22, %v8466_v5  ;;  %v9911_v4 = vld [vmem:[%s15342_s2 + $0x6c] sm:$0xf0]  ;;  %v9909_v22 = vld [vmem:[%s15342_s2 + $0x64] sm:$0xf] }
 0x3c3   :  { %4601 = vmatpush.bf16.msra.mxu1 %v8593_v58  ;;  %4627 = vmatpush.bf16.msra.mxu3 %v8597_v61  ;;  %v9931_v58 = vld [vmem:[%s15342_s2 + $0x10c] sm:$0xf0] }
 0x3c4   :  { %3867 = vmatmul.bf16.vlgmr.msra.gmra.mxu0 %v13545_v17  ;;  %3893 = vmatmul.bf16.vlgmr.msra.gmra.mxu2 %v13545_v17  ;;  %v8481_v61 = vor.u32 %v9931_v58, %v8480_v57  ;;  %v8370_v57 = vld [vmem:[%s15342_s2 + $0x30] sm:$0xf0] }
 0x3c5   :  { %4132 = vmatpush.bf16.msrb.mxu0 %v8273_v2  ;;  %v8513_v2 = vor.u32 %v9939_v25, %v8512_v10  ;;  %v8568_v10 = vld [vmem:[%s15342_s2 + $0x1a8] sm:$0xf]  ;;  %v9952_v25 = vld [vmem:[%s15342_s2 + $0x1b4] sm:$0xf0] }
 0x3c6   :  { %4158 = vmatpush.bf16.msrb.mxu2 %v8281_v47  ;;  %v9937_v47 = vld [vmem:[%s15342_s2 + $0x144] sm:$0xf] }
 0x3c7   :  { %4628 = vmatpush.bf16.msra.mxu3 %v8581_v0  ;;  %v8517_v13 = vor.u32 %v9937_v47, %v8514_v30  ;;  %v9958_v0 = vld [vmem:[%s15342_s2 + $0x1ec] sm:$0xf]  ;;  %v8570_v47 = vld [vmem:[%s15342_s2 + $0x1b8] sm:$0xf0] }
 0x3c8   :  { %v8605_v51 = vor.u32 %v9958_v0, %v8602_v6  ;;  %v8352_v0 = vld [vmem:[%s15342_s2] sm:$0xf]  ;;  %v9897_v6 = vld [vmem:[%s15342_s2 + $0x4] sm:$0xf] }
 0x3c9   :  { %4133 = vmatpush.bf16.msrb.mxu0 %v8257_v36  ;;  %v9921_v36 = vld [vmem:[%s15342_s2 + $0xc4] sm:$0xf] }
 0x3ca   :  { %4159 = vmatpush.bf16.msrb.mxu2 %v8265_v38  ;;  %v8449_v38 = vor.u32 %v9923_v35, %v8448_v33  ;;  %v8453_v41 = vor.u32 %v9921_v36, %v8450_v34  ;;  %v9907_v33 = vld [vmem:[%s15342_s2 + $0x4c] sm:$0xf0]  ;;  %v9905_v35 = vld [vmem:[%s15342_s2 + $0x44] sm:$0xf] }
 0x3cb   :  { %4629 = vmatpush.bf16.msra.mxu3 %v8565_v8 }
 0x3cd   :  { %4134 = vmatpush.bf16.msrb.mxu0 %v8241_v56  ;;  %v8497_v56 = vor.u32 %v9935_v40, %v8496_v39  ;;  %v8552_v40 = vld [vmem:[%s15342_s2 + $0x188] sm:$0xf] }
 0x3ce   :  { %4160 = vmatpush.bf16.msrb.mxu2 %v8249_v43  ;;  %v9933_v43 = vld [vmem:[%s15342_s2 + $0x124] sm:$0xf] }
 0x3cf   :  { %4630 = vmatpush.bf16.msra.mxu3 %v8549_v18  ;;  %v8501_v45 = vor.u32 %v9933_v43, %v8498_v44  ;;  %v9956_v18 = vld [vmem:[%s15342_s2 + $0x1d4] sm:$0xf0]  ;;  %v8554_v44 = vld [vmem:[%s15342_s2 + $0x198] sm:$0xf0] }
 0x3d0   :  { %v8585_v16 = vor.u32 %v9956_v18, %v8584_v12  ;;  %v9926_v12 = vld [vmem:[%s15342_s2 + $0xec] sm:$0xf]  ;;  %v8474_v18 = vld [vmem:[%s15342_s2 + $0xf8] sm:$0xf0] }
 0x3d1   :  { %4135 = vmatpush.bf16.msrb.mxu0 %v8225_v29  ;;  %v9919_v29 = vld [vmem:[%s15342_s2 + $0xac] sm:$0xf0] }
 0x3d2   :  { %4161 = vmatpush.bf16.msrb.mxu2 %v8233_v48  ;;  %v9917_v48 = vld [vmem:[%s15342_s2 + $0xa4] sm:$0xf]  ;;  %v8433_v52 = vor.u32 %v9919_v29, %v8432_v46  ;;  %v8368_v29 = vld [vmem:[%s15342_s2 + $0x20] sm:$0xf] }
 0x3d3   :  { %4631 = vmatpush.bf16.msra.mxu3 %v8533_v21  ;;  %v8437_v60 = vor.u32 %v9917_v48, %v8434_v55  ;;  %v8400_v21 = vld [vmem:[%s15342_s2 + $0x60] sm:$0xf]  ;;  %v9903_v48 = vld [vmem:[%s15342_s2 + $0x2c] sm:$0xf0] }
 0x3d4   :  { %4136 = vmatmul.bf16.vlgmr.msrb.gmra.mxu0 %v13545_v17  ;;  %v8401_v53 = vor.u32 %v9911_v4, %v8400_v21  ;;  %v8369_v55 = vor.u32 %v9903_v48, %v8368_v29  ;;  %v8488_v48 = vld [vmem:[%s15342_s2 + $0x108] sm:$0xf] }
 0x3d5   :  { %4162 = vmatmul.bf16.vlgmr.msrb.gmra.mxu2 %v13545_v17  ;;  %v8576_v17 = vld [vmem:[%s15342_s2 + $0x1c0] sm:$0xf]  ;;  %4588 = vmatpush.bf16.msra.mxu0 %v8465_v23  ;;  %v8402_v23 = vld [vmem:[%s15342_s2 + $0x70] sm:$0xf0] }
 0x3d6   :  { %v8577_v63 = vor.u32 %v9955_v62, %v8576_v17  ;;  %4614 = vmatpush.bf16.msra.mxu2 %v8469_v28  ;;  %v9929_v17 = vld [vmem:[%s15342_s2 + $0x104] sm:$0xf]  ;;  %v8482_v62 = vld [vmem:[%s15342_s2 + $0x110] sm:$0xf0]  ;;  %v8405_v5 = vor.u32 %v9909_v22, %v8402_v23  ;;  %v9950_v28 = vld [vmem:[%s15342_s2 + $0x1ac] sm:$0xf] }
 0x3d7   :  { %4632 = vmatpush.bf16.msra.mxu3 %v8517_v13  ;;  %v8485_v59 = vor.u32 %v9929_v17, %v8482_v62  ;;  %v8573_v30 = vor.u32 %v9950_v28, %v8570_v47  ;;  %v8384_v13 = vld [vmem:[%s15342_s2 + $0x40] sm:$0xf]  ;;  %v9942_v17 = vld [vmem:[%s15342_s2 + $0x16c] sm:$0xf]  ;;  %v8522_v22 = vld [vmem:[%s15342_s2 + $0x158] sm:$0xf0] }
 0x3d8   :  { %4602 = vmatpush.bf16.msra.mxu1 %v8577_v63  ;;  %v8600_v63 = vld [vmem:[%s15342_s2 + $0x1e8] sm:$0xf]  ;;  %v8385_v36 = vor.u32 %v9907_v33, %v8384_v13  ;;  %v9922_v28 = vld [vmem:[%s15342_s2 + $0xcc] sm:$0xf]  ;;  %v9936_v33 = vld [vmem:[%s15342_s2 + $0x134] sm:$0xf0] }
 0x3d9   :  { %4589 = vmatpush.bf16.msra.mxu0 %v8449_v38  ;;  %v8601_v3 = vor.u32 %v9960_v50, %v8600_v63  ;;  %v8386_v38 = vld [vmem:[%s15342_s2 + $0x50] sm:$0xf0]  ;;  %v8504_v47 = vld [vmem:[%s15342_s2 + $0x128] sm:$0xf] }
 0x3da   :  { %4615 = vmatpush.bf16.msra.mxu2 %v8453_v41  ;;  %v8389_v39 = vor.u32 %v9905_v35, %v8386_v38  ;;  %v9948_v41 = vld [vmem:[%s15342_s2 + $0x194] sm:$0xf0]  ;;  %v9934_v35 = vld [vmem:[%s15342_s2 + $0x12c] sm:$0xf] }
 0x3db   :  { %4633 = vmatpush.bf16.msra.mxu3 %v8501_v45  ;;  %v8553_v43 = vor.u32 %v9948_v41, %v8552_v40 }
 0x3dc   :  { %4603 = vmatpush.bf16.msra.mxu1 %v8561_v7  ;;  %v9915_v7 = vld [vmem:[%s15342_s2 + $0x8c] sm:$0xf0] }
 0x3dd   :  { %4590 = vmatpush.bf16.msra.mxu0 %v8433_v52  ;;  %v8417_v8 = vor.u32 %v9915_v7, %v8416_v26  ;;  %v9901_v52 = vld [vmem:[%s15342_s2 + $0x24] sm:$0xf] }
 0x3de   :  { %4616 = vmatpush.bf16.msra.mxu2 %v8437_v60  ;;  %v8373_v58 = vor.u32 %v9901_v52, %v8370_v57  ;;  %v8536_v60 = vld [vmem:[%s15342_s2 + $0x168] sm:$0xf]  ;;  %v9932_v52 = vld [vmem:[%s15342_s2 + $0x114] sm:$0xf0] }
 0x3df   :  { %4634 = vmatpush.bf16.msra.mxu3 %v8485_v59  ;;  %v8538_v59 = vld [vmem:[%s15342_s2 + $0x178] sm:$0xf0] }
 0x3e0   :  { %4604 = vmatpush.bf16.msra.mxu1 %v8545_v11  ;;  %v8421_v11 = vor.u32 %v9913_v49, %v8418_v24  ;;  %v8541_v50 = vor.u32 %v9942_v17, %v8538_v59  ;;  %v8424_v59 = vld [vmem:[%s15342_s2 + $0x88] sm:$0xf] }
 0x3e1   :  { %4591 = vmatpush.bf16.msra.mxu0 %v8417_v8  ;;  %v8472_v8 = vld [vmem:[%s15342_s2 + $0xe8] sm:$0xf] }
 0x3e2   :  { %4617 = vmatpush.bf16.msra.mxu2 %v8421_v11  ;;  %v9928_v11 = vld [vmem:[%s15342_s2 + $0xf4] sm:$0xf0] }
 0x3e3   :  { %4679 = vmatpush.bf16.msrb.mxu3 %v8605_v51  ;;  %v8354_v51 = vld [vmem:[%s15342_s2 + $0x10] sm:$0xf0]  ;;  %v8473_v14 = vor.u32 %v9928_v11, %v8472_v8  ;;  %v8408_v8 = vld [vmem:[%s15342_s2 + $0x68] sm:$0xf]  ;;  %v9910_v11 = vld [vmem:[%s15342_s2 + $0x6c] sm:$0xf] }
 0x3e4   :  { %4605 = vmatpush.bf16.msra.mxu1 %v8529_v20  ;;  %v8357_v24 = vor.u32 %v9897_v6, %v8354_v51  ;;  %v8426_v6 = vld [vmem:[%s15342_s2 + $0x98] sm:$0xf0] }
 0x3e5   :  { %4592 = vmatpush.bf16.msra.mxu0 %v8401_v53 }
 0x3e6   :  { %4618 = vmatpush.bf16.msra.mxu2 %v8405_v5  ;;  %v8456_v5 = vld [vmem:[%s15342_s2 + $0xc8] sm:$0xf] }
 0x3e7   :  { %4680 = vmatpush.bf16.msrb.mxu3 %v8589_v15  ;;  %v9938_v15 = vld [vmem:[%s15342_s2 + $0x14c] sm:$0xf] }
 0x3e8   :  { %4606 = vmatpush.bf16.msra.mxu1 %v8513_v2  ;;  %v8569_v2 = vor.u32 %v9952_v25, %v8568_v10  ;;  %v8525_v23 = vor.u32 %v9938_v15, %v8522_v22  ;;  %v9924_v10 = vld [vmem:[%s15342_s2 + $0xd4] sm:$0xf0]  ;;  %v8392_v22 = vld [vmem:[%s15342_s2 + $0x48] sm:$0xf] }
 0x3e9   :  { %4593 = vmatpush.bf16.msra.mxu0 %v8385_v36 }
 0x3ea   :  { %4619 = vmatpush.bf16.msra.mxu2 %v8389_v39  ;;  %v8506_v39 = vld [vmem:[%s15342_s2 + $0x138] sm:$0xf0] }
 0x3eb   :  { %4681 = vmatpush.bf16.msrb.mxu3 %v8573_v30  ;;  %v8509_v41 = vor.u32 %v9934_v35, %v8506_v39  ;;  %v8376_v35 = vld [vmem:[%s15342_s2 + $0x28] sm:$0xf]  ;;  %v9902_v39 = vld [vmem:[%s15342_s2 + $0x2c] sm:$0xf] }
 0x3ec   :  { %4607 = vmatpush.bf16.msra.mxu1 %v8497_v56  ;;  %v9946_v56 = vld [vmem:[%s15342_s2 + $0x18c] sm:$0xf] }
 0x3ed   :  { %v8557_v46 = vor.u32 %v9946_v56, %v8554_v44  ;;  %4594 = vmatpush.bf16.msra.mxu0 %v8369_v55  ;;  %v8440_v56 = vld [vmem:[%s15342_s2 + $0xa8] sm:$0xf]  ;;  %v9918_v44 = vld [vmem:[%s15342_s2 + $0xac] sm:$0xf] }
 0x3ee   :  { %4620 = vmatpush.bf16.msra.mxu2 %v8373_v58  ;;  %v8489_v58 = vor.u32 %v9932_v52, %v8488_v48  ;;  %v9900_v48 = vld [vmem:[%s15342_s2 + $0x14] sm:$0xf0]  ;;  %v9898_v52 = vld [vmem:[%s15342_s2 + $0xc] sm:$0xf] }
 0x3ef   :  { %4682 = vmatpush.bf16.msrb.mxu3 %v8557_v46 }
 0x3f0   :  { %4608 = vmatpush.bf16.msra.mxu1 %v8481_v61  ;;  %v9944_v61 = vld [vmem:[%s15342_s2 + $0x174] sm:$0xf0] }
 0x3f1   :  { %v8537_v62 = vor.u32 %v9944_v61, %v8536_v60  ;;  %v9930_v60 = vld [vmem:[%s15342_s2 + $0x10c] sm:$0xf]  ;;  %v8490_v61 = vld [vmem:[%s15342_s2 + $0x118] sm:$0xf0] }
 0x3f2   :  { %4621 = vmatpush.bf16.msra.mxu2 %v8357_v24  ;;  %v8493_v17 = vor.u32 %v9930_v60, %v8490_v61  ;;  %v9912_v24 = vld [vmem:[%s15342_s2 + $0x74] sm:$0xf0]  ;;  %v8362_v60 = vld [vmem:[%s15342_s2 + $0x18] sm:$0xf0] }
 0x3f3   :  { %4683 = vmatpush.bf16.msrb.mxu3 %v8541_v50  ;;  %v8365_v61 = vor.u32 %v9898_v52, %v8362_v60  ;;  %v8663_v52 = vld [vmem:[%s15341_s1 + $0x70] sm:$0xf0] }
 0x3f4   :  { %4653 = vmatpush.bf16.msrb.mxu1 %v8601_v3  ;;  %v9899_v3 = vld [vmem:[%s15342_s2 + $0xc] sm:$0xf0] }
 0x3f5   :  { %v8353_v7 = vor.u32 %v9899_v3, %v8352_v0  ;;  %v9914_v3 = vld [vmem:[%s15342_s2 + $0x8c] sm:$0xf] }
 0x3f7   :  { %4595 = vmatpush.bf16.msra.mxu0 %v8353_v7  ;;  %4684 = vmatpush.bf16.msrb.mxu3 %v8525_v23  ;;  %v9908_v23 = vld [vmem:[%s15342_s2 + $0x54] sm:$0xf0] }
 0x3f8   :  { %4654 = vmatpush.bf16.msrb.mxu1 %v8585_v16  ;;  %v8477_v16 = vor.u32 %v9926_v12, %v8474_v18  ;;  %v8409_v18 = vor.u32 %v9912_v24, %v8408_v8 }
 0x3fa   :  { %4666 = vmatpush.bf16.msrb.mxu2 %v8477_v16 }
 0x3fb   :  { %4640 = vmatpush.bf16.msrb.mxu0 %v8473_v14  ;;  %4685 = vmatpush.bf16.msrb.mxu3 %v8509_v41  ;;  %v8410_v14 = vld [vmem:[%s15342_s2 + $0x78] sm:$0xf0] }
 0x3fc   :  { %4655 = vmatpush.bf16.msrb.mxu1 %v8569_v2  ;;  %v8458_v2 = vld [vmem:[%s15342_s2 + $0xd8] sm:$0xf0] }
 0x3fd   :  { %v8461_v13 = vor.u32 %v9922_v28, %v8458_v2 }
 0x3ff   :  { %4667 = vmatpush.bf16.msrb.mxu2 %v8461_v13  ;;  %4686 = vmatpush.bf16.msrb.mxu3 %v8493_v17 }
 0x400   :  { %4656 = vmatpush.bf16.msrb.mxu1 %v8553_v43  ;;  %v9920_v43 = vld [vmem:[%s15342_s2 + $0xb4] sm:$0xf0] }
 0x401   :  { %v8441_v29 = vor.u32 %v9920_v43, %v8440_v56 }
 0x404   :  { %4657 = vmatpush.bf16.msrb.mxu1 %v8537_v62 }
 0x41d   :  { %v13765_v9 = vpop.f32.mrf.mxu1 }
 0x423   :  { %v13815_v31 = vpop.f32.mrf.mxu3 }
 0x425   :  { %v3831_v20 = vpop.f32.mrf.mxu1 }
 0x426   :  { %v9940_v20 = vld [vmem:[%s15342_s2 + $0x154] sm:$0xf0] }
 0x427   :  { %v8521_v53 = vor.u32 %v9940_v20, %v8520_v19  ;;  %v8413_v20 = vor.u32 %v9910_v11, %v8410_v14  ;;  %v9990_v11 = vld [vmem:[%s15341_s1 + $0xec] sm:$0xf] }
 0x429   :  { %4658 = vmatpush.bf16.msrb.mxu1 %v8521_v53 }
 0x42b   :  { %v3857_v34 = vpop.f32.mrf.mxu3 }
 0x42c   :  { %v8505_v34 = vor.u32 %v9936_v33, %v8504_v47 }
 0x42d   :  { %v13877_v45 = vpop.f32.mrf.mxu1 }
 0x42e   :  { %4659 = vmatpush.bf16.msrb.mxu1 %v8505_v34 }
 0x431   :  { %v3816_v63 = vpop.f32.mrf.mxu0 }
 0x432   :  { %v3817_v26 = vadd.f32 %v3816_v63, %v11374_v37  ;;  %v9916_v63 = vld [vmem:[%s15342_s2 + $0x94] sm:$0xf0]  ;;  %4660 = vmatpush.bf16.msrb.mxu1 %v8489_v58 }
 0x433   :  { %v13919_v49 = vpop.f32.mrf.mxu3  ;;  %v8425_v0 = vor.u32 %v9916_v63, %v8424_v59  ;;  %v8221_v59 = vld [vmem:[%s15343_s0 + $0xb8] sm:$0xff] }
 0x434   :  { %v3830_v21 = vadd.f32 %v13765_v9, %v3817_v26  ;;  %v8457_v9 = vor.u32 %v9924_v10, %v8456_v5  ;;  %v8429_v26 = vor.u32 %v9914_v3, %v8426_v6 }
 0x435   :  { %v3883_v4 = vpop.f32.mrf.mxu1 }
 0x436   :  { %v3911_v36 = vmul.f32 0.5, %v3830_v21  ;;  %4641 = vmatpush.bf16.msrb.mxu0 %v8457_v9  ;;  %v8219_v21 = vld [vmem:[%s15343_s0 + $0xa8] sm:$0xff]  ;;  %v8394_v9 = vld [vmem:[%s15342_s2 + $0x58] sm:$0xf0] }
 0x437   :  { %v3842_v25 = vpop.f32.mrf.mxu2 }
 0x438   :  { %v3843_v30 = vadd.f32 %v3842_v25, %v11404_v54  ;;  %10245 = vtanh.f32 %v3911_v36  ;;  %v8393_v25 = vor.u32 %v9908_v23, %v8392_v22  ;;  %v9904_v36 = vld [vmem:[%s15342_s2 + $0x34] sm:$0xf0]  ;;  %v8711_v22 = vld [vmem:[%s15341_s1 + $0xd0] sm:$0xf0] }
 0x439   :  { %v3818_v38 = vpop.f32.mrf.mxu0  ;;  %v8377_v34 = vor.u32 %v9904_v36, %v8376_v35  ;;  %v8703_v35 = vld [vmem:[%s15341_s1 + $0xb8] sm:$0xf0] }
 0x43a   :  { %v3856_v40 = vadd.f32 %v13815_v31, %v3843_v30  ;;  %v8442_v31 = vld [vmem:[%s15342_s2 + $0xb8] sm:$0xf0]  ;;  %4642 = vmatpush.bf16.msrb.mxu0 %v8441_v29 }
 0x43b   :  { %v3909_v46 = vpop.f32.mrf.mxu3  ;;  %v8445_v57 = vor.u32 %v9918_v44, %v8442_v31  ;;  %v8360_v31 = vld [vmem:[%s15342_s2 + $0x8] sm:$0xf] }
 0x43c   :  { %v3915_v55 = vmul.f32 0.5, %v3856_v40  ;;  %v8361_v58 = vor.u32 %v9900_v48, %v8360_v31  ;;  %v9973_v48 = vld [vmem:[%s15341_s1 + $0x64] sm:$0xf] }
 0x43d   :  { %4668 = vmatpush.bf16.msrb.mxu2 %v8445_v57  ;;  %v8218_v57 = vld [vmem:[%s15343_s0 + $0xa0] sm:$0xff]  ;;  %v8666_v60 = vor.u32 %v9973_v48, %v8663_v52 }
 0x43e   :  { %10247 = vtanh.f32 %v3915_v55  ;;  %v4150_v62 = vpop.f32.mrf.mxu1  ;;  %4643 = vmatpush.bf16.msrb.mxu0 %v8425_v0  ;;  %v10246_v12 = vpop.eup %10245  ;;  %v8645_v52 = vld [vmem:[%s15341_s1 + $0x40] sm:$0xf] }
 0x43f   :  { %v3844_v50 = vpop.f32.mrf.mxu2  ;;  %v3913_v5 = vadd.f32 1.0, %v10246_v12  ;;  %v4181_v28 = vadd.f32 %v8219_v21, %v4150_v62  ;;  %v8735_v12 = vld [vmem:[%s15341_s1 + $0xf8] sm:$0xf0] }
 0x441   :  { %v3868_v7 = vpop.f32.mrf.mxu0  ;;  %4669 = vmatpush.bf16.msrb.mxu2 %v8429_v26  ;;  %v3914_v38 = vmul.f32 0.5, %v3913_v5  ;;  %v4188_v41 = vmul.f32 0.5, %v4181_v28  ;;  %v8220_v26 = vld [vmem:[%s15343_s0 + $0xb0] sm:$0xff]  ;;  %v8719_v5 = vld [vmem:[%s15341_s1 + $0xd8] sm:$0xf0] }
 0x442   :  { %v3869_v51 = vadd.f32 %v3868_v7, %v11487_v42  ;;  %4644 = vmatpush.bf16.msrb.mxu0 %v8409_v18  ;;  %v9989_v7 = vld [vmem:[%s15341_s1 + $0xe4] sm:$0xf] }
 0x444   :  { %v10248_v16 = vpop.eup %10247  ;;  %v3882_v19 = vadd.f32 %v13877_v45, %v3869_v51  ;;  %v9906_v45 = vld [vmem:[%s15342_s2 + $0x4c] sm:$0xf]  ;;  %v8727_v51 = vld [vmem:[%s15341_s1 + $0xf0] sm:$0xf0] }
 0x445   :  { %v3917_v15 = vadd.f32 1.0, %v10248_v16  ;;  %v4176_v4 = vpop.f32.mrf.mxu3  ;;  %4670 = vmatpush.bf16.msrb.mxu2 %v8413_v20  ;;  %v8397_v47 = vor.u32 %v9906_v45, %v8394_v9  ;;  %v8730_v21 = vor.u32 %v9989_v7, %v8727_v51  ;;  %v9986_v45 = vld [vmem:[%s15341_s1 + $0xcc] sm:$0xf]  ;;  %v8655_v7 = vld [vmem:[%s15341_s1 + $0x58] sm:$0xf0] }
 0x446   :  { %10249 = vtanh.f32 %v3882_v19  ;;  %v4152_v53 = vpop.f32.mrf.mxu1  ;;  %4645 = vmatpush.bf16.msrb.mxu0 %v8393_v25  ;;  %v4183_v6 = vadd.f32 %v8221_v59, %v4176_v4  ;;  %v8738_v4 = vor.u32 %v9990_v11, %v8735_v12  ;;  %v8733_v59 = vld [vmem:[%s15341_s1 + $0xe8] sm:$0xf]  ;;  %v8709_v11 = vld [vmem:[%s15341_s1 + $0xc0] sm:$0xf]  ;;  %v9987_v12 = vld [vmem:[%s15341_s1 + $0xcc] sm:$0xf0] }
 0x447   :  { %v3894_v10 = vpop.f32.mrf.mxu2  ;;  %v3918_v30 = vmul.f32 0.5, %v3917_v15  ;;  %v9985_v53 = vld [vmem:[%s15341_s1 + $0xc4] sm:$0xf] }
 0x448   :  { %v3895_v2 = vadd.f32 %v3894_v10, %v11516_v1  ;;  %v4193_v15 = vmul.f32 0.5, %v4183_v6  ;;  %v8714_v28 = vor.u32 %v9985_v53, %v8711_v22  ;;  %v8647_v6 = vld [vmem:[%s15341_s1 + $0x50] sm:$0xf0]  ;;  %v8639_v53 = vld [vmem:[%s15341_s1 + $0x38] sm:$0xf0]  ;;  %v8710_v22 = vor.u32 %v9987_v12, %v8709_v11 }
 0x449   :  { %v3870_v13 = vpop.f32.mrf.mxu0  ;;  %4671 = vmatpush.bf16.msrb.mxu2 %v8397_v47  ;;  %v3924_v44 = vmul.f32 %v3918_v30, %v13433_v32  ;;  %v9981_v47 = vld [vmem:[%s15341_s1 + $0xa4] sm:$0xf]  ;;  %v8695_v30 = vld [vmem:[%s15341_s1 + $0xb0] sm:$0xf0]  ;;  %v10055_v11 = vld [vmem:[%s15342_s2 + $0x1ec] sm:$0xf0] }
 0x44a   :  { %v3908_v33 = vadd.f32 %v13919_v49, %v3895_v2  ;;  %v8378_v49 = vld [vmem:[%s15342_s2 + $0x38] sm:$0xf0]  ;;  %4646 = vmatpush.bf16.msrb.mxu0 %v8377_v34  ;;  %v8722_v2 = vor.u32 %v9986_v45, %v8719_v5  ;;  %v8698_v34 = vor.u32 %v9981_v47, %v8695_v30  ;;  %v8693_v45 = vld [vmem:[%s15341_s1 + $0xa0] sm:$0xf]  ;;  %v9983_v5 = vld [vmem:[%s15341_s1 + $0xac] sm:$0xf0] }
 0x44b   :  { %v8381_v43 = vor.u32 %v9902_v39, %v8378_v49  ;;  %v8615_v47 = vld [vmem:[%s15341_s1 + $0x10] sm:$0xf0]  ;;  %v9962_v30 = vld [vmem:[%s15341_s1 + $0xc] sm:$0xf]  ;;  %v10053_v12 = vld [vmem:[%s15342_s2 + $0x1e4] sm:$0xf] }
 0x44c   :  { %v10250_v40 = vpop.eup %10249  ;;  %v3920_v56 = vmul.f32 0.5, %v3908_v33  ;;  %v9982_v33 = vld [vmem:[%s15341_s1 + $0xac] sm:$0xf] }
 0x44d   :  { %v3925_v46 = vmul.f32 %v10250_v40, %v3914_v38  ;;  %v4178_v29 = vpop.f32.mrf.mxu3  ;;  %4672 = vmatpush.bf16.msrb.mxu2 %v8381_v43  ;;  %v8706_v40 = vor.u32 %v9982_v33, %v8703_v35  ;;  %v9978_v43 = vld [vmem:[%s15341_s1 + $0x8c] sm:$0xf]  ;;  %v8694_v33 = vor.u32 %v9983_v5, %v8693_v45  ;;  %v10045_v45 = vld [vmem:[%s15342_s2 + $0x1a4] sm:$0xf] }
 0x44e   :  { %10251 = vtanh.f32 %v3920_v56  ;;  %4647 = vmatpush.bf16.msrb.mxu0 %v8361_v58  ;;  %v8679_v56 = vld [vmem:[%s15341_s1 + $0x90] sm:$0xf0]  ;;  %v8671_v58 = vld [vmem:[%s15341_s1 + $0x78] sm:$0xf0] }
 0x44f   :  { %v14058_v55 = vadd.f32 %v3925_v46, %v3924_v44  ;;  %v3896_v32 = vpop.f32.mrf.mxu2  ;;  %10253 = vtanh.f32 %v4188_v41  ;;  %v9977_v41 = vld [vmem:[%s15341_s1 + $0x84] sm:$0xf] }
 0x450   :  { %v8682_v29 = vor.u32 %v9977_v41, %v8679_v56 }
 0x451   :  { %10255 = vtanh.f32 %v14058_v55  ;;  %v4137_v17 = vpop.f32.mrf.mxu0  ;;  %4673 = vmatpush.bf16.msrb.mxu2 %v8365_v61 }
 0x452   :  { %v4180_v62 = vadd.f32 %v8218_v57, %v4137_v17  ;;  %v9974_v57 = vld [vmem:[%s15341_s1 + $0x6c] sm:$0xf]  ;;  %v8725_v17 = vld [vmem:[%s15341_s1 + $0xe0] sm:$0xf] }
 0x453   :  { %v8674_v61 = vor.u32 %v9974_v57, %v8671_v58  ;;  %v8653_v57 = vld [vmem:[%s15341_s1 + $0x48] sm:$0xf]  ;;  %v9972_v58 = vld [vmem:[%s15341_s1 + $0x54] sm:$0xf0] }
 0x454   :  { %v10252_v63 = vpop.eup %10251  ;;  %v4184_v50 = vmul.f32 0.5, %v4180_v62  ;;  %v9991_v62 = vld [vmem:[%s15341_s1 + $0xec] sm:$0xf0] }
 0x455   :  { %v3922_v0 = vadd.f32 1.0, %v10252_v63  ;;  %v10254_v3 = vpop.eup %10253 }
 0x456   :  { %10257 = vtanh.f32 %v4184_v50  ;;  %v4190_v20 = vadd.f32 1.0, %v10254_v3  ;;  %v9992_v50 = vld [vmem:[%s15341_s1 + $0xf4] sm:$0xf0] }
 0x457   :  { %v10256_v8 = vpop.eup %10255  ;;  %v3923_v24 = vmul.f32 0.5, %v3922_v0  ;;  %v9969_v0 = vld [vmem:[%s15341_s1 + $0x44] sm:$0xf] }
 0x458   :  { %v4163_v18 = vpop.f32.mrf.mxu2  ;;  %v4191_v9 = vmul.f32 0.5, %v4190_v20  ;;  %v9988_v20 = vld [vmem:[%s15341_s1 + $0xd4] sm:$0xf0] }
 0x459   :  { %v3928_v14 = vmul.f32 %v10256_v8, %v3923_v24  ;;  %v4182_v16 = vadd.f32 %v8220_v26, %v4163_v18  ;;  %v4139_v19 = vpop.f32.mrf.mxu0  ;;  %v9970_v26 = vld [vmem:[%s15341_s1 + $0x4c] sm:$0xf]  ;;  %v8726_v8 = vor.u32 %v9991_v62, %v8725_v17  ;;  %v8734_v24 = vor.u32 %v9992_v50, %v8733_v59  ;;  %v8629_v17 = vld [vmem:[%s15341_s1 + $0x20] sm:$0xf]  ;;  %v9967_v62 = vld [vmem:[%s15341_s1 + $0x2c] sm:$0xf0] }
 0x45a   :  { %v4197_v39 = vmul.f32 %v4191_v9, %v13500_v27  ;;  %v8687_v27 = vld [vmem:[%s15341_s1 + $0x98] sm:$0xf0]  ;;  %v8717_v19 = vld [vmem:[%s15341_s1 + $0xc8] sm:$0xf]  ;;  %v8630_v50 = vor.u32 %v9967_v62, %v8629_v17  ;;  %v8839_v17 = vld [vmem:[%s15342_s2 + $0xd0] sm:$0xf0] }
 0x45b   :  { %8217 = vst [vmem:[%s15345_s4 + $0x20] sm:$0xff] %v3928_v14  ;;  %v4203_v23 = vpack.c.bf16 %v3928_v14, %v3928_v14  ;;  %10259 = vtanh.f32 %v4182_v16  ;;  %v8690_v31 = vor.u32 %v9978_v43, %v8687_v27  ;;  %v8650_v14 = vor.u32 %v9969_v0, %v8647_v6  ;;  %v8701_v9 = vld [vmem:[%s15341_s1 + $0xa8] sm:$0xf]  ;;  %v8661_v43 = vld [vmem:[%s15341_s1 + $0x60] sm:$0xf] }
 0x45c   :  { %v10258_v10 = vpop.eup %10257  ;;  %10261 = vtanh.f32 %v4193_v15  ;;  %v8658_v16 = vor.u32 %v9970_v26, %v8655_v7  ;;  %v9965_v15 = vld [vmem:[%s15341_s1 + $0x24] sm:$0xf]  ;;  %v9975_v27 = vld [vmem:[%s15341_s1 + $0x6c] sm:$0xf0]  ;;  %v8637_v59 = vld [vmem:[%s15341_s1 + $0x28] sm:$0xf] }
 0x45d   :  { %v4186_v25 = vadd.f32 1.0, %v10258_v10  ;;  %4609 = vmatmul.bf16.vlgmr.msra.gmra.mxu1 %v4203_v23  ;;  %4635 = vmatmul.bf16.vlgmr.msra.gmra.mxu3 %v4203_v23  ;;  %v9963_v6 = vld [vmem:[%s15341_s1 + $0xc] sm:$0xf0]  ;;  %v8621_v26 = vld [vmem:[%s15341_s1 + $0x8] sm:$0xf] }
 0x45e   :  { %4922 = vmatpush.bf16.msra.mxu1 %v8730_v21  ;;  %4948 = vmatpush.bf16.msra.mxu3 %v8738_v4  ;;  %v8631_v21 = vld [vmem:[%s15341_s1 + $0x30] sm:$0xf0]  ;;  %v9966_v4 = vld [vmem:[%s15341_s1 + $0x2c] sm:$0xf]  ;;  %v9964_v7 = vld [vmem:[%s15341_s1 + $0x14] sm:$0xf0] }
 0x45f   :  { %v4187_v13 = vmul.f32 0.5, %v4186_v25  ;;  %v8634_v10 = vor.u32 %v9965_v15, %v8631_v21  ;;  %v8642_v25 = vor.u32 %v9966_v4, %v8639_v53  ;;  %v10049_v15 = vld [vmem:[%s15342_s2 + $0x1c4] sm:$0xf]  ;;  %v8967_v4 = vld [vmem:[%s15342_s2 + $0x1d0] sm:$0xf0] }
 0x460   :  { %v4165_v36 = vpop.f32.mrf.mxu2  ;;  %v8970_v53 = vor.u32 %v10049_v15, %v8967_v4  ;;  %v8885_v62 = vld [vmem:[%s15342_s2 + $0x120] sm:$0xf]  ;;  %v10056_v4 = vld [vmem:[%s15342_s2 + $0x1f4] sm:$0xf0] }
 0x461   :  { %v10260_v38 = vpop.eup %10259 }
 0x462   :  { %v4198_v49 = vmul.f32 %v10260_v38, %v4187_v13  ;;  %4923 = vmatpush.bf16.msra.mxu1 %v8714_v28  ;;  %4949 = vmatpush.bf16.msra.mxu3 %v8722_v2  ;;  %v10262_v44 = vpop.eup %10261  ;;  %v9984_v28 = vld [vmem:[%s15341_s1 + $0xb4] sm:$0xf0]  ;;  %v9961_v2 = vld [vmem:[%s15341_s1 + $0x4] sm:$0xf]  ;;  %v8623_v13 = vld [vmem:[%s15341_s1 + $0x18] sm:$0xf0] }
 0x463   :  { %v4195_v32 = vadd.f32 1.0, %v10262_v44  ;;  %v8702_v35 = vor.u32 %v9984_v28, %v8701_v9  ;;  %v8618_v36 = vor.u32 %v9961_v2, %v8615_v47  ;;  %v8626_v38 = vor.u32 %v9962_v30, %v8623_v13  ;;  %v8669_v44 = vld [vmem:[%s15341_s1 + $0x68] sm:$0xf]  ;;  %v8933_v9 = vld [vmem:[%s15342_s2 + $0x180] sm:$0xf] }
 0x464   :  { %v14125_v46 = vadd.f32 %v4198_v49, %v4197_v39  ;;  %v9979_v39 = vld [vmem:[%s15341_s1 + $0x8c] sm:$0xf0]  ;;  %v8685_v49 = vld [vmem:[%s15341_s1 + $0x88] sm:$0xf]  ;;  %v10041_v2 = vld [vmem:[%s15342_s2 + $0x184] sm:$0xf] }
 0x465   :  { %v4196_v63 = vmul.f32 0.5, %v4195_v32  ;;  %v9971_v32 = vld [vmem:[%s15341_s1 + $0x4c] sm:$0xf0]  ;;  %v8935_v30 = vld [vmem:[%s15342_s2 + $0x190] sm:$0xf0] }
 0x466   :  { %10263 = vtanh.f32 %v14125_v46  ;;  %4924 = vmatpush.bf16.msra.mxu1 %v8698_v34  ;;  %4950 = vmatpush.bf16.msra.mxu3 %v8706_v40  ;;  %v8677_v34 = vld [vmem:[%s15341_s1 + $0x80] sm:$0xf]  ;;  %v9980_v40 = vld [vmem:[%s15341_s1 + $0x94] sm:$0xf0]  ;;  %v10043_v28 = vld [vmem:[%s15342_s2 + $0x18c] sm:$0xf0]  ;;  %v8938_v13 = vor.u32 %v10041_v2, %v8935_v30 }
 0x467   :  { %v8678_v41 = vor.u32 %v9979_v39, %v8677_v34  ;;  %v8686_v56 = vor.u32 %v9980_v40, %v8685_v49  ;;  %v8934_v47 = vor.u32 %v10043_v28, %v8933_v9  ;;  %v8919_v34 = vld [vmem:[%s15342_s2 + $0x170] sm:$0xf0]  ;;  %v8853_v49 = vld [vmem:[%s15342_s2 + $0xe0] sm:$0xf]  ;;  %v10023_v40 = vld [vmem:[%s15342_s2 + $0xec] sm:$0xf0] }
 0x468   :  { %v10009_v9 = vld [vmem:[%s15342_s2 + $0x84] sm:$0xf]  ;;  %v8807_v28 = vld [vmem:[%s15342_s2 + $0x90] sm:$0xf0]  ;;  %v8973_v30 = vld [vmem:[%s15342_s2 + $0x1c8] sm:$0xf] }
 0x46a   :  { %4925 = vmatpush.bf16.msra.mxu1 %v8682_v29  ;;  %4951 = vmatpush.bf16.msra.mxu3 %v8690_v31  ;;  %v9976_v29 = vld [vmem:[%s15341_s1 + $0x74] sm:$0xf0]  ;;  %v8662_v31 = vor.u32 %v9975_v27, %v8661_v43  ;;  %v8855_v43 = vld [vmem:[%s15342_s2 + $0xf0] sm:$0xf0]  ;;  %v8901_v27 = vld [vmem:[%s15342_s2 + $0x140] sm:$0xf] }
 0x46b   :  { %v8670_v48 = vor.u32 %v9976_v29, %v8669_v44  ;;  %v10035_v44 = vld [vmem:[%s15342_s2 + $0x14c] sm:$0xf0] }
 0x46c   :  { %v10264_v3 = vpop.eup %10263 }
 0x46d   :  { %v4201_v51 = vmul.f32 %v10264_v3, %v4196_v63  ;;  %4661 = vmatmul.bf16.vlgmr.msrb.gmra.mxu1 %v4203_v23  ;;  %4687 = vmatmul.bf16.vlgmr.msrb.gmra.mxu3 %v4203_v23  ;;  %v8718_v23 = vor.u32 %v9988_v20, %v8717_v19  ;;  %v9968_v63 = vld [vmem:[%s15341_s1 + $0x34] sm:$0xf0]  ;;  %v8613_v3 = vld [vmem:[%s15341_s1] sm:$0xf]  ;;  %v10051_v20 = vld [vmem:[%s15342_s2 + $0x1cc] sm:$0xf0] }
 0x46e   :  { %4926 = vmatpush.bf16.msra.mxu1 %v8666_v60  ;;  %4952 = vmatpush.bf16.msra.mxu3 %v8674_v61  ;;  %v8646_v60 = vor.u32 %v9971_v32, %v8645_v52  ;;  %v8654_v61 = vor.u32 %v9972_v58, %v8653_v57  ;;  %v8638_v0 = vor.u32 %v9968_v63, %v8637_v59  ;;  %v8903_v52 = vld [vmem:[%s15342_s2 + $0x150] sm:$0xf0]  ;;  %v8837_v57 = vld [vmem:[%s15342_s2 + $0xc0] sm:$0xf]  ;;  %v10019_v58 = vld [vmem:[%s15342_s2 + $0xcc] sm:$0xf0] }
 0x46f   :  { %v14170_v18 = vpack.c.bf16 %v4201_v51, %v4201_v51  ;;  %v8614_v51 = vor.u32 %v9963_v6, %v8613_v3  ;;  %v10031_v59 = vld [vmem:[%s15342_s2 + $0x12c] sm:$0xf0]  ;;  %v8887_v3 = vld [vmem:[%s15342_s2 + $0x130] sm:$0xf0] }
 0x471   :  { %4596 = vmatmul.bf16.vlgmr.msra.gmra.mxu0 %v14170_v18  ;;  %4622 = vmatmul.bf16.vlgmr.msra.gmra.mxu2 %v14170_v18 }
 0x472   :  { %4909 = vmatpush.bf16.msra.mxu0 %v8726_v8  ;;  %4935 = vmatpush.bf16.msra.mxu2 %v8734_v24  ;;  %v8622_v8 = vor.u32 %v9964_v7, %v8621_v26  ;;  %v8981_v24 = vld [vmem:[%s15342_s2 + $0x1e0] sm:$0xf] }
 0x473   :  { %4927 = vmatpush.bf16.msra.mxu1 %v8650_v14  ;;  %4953 = vmatpush.bf16.msra.mxu3 %v8658_v16  ;;  %v8982_v14 = vor.u32 %v10055_v11, %v8981_v24  ;;  %v8983_v16 = vld [vmem:[%s15342_s2 + $0x1f0] sm:$0xf0]  ;;  %v8821_v7 = vld [vmem:[%s15342_s2 + $0xa0] sm:$0xf] }
 0x474   :  { %v8986_v19 = vor.u32 %v10053_v12, %v8983_v16  ;;  %v8823_v11 = vld [vmem:[%s15342_s2 + $0xb0] sm:$0xf0]  ;;  %v8869_v12 = vld [vmem:[%s15342_s2 + $0x100] sm:$0xf] }
 0x476   :  { %4910 = vmatpush.bf16.msra.mxu0 %v8710_v22  ;;  %4936 = vmatpush.bf16.msra.mxu2 %v8718_v23  ;;  %v8949_v22 = vld [vmem:[%s15342_s2 + $0x1a0] sm:$0xf]  ;;  %v10047_v23 = vld [vmem:[%s15342_s2 + $0x1ac] sm:$0xf0] }
 0x477   :  { %4928 = vmatpush.bf16.msra.mxu1 %v8634_v10  ;;  %4954 = vmatpush.bf16.msra.mxu3 %v8642_v25  ;;  %v8950_v5 = vor.u32 %v10047_v23, %v8949_v22  ;;  %v8951_v10 = vld [vmem:[%s15342_s2 + $0x1b0] sm:$0xf0]  ;;  %v8991_v23 = vld [vmem:[%s15342_s2 + $0x1f8] sm:$0xf0] }
 0x478   :  { %v8954_v25 = vor.u32 %v10045_v45, %v8951_v10  ;;  %v8805_v45 = vld [vmem:[%s15342_s2 + $0x80] sm:$0xf] }
 0x47a   :  { %4911 = vmatpush.bf16.msra.mxu0 %v8694_v33  ;;  %4937 = vmatpush.bf16.msra.mxu2 %v8702_v35  ;;  %v8917_v33 = vld [vmem:[%s15342_s2 + $0x160] sm:$0xf]  ;;  %v10039_v35 = vld [vmem:[%s15342_s2 + $0x16c] sm:$0xf0] }
 0x47b   :  { %4929 = vmatpush.bf16.msra.mxu1 %v8618_v36  ;;  %4955 = vmatpush.bf16.msra.mxu3 %v8626_v38  ;;  %v10037_v36 = vld [vmem:[%s15342_s2 + $0x164] sm:$0xf]  ;;  %v8918_v38 = vor.u32 %v10039_v35, %v8917_v33  ;;  %v10050_v33 = vld [vmem:[%s15342_s2 + $0x1cc] sm:$0xf] }
 0x47c   :  { %v8922_v39 = vor.u32 %v10037_v36, %v8919_v34  ;;  %v8975_v36 = vld [vmem:[%s15342_s2 + $0x1d8] sm:$0xf0] }
 0x47d   :  { %v8978_v34 = vor.u32 %v10050_v33, %v8975_v36  ;;  %v8909_v36 = vld [vmem:[%s15342_s2 + $0x148] sm:$0xf] }
 0x47e   :  { %4912 = vmatpush.bf16.msra.mxu0 %v8678_v41  ;;  %4930 = vmatmul.bf16.vlgmr.msra.gmra.mxu1 %v14170_v18  ;;  %v10021_v41 = vld [vmem:[%s15342_s2 + $0xe4] sm:$0xf] }
 0x47f   :  { %4938 = vmatpush.bf16.msra.mxu2 %v8686_v56  ;;  %4956 = vmatmul.bf16.vlgmr.msra.gmra.mxu3 %v14170_v18  ;;  %v8854_v56 = vor.u32 %v10023_v40, %v8853_v49  ;;  %v8858_v29 = vor.u32 %v10021_v41, %v8855_v43  ;;  %v10007_v49 = vld [vmem:[%s15342_s2 + $0x6c] sm:$0xf0]  ;;  %v10005_v41 = vld [vmem:[%s15342_s2 + $0x64] sm:$0xf] }
 0x480   :  { %5382 = vmatpush.bf16.msrb.mxu1 %v8982_v14  ;;  %5408 = vmatpush.bf16.msrb.mxu3 %v8986_v19  ;;  %v10027_v14 = vld [vmem:[%s15342_s2 + $0x10c] sm:$0xf0] }
 0x481   :  { %4648 = vmatmul.bf16.vlgmr.msrb.gmra.mxu0 %v14170_v18  ;;  %4674 = vmatmul.bf16.vlgmr.msrb.gmra.mxu2 %v14170_v18  ;;  %v8870_v19 = vor.u32 %v10027_v14, %v8869_v12  ;;  %v8759_v12 = vld [vmem:[%s15342_s2 + $0x30] sm:$0xf0] }
 0x482   :  { %4913 = vmatpush.bf16.msra.mxu0 %v8662_v31  ;;  %v8902_v31 = vor.u32 %v10035_v44, %v8901_v27  ;;  %v8957_v27 = vld [vmem:[%s15342_s2 + $0x1a8] sm:$0xf]  ;;  %v10048_v44 = vld [vmem:[%s15342_s2 + $0x1b4] sm:$0xf0] }
 0x483   :  { %4939 = vmatpush.bf16.msra.mxu2 %v8670_v48  ;;  %v10033_v48 = vld [vmem:[%s15342_s2 + $0x144] sm:$0xf] }
 0x484   :  { %5409 = vmatpush.bf16.msrb.mxu3 %v8970_v53  ;;  %v8906_v32 = vor.u32 %v10033_v48, %v8903_v52  ;;  %v10054_v53 = vld [vmem:[%s15342_s2 + $0x1ec] sm:$0xf]  ;;  %v8959_v48 = vld [vmem:[%s15342_s2 + $0x1b8] sm:$0xf0] }
 0x485   :  { %v8994_v10 = vor.u32 %v10054_v53, %v8991_v23  ;;  %v8741_v53 = vld [vmem:[%s15342_s2] sm:$0xf]  ;;  %v9993_v23 = vld [vmem:[%s15342_s2 + $0x4] sm:$0xf] }
 0x486   :  { %4914 = vmatpush.bf16.msra.mxu0 %v8646_v60  ;;  %v10017_v60 = vld [vmem:[%s15342_s2 + $0xc4] sm:$0xf] }
 0x487   :  { %4940 = vmatpush.bf16.msra.mxu2 %v8654_v61  ;;  %v8838_v61 = vor.u32 %v10019_v58, %v8837_v57  ;;  %v8842_v63 = vor.u32 %v10017_v60, %v8839_v17  ;;  %v10003_v57 = vld [vmem:[%s15342_s2 + $0x4c] sm:$0xf0]  ;;  %v10001_v58 = vld [vmem:[%s15342_s2 + $0x44] sm:$0xf] }
 0x488   :  { %5410 = vmatpush.bf16.msrb.mxu3 %v8954_v25 }
 0x48a   :  { %4915 = vmatpush.bf16.msra.mxu0 %v8630_v50  ;;  %v8886_v50 = vor.u32 %v10031_v59, %v8885_v62  ;;  %v8941_v59 = vld [vmem:[%s15342_s2 + $0x188] sm:$0xf] }
 0x48b   :  { %4941 = vmatpush.bf16.msra.mxu2 %v8638_v0  ;;  %v10029_v0 = vld [vmem:[%s15342_s2 + $0x124] sm:$0xf] }
 0x48c   :  { %5411 = vmatpush.bf16.msrb.mxu3 %v8938_v13  ;;  %v8890_v6 = vor.u32 %v10029_v0, %v8887_v3  ;;  %v10052_v13 = vld [vmem:[%s15342_s2 + $0x1d4] sm:$0xf0]  ;;  %v8943_v3 = vld [vmem:[%s15342_s2 + $0x198] sm:$0xf0] }
 0x48d   :  { %v8974_v35 = vor.u32 %v10052_v13, %v8973_v30  ;;  %v10022_v30 = vld [vmem:[%s15342_s2 + $0xec] sm:$0xf]  ;;  %v8863_v13 = vld [vmem:[%s15342_s2 + $0xf8] sm:$0xf0] }
 0x48e   :  { %4916 = vmatpush.bf16.msra.mxu0 %v8614_v51  ;;  %v10015_v51 = vld [vmem:[%s15342_s2 + $0xac] sm:$0xf0] }
 0x48f   :  { %4942 = vmatpush.bf16.msra.mxu2 %v8622_v8  ;;  %v10013_v8 = vld [vmem:[%s15342_s2 + $0xa4] sm:$0xf]  ;;  %v8822_v24 = vor.u32 %v10015_v51, %v8821_v7  ;;  %v8757_v51 = vld [vmem:[%s15342_s2 + $0x20] sm:$0xf] }
 0x490   :  { %5412 = vmatpush.bf16.msrb.mxu3 %v8922_v39  ;;  %v8826_v16 = vor.u32 %v10013_v8, %v8823_v11  ;;  %v8789_v39 = vld [vmem:[%s15342_s2 + $0x60] sm:$0xf]  ;;  %v9999_v8 = vld [vmem:[%s15342_s2 + $0x2c] sm:$0xf0] }
 0x491   :  { %4917 = vmatmul.bf16.vlgmr.msra.gmra.mxu0 %v14170_v18  ;;  %v8790_v40 = vor.u32 %v10007_v49, %v8789_v39  ;;  %v8758_v11 = vor.u32 %v9999_v8, %v8757_v51  ;;  %v8877_v8 = vld [vmem:[%s15342_s2 + $0x108] sm:$0xf] }
 0x492   :  { %4943 = vmatmul.bf16.vlgmr.msra.gmra.mxu2 %v14170_v18  ;;  %v8965_v18 = vld [vmem:[%s15342_s2 + $0x1c0] sm:$0xf]  ;;  %5369 = vmatpush.bf16.msrb.mxu0 %v8854_v56  ;;  %v8791_v56 = vld [vmem:[%s15342_s2 + $0x70] sm:$0xf0] }
 0x493   :  { %v8966_v21 = vor.u32 %v10051_v20, %v8965_v18  ;;  %5395 = vmatpush.bf16.msrb.mxu2 %v8858_v29  ;;  %v10025_v18 = vld [vmem:[%s15342_s2 + $0x104] sm:$0xf]  ;;  %v8871_v20 = vld [vmem:[%s15342_s2 + $0x110] sm:$0xf0]  ;;  %v8794_v43 = vor.u32 %v10005_v41, %v8791_v56  ;;  %v10046_v29 = vld [vmem:[%s15342_s2 + $0x1ac] sm:$0xf] }
 0x494   :  { %5413 = vmatpush.bf16.msrb.mxu3 %v8906_v32  ;;  %v8874_v15 = vor.u32 %v10025_v18, %v8871_v20  ;;  %v8962_v52 = vor.u32 %v10046_v29, %v8959_v48  ;;  %v8773_v32 = vld [vmem:[%s15342_s2 + $0x40] sm:$0xf]  ;;  %v10038_v18 = vld [vmem:[%s15342_s2 + $0x16c] sm:$0xf]  ;;  %v8911_v41 = vld [vmem:[%s15342_s2 + $0x158] sm:$0xf0] }
 0x495   :  { %5383 = vmatpush.bf16.msrb.mxu1 %v8966_v21  ;;  %v8989_v21 = vld [vmem:[%s15342_s2 + $0x1e8] sm:$0xf]  ;;  %v8774_v60 = vor.u32 %v10003_v57, %v8773_v32  ;;  %v10018_v29 = vld [vmem:[%s15342_s2 + $0xcc] sm:$0xf]  ;;  %v10032_v57 = vld [vmem:[%s15342_s2 + $0x134] sm:$0xf0] }
 0x496   :  { %5370 = vmatpush.bf16.msrb.mxu0 %v8838_v61  ;;  %v8990_v22 = vor.u32 %v10056_v4, %v8989_v21  ;;  %v8775_v61 = vld [vmem:[%s15342_s2 + $0x50] sm:$0xf0]  ;;  %v8893_v48 = vld [vmem:[%s15342_s2 + $0x128] sm:$0xf] }
 0x497   :  { %5396 = vmatpush.bf16.msrb.mxu2 %v8842_v63  ;;  %v8778_v62 = vor.u32 %v10001_v58, %v8775_v61  ;;  %v10044_v63 = vld [vmem:[%s15342_s2 + $0x194] sm:$0xf0]  ;;  %v10030_v58 = vld [vmem:[%s15342_s2 + $0x12c] sm:$0xf] }
 0x498   :  { %5414 = vmatpush.bf16.msrb.mxu3 %v8890_v6  ;;  %v8942_v0 = vor.u32 %v10044_v63, %v8941_v59 }
 0x499   :  { %5384 = vmatpush.bf16.msrb.mxu1 %v8950_v5  ;;  %v10011_v5 = vld [vmem:[%s15342_s2 + $0x8c] sm:$0xf0] }
 0x49a   :  { %5371 = vmatpush.bf16.msrb.mxu0 %v8822_v24  ;;  %v8806_v25 = vor.u32 %v10011_v5, %v8805_v45  ;;  %v9997_v24 = vld [vmem:[%s15342_s2 + $0x24] sm:$0xf] }
 0x49b   :  { %5397 = vmatpush.bf16.msrb.mxu2 %v8826_v16  ;;  %v8762_v14 = vor.u32 %v9997_v24, %v8759_v12  ;;  %v8925_v16 = vld [vmem:[%s15342_s2 + $0x168] sm:$0xf]  ;;  %v10028_v24 = vld [vmem:[%s15342_s2 + $0x114] sm:$0xf0] }
 0x49c   :  { %5415 = vmatpush.bf16.msrb.mxu3 %v8874_v15  ;;  %v8927_v15 = vld [vmem:[%s15342_s2 + $0x178] sm:$0xf0] }
 0x49d   :  { %5385 = vmatpush.bf16.msrb.mxu1 %v8934_v47  ;;  %v8810_v47 = vor.u32 %v10009_v9, %v8807_v28  ;;  %v8930_v4 = vor.u32 %v10038_v18, %v8927_v15  ;;  %v8813_v15 = vld [vmem:[%s15342_s2 + $0x88] sm:$0xf] }
 0x49e   :  { %5372 = vmatpush.bf16.msrb.mxu0 %v8806_v25  ;;  %v8861_v25 = vld [vmem:[%s15342_s2 + $0xe8] sm:$0xf] }
 0x49f   :  { %5398 = vmatpush.bf16.msrb.mxu2 %v8810_v47  ;;  %v10024_v47 = vld [vmem:[%s15342_s2 + $0xf4] sm:$0xf0] }
 0x4a0   :  { %5460 = vmatpush.bf16.msra.mxu3 %v8994_v10  ;;  %v8743_v10 = vld [vmem:[%s15342_s2 + $0x10] sm:$0xf0]  ;;  %v8862_v33 = vor.u32 %v10024_v47, %v8861_v25  ;;  %v8797_v25 = vld [vmem:[%s15342_s2 + $0x68] sm:$0xf]  ;;  %v10006_v47 = vld [vmem:[%s15342_s2 + $0x6c] sm:$0xf] }
 0x4a1   :  { %5386 = vmatpush.bf16.msrb.mxu1 %v8918_v38  ;;  %v8746_v28 = vor.u32 %v9993_v23, %v8743_v10  ;;  %v8815_v23 = vld [vmem:[%s15342_s2 + $0x98] sm:$0xf0] }
 0x4a2   :  { %5373 = vmatpush.bf16.msrb.mxu0 %v8790_v40 }
 0x4a3   :  { %5399 = vmatpush.bf16.msrb.mxu2 %v8794_v43  ;;  %v8845_v43 = vld [vmem:[%s15342_s2 + $0xc8] sm:$0xf] }
 0x4a4   :  { %5461 = vmatpush.bf16.msra.mxu3 %v8978_v34  ;;  %v10034_v34 = vld [vmem:[%s15342_s2 + $0x14c] sm:$0xf] }
 0x4a5   :  { %5387 = vmatpush.bf16.msrb.mxu1 %v8902_v31  ;;  %v8958_v31 = vor.u32 %v10048_v44, %v8957_v27  ;;  %v8914_v56 = vor.u32 %v10034_v34, %v8911_v41  ;;  %v10020_v27 = vld [vmem:[%s15342_s2 + $0xd4] sm:$0xf0]  ;;  %v8781_v41 = vld [vmem:[%s15342_s2 + $0x48] sm:$0xf] }
 0x4a6   :  { %5374 = vmatpush.bf16.msrb.mxu0 %v8774_v60 }
 0x4a7   :  { %5400 = vmatpush.bf16.msrb.mxu2 %v8778_v62  ;;  %v8895_v62 = vld [vmem:[%s15342_s2 + $0x138] sm:$0xf0] }
 0x4a8   :  { %5462 = vmatpush.bf16.msra.mxu3 %v8962_v52  ;;  %v8898_v63 = vor.u32 %v10030_v58, %v8895_v62  ;;  %v8765_v58 = vld [vmem:[%s15342_s2 + $0x28] sm:$0xf]  ;;  %v9998_v62 = vld [vmem:[%s15342_s2 + $0x2c] sm:$0xf] }
 0x4a9   :  { %5388 = vmatpush.bf16.msrb.mxu1 %v8886_v50  ;;  %v10042_v50 = vld [vmem:[%s15342_s2 + $0x18c] sm:$0xf] }
 0x4aa   :  { %v8946_v7 = vor.u32 %v10042_v50, %v8943_v3  ;;  %5375 = vmatpush.bf16.msrb.mxu0 %v8758_v11  ;;  %v8829_v50 = vld [vmem:[%s15342_s2 + $0xa8] sm:$0xf]  ;;  %v10014_v3 = vld [vmem:[%s15342_s2 + $0xac] sm:$0xf] }
 0x4ab   :  { %5401 = vmatpush.bf16.msrb.mxu2 %v8762_v14  ;;  %v8878_v14 = vor.u32 %v10028_v24, %v8877_v8  ;;  %v9996_v8 = vld [vmem:[%s15342_s2 + $0x14] sm:$0xf0]  ;;  %v9994_v24 = vld [vmem:[%s15342_s2 + $0xc] sm:$0xf] }
 0x4ac   :  { %5463 = vmatpush.bf16.msra.mxu3 %v8946_v7 }
 0x4ad   :  { %5389 = vmatpush.bf16.msrb.mxu1 %v8870_v19  ;;  %v10040_v19 = vld [vmem:[%s15342_s2 + $0x174] sm:$0xf0] }
 0x4ae   :  { %v8926_v20 = vor.u32 %v10040_v19, %v8925_v16  ;;  %v10026_v16 = vld [vmem:[%s15342_s2 + $0x10c] sm:$0xf]  ;;  %v8879_v19 = vld [vmem:[%s15342_s2 + $0x118] sm:$0xf0] }
 0x4af   :  { %5402 = vmatpush.bf16.msrb.mxu2 %v8746_v28  ;;  %v8882_v18 = vor.u32 %v10026_v16, %v8879_v19  ;;  %v10008_v28 = vld [vmem:[%s15342_s2 + $0x74] sm:$0xf0]  ;;  %v8751_v16 = vld [vmem:[%s15342_s2 + $0x18] sm:$0xf0] }
 0x4b0   :  { %5464 = vmatpush.bf16.msra.mxu3 %v8930_v4  ;;  %v8754_v19 = vor.u32 %v9994_v24, %v8751_v16  ;;  %v9052_v24 = vld [vmem:[%s15341_s1 + $0x70] sm:$0xf0] }
 0x4b1   :  { %5434 = vmatpush.bf16.msra.mxu1 %v8990_v22  ;;  %v9995_v22 = vld [vmem:[%s15342_s2 + $0xc] sm:$0xf0] }
 0x4b2   :  { %v8742_v5 = vor.u32 %v9995_v22, %v8741_v53  ;;  %v10010_v22 = vld [vmem:[%s15342_s2 + $0x8c] sm:$0xf] }
 0x4b4   :  { %5376 = vmatpush.bf16.msrb.mxu0 %v8742_v5  ;;  %5465 = vmatpush.bf16.msra.mxu3 %v8914_v56  ;;  %v10004_v56 = vld [vmem:[%s15342_s2 + $0x54] sm:$0xf0] }
 0x4b5   :  { %5435 = vmatpush.bf16.msra.mxu1 %v8974_v35  ;;  %v8866_v35 = vor.u32 %v10022_v30, %v8863_v13  ;;  %v8798_v13 = vor.u32 %v10008_v28, %v8797_v25 }
 0x4b7   :  { %5447 = vmatpush.bf16.msra.mxu2 %v8866_v35 }
 0x4b8   :  { %5421 = vmatpush.bf16.msra.mxu0 %v8862_v33  ;;  %5466 = vmatpush.bf16.msra.mxu3 %v8898_v63  ;;  %v8799_v33 = vld [vmem:[%s15342_s2 + $0x78] sm:$0xf0] }
 0x4b9   :  { %5436 = vmatpush.bf16.msra.mxu1 %v8958_v31  ;;  %v8847_v31 = vld [vmem:[%s15342_s2 + $0xd8] sm:$0xf0] }
 0x4ba   :  { %v8850_v32 = vor.u32 %v10018_v29, %v8847_v31 }
 0x4bc   :  { %5448 = vmatpush.bf16.msra.mxu2 %v8850_v32  ;;  %5467 = vmatpush.bf16.msra.mxu3 %v8882_v18 }
 0x4bd   :  { %5437 = vmatpush.bf16.msra.mxu1 %v8942_v0  ;;  %v10016_v0 = vld [vmem:[%s15342_s2 + $0xb4] sm:$0xf0] }
 0x4be   :  { %v8830_v51 = vor.u32 %v10016_v0, %v8829_v50 }
 0x4c1   :  { %5438 = vmatpush.bf16.msra.mxu1 %v8926_v20 }
 0x4da   :  { %v14390_v26 = vpop.f32.mrf.mxu1 }
 0x4e0   :  { %v14440_v2 = vpop.f32.mrf.mxu3 }
 0x4e2   :  { %v4612_v38 = vpop.f32.mrf.mxu1 }
 0x4e3   :  { %v10036_v38 = vld [vmem:[%s15342_s2 + $0x154] sm:$0xf0] }
 0x4e4   :  { %v8910_v40 = vor.u32 %v10036_v38, %v8909_v36  ;;  %v8802_v38 = vor.u32 %v10006_v47, %v8799_v33  ;;  %v10086_v47 = vld [vmem:[%s15341_s1 + $0xec] sm:$0xf] }
 0x4e6   :  { %5439 = vmatpush.bf16.msra.mxu1 %v8910_v40 }
 0x4e8   :  { %v4638_v17 = vpop.f32.mrf.mxu3 }
 0x4e9   :  { %v8894_v17 = vor.u32 %v10032_v57, %v8893_v48 }
 0x4ea   :  { %v14502_v6 = vpop.f32.mrf.mxu1 }
 0x4eb   :  { %5440 = vmatpush.bf16.msra.mxu1 %v8894_v17 }
 0x4ee   :  { %v4597_v21 = vpop.f32.mrf.mxu0 }
 0x4ef   :  { %v4598_v45 = vadd.f32 %v4597_v21, %v11374_v37  ;;  %v10012_v21 = vld [vmem:[%s15342_s2 + $0x94] sm:$0xf0]  ;;  %5441 = vmatpush.bf16.msra.mxu1 %v8878_v14 }
 0x4f0   :  { %v14544_v9 = vpop.f32.mrf.mxu3  ;;  %v8814_v53 = vor.u32 %v10012_v21, %v8813_v15  ;;  %v8610_v15 = vld [vmem:[%s15343_s0 + $0xd8] sm:$0xff] }
 0x4f1   :  { %v4611_v39 = vadd.f32 %v14390_v26, %v4598_v45  ;;  %v8846_v26 = vor.u32 %v10020_v27, %v8845_v43  ;;  %v8818_v45 = vor.u32 %v10010_v22, %v8815_v23 }
 0x4f2   :  { %v4664_v49 = vpop.f32.mrf.mxu1 }
 0x4f3   :  { %v4692_v60 = vmul.f32 0.5, %v4611_v39  ;;  %5422 = vmatpush.bf16.msra.mxu0 %v8846_v26  ;;  %v8608_v39 = vld [vmem:[%s15343_s0 + $0xc8] sm:$0xff]  ;;  %v8783_v26 = vld [vmem:[%s15342_s2 + $0x58] sm:$0xf0] }
 0x4f4   :  { %v4623_v44 = vpop.f32.mrf.mxu2 }
 0x4f5   :  { %v4624_v52 = vadd.f32 %v4623_v44, %v11404_v54  ;;  %10265 = vtanh.f32 %v4692_v60  ;;  %v8782_v44 = vor.u32 %v10004_v56, %v8781_v41  ;;  %v10000_v60 = vld [vmem:[%s15342_s2 + $0x34] sm:$0xf0]  ;;  %v9100_v41 = vld [vmem:[%s15341_s1 + $0xd0] sm:$0xf0] }
 0x4f6   :  { %v4599_v61 = vpop.f32.mrf.mxu0  ;;  %v8766_v17 = vor.u32 %v10000_v60, %v8765_v58  ;;  %v9092_v58 = vld [vmem:[%s15341_s1 + $0xb8] sm:$0xf0] }
 0x4f7   :  { %v4637_v59 = vadd.f32 %v14440_v2, %v4624_v52  ;;  %v8831_v2 = vld [vmem:[%s15342_s2 + $0xb8] sm:$0xf0]  ;;  %5423 = vmatpush.bf16.msra.mxu0 %v8830_v51 }
 0x4f8   :  { %v4690_v7 = vpop.f32.mrf.mxu3  ;;  %v8834_v12 = vor.u32 %v10014_v3, %v8831_v2  ;;  %v8749_v2 = vld [vmem:[%s15342_s2 + $0x8] sm:$0xf] }
 0x4f9   :  { %v4696_v11 = vmul.f32 0.5, %v4637_v59  ;;  %v8750_v14 = vor.u32 %v9996_v8, %v8749_v2  ;;  %v10069_v8 = vld [vmem:[%s15341_s1 + $0x64] sm:$0xf] }
 0x4fa   :  { %5449 = vmatpush.bf16.msra.mxu2 %v8834_v12  ;;  %v8607_v12 = vld [vmem:[%s15343_s0 + $0xc0] sm:$0xff]  ;;  %v9055_v16 = vor.u32 %v10069_v8, %v9052_v24 }
 0x4fb   :  { %10267 = vtanh.f32 %v4696_v11  ;;  %v4931_v20 = vpop.f32.mrf.mxu1  ;;  %5424 = vmatpush.bf16.msra.mxu0 %v8814_v53  ;;  %v10266_v30 = vpop.eup %10265  ;;  %v9034_v24 = vld [vmem:[%s15341_s1 + $0x40] sm:$0xf] }
 0x4fc   :  { %v4625_v4 = vpop.f32.mrf.mxu2  ;;  %v4694_v43 = vadd.f32 1.0, %v10266_v30  ;;  %v4962_v29 = vadd.f32 %v8608_v39, %v4931_v20  ;;  %v9124_v30 = vld [vmem:[%s15341_s1 + $0xf8] sm:$0xf0] }
 0x4fe   :  { %v4649_v5 = vpop.f32.mrf.mxu0  ;;  %5450 = vmatpush.bf16.msra.mxu2 %v8818_v45  ;;  %v4695_v61 = vmul.f32 0.5, %v4694_v43  ;;  %v4969_v63 = vmul.f32 0.5, %v4962_v29  ;;  %v8609_v45 = vld [vmem:[%s15343_s0 + $0xd0] sm:$0xff]  ;;  %v9108_v43 = vld [vmem:[%s15341_s1 + $0xd8] sm:$0xf0] }
 0x4ff   :  { %v4650_v10 = vadd.f32 %v4649_v5, %v11487_v42  ;;  %5425 = vmatpush.bf16.msra.mxu0 %v8798_v13  ;;  %v10085_v5 = vld [vmem:[%s15341_s1 + $0xe4] sm:$0xf] }
 0x501   :  { %v10268_v35 = vpop.eup %10267  ;;  %v4663_v36 = vadd.f32 %v14502_v6, %v4650_v10  ;;  %v10002_v6 = vld [vmem:[%s15342_s2 + $0x4c] sm:$0xf]  ;;  %v9116_v10 = vld [vmem:[%s15341_s1 + $0xf0] sm:$0xf0] }
 0x502   :  { %v4698_v34 = vadd.f32 1.0, %v10268_v35  ;;  %v4957_v49 = vpop.f32.mrf.mxu3  ;;  %5451 = vmatpush.bf16.msra.mxu2 %v8802_v38  ;;  %v8786_v48 = vor.u32 %v10002_v6, %v8783_v26  ;;  %v9119_v39 = vor.u32 %v10085_v5, %v9116_v10  ;;  %v10082_v6 = vld [vmem:[%s15341_s1 + $0xcc] sm:$0xf]  ;;  %v9044_v5 = vld [vmem:[%s15341_s1 + $0x58] sm:$0xf0] }
 0x503   :  { %10269 = vtanh.f32 %v4663_v36  ;;  %v4933_v40 = vpop.f32.mrf.mxu1  ;;  %5426 = vmatpush.bf16.msra.mxu0 %v8782_v44  ;;  %v4964_v23 = vadd.f32 %v8610_v15, %v4957_v49  ;;  %v9127_v49 = vor.u32 %v10086_v47, %v9124_v30  ;;  %v9122_v15 = vld [vmem:[%s15341_s1 + $0xe8] sm:$0xf]  ;;  %v9098_v47 = vld [vmem:[%s15341_s1 + $0xc0] sm:$0xf]  ;;  %v10083_v30 = vld [vmem:[%s15341_s1 + $0xcc] sm:$0xf0] }
 0x504   :  { %v4675_v27 = vpop.f32.mrf.mxu2  ;;  %v4699_v52 = vmul.f32 0.5, %v4698_v34  ;;  %v10081_v40 = vld [vmem:[%s15341_s1 + $0xc4] sm:$0xf] }
 0x505   :  { %v4676_v31 = vadd.f32 %v4675_v27, %v11516_v1  ;;  %v4974_v34 = vmul.f32 0.5, %v4964_v23  ;;  %v9103_v29 = vor.u32 %v10081_v40, %v9100_v41  ;;  %v9036_v23 = vld [vmem:[%s15341_s1 + $0x50] sm:$0xf0]  ;;  %v9028_v40 = vld [vmem:[%s15341_s1 + $0x38] sm:$0xf0]  ;;  %v9099_v41 = vor.u32 %v10083_v30, %v9098_v47 }
 0x506   :  { %v4651_v32 = vpop.f32.mrf.mxu0  ;;  %5452 = vmatpush.bf16.msra.mxu2 %v8786_v48  ;;  %v4705_v3 = vmul.f32 %v4699_v52, %v14058_v55  ;;  %v10077_v48 = vld [vmem:[%s15341_s1 + $0xa4] sm:$0xf]  ;;  %v9084_v52 = vld [vmem:[%s15341_s1 + $0xb0] sm:$0xf0]  ;;  %v10151_v47 = vld [vmem:[%s15342_s2 + $0x1ec] sm:$0xf0] }
 0x507   :  { %v4689_v57 = vadd.f32 %v14544_v9, %v4676_v31  ;;  %v8767_v9 = vld [vmem:[%s15342_s2 + $0x38] sm:$0xf0]  ;;  %5427 = vmatpush.bf16.msra.mxu0 %v8766_v17  ;;  %v9111_v31 = vor.u32 %v10082_v6, %v9108_v43  ;;  %v9087_v17 = vor.u32 %v10077_v48, %v9084_v52  ;;  %v9082_v6 = vld [vmem:[%s15341_s1 + $0xa0] sm:$0xf]  ;;  %v10079_v43 = vld [vmem:[%s15341_s1 + $0xac] sm:$0xf0] }
 0x508   :  { %v8770_v0 = vor.u32 %v9998_v62, %v8767_v9  ;;  %v9004_v48 = vld [vmem:[%s15341_s1 + $0x10] sm:$0xf0]  ;;  %v10058_v52 = vld [vmem:[%s15341_s1 + $0xc] sm:$0xf]  ;;  %v10149_v30 = vld [vmem:[%s15342_s2 + $0x1e4] sm:$0xf] }
 0x509   :  { %v10270_v59 = vpop.eup %10269  ;;  %v4701_v50 = vmul.f32 0.5, %v4689_v57  ;;  %v10078_v57 = vld [vmem:[%s15341_s1 + $0xac] sm:$0xf] }
 0x50a   :  { %v4706_v7 = vmul.f32 %v10270_v59, %v4695_v61  ;;  %v4959_v51 = vpop.f32.mrf.mxu3  ;;  %5453 = vmatpush.bf16.msra.mxu2 %v8770_v0  ;;  %v9095_v59 = vor.u32 %v10078_v57, %v9092_v58  ;;  %v10074_v0 = vld [vmem:[%s15341_s1 + $0x8c] sm:$0xf]  ;;  %v9083_v57 = vor.u32 %v10079_v43, %v9082_v6  ;;  %v10141_v6 = vld [vmem:[%s15342_s2 + $0x1a4] sm:$0xf] }
 0x50b   :  { %10271 = vtanh.f32 %v4701_v50  ;;  %5428 = vmatpush.bf16.msra.mxu0 %v8750_v14  ;;  %v9068_v50 = vld [vmem:[%s15341_s1 + $0x90] sm:$0xf0]  ;;  %v9060_v14 = vld [vmem:[%s15341_s1 + $0x78] sm:$0xf0] }
 0x50c   :  { %v14683_v11 = vadd.f32 %v4706_v7, %v4705_v3  ;;  %v4677_v55 = vpop.f32.mrf.mxu2  ;;  %10273 = vtanh.f32 %v4969_v63  ;;  %v10073_v63 = vld [vmem:[%s15341_s1 + $0x84] sm:$0xf] }
 0x50d   :  { %v9071_v51 = vor.u32 %v10073_v63, %v9068_v50 }
 0x50e   :  { %10275 = vtanh.f32 %v14683_v11  ;;  %v4918_v18 = vpop.f32.mrf.mxu0  ;;  %5454 = vmatpush.bf16.msra.mxu2 %v8754_v19 }
 0x50f   :  { %v4961_v20 = vadd.f32 %v8607_v12, %v4918_v18  ;;  %v10070_v12 = vld [vmem:[%s15341_s1 + $0x6c] sm:$0xf]  ;;  %v9114_v18 = vld [vmem:[%s15341_s1 + $0xe0] sm:$0xf] }
 0x510   :  { %v9063_v19 = vor.u32 %v10070_v12, %v9060_v14  ;;  %v9042_v12 = vld [vmem:[%s15341_s1 + $0x48] sm:$0xf]  ;;  %v10068_v14 = vld [vmem:[%s15341_s1 + $0x54] sm:$0xf0] }
 0x511   :  { %v10272_v21 = vpop.eup %10271  ;;  %v4965_v4 = vmul.f32 0.5, %v4961_v20  ;;  %v10087_v20 = vld [vmem:[%s15341_s1 + $0xec] sm:$0xf0] }
 0x512   :  { %v4703_v53 = vadd.f32 1.0, %v10272_v21  ;;  %v10274_v22 = vpop.eup %10273 }
 0x513   :  { %10277 = vtanh.f32 %v4965_v4  ;;  %v4971_v38 = vadd.f32 1.0, %v10274_v22  ;;  %v10088_v4 = vld [vmem:[%s15341_s1 + $0xf4] sm:$0xf0] }
 0x514   :  { %v10276_v25 = vpop.eup %10275  ;;  %v4704_v28 = vmul.f32 0.5, %v4703_v53  ;;  %v10065_v53 = vld [vmem:[%s15341_s1 + $0x44] sm:$0xf] }
 0x515   :  { %v4944_v13 = vpop.f32.mrf.mxu2  ;;  %v4972_v26 = vmul.f32 0.5, %v4971_v38  ;;  %v10084_v38 = vld [vmem:[%s15341_s1 + $0xd4] sm:$0xf0] }
 0x516   :  { %v4709_v33 = vmul.f32 %v10276_v25, %v4704_v28  ;;  %v4963_v35 = vadd.f32 %v8609_v45, %v4944_v13  ;;  %v4920_v36 = vpop.f32.mrf.mxu0  ;;  %v10066_v45 = vld [vmem:[%s15341_s1 + $0x4c] sm:$0xf]  ;;  %v9115_v25 = vor.u32 %v10087_v20, %v9114_v18  ;;  %v9123_v28 = vor.u32 %v10088_v4, %v9122_v15  ;;  %v9018_v18 = vld [vmem:[%s15341_s1 + $0x20] sm:$0xf]  ;;  %v10063_v20 = vld [vmem:[%s15341_s1 + $0x2c] sm:$0xf0] }
 0x517   :  { %v4978_v62 = vmul.f32 %v4972_v26, %v14125_v46  ;;  %v9076_v46 = vld [vmem:[%s15341_s1 + $0x98] sm:$0xf0]  ;;  %v9106_v36 = vld [vmem:[%s15341_s1 + $0xc8] sm:$0xf]  ;;  %v9019_v4 = vor.u32 %v10063_v20, %v9018_v18  ;;  %v10115_v18 = vld [vmem:[%s15342_s2 + $0xcc] sm:$0xf0] }
 0x518   :  { %8606 = vst [vmem:[%s15345_s4 + $0x28] sm:$0xff] %v4709_v33  ;;  %v4984_v56 = vpack.c.bf16 %v4709_v33, %v4709_v33  ;;  %10279 = vtanh.f32 %v4963_v35  ;;  %v9079_v2 = vor.u32 %v10074_v0, %v9076_v46  ;;  %v9039_v33 = vor.u32 %v10065_v53, %v9036_v23  ;;  %v9090_v26 = vld [vmem:[%s15341_s1 + $0xa8] sm:$0xf]  ;;  %v9050_v0 = vld [vmem:[%s15341_s1 + $0x60] sm:$0xf] }
 0x519   :  { %v10278_v27 = vpop.eup %10277  ;;  %10281 = vtanh.f32 %v4974_v34  ;;  %v9047_v35 = vor.u32 %v10066_v45, %v9044_v5  ;;  %v10061_v34 = vld [vmem:[%s15341_s1 + $0x24] sm:$0xf]  ;;  %v10071_v46 = vld [vmem:[%s15341_s1 + $0x6c] sm:$0xf0]  ;;  %v9026_v15 = vld [vmem:[%s15341_s1 + $0x28] sm:$0xf] }
 0x51a   :  { %v4967_v44 = vadd.f32 1.0, %v10278_v27  ;;  %5390 = vmatmul.bf16.vlgmr.msrb.gmra.mxu1 %v4984_v56  ;;  %5416 = vmatmul.bf16.vlgmr.msrb.gmra.mxu3 %v4984_v56  ;;  %v10059_v23 = vld [vmem:[%s15341_s1 + $0xc] sm:$0xf0]  ;;  %v9010_v45 = vld [vmem:[%s15341_s1 + $0x8] sm:$0xf] }
 0x51b   :  { %5703 = vmatpush.bf16.msrb.mxu1 %v9119_v39  ;;  %5729 = vmatpush.bf16.msrb.mxu3 %v9127_v49  ;;  %v9020_v39 = vld [vmem:[%s15341_s1 + $0x30] sm:$0xf0]  ;;  %v10062_v49 = vld [vmem:[%s15341_s1 + $0x2c] sm:$0xf]  ;;  %v10060_v5 = vld [vmem:[%s15341_s1 + $0x14] sm:$0xf0] }
 0x51c   :  { %v4968_v32 = vmul.f32 0.5, %v4967_v44  ;;  %v9023_v27 = vor.u32 %v10061_v34, %v9020_v39  ;;  %v9031_v44 = vor.u32 %v10062_v49, %v9028_v40  ;;  %v10145_v34 = vld [vmem:[%s15342_s2 + $0x1c4] sm:$0xf]  ;;  %v9356_v49 = vld [vmem:[%s15342_s2 + $0x1d0] sm:$0xf0] }
 0x51d   :  { %v4946_v60 = vpop.f32.mrf.mxu2  ;;  %v9359_v40 = vor.u32 %v10145_v34, %v9356_v49  ;;  %v10113_v20 = vld [vmem:[%s15342_s2 + $0xc4] sm:$0xf]  ;;  %v9260_v49 = vld [vmem:[%s15342_s2 + $0x110] sm:$0xf0] }
 0x51e   :  { %v10280_v61 = vpop.eup %10279 }
 0x51f   :  { %v4979_v9 = vmul.f32 %v10280_v61, %v4968_v32  ;;  %5704 = vmatpush.bf16.msrb.mxu1 %v9103_v29  ;;  %5730 = vmatpush.bf16.msrb.mxu3 %v9111_v31  ;;  %v10282_v3 = vpop.eup %10281  ;;  %v10080_v29 = vld [vmem:[%s15341_s1 + $0xb4] sm:$0xf0]  ;;  %v10057_v31 = vld [vmem:[%s15341_s1 + $0x4] sm:$0xf]  ;;  %v9012_v32 = vld [vmem:[%s15341_s1 + $0x18] sm:$0xf0] }
 0x520   :  { %v4976_v55 = vadd.f32 1.0, %v10282_v3  ;;  %v9091_v58 = vor.u32 %v10080_v29, %v9090_v26  ;;  %v9007_v60 = vor.u32 %v10057_v31, %v9004_v48  ;;  %v9015_v61 = vor.u32 %v10058_v52, %v9012_v32  ;;  %v9058_v3 = vld [vmem:[%s15341_s1 + $0x68] sm:$0xf]  ;;  %v9322_v26 = vld [vmem:[%s15342_s2 + $0x180] sm:$0xf] }
 0x521   :  { %v14750_v7 = vadd.f32 %v4979_v9, %v4978_v62  ;;  %v10075_v62 = vld [vmem:[%s15341_s1 + $0x8c] sm:$0xf0]  ;;  %v9074_v9 = vld [vmem:[%s15341_s1 + $0x88] sm:$0xf]  ;;  %v10137_v31 = vld [vmem:[%s15342_s2 + $0x184] sm:$0xf] }
 0x522   :  { %v4977_v21 = vmul.f32 0.5, %v4976_v55  ;;  %v10067_v55 = vld [vmem:[%s15341_s1 + $0x4c] sm:$0xf0]  ;;  %v9324_v52 = vld [vmem:[%s15342_s2 + $0x190] sm:$0xf0] }
 0x523   :  { %10283 = vtanh.f32 %v14750_v7  ;;  %5705 = vmatpush.bf16.msrb.mxu1 %v9087_v17  ;;  %5731 = vmatpush.bf16.msrb.mxu3 %v9095_v59  ;;  %v9066_v17 = vld [vmem:[%s15341_s1 + $0x80] sm:$0xf]  ;;  %v10076_v59 = vld [vmem:[%s15341_s1 + $0x94] sm:$0xf0]  ;;  %v10139_v29 = vld [vmem:[%s15342_s2 + $0x18c] sm:$0xf0] }
 0x524   :  { %v9067_v63 = vor.u32 %v10075_v62, %v9066_v17  ;;  %v9075_v50 = vor.u32 %v10076_v59, %v9074_v9  ;;  %v9323_v48 = vor.u32 %v10139_v29, %v9322_v26  ;;  %v10133_v17 = vld [vmem:[%s15342_s2 + $0x164] sm:$0xf]  ;;  %v9308_v62 = vld [vmem:[%s15342_s2 + $0x170] sm:$0xf0]  ;;  %v9242_v59 = vld [vmem:[%s15342_s2 + $0xe0] sm:$0xf] }
 0x525   :  { %v9311_v9 = vor.u32 %v10133_v17, %v9308_v62  ;;  %v9194_v29 = vld [vmem:[%s15342_s2 + $0x80] sm:$0xf]  ;;  %v10146_v17 = vld [vmem:[%s15342_s2 + $0x1cc] sm:$0xf] }
 0x527   :  { %5706 = vmatpush.bf16.msrb.mxu1 %v9071_v51  ;;  %5732 = vmatpush.bf16.msrb.mxu3 %v9079_v2  ;;  %v10072_v51 = vld [vmem:[%s15341_s1 + $0x74] sm:$0xf0]  ;;  %v9051_v2 = vor.u32 %v10071_v46, %v9050_v0 }
 0x528   :  { %v9059_v8 = vor.u32 %v10072_v51, %v9058_v3  ;;  %v9244_v3 = vld [vmem:[%s15342_s2 + $0xf0] sm:$0xf0]  ;;  %v9290_v51 = vld [vmem:[%s15342_s2 + $0x140] sm:$0xf] }
 0x529   :  { %v10284_v22 = vpop.eup %10283 }
 0x52a   :  { %v4982_v10 = vmul.f32 %v10284_v22, %v4977_v21  ;;  %5442 = vmatmul.bf16.vlgmr.msra.gmra.mxu1 %v4984_v56  ;;  %5468 = vmatmul.bf16.vlgmr.msra.gmra.mxu3 %v4984_v56  ;;  %v9107_v56 = vor.u32 %v10084_v38, %v9106_v36  ;;  %v10064_v21 = vld [vmem:[%s15341_s1 + $0x34] sm:$0xf0]  ;;  %v9002_v22 = vld [vmem:[%s15341_s1] sm:$0xf]  ;;  %v10147_v38 = vld [vmem:[%s15342_s2 + $0x1cc] sm:$0xf0] }
 0x52b   :  { %5707 = vmatpush.bf16.msrb.mxu1 %v9055_v16  ;;  %5733 = vmatpush.bf16.msrb.mxu3 %v9063_v19  ;;  %v9035_v16 = vor.u32 %v10067_v55, %v9034_v24  ;;  %v9043_v19 = vor.u32 %v10068_v14, %v9042_v12  ;;  %v9027_v53 = vor.u32 %v10064_v21, %v9026_v15  ;;  %v10129_v55 = vld [vmem:[%s15342_s2 + $0x144] sm:$0xf]  ;;  %v9292_v12 = vld [vmem:[%s15342_s2 + $0x150] sm:$0xf0] }
 0x52c   :  { %v14795_v13 = vpack.c.bf16 %v4982_v10, %v4982_v10  ;;  %v9003_v10 = vor.u32 %v10059_v23, %v9002_v22  ;;  %v9228_v21 = vld [vmem:[%s15342_s2 + $0xd0] sm:$0xf0] }
 0x52d   :  { %v9231_v22 = vor.u32 %v10113_v20, %v9228_v21 }
 0x52e   :  { %5377 = vmatmul.bf16.vlgmr.msrb.gmra.mxu0 %v14795_v13  ;;  %5403 = vmatmul.bf16.vlgmr.msrb.gmra.mxu2 %v14795_v13 }
 0x52f   :  { %5690 = vmatpush.bf16.msrb.mxu0 %v9115_v25  ;;  %5716 = vmatpush.bf16.msrb.mxu2 %v9123_v28  ;;  %v9011_v25 = vor.u32 %v10060_v5, %v9010_v45  ;;  %v9370_v28 = vld [vmem:[%s15342_s2 + $0x1e0] sm:$0xf]  ;;  %v10125_v45 = vld [vmem:[%s15342_s2 + $0x124] sm:$0xf]  ;;  %v9276_v5 = vld [vmem:[%s15342_s2 + $0x130] sm:$0xf0] }
 0x530   :  { %5708 = vmatpush.bf16.msrb.mxu1 %v9039_v33  ;;  %5734 = vmatpush.bf16.msrb.mxu3 %v9047_v35  ;;  %v9371_v33 = vor.u32 %v10151_v47, %v9370_v28  ;;  %v9372_v35 = vld [vmem:[%s15342_s2 + $0x1f0] sm:$0xf0]  ;;  %v10111_v28 = vld [vmem:[%s15342_s2 + $0xac] sm:$0xf0]  ;;  %v10109_v47 = vld [vmem:[%s15342_s2 + $0xa4] sm:$0xf] }
 0x531   :  { %v9375_v36 = vor.u32 %v10149_v30, %v9372_v35  ;;  %v9212_v35 = vld [vmem:[%s15342_s2 + $0xb0] sm:$0xf0] }
 0x533   :  { %5691 = vmatpush.bf16.msrb.mxu0 %v9099_v41  ;;  %5717 = vmatpush.bf16.msrb.mxu2 %v9107_v56  ;;  %v9338_v41 = vld [vmem:[%s15342_s2 + $0x1a0] sm:$0xf]  ;;  %v10143_v56 = vld [vmem:[%s15342_s2 + $0x1ac] sm:$0xf0] }
 0x534   :  { %5709 = vmatpush.bf16.msrb.mxu1 %v9023_v27  ;;  %5735 = vmatpush.bf16.msrb.mxu3 %v9031_v44  ;;  %v9339_v43 = vor.u32 %v10143_v56, %v9338_v41  ;;  %v9340_v27 = vld [vmem:[%s15342_s2 + $0x1b0] sm:$0xf0] }
 0x535   :  { %v9343_v44 = vor.u32 %v10141_v6, %v9340_v27  ;;  %v10152_v6 = vld [vmem:[%s15342_s2 + $0x1f4] sm:$0xf0]  ;;  %v9380_v27 = vld [vmem:[%s15342_s2 + $0x1f8] sm:$0xf0] }
 0x537   :  { %5692 = vmatpush.bf16.msrb.mxu0 %v9083_v57  ;;  %5718 = vmatpush.bf16.msrb.mxu2 %v9091_v58  ;;  %v9327_v57 = vor.u32 %v10137_v31, %v9324_v52  ;;  %v9306_v58 = vld [vmem:[%s15342_s2 + $0x160] sm:$0xf]  ;;  %v10107_v31 = vld [vmem:[%s15342_s2 + $0x8c] sm:$0xf0] }
 0x538   :  { %5710 = vmatpush.bf16.msrb.mxu1 %v9007_v60  ;;  %5736 = vmatpush.bf16.msrb.mxu3 %v9015_v61  ;;  %v10135_v60 = vld [vmem:[%s15342_s2 + $0x16c] sm:$0xf0]  ;;  %v9195_v52 = vor.u32 %v10107_v31, %v9194_v29  ;;  %v10134_v29 = vld [vmem:[%s15342_s2 + $0x16c] sm:$0xf]  ;;  %v9316_v31 = vld [vmem:[%s15342_s2 + $0x178] sm:$0xf0] }
 0x539   :  { %v9307_v61 = vor.u32 %v10135_v60, %v9306_v58  ;;  %v9362_v60 = vld [vmem:[%s15342_s2 + $0x1c8] sm:$0xf] }
 0x53b   :  { %5693 = vmatpush.bf16.msrb.mxu0 %v9067_v63  ;;  %5711 = vmatmul.bf16.vlgmr.msrb.gmra.mxu1 %v14795_v13  ;;  %v10119_v63 = vld [vmem:[%s15342_s2 + $0xec] sm:$0xf0] }
 0x53c   :  { %5719 = vmatpush.bf16.msrb.mxu2 %v9075_v50  ;;  %5737 = vmatmul.bf16.vlgmr.msrb.gmra.mxu3 %v14795_v13  ;;  %v10117_v50 = vld [vmem:[%s15342_s2 + $0xe4] sm:$0xf]  ;;  %v9243_v46 = vor.u32 %v10119_v63, %v9242_v59  ;;  %v9364_v59 = vld [vmem:[%s15342_s2 + $0x1d8] sm:$0xf0] }
 0x53d   :  { %6163 = vmatpush.bf16.msra.mxu1 %v9371_v33  ;;  %6189 = vmatpush.bf16.msra.mxu3 %v9375_v36  ;;  %v9258_v36 = vld [vmem:[%s15342_s2 + $0x100] sm:$0xf] }
 0x53e   :  { %5429 = vmatmul.bf16.vlgmr.msra.gmra.mxu0 %v14795_v13  ;;  %5455 = vmatmul.bf16.vlgmr.msra.gmra.mxu2 %v14795_v13 }
 0x53f   :  { %5694 = vmatpush.bf16.msrb.mxu0 %v9051_v2  ;;  %v10131_v2 = vld [vmem:[%s15342_s2 + $0x14c] sm:$0xf0] }
 0x540   :  { %5720 = vmatpush.bf16.msrb.mxu2 %v9059_v8  ;;  %v9247_v8 = vor.u32 %v10117_v50, %v9244_v3  ;;  %v9291_v24 = vor.u32 %v10131_v2, %v9290_v51  ;;  %v9367_v50 = vor.u32 %v10146_v17, %v9364_v59  ;;  %v10103_v3 = vld [vmem:[%s15342_s2 + $0x6c] sm:$0xf0] }
 0x541   :  { %6190 = vmatpush.bf16.msra.mxu3 %v9359_v40  ;;  %v9378_v40 = vld [vmem:[%s15342_s2 + $0x1e8] sm:$0xf] }
 0x543   :  { %5695 = vmatpush.bf16.msrb.mxu0 %v9035_v16  ;;  %v9295_v16 = vor.u32 %v10129_v55, %v9292_v12  ;;  %v9346_v12 = vld [vmem:[%s15342_s2 + $0x1a8] sm:$0xf] }
 0x544   :  { %5721 = vmatpush.bf16.msrb.mxu2 %v9043_v19  ;;  %v9226_v19 = vld [vmem:[%s15342_s2 + $0xc0] sm:$0xf] }
 0x545   :  { %6191 = vmatpush.bf16.msra.mxu3 %v9343_v44  ;;  %v9227_v15 = vor.u32 %v10115_v18, %v9226_v19  ;;  %v9379_v44 = vor.u32 %v10152_v6, %v9378_v40 }
 0x547   :  { %5696 = vmatpush.bf16.msrb.mxu0 %v9019_v4  ;;  %v9274_v4 = vld [vmem:[%s15342_s2 + $0x120] sm:$0xf] }
 0x548   :  { %5722 = vmatpush.bf16.msrb.mxu2 %v9027_v53  ;;  %v10127_v53 = vld [vmem:[%s15342_s2 + $0x12c] sm:$0xf0] }
 0x549   :  { %6192 = vmatpush.bf16.msra.mxu3 %v9327_v57  ;;  %v9275_v23 = vor.u32 %v10127_v53, %v9274_v4  ;;  %v9196_v57 = vld [vmem:[%s15342_s2 + $0x90] sm:$0xf0]  ;;  %v9162_v4 = vld [vmem:[%s15342_s2 + $0x40] sm:$0xf]  ;;  %v10099_v53 = vld [vmem:[%s15342_s2 + $0x4c] sm:$0xf0] }
 0x54b   :  { %5697 = vmatpush.bf16.msrb.mxu0 %v9003_v10  ;;  %v9279_v10 = vor.u32 %v10125_v45, %v9276_v5  ;;  %v9164_v45 = vld [vmem:[%s15342_s2 + $0x50] sm:$0xf0] }
 0x54c   :  { %5723 = vmatpush.bf16.msrb.mxu2 %v9011_v25  ;;  %v9210_v25 = vld [vmem:[%s15342_s2 + $0xa0] sm:$0xf] }
 0x54d   :  { %6193 = vmatpush.bf16.msra.mxu3 %v9311_v9  ;;  %v9211_v33 = vor.u32 %v10111_v28, %v9210_v25  ;;  %v9330_v25 = vld [vmem:[%s15342_s2 + $0x188] sm:$0xf]  ;;  %v10140_v28 = vld [vmem:[%s15342_s2 + $0x194] sm:$0xf0] }
 0x54e   :  { %5698 = vmatmul.bf16.vlgmr.msrb.gmra.mxu0 %v14795_v13 }
 0x54f   :  { %5724 = vmatmul.bf16.vlgmr.msrb.gmra.mxu2 %v14795_v13  ;;  %v9354_v13 = vld [vmem:[%s15342_s2 + $0x1c0] sm:$0xf]  ;;  %6150 = vmatpush.bf16.msra.mxu0 %v9243_v46 }
 0x550   :  { %v9355_v39 = vor.u32 %v10147_v38, %v9354_v13  ;;  %6176 = vmatpush.bf16.msra.mxu2 %v9247_v8  ;;  %v10123_v13 = vld [vmem:[%s15342_s2 + $0x10c] sm:$0xf0]  ;;  %v9215_v38 = vor.u32 %v10109_v47, %v9212_v35  ;;  %v9178_v46 = vld [vmem:[%s15342_s2 + $0x60] sm:$0xf]  ;;  %v10101_v8 = vld [vmem:[%s15342_s2 + $0x64] sm:$0xf] }
 0x551   :  { %6194 = vmatpush.bf16.msra.mxu3 %v9295_v16  ;;  %v9259_v34 = vor.u32 %v10123_v13, %v9258_v36  ;;  %v9179_v2 = vor.u32 %v10103_v3, %v9178_v46  ;;  %v10142_v16 = vld [vmem:[%s15342_s2 + $0x1ac] sm:$0xf]  ;;  %v9332_v36 = vld [vmem:[%s15342_s2 + $0x198] sm:$0xf0] }
 0x552   :  { %6164 = vmatpush.bf16.msra.mxu1 %v9355_v39  ;;  %v10121_v39 = vld [vmem:[%s15342_s2 + $0x104] sm:$0xf]  ;;  %v10138_v35 = vld [vmem:[%s15342_s2 + $0x18c] sm:$0xf]  ;;  %v9252_v46 = vld [vmem:[%s15342_s2 + $0xf8] sm:$0xf0] }
 0x553   :  { %6151 = vmatpush.bf16.msra.mxu0 %v9227_v15  ;;  %v9263_v56 = vor.u32 %v10121_v39, %v9260_v49  ;;  %v9348_v15 = vld [vmem:[%s15342_s2 + $0x1b8] sm:$0xf0]  ;;  %v10095_v39 = vld [vmem:[%s15342_s2 + $0x2c] sm:$0xf0]  ;;  %v10093_v49 = vld [vmem:[%s15342_s2 + $0x24] sm:$0xf] }
 0x554   :  { %6177 = vmatpush.bf16.msra.mxu2 %v9231_v22  ;;  %v9351_v21 = vor.u32 %v10142_v16, %v9348_v15  ;;  %v10130_v16 = vld [vmem:[%s15342_s2 + $0x14c] sm:$0xf]  ;;  %v9234_v15 = vld [vmem:[%s15342_s2 + $0xc8] sm:$0xf] }
 0x555   :  { %6195 = vmatpush.bf16.msra.mxu3 %v9279_v10 }
 0x556   :  { %6165 = vmatpush.bf16.msra.mxu1 %v9339_v43  ;;  %v10150_v43 = vld [vmem:[%s15342_s2 + $0x1ec] sm:$0xf] }
 0x557   :  { %6152 = vmatpush.bf16.msra.mxu0 %v9211_v33  ;;  %v9383_v26 = vor.u32 %v10150_v43, %v9380_v27  ;;  %v9331_v33 = vor.u32 %v10140_v28, %v9330_v25  ;;  %v9314_v27 = vld [vmem:[%s15342_s2 + $0x168] sm:$0xf] }
 0x558   :  { %6178 = vmatpush.bf16.msra.mxu2 %v9215_v38  ;;  %v9335_v38 = vor.u32 %v10138_v35, %v9332_v36  ;;  %v8997_v25 = vld [vmem:[%s15343_s0 + $0xe8] sm:$0xff] }
 0x559   :  { %6196 = vmatpush.bf16.msra.mxu3 %v9263_v56 }
 0x55a   :  { %6166 = vmatpush.bf16.msra.mxu1 %v9323_v48  ;;  %v10105_v48 = vld [vmem:[%s15342_s2 + $0x84] sm:$0xf] }
 0x55b   :  { %v9199_v58 = vor.u32 %v10105_v48, %v9196_v57  ;;  %6153 = vmatpush.bf16.msra.mxu0 %v9195_v52  ;;  %v9319_v52 = vor.u32 %v10134_v29, %v9316_v31  ;;  %v9130_v57 = vld [vmem:[%s15342_s2] sm:$0xf]  ;;  %v10122_v29 = vld [vmem:[%s15342_s2 + $0x10c] sm:$0xf] }
 0x55d   :  { %6241 = vmatpush.bf16.msrb.mxu3 %v9383_v26  ;;  %6179 = vmatpush.bf16.msra.mxu2 %v9199_v58  ;;  %v10091_v58 = vld [vmem:[%s15342_s2 + $0xc] sm:$0xf0] }
 0x55e   :  { %6167 = vmatpush.bf16.msra.mxu1 %v9307_v61  ;;  %v10148_v61 = vld [vmem:[%s15342_s2 + $0x1d4] sm:$0xf0]  ;;  %v9131_v17 = vor.u32 %v10091_v58, %v9130_v57  ;;  %v9268_v57 = vld [vmem:[%s15342_s2 + $0x118] sm:$0xf0] }
 0x55f   :  { %v9363_v9 = vor.u32 %v10148_v61, %v9362_v60  ;;  %6154 = vmatpush.bf16.msra.mxu0 %v9179_v2  ;;  %v10089_v60 = vld [vmem:[%s15342_s2 + $0x4] sm:$0xf]  ;;  %v10108_v58 = vld [vmem:[%s15342_s2 + $0x94] sm:$0xf0] }
 0x561   :  { %6242 = vmatpush.bf16.msrb.mxu3 %v9367_v50  ;;  %v10118_v50 = vld [vmem:[%s15342_s2 + $0xec] sm:$0xf] }
 0x562   :  { %6168 = vmatpush.bf16.msra.mxu1 %v9291_v24  ;;  %v9180_v24 = vld [vmem:[%s15342_s2 + $0x70] sm:$0xf0] }
 0x563   :  { %v9183_v55 = vor.u32 %v10101_v8, %v9180_v24  ;;  %v9255_v8 = vor.u32 %v10118_v50, %v9252_v46  ;;  %v9298_v24 = vld [vmem:[%s15342_s2 + $0x148] sm:$0xf] }
 0x565   :  { %6180 = vmatpush.bf16.msra.mxu2 %v9183_v55  ;;  %6243 = vmatpush.bf16.msrb.mxu3 %v9351_v21  ;;  %v10132_v55 = vld [vmem:[%s15342_s2 + $0x154] sm:$0xf0] }
 0x566   :  { %6169 = vmatpush.bf16.msra.mxu1 %v9275_v23  ;;  %v9163_v23 = vor.u32 %v10099_v53, %v9162_v4  ;;  %v10116_v21 = vld [vmem:[%s15342_s2 + $0xd4] sm:$0xf0]  ;;  %v10114_v4 = vld [vmem:[%s15342_s2 + $0xcc] sm:$0xf] }
 0x568   :  { %6155 = vmatpush.bf16.msra.mxu0 %v9163_v23  ;;  %v9235_v23 = vor.u32 %v10116_v21, %v9234_v15  ;;  %v9170_v21 = vld [vmem:[%s15342_s2 + $0x48] sm:$0xf] }
 0x569   :  { %6244 = vmatpush.bf16.msrb.mxu3 %v9335_v38  ;;  %v10112_v38 = vld [vmem:[%s15342_s2 + $0xb4] sm:$0xf0] }
 0x56a   :  { %6170 = vmatpush.bf16.msra.mxu1 %v9259_v34  ;;  %v9146_v34 = vld [vmem:[%s15342_s2 + $0x20] sm:$0xf] }
 0x56b   :  { %v9147_v56 = vor.u32 %v10095_v39, %v9146_v34  ;;  %v10110_v34 = vld [vmem:[%s15342_s2 + $0xac] sm:$0xf] }
 0x56d   :  { %6156 = vmatpush.bf16.msra.mxu0 %v9147_v56  ;;  %6245 = vmatpush.bf16.msrb.mxu3 %v9319_v52  ;;  %v9220_v56 = vld [vmem:[%s15342_s2 + $0xb8] sm:$0xf0] }
 0x56e   :  { %6215 = vmatpush.bf16.msrb.mxu1 %v9379_v44  ;;  %v10136_v44 = vld [vmem:[%s15342_s2 + $0x174] sm:$0xf0] }
 0x56f   :  { %v9315_v26 = vor.u32 %v10136_v44, %v9314_v27  ;;  %v9223_v44 = vor.u32 %v10110_v34, %v9220_v56  ;;  %v9138_v56 = vld [vmem:[%s15342_s2 + $0x8] sm:$0xf] }
 0x571   :  { %6157 = vmatpush.bf16.msra.mxu0 %v9131_v17 }
 0x572   :  { %6216 = vmatpush.bf16.msrb.mxu1 %v9363_v9  ;;  %v9250_v9 = vld [vmem:[%s15342_s2 + $0xe8] sm:$0xf] }
 0x597   :  { %v14955_v32 = vpop.f32.mrf.mxu1 }
 0x59d   :  { %v14978_v0 = vpop.f32.mrf.mxu3 }
 0x59f   :  { %v5393_v14 = vpop.f32.mrf.mxu1 }
 0x5a0   :  { %v10144_v14 = vld [vmem:[%s15342_s2 + $0x1b4] sm:$0xf0] }
 0x5a1   :  { %v9347_v20 = vor.u32 %v10144_v14, %v9346_v12  ;;  %v9299_v14 = vor.u32 %v10132_v55, %v9298_v24  ;;  %v8996_v24 = vld [vmem:[%s15343_s0 + $0xe0] sm:$0xff] }
 0x5a3   :  { %6217 = vmatpush.bf16.msrb.mxu1 %v9347_v20 }
 0x5a5   :  { %v5419_v30 = vpop.f32.mrf.mxu3 }
 0x5a7   :  { %v15046_v41 = vpop.f32.mrf.mxu1  ;;  %6218 = vmatpush.bf16.msrb.mxu1 %v9331_v33  ;;  %v9284_v33 = vld [vmem:[%s15342_s2 + $0x138] sm:$0xf0] }
 0x5ab   :  { %v5378_v62 = vpop.f32.mrf.mxu0  ;;  %6219 = vmatpush.bf16.msrb.mxu1 %v9315_v26  ;;  %v10124_v26 = vld [vmem:[%s15342_s2 + $0x114] sm:$0xf0] }
 0x5ac   :  { %v5379_v63 = vadd.f32 %v5378_v62, %v11374_v37  ;;  %v9132_v62 = vld [vmem:[%s15342_s2 + $0x10] sm:$0xf0] }
 0x5ad   :  { %v15088_v51 = vpop.f32.mrf.mxu3  ;;  %v9135_v59 = vor.u32 %v10089_v60, %v9132_v62 }
 0x5ae   :  { %v5392_v19 = vadd.f32 %v14955_v32, %v5379_v63  ;;  %v10097_v32 = vld [vmem:[%s15342_s2 + $0x44] sm:$0xf]  ;;  %v10120_v63 = vld [vmem:[%s15342_s2 + $0xf4] sm:$0xf0] }
 0x5af   :  { %v5445_v18 = vpop.f32.mrf.mxu1  ;;  %v9167_v10 = vor.u32 %v10097_v32, %v9164_v45  ;;  %v9251_v2 = vor.u32 %v10120_v63, %v9250_v9  ;;  %6220 = vmatpush.bf16.msrb.mxu1 %v9299_v14  ;;  %v9236_v32 = vld [vmem:[%s15342_s2 + $0xd8] sm:$0xf0]  ;;  %v9282_v45 = vld [vmem:[%s15342_s2 + $0x128] sm:$0xf]  ;;  %v10106_v9 = vld [vmem:[%s15342_s2 + $0x8c] sm:$0xf] }
 0x5b0   :  { %v5473_v47 = vmul.f32 0.5, %v5392_v19  ;;  %v9300_v19 = vld [vmem:[%s15342_s2 + $0x158] sm:$0xf0]  ;;  %v9239_v28 = vor.u32 %v10114_v4, %v9236_v32  ;;  %v9186_v14 = vld [vmem:[%s15342_s2 + $0x68] sm:$0xf] }
 0x5b1   :  { %v5404_v22 = vpop.f32.mrf.mxu2  ;;  %6181 = vmatpush.bf16.msra.mxu2 %v9167_v10  ;;  %6202 = vmatpush.bf16.msrb.mxu0 %v9251_v2  ;;  %v9303_v20 = vor.u32 %v10130_v16, %v9300_v19  ;;  %v10102_v16 = vld [vmem:[%s15342_s2 + $0x6c] sm:$0xf]  ;;  %v10100_v4 = vld [vmem:[%s15342_s2 + $0x54] sm:$0xf0] }
 0x5b2   :  { %v5405_v5 = vadd.f32 %v5404_v22, %v11404_v54  ;;  %10285 = vtanh.f32 %v5473_v47  ;;  %v8999_v32 = vld [vmem:[%s15343_s0 + $0xf8] sm:$0xff] }
 0x5b3   :  { %v5380_v30 = vpop.f32.mrf.mxu0  ;;  %6246 = vmatpush.bf16.msrb.mxu3 %v9303_v20 }
 0x5b4   :  { %v5418_v13 = vadd.f32 %v14978_v0, %v5405_v5  ;;  %v9148_v0 = vld [vmem:[%s15342_s2 + $0x30] sm:$0xf0]  ;;  %v10128_v5 = vld [vmem:[%s15342_s2 + $0x134] sm:$0xf0]  ;;  %v10126_v30 = vld [vmem:[%s15342_s2 + $0x12c] sm:$0xf] }
 0x5b5   :  { %v5471_v40 = vpop.f32.mrf.mxu3  ;;  %v9151_v43 = vor.u32 %v10093_v49, %v9148_v0  ;;  %v9283_v47 = vor.u32 %v10128_v5, %v9282_v45  ;;  %v9287_v36 = vor.u32 %v10126_v30, %v9284_v33  ;;  %6203 = vmatpush.bf16.msrb.mxu0 %v9235_v23  ;;  %v9266_v0 = vld [vmem:[%s15342_s2 + $0x108] sm:$0xf]  ;;  %v9172_v23 = vld [vmem:[%s15342_s2 + $0x58] sm:$0xf0]  ;;  %v9171_v45 = vor.u32 %v10100_v4, %v9170_v21  ;;  %v10094_v30 = vld [vmem:[%s15342_s2 + $0x2c] sm:$0xf] }
 0x5b6   :  { %v5477_v6 = vmul.f32 0.5, %v5418_v13  ;;  %v9218_v13 = vld [vmem:[%s15342_s2 + $0xa8] sm:$0xf]  ;;  %v9267_v52 = vor.u32 %v10124_v26, %v9266_v0  ;;  %v9156_v33 = vld [vmem:[%s15342_s2 + $0x38] sm:$0xf0] }
 0x5b7   :  { %6182 = vmatpush.bf16.msra.mxu2 %v9151_v43  ;;  %v9219_v40 = vor.u32 %v10112_v38, %v9218_v13  ;;  %6221 = vmatpush.bf16.msrb.mxu1 %v9283_v47  ;;  %v8998_v38 = vld [vmem:[%s15343_s0 + $0xf0] sm:$0xff]  ;;  %v10092_v0 = vld [vmem:[%s15342_s2 + $0x14] sm:$0xf0] }
 0x5b8   :  { %10287 = vtanh.f32 %v5477_v6  ;;  %v15159_v48 = vpop.f32.mrf.mxu1  ;;  %v10286_v18 = vpop.eup %10285  ;;  %6247 = vmatpush.bf16.msrb.mxu3 %v9287_v36 }
 0x5b9   :  { %v5406_v61 = vpop.f32.mrf.mxu2  ;;  %v5475_v39 = vadd.f32 1.0, %v10286_v18  ;;  %v5743_v43 = vadd.f32 %v8997_v25, %v15159_v48  ;;  %v9202_v48 = vld [vmem:[%s15342_s2 + $0x88] sm:$0xf]  ;;  %6204 = vmatpush.bf16.msrb.mxu0 %v9219_v40  ;;  %v9188_v18 = vld [vmem:[%s15342_s2 + $0x78] sm:$0xf0]  ;;  %v9159_v40 = vor.u32 %v10094_v30, %v9156_v33 }
 0x5ba   :  { %v9271_v61 = vor.u32 %v10122_v29, %v9268_v57  ;;  %v9203_v62 = vor.u32 %v10108_v58, %v9202_v48  ;;  %v9191_v15 = vor.u32 %v10102_v16, %v9188_v18  ;;  %v10096_v25 = vld [vmem:[%s15342_s2 + $0x34] sm:$0xf0] }
 0x5bb   :  { %v5430_v3 = vpop.f32.mrf.mxu0  ;;  %6183 = vmatpush.bf16.msra.mxu2 %v9135_v59  ;;  %v5476_v17 = vmul.f32 0.5, %v5475_v39  ;;  %v9204_v59 = vld [vmem:[%s15342_s2 + $0x98] sm:$0xf0]  ;;  %v5750_v50 = vmul.f32 0.5, %v5743_v43  ;;  %6222 = vmatpush.bf16.msrb.mxu1 %v9267_v52  ;;  %v9139_v52 = vor.u32 %v10092_v0, %v9138_v56 }
 0x5bc   :  { %v5431_v12 = vadd.f32 %v5430_v3, %v11487_v42  ;;  %v9207_v3 = vor.u32 %v10106_v9, %v9204_v59  ;;  %6248 = vmatpush.bf16.msrb.mxu3 %v9271_v61  ;;  %v9140_v43 = vld [vmem:[%s15342_s2 + $0x18] sm:$0xf0] }
 0x5bd   :  { %6205 = vmatpush.bf16.msrb.mxu0 %v9203_v62 }
 0x5be   :  { %v10288_v53 = vpop.eup %10287  ;;  %v5444_v22 = vadd.f32 %v15046_v41, %v5431_v12 }
 0x5bf   :  { %6228 = vmatpush.bf16.msrb.mxu2 %v9255_v8  ;;  %v5479_v10 = vadd.f32 1.0, %v10288_v53  ;;  %v15220_v41 = vpop.f32.mrf.mxu3 }
 0x5c0   :  { %10289 = vtanh.f32 %v5444_v22  ;;  %v5714_v35 = vpop.f32.mrf.mxu1  ;;  %v10098_v22 = vld [vmem:[%s15342_s2 + $0x4c] sm:$0xf]  ;;  %v5745_v13 = vadd.f32 %v8999_v32, %v15220_v41 }
 0x5c1   :  { %v5456_v49 = vpop.f32.mrf.mxu2  ;;  %v5480_v6 = vmul.f32 0.5, %v5479_v10  ;;  %v9175_v5 = vor.u32 %v10098_v22, %v9172_v23  ;;  %v9154_v10 = vld [vmem:[%s15342_s2 + $0x28] sm:$0xf] }
 0x5c2   :  { %v5457_v27 = vadd.f32 %v5456_v49, %v11516_v1  ;;  %v9155_v49 = vor.u32 %v10096_v25, %v9154_v10 }
 0x5c3   :  { %6229 = vmatpush.bf16.msrb.mxu2 %v9239_v28  ;;  %v5432_v31 = vpop.f32.mrf.mxu0 }
 0x5c4   :  { %v5470_v60 = vadd.f32 %v15088_v51, %v5457_v27  ;;  %v5486_v51 = vmul.f32 %v5480_v6, %v14683_v11  ;;  %v10104_v11 = vld [vmem:[%s15342_s2 + $0x74] sm:$0xf0]  ;;  %v10090_v6 = vld [vmem:[%s15342_s2 + $0xc] sm:$0xf]  ;;  %v5755_v31 = vmul.f32 0.5, %v5745_v13 }
 0x5c5   :  { %v9187_v19 = vor.u32 %v10104_v11, %v9186_v14  ;;  %v9143_v48 = vor.u32 %v10090_v6, %v9140_v43 }
 0x5c6   :  { %v10290_v63 = vpop.eup %10289  ;;  %v5482_v46 = vmul.f32 0.5, %v5470_v60 }
 0x5c7   :  { %6230 = vmatpush.bf16.msrb.mxu2 %v9223_v44  ;;  %v5487_v2 = vmul.f32 %v10290_v63, %v5476_v17  ;;  %v5740_v8 = vpop.f32.mrf.mxu3  ;;  %6206 = vmatpush.bf16.msrb.mxu0 %v9187_v19 }
 0x5c8   :  { %10291 = vtanh.f32 %v5482_v46 }
 0x5c9   :  { %v15271_v55 = vadd.f32 %v5487_v2, %v5486_v51  ;;  %v5458_v12 = vpop.f32.mrf.mxu2  ;;  %10293 = vtanh.f32 %v5750_v50 }
 0x5cb   :  { %6231 = vmatpush.bf16.msrb.mxu2 %v9207_v3  ;;  %10295 = vtanh.f32 %v15271_v55  ;;  %v5699_v20 = vpop.f32.mrf.mxu0  ;;  %6207 = vmatpush.bf16.msrb.mxu0 %v9171_v45 }
 0x5cc   :  { %v5742_v53 = vadd.f32 %v8996_v24, %v5699_v20 }
 0x5ce   :  { %v10292_v28 = vpop.eup %10291  ;;  %v5746_v47 = vmul.f32 0.5, %v5742_v53 }
 0x5cf   :  { %6232 = vmatpush.bf16.msrb.mxu2 %v9191_v15  ;;  %v5484_v35 = vadd.f32 1.0, %v10292_v28  ;;  %v10294_v36 = vpop.eup %10293  ;;  %6208 = vmatpush.bf16.msrb.mxu0 %v9155_v49 }
 0x5d0   :  { %10297 = vtanh.f32 %v5746_v47  ;;  %v5752_v29 = vadd.f32 1.0, %v10294_v36 }
 0x5d1   :  { %v10296_v34 = vpop.eup %10295  ;;  %v5485_v39 = vmul.f32 0.5, %v5484_v35 }
 0x5d2   :  { %v5725_v41 = vpop.f32.mrf.mxu2  ;;  %v5753_v61 = vmul.f32 0.5, %v5752_v29 }
 0x5d3   :  { %6233 = vmatpush.bf16.msrb.mxu2 %v9175_v5  ;;  %v5490_v27 = vmul.f32 %v10296_v34, %v5485_v39  ;;  %v5744_v44 = vadd.f32 %v8998_v38, %v5725_v41  ;;  %v5701_v26 = vpop.f32.mrf.mxu0  ;;  %6209 = vmatpush.bf16.msrb.mxu0 %v9139_v52 }
 0x5d4   :  { %v5759_v59 = vmul.f32 %v5753_v61, %v14750_v7 }
 0x5d5   :  { %8995 = vst [vmem:[%s15345_s4 + $0x30] sm:$0xff] %v5490_v27  ;;  %v5765_v57 = vpack.c.bf16 %v5490_v27, %v5490_v27  ;;  %10299 = vtanh.f32 %v5744_v44 }
 0x5d6   :  { %v10298_v58 = vpop.eup %10297  ;;  %10301 = vtanh.f32 %v5755_v31 }
 0x5d7   :  { %6234 = vmatpush.bf16.msrb.mxu2 %v9159_v40  ;;  %v5748_v60 = vadd.f32 1.0, %v10298_v58  ;;  %6171 = vmatmul.bf16.vlgmr.msra.gmra.mxu1 %v5765_v57 }
 0x5d8   :  { %6197 = vmatmul.bf16.vlgmr.msra.gmra.mxu3 %v5765_v57 }
 0x5d9   :  { %v5749_v17 = vmul.f32 0.5, %v5748_v60 }
 0x5da   :  { %v5727_v62 = vpop.f32.mrf.mxu2 }
 0x5db   :  { %6235 = vmatpush.bf16.msrb.mxu2 %v9143_v48  ;;  %v10300_v9 = vpop.eup %10299 }
 0x5dc   :  { %v5760_v63 = vmul.f32 %v10300_v9, %v5749_v17  ;;  %v10302_v50 = vpop.eup %10301 }
 0x5dd   :  { %v5757_v3 = vadd.f32 1.0, %v10302_v50 }
 0x5de   :  { %v5761_v46 = vadd.f32 %v5760_v63, %v5759_v59 }
 0x5df   :  { %v5758_v51 = vmul.f32 0.5, %v5757_v3 }
 0x5e0   :  { %10303 = vtanh.f32 %v5761_v46 }
 0x5e6   :  { %v10304_v2 = vpop.eup %10303 }
 0x5e7   :  { %6223 = vmatmul.bf16.vlgmr.msrb.gmra.mxu1 %v5765_v57  ;;  %v5763_v8 = vmul.f32 %v10304_v2, %v5758_v51 }
 0x5e8   :  { %6249 = vmatmul.bf16.vlgmr.msrb.gmra.mxu3 %v5765_v57 }
 0x5e9   :  { %v5764_v24 = vpack.c.bf16 %v5763_v8, %v5763_v8 }
 0x5eb   :  { %6158 = vmatmul.bf16.vlgmr.msra.gmra.mxu0 %v5764_v24  ;;  %6184 = vmatmul.bf16.vlgmr.msra.gmra.mxu2 %v5764_v24 }
 0x5fb   :  { %6210 = vmatmul.bf16.vlgmr.msrb.gmra.mxu0 %v5764_v24  ;;  %6236 = vmatmul.bf16.vlgmr.msrb.gmra.mxu2 %v5764_v24 }
 0x654   :  { %v6172_v12 = vpop.f32.mrf.mxu1 }
 0x65b   :  { %v6198_v14 = vpop.f32.mrf.mxu3 }
 0x65c   :  { %v6174_v11 = vpop.f32.mrf.mxu1 }
 0x663   :  { %v6200_v16 = vpop.f32.mrf.mxu3 }
 0x664   :  { %v6224_v7 = vpop.f32.mrf.mxu1 }
 0x668   :  { %v6159_v19 = vpop.f32.mrf.mxu0 }
 0x669   :  { %v6160_v18 = vadd.f32 %v6159_v19, %v11374_v37 }
 0x66b   :  { %v6250_v20 = vpop.f32.mrf.mxu3  ;;  %v6173_v15 = vadd.f32 %v6172_v12, %v6160_v18 }
 0x66c   :  { %v6226_v21 = vpop.f32.mrf.mxu1 }
 0x66d   :  { %v6254_v22 = vmul.f32 0.5, %v6173_v15 }
 0x66e   :  { %v6185_v4 = vpop.f32.mrf.mxu2 }
 0x66f   :  { %v6186_v53 = vadd.f32 %v6185_v4, %v11404_v54  ;;  %10305 = vtanh.f32 %v6254_v22 }
 0x670   :  { %v6161_v23 = vpop.f32.mrf.mxu0 }
 0x671   :  { %v6199_v32 = vadd.f32 %v6198_v14, %v6186_v53 }
 0x673   :  { %v6252_v45 = vpop.f32.mrf.mxu3  ;;  %v6258_v5 = vmul.f32 0.5, %v6199_v32 }
 0x675   :  { %10307 = vtanh.f32 %v6258_v5  ;;  %v10306_v47 = vpop.eup %10305 }
 0x676   :  { %v6187_v10 = vpop.f32.mrf.mxu2  ;;  %v6256_v35 = vadd.f32 1.0, %v10306_v47 }
 0x678   :  { %v6211_v25 = vpop.f32.mrf.mxu0  ;;  %v6257_v39 = vmul.f32 0.5, %v6256_v35 }
 0x679   :  { %v6212_v28 = vadd.f32 %v6211_v25, %v11487_v42 }
 0x67b   :  { %v10308_v30 = vpop.eup %10307  ;;  %v6225_v37 = vadd.f32 %v6224_v7, %v6212_v28 }
 0x67c   :  { %v6260_v33 = vadd.f32 1.0, %v10308_v30 }
 0x67d   :  { %10309 = vtanh.f32 %v6225_v37 }
 0x67e   :  { %v6237_v36 = vpop.f32.mrf.mxu2  ;;  %v6261_v13 = vmul.f32 0.5, %v6260_v33 }
 0x67f   :  { %v6238_v54 = vadd.f32 %v6237_v36, %v11516_v1 }
 0x680   :  { %v6213_v38 = vpop.f32.mrf.mxu0  ;;  %v6267_v56 = vmul.f32 %v6261_v13, %v15271_v55 }
 0x681   :  { %v6251_v34 = vadd.f32 %v6250_v20, %v6238_v54 }
 0x683   :  { %v10310_v49 = vpop.eup %10309  ;;  %v6263_v40 = vmul.f32 0.5, %v6251_v34 }
 0x684   :  { %v6268_v0 = vmul.f32 %v10310_v49, %v6257_v39 }
 0x685   :  { %10311 = vtanh.f32 %v6263_v40 }
 0x686   :  { %v6269_v42 = vadd.f32 %v6268_v0, %v6267_v56  ;;  %v6239_v41 = vpop.f32.mrf.mxu2 }
 0x688   :  { %10313 = vtanh.f32 %v6269_v42 }
 0x68b   :  { %v10312_v6 = vpop.eup %10311 }
 0x68c   :  { %v6265_v43 = vadd.f32 1.0, %v10312_v6 }
 0x68e   :  { %v10314_v27 = vpop.eup %10313  ;;  %v6266_v44 = vmul.f32 0.5, %v6265_v43 }
 0x690   :  { %v6271_v26 = vmul.f32 %v10314_v27, %v6266_v44 }
 0x692   :  { %9384 = vst [vmem:[%s15345_s4 + $0x38] sm:$0xff] %v6271_v26 }

</bundles_post_ra>
